<compile_context>
chip_gen: v7x
topology: tpu7x:2x2x1
jax: 0.10.0
libtpu: 0.0.40
codegen_flags: <defaults>
</compile_context>

<pallas_src>
import numpy as np
import jax
import jax.numpy as jnp
from jax.experimental import pallas as pl
from jax.experimental.pallas import tpu as pltpu

# ---------------------------------------------------------------- constants
BINS = jnp.array(
    [1, 2, 3, 4, 5, 6, 7, 8, 10, 11, 12, 13, 14, 15, 16, 17, 18, 19, 20,
     21, 22, 23, 24, 25, 30, 35], dtype=jnp.int32)          # 26 bins
N_BUCKETS = BINS.shape[0] + 1                                 # 27

D_TEXT = 768
D_SPAN = 2 * D_TEXT        # 1536 (start ++ end)
D_WIDTH = 50
D_DIST = 300
D_FRAME = 768
D_FEAT = D_SPAN + D_WIDTH  # 1586 span_features width
D_PAIR = 2 * D_FEAT + D_FEAT + D_DIST + 2 * D_FRAME  # 6594
HID = 300

K_PAD = 6656               # 52 * 128 (padded reduction axis)
PAD_K = K_PAD - D_PAIR     # 62 zero lanes appended to pair_rep
H_PAD = 384                # 3 * 128  (padded hidden axis)
TP_MIN = 128               # row-tile / lane-dense output granularity
TP_MAX = 512               # keeps x double-buffer + resident W1 ~< 20 MiB VMEM


def _round_up(n, m):
    return -(-n // m) * m


def _choose_tp(P):
    """Row-tile size: as large as 512 (roofline / step-overhead amortization),
    but capped so a v7x megacore grid keeps G >= 2 tiles whenever P allows."""
    half = _round_up(-(-P // 2), TP_MIN)     # round_up(ceil(P/2), 128)
    return max(TP_MIN, min(TP_MAX, half))


# ---------------------------------------------------------------- kernel
def pair_mlp_kernel(x_ref, w1_ref, b1_ref, w2_ref, b2_ref, out_ref):
    # Linear(6594, 300): bf16 operands, f32 accumulation on the MXU.
    h = jnp.dot(x_ref[...], w1_ref[...], preferred_element_type=jnp.float32)
    # + bias, ReLU (Dropout is identity in eval mode).
    h = jnp.maximum(h + b1_ref[...], 0.0)
    # Linear(300, 1) + bias, emitted lane-dense: contract the hidden axis of
    # both operands -> (1, TP) row instead of a (TP, 1) masked-store column.
    # Both operands bf16 so the epilogue shares the bf16 MXU path.
    s = jax.lax.dot_general(
        w2_ref[...], h.astype(jnp.bfloat16),
        dimension_numbers=(((1,), (1,)), ((), ())),
        preferred_element_type=jnp.float32) + b2_ref[0, 0]          # (1, TP)
    # Fused output block: row 0 = sigmoid, row 1 = raw score.
    out_ref[0] = jnp.concatenate([jax.nn.sigmoid(s), s], axis=0)    # (2, TP)


def pair_mlp(pair_rep, params):
    """pair_rep: (P, K_PAD) bf16 (columns >= D_PAIR are zero).
    Returns (sigmoid, raw_score), each (P, 1) f32."""
    P = pair_rep.shape[0]
    assert pair_rep.shape[1] == K_PAD and pair_rep.dtype == jnp.bfloat16
    tp = _choose_tp(P)
    G = -(-P // tp)
    P_pad = G * tp
    x = pair_rep if P_pad == P else jnp.pad(pair_rep, ((0, P_pad - P), (0, 0)))

    out = pl.pallas_call(
        pair_mlp_kernel,
        out_shape=jax.ShapeDtypeStruct((G, 2, tp), jnp.float32),
        grid_spec=pltpu.PrefetchScalarGridSpec(
            num_scalar_prefetch=0,
            grid=(G,),                                             # P tiles only
            in_specs=[
                # TODO(synk): sweep pipeline_mode=pl.Buffered(3) here on v6e.
                pl.BlockSpec((tp, K_PAD), lambda p: (p, 0)),       # x row tile (bf16)
                # Resident weights: constant block index -> single buffer.
                pl.BlockSpec((K_PAD, H_PAD), lambda p: (0, 0),
                             pipeline_mode=pl.Buffered(1)),        # W1 (bf16)
                pl.BlockSpec((1, H_PAD), lambda p: (0, 0),
                             pipeline_mode=pl.Buffered(1)),        # b1 (f32, zero-padded)
                pl.BlockSpec((1, H_PAD), lambda p: (0, 0),
                             pipeline_mode=pl.Buffered(1)),        # W2 row (bf16, zero-padded)
                pl.BlockSpec(memory_space=pltpu.MemorySpace.SMEM), # b2 scalar
            ],
            out_specs=pl.BlockSpec((1, 2, tp), lambda p: (p, 0, 0)),
        ),
        compiler_params=pltpu.CompilerParams(
            dimension_semantics=("parallel",),      # megacore sharding on v7x
            vmem_limit_bytes=32 << 20),
    )(x, params["w1_pad"], params["b1_pad"], params["w2_pad"], params["b2_pad"])

    sig = out[:, 0, :].reshape(P_pad, 1)[:P]
    score = out[:, 1, :].reshape(P_pad, 1)[:P]
    return sig, score


def mlp_ref(pair_rep, params):
    # Pure-JAX reference mirroring the kernel's bf16 rounding + f32 accumulation.
    x = pair_rep.astype(jnp.float32)
    w1 = params["w1_pad"].astype(jnp.float32)
    h = jnp.maximum(x @ w1 + params["b1_pad"], 0.0)
    hb = h.astype(jnp.bfloat16).astype(jnp.float32)
    w2 = params["w2_pad"].astype(jnp.float32)
    s = (hb * w2).sum(axis=1, keepdims=True) + params["b2_pad"][0, 0]
    return jax.nn.sigmoid(s), s


# ---------------------------------------------------------------- glue (plain JAX)
def bucketize(vals):
    """Torch stoi: count of bins b with value >= b."""
    v = jnp.asarray(vals, jnp.int32)
    return jnp.sum(v[:, None] >= BINS[None, :], axis=1).astype(jnp.int32)


def init_params(key):
    ks = jax.random.split(key, 6)
    w1 = jax.random.normal(ks[2], (D_PAIR, HID), jnp.float32) / jnp.sqrt(D_PAIR)
    b1 = 0.01 * jax.random.normal(ks[3], (HID,), jnp.float32)
    w2 = jax.random.normal(ks[4], (HID, 1), jnp.float32) / jnp.sqrt(HID)
    b2 = 0.01 * jax.random.normal(ks[5], (1,), jnp.float32)
    params = {
        "width_embed": 0.02 * jax.random.normal(ks[0], (N_BUCKETS, D_WIDTH), jnp.float32),
        "dist_embed":  0.02 * jax.random.normal(ks[1], (N_BUCKETS, D_DIST), jnp.float32),
        "w1": w1, "b1": b1, "w2": w2, "b2": b2,
    }
    # Pad + cast ONCE at init (hoisted out of the per-call path).
    # NOTE: padded rows/cols of w1/b1/w2 MUST stay exactly zero; the kernel's
    # padded K lanes / H columns rely on it.
    params["w1_pad"] = jnp.pad(w1, ((0, K_PAD - D_PAIR), (0, H_PAD - HID))).astype(jnp.bfloat16)
    params["b1_pad"] = jnp.pad(b1, (0, H_PAD - HID)).reshape(1, H_PAD)
    params["w2_pad"] = jnp.pad(w2[:, 0], (0, H_PAD - HID)).astype(jnp.bfloat16).reshape(1, H_PAD)
    params["b2_pad"] = b2.astype(jnp.float32).reshape(1, 1)
    return params


def resolution_forward(params, sample, mlp_fn=pair_mlp):
    spans = sample["spans"]
    rsv = sample["recipe_span_vectors"].astype(jnp.float32)   # (T, 768)
    rcv = sample["recipe_clip_vectors"].astype(jnp.float32)   # (steps, 768)

    # Vectorized span / frame gathering (no per-span Python loop of XLA ops).
    idx = jnp.asarray([sp["index"] for sp in spans], jnp.int32)
    i1 = jnp.asarray([sp["i1"] for sp in spans], jnp.int32)
    i2 = jnp.asarray([sp["i2"] for sp in spans], jnp.int32)
    step_id = jnp.asarray([sp["step_id"] for sp in spans], jnp.int32)
    n_words = [sp["n_words"] for sp in spans]

    valid = (idx != 0).astype(jnp.float32)[:, None]
    span_tensor = jnp.concatenate([rsv[i1], rsv[i2]], axis=1) * valid   # (S, 1536)
    frame_tensor = rcv[step_id] * valid                                  # (S, 768)

    # Width embedding (Dropout = identity in eval).
    widthes = params["width_embed"][bucketize(n_words)]                  # (S, 50)
    span_features = jnp.concatenate([span_tensor, widthes], axis=1)      # (S, 1586)

    anaphor_ids, antecedent_ids, step_distances, labels = zip(*sample["recipe_pairs"])
    resolution_labels = jnp.asarray(labels, jnp.float32)

    # --- Distance module: stoi (bucketize) -> Embedding -> Dropout(identity) ---
    distances = params["dist_embed"][bucketize(list(step_distances))]    # (P, 300)

    ai = jnp.asarray(anaphor_ids, jnp.int32)
    bi = jnp.asarray(antecedent_ids, jnp.int32)
    i_text = span_features[ai]
    j_text = span_features[bi]
    P = int(ai.shape[0])

    # Build pair_rep directly in bf16 WITH the K-padding appended, so XLA never
    # materializes a separate f32 concat followed by a bf16 cast+pad pass.
    bf = jnp.bfloat16
    pair_rep = jnp.concatenate([
        i_text.astype(bf), j_text.astype(bf),            # ij_span  (P, 3172)
        (i_text * j_text).astype(bf),                    # ij_cos   (P, 1586)
        distances.astype(bf),                            # Distance (P, 300)
        frame_tensor[ai].astype(bf),                     # ij_img   (P, 1536)
        frame_tensor[bi].astype(bf),
        jnp.zeros((P, PAD_K), bf),                       # K padding (P, 62)
    ], axis=1)
    assert pair_rep.shape[1] == K_PAD, "There is a problem!!!"

    sig, _ = mlp_fn(pair_rep, params)
    assert sig.shape[0] == P, "There is a problem!!!"

    lens = sample["antecedent_lengths"]
    split_points = np.cumsum(lens)[:-1].tolist()
    resolution_sigmoids = jnp.split(sig, split_points, axis=0)
    resolution_probabilities = jnp.concatenate(resolution_sigmoids, axis=0)
    return resolution_sigmoids, resolution_probabilities, resolution_labels


# ---------------------------------------------------------------- demo
if __name__ == "__main__":
    key = jax.random.PRNGKey(0)
    pkey, dkey1, dkey2 = jax.random.split(key, 3)
    params = init_params(pkey)

    # Small synthetic "sample": 5 spans (span 0 is the dummy), 9 pairs.
    T, STEPS = 20, 4
    recipe_span_vectors = 0.1 * jax.random.normal(dkey1, (T, D_TEXT), jnp.float32)
    recipe_clip_vectors = 0.1 * jax.random.normal(dkey2, (STEPS, D_FRAME), jnp.float32)

    spans = [
        {"index": 0, "i1": 0, "i2": 0, "step_id": 0, "n_words": 1},
        {"index": 1, "i1": 1, "i2": 3, "step_id": 0, "n_words": 2},
        {"index": 2, "i1": 5, "i2": 6, "step_id": 1, "n_words": 3},
        {"index": 3, "i1": 9, "i2": 12, "step_id": 2, "n_words": 9},
        {"index": 4, "i1": 14, "i2": 19, "step_id": 3, "n_words": 27},
    ]
    # (anaphor_id, antecedent_id, step_distance, label)
    recipe_pairs = [
        (2, 0, 0, 0.0), (2, 1, 1, 1.0),
        (3, 0, 0, 0.0), (3, 1, 2, 0.0), (3, 2, 1, 1.0),
        (4, 0, 0, 0.0), (4, 1, 3, 0.0), (4, 2, 2, 0.0), (4, 3, 1, 1.0),
    ]
    sample = {
        "spans": spans,
        "recipe_span_vectors": recipe_span_vectors,
        "recipe_clip_vectors": recipe_clip_vectors,
        "recipe_pairs": recipe_pairs,
        "antecedent_lengths": [2, 3, 4],
    }

    sigmoids, probabilities, labels = resolution_forward(params, sample, mlp_fn=pair_mlp)
    probabilities = jax.block_until_ready(probabilities)

    # Pure-JAX reference check of the Pallas MLP path (bf16 inputs => looser tol).
    _, probs_ref, _ = resolution_forward(params, sample, mlp_fn=mlp_ref)
    np.testing.assert_allclose(np.asarray(probabilities), np.asarray(probs_ref),
                               rtol=1e-2, atol=1e-2)
    assert len(sigmoids) == 3
    assert probabilities.shape == (len(recipe_pairs), 1)
    assert labels.shape == (len(recipe_pairs),)

    # --- Multi-tile / megacore path test: P > TP so the grid has G >= 2 tiles ---
    P_big = 300                                   # -> TP=256, G=2, P_pad=512
    kb = jax.random.PRNGKey(7)
    xb = (0.05 * jax.random.normal(kb, (P_big, D_PAIR), jnp.float32)).astype(jnp.bfloat16)
    xb = jnp.concatenate([xb, jnp.zeros((P_big, PAD_K), jnp.bfloat16)], axis=1)
    sig_big, score_big = pair_mlp(xb, params)
    sig_big = jax.block_until_ready(sig_big)
    sig_ref_big, score_ref_big = mlp_ref(xb, params)
    np.testing.assert_allclose(np.asarray(sig_big), np.asarray(sig_ref_big),
                               rtol=1e-2, atol=1e-2)
    np.testing.assert_allclose(np.asarray(score_big), np.asarray(score_ref_big),
                               rtol=1e-2, atol=2e-2)
    assert sig_big.shape == (P_big, 1)

    print("KERNEL_OK")
</pallas_src>

<mosaic_0001>
module attributes {stable_mosaic.version = 11 : i64} {
  func.func @pair_mlp_kernel(%arg0: i32, %arg1: memref<128x6656xbf16, #tpu.memory_space<vmem>>, %arg2: memref<6656x384xbf16, #tpu.memory_space<vmem>>, %arg3: memref<1x384xf32, #tpu.memory_space<vmem>>, %arg4: memref<1x384xbf16, #tpu.memory_space<vmem>>, %arg5: memref<1x1xf32, #tpu.memory_space<smem>>, %arg6: memref<1x2x128xf32, #tpu.memory_space<vmem>>) attributes {dimension_semantics = [#tpu.dimension_semantics<parallel>], iteration_bounds = array<i64: 1>, scalar_prefetch = 0 : i64, scratch_operands = 0 : i64, tpu.core_type = #tpu.core_type<tc>, window_params = [{transform_indices = @transform_0, window_bounds = array<i64: 128, 6656>}, {pipeline_mode = #tpu.pipeline_mode<synchronous>, transform_indices = @transform_1, window_bounds = array<i64: 6656, 384>}, {pipeline_mode = #tpu.pipeline_mode<synchronous>, transform_indices = @transform_2, window_bounds = array<i64: 1, 384>}, {pipeline_mode = #tpu.pipeline_mode<synchronous>, transform_indices = @transform_3, window_bounds = array<i64: 1, 384>}, {transform_indices = @transform_4, window_bounds = array<i64: 1, 1>}, {transform_indices = @transform_5, window_bounds = array<i64: 1, 2, 128>}]} {
    %c0 = arith.constant 0 : index
    %c0_0 = arith.constant 0 : index
    %0 = vector.load %arg1[%c0, %c0_0] : memref<128x6656xbf16, #tpu.memory_space<vmem>>, vector<128x6656xbf16>
    %c0_1 = arith.constant 0 : index
    %c0_2 = arith.constant 0 : index
    %1 = vector.load %arg2[%c0_1, %c0_2] : memref<6656x384xbf16, #tpu.memory_space<vmem>>, vector<6656x384xbf16>
    %cst = arith.constant dense<0.000000e+00> : vector<128x384xf32>
    %2 = tpu.matmul %0, %1, %cst {dimension_numbers = #tpu.dot_dimension_numbers<[1], [0], [0], [1], [0, 0, 1, 1], [], []>} : vector<128x6656xbf16>, vector<6656x384xbf16>, vector<128x384xf32> -> vector<128x384xf32>
    %c0_3 = arith.constant 0 : index
    %c0_4 = arith.constant 0 : index
    %3 = vector.load %arg3[%c0_3, %c0_4] : memref<1x384xf32, #tpu.memory_space<vmem>>, vector<1x384xf32>
    %4 = vector.broadcast %3 : vector<1x384xf32> to vector<128x384xf32>
    %5 = arith.addf %2, %4 : vector<128x384xf32>
    %cst_5 = arith.constant 0.000000e+00 : f32
    %6 = vector.broadcast %cst_5 : f32 to vector<128x384xf32>
    %7 = arith.maximumf %5, %6 : vector<128x384xf32>
    %c0_6 = arith.constant 0 : index
    %c0_7 = arith.constant 0 : index
    %8 = vector.load %arg4[%c0_6, %c0_7] : memref<1x384xbf16, #tpu.memory_space<vmem>>, vector<1x384xbf16>
    %9 = arith.truncf %7 : vector<128x384xf32> to vector<128x384xbf16>
    %cst_8 = arith.constant dense<0.000000e+00> : vector<1x128xf32>
    %10 = tpu.matmul %8, %9, %cst_8 {dimension_numbers = #tpu.dot_dimension_numbers<[1], [1], [0], [0], [0, 0, 1, 0], [], []>} : vector<1x384xbf16>, vector<128x384xbf16>, vector<1x128xf32> -> vector<1x128xf32>
    %c0_9 = arith.constant 0 : index
    %c0_10 = arith.constant 0 : index
    %11 = memref.load %arg5[%c0_9, %c0_10] : memref<1x1xf32, #tpu.memory_space<smem>>
    %12 = vector.broadcast %11 : f32 to vector<1x128xf32>
    %13 = arith.addf %10, %12 : vector<1x128xf32>
    %14 = arith.negf %13 : vector<1x128xf32>
    %15 = math.exp %14 : vector<1x128xf32>
    %cst_11 = arith.constant 1.000000e+00 : f32
    %16 = vector.broadcast %cst_11 : f32 to vector<1x128xf32>
    %17 = arith.addf %16, %15 : vector<1x128xf32>
    %18 = arith.divf %16, %17 : vector<1x128xf32>
    %19 = tpu.concatenate %18, %13 in 0 : vector<1x128xf32>, vector<1x128xf32> -> vector<2x128xf32>
    %c0_12 = arith.constant 0 : index
    %c0_13 = arith.constant 0 : index
    %c0_14 = arith.constant 0 : index
    %20 = vector.load %arg6[%c0_12, %c0_13, %c0_14] : memref<1x2x128xf32, #tpu.memory_space<vmem>>, vector<1x2x128xf32>
    %21 = vector.shape_cast %20 : vector<1x2x128xf32> to vector<2x128xf32>
    %22 = vector.shape_cast %19 : vector<2x128xf32> to vector<1x2x128xf32>
    tpu.vector_store %arg6[%c0_12, %c0_13, %c0_14], %22 {strides = array<i32>} : memref<1x2x128xf32, #tpu.memory_space<vmem>>, vector<1x2x128xf32>,
    return
  }
  func.func @transform_0(%arg0: i32) -> (i32, i32) {
    %c0_i32 = arith.constant 0 : i32
    %c0_i32_0 = arith.constant 0 : i32
    return %arg0, %c0_i32 : i32, i32
  }
  func.func @transform_1(%arg0: i32) -> (i32, i32) {
    %c0_i32 = arith.constant 0 : i32
    %c0_i32_0 = arith.constant 0 : i32
    %c0_i32_1 = arith.constant 0 : i32
    return %c0_i32, %c0_i32_0 : i32, i32
  }
  func.func @transform_2(%arg0: i32) -> (i32, i32) {
    %c0_i32 = arith.constant 0 : i32
    %c0_i32_0 = arith.constant 0 : i32
    %c0_i32_1 = arith.constant 0 : i32
    return %c0_i32, %c0_i32_0 : i32, i32
  }
  func.func @transform_3(%arg0: i32) -> (i32, i32) {
    %c0_i32 = arith.constant 0 : i32
    %c0_i32_0 = arith.constant 0 : i32
    %c0_i32_1 = arith.constant 0 : i32
    return %c0_i32, %c0_i32_0 : i32, i32
  }
  func.func @transform_4(%arg0: i32) -> (i32, i32) {
    %c0_i32 = arith.constant 0 : i32
    %c0_i32_0 = arith.constant 0 : i32
    %c0_i32_1 = arith.constant 0 : i32
    return %c0_i32, %c0_i32_0 : i32, i32
  }
  func.func @transform_5(%arg0: i32) -> (i32, i32, i32) {
    %c0_i32 = arith.constant 0 : i32
    %c0_i32_0 = arith.constant 0 : i32
    %c0_i32_1 = arith.constant 0 : i32
    return %arg0, %c0_i32, %c0_i32_0 : i32, i32, i32
  }
}

</mosaic_0001>

<bundles_post_ra>
// kernel: tpu_custom_call.1
= control target key start
LH: loop header
LB: loop body
LE: loop exit
PB: predicated region body
PF: predicated region fallthrough
CT: control target
= control target key end

     0   :  { %11 = vsyncpa [#allocation4], 0  ;;  %s26201_s0 = inlined_call_operand.hbm [shape: bf16[128,6656], index: 0, kind: input, shape index: {}]   ;;  %s26202_s1 = inlined_call_operand.hbm [shape: bf16[6656,384], index: 1, kind: input, shape index: {}]   ;;  %s26203_s2 = inlined_call_operand.hbm [shape: f32[1,384], index: 2, kind: input, shape index: {}]   ;;  %s26204_s3 = inlined_call_operand.hbm [shape: bf16[1,384], index: 3, kind: input, shape index: {}]   ;;  %s26205_s4 = inlined_call_operand.<no memory space> [shape: f32[1,1], index: 4, kind: input, shape index: {}]   ;;  %s26206_s5 = inlined_call_operand.hbm [shape: f32[1,2,128], index: 5, kind: output, shape index: {}]  }
   0x1   :  { %12 = vsyncpa [#allocation7], 0 }
   0x2   :  { %13 = vsyncpa [#allocation10], 0 }
   0x3   :  { %14 = vsyncpa [#allocation5], 0  ;;  %s23194_s18 = smov [#allocation6]   ;;  %s23076_s22 = scalar_lea.hbm %s26202_s1, 159744 }
   0x4   :  { %s32_s19 = sshll.u32 %s23194_s18, 4  ;;  %p23077_p0 = scmp.ne.s32.totalorder %s26202_s1, %s23076_s22  ;;  %s33_s19 = int_to_ptr.vmem [resolvable:$true] %s32_s19 }
   0x5   :  { %p23080_p1 = scmp.lt.u32.totalorder %s23076_s22, %s26202_s1 }
   0x7   :  { %p23082_p2 = pnand %p23080_p1, %p23077_p0 }
   0x9   :  { %23085 = shalt.err (!%p23082_p2)
}
   0xa   :  { %s23086_s27 = scalar_lea.vmem %s33_s19, 159744  ;;  %p23091_p4 = scmp.lt.s32.totalorder %s33_s19, %s33_s19 }
   0xb   :  { %p23087_p3 = scmp.ne.s32.totalorder %s33_s19, %s23086_s27  ;;  %p23092_p5 = scmp.lt.s32.totalorder %s23086_s27, %s23086_s27 }
   0xd   :  { %p23093_p6 = por %p23092_p5, %p23091_p4 }
   0xf   :  { %p23094_p7 = pnand %p23093_p6, %p23087_p3 }
  0x11   :  { %23097 = shalt.err (!%p23094_p7)
}
  0x12   :  { %s23195_s28 = smov 192   ;;  %s23196_s29 = smov 12  }
  0x13   :  { %38 = dma.hbm_to_vmem [thread:$0]  %s26202_s1, 159744, %s33_s19, [#allocation7], %s23195_s28, %s23195_s28, %s23196_s29  }
  0x14   :  { %s23197_s7 = smov [#allocation3]   ;;  %s23098_s11 = scalar_lea.hbm %s26201_s0, 53248 }
  0x15   :  { %s20_s8 = sshll.u32 %s23197_s7, 4  ;;  %p23099_p8 = scmp.ne.s32.totalorder %s26201_s0, %s23098_s11  ;;  %s21_s8 = int_to_ptr.vmem [resolvable:$true] %s20_s8 }
  0x16   :  { %p23102_p9 = scmp.lt.u32.totalorder %s23098_s11, %s26201_s0 }
  0x18   :  { %p23104_p10 = pnand %p23102_p9, %p23099_p8 }
  0x1a   :  { %23107 = shalt.err (!%p23104_p10)
}
  0x1b   :  { %s23108_s16 = scalar_lea.vmem %s21_s8, 53248  ;;  %p23113_p12 = scmp.lt.s32.totalorder %s21_s8, %s21_s8 }
  0x1c   :  { %p23109_p11 = scmp.ne.s32.totalorder %s21_s8, %s23108_s16  ;;  %p23114_p13 = scmp.lt.s32.totalorder %s23108_s16, %s23108_s16 }
  0x1e   :  { %p23115_p0 = por %p23114_p13, %p23113_p12 }
  0x20   :  { %p23116_p1 = pnand %p23115_p0, %p23109_p11 }
  0x22   :  { %23119 = shalt.err (!%p23116_p1)
}
  0x23   :  { %s23198_s1 = smov 3328   ;;  %s23199_s17 = smov 208  }
  0x24   :  { %26 = dma.hbm_to_vmem [thread:$0]  %s26201_s0, 53248, %s21_s8, [#allocation4], %s23198_s1, %s23198_s1, %s23199_s17  }
  0x25   :  { %s23200_s20 = smov [#allocation8]   ;;  %s23201_s22 = smov [#allocation9]  }
  0x26   :  { %s45_s21 = sshll.u32 %s23200_s20, 4  ;;  %s55_s23 = sshll.u32 %s23201_s22, 4  ;;  %s46_s21 = int_to_ptr.vmem [resolvable:$true] %s45_s21  ;;  %s56_s23 = int_to_ptr.vmem [resolvable:$true] %s55_s23 }
  0x27   :  { %s23120_s26 = scalar_lea.hbm %s26203_s2, 48 }
  0x28   :  { %p23121_p2 = scmp.ne.s32.totalorder %s26203_s2, %s23120_s26  ;;  %p23124_p3 = scmp.lt.u32.totalorder %s23120_s26, %s26203_s2 }
  0x2a   :  { %p23126_p4 = pnand %p23124_p3, %p23121_p2 }
  0x2c   :  { %23129 = shalt.err (!%p23126_p4)
}
  0x2d   :  { %s23130_s0 = scalar_lea.vmem %s46_s21, 48  ;;  %s23134_s6 = scalar_lea.vmem %s46_s21, 64 }
  0x2e   :  { %p23131_p5 = scmp.ne.s32.totalorder %s46_s21, %s23130_s0  ;;  %p23135_p6 = scmp.lt.s32.totalorder %s46_s21, %s46_s21 }
  0x2f   :  { %p23136_p7 = scmp.lt.s32.totalorder %s23134_s6, %s23130_s0 }
  0x31   :  { %p23137_p8 = por %p23136_p7, %p23135_p6 }
  0x33   :  { %p23138_p9 = pnand %p23137_p8, %p23131_p5 }
  0x35   :  { %23141 = shalt.err (!%p23138_p9)
}
  0x36   :  { %48 = dma.hbm_to_vmem [thread:$0]  %s26203_s2, 48, %s46_s21, [#allocation7]  }
  0x37   :  { %s23142_s11 = scalar_lea.hbm %s26204_s3, 48 }
  0x38   :  { %p23143_p10 = scmp.ne.s32.totalorder %s26204_s3, %s23142_s11  ;;  %p23146_p11 = scmp.lt.u32.totalorder %s23142_s11, %s26204_s3 }
  0x3a   :  { %p23148_p12 = pnand %p23146_p11, %p23143_p10 }
  0x3c   :  { %23151 = shalt.err (!%p23148_p12)
}
  0x3d   :  { %s23152_s16 = scalar_lea.vmem %s56_s23, 48  ;;  %s23156_s1 = scalar_lea.vmem %s56_s23, 64 }
  0x3e   :  { %p23153_p13 = scmp.ne.s32.totalorder %s56_s23, %s23152_s16  ;;  %p23157_p0 = scmp.lt.s32.totalorder %s56_s23, %s56_s23 }
  0x3f   :  { %p23158_p1 = scmp.lt.s32.totalorder %s23156_s1, %s23152_s16 }
  0x41   :  { %p23159_p2 = por %p23158_p1, %p23157_p0 }
  0x43   :  { %p23160_p3 = pnand %p23159_p2, %p23153_p13 }
  0x45   :  { %23163 = shalt.err (!%p23160_p3)
}
  0x46   :  { %58 = dma.hbm_to_vmem [thread:$0]  %s26204_s3, 48, %s56_s23, [#allocation10]  }
  0x47   :  { %23186 = dma.done.wait [#allocation4], 53248  }
  0x48   :  { %23187 = vsyncadd [#allocation4], 4294914048 }
  0x49   :  { %23188 = dma.done.wait [#allocation7], 159792  }
  0x4a   :  { %23189 = vsyncadd [#allocation7], 4294807504 }
  0x4b   :  { %23190 = dma.done.wait [#allocation10], 48  }
  0x4c   :  { %23191 = vsyncadd [#allocation10], 4294967248  ;;  %v20783_v0 = vld [vmem:[#allocation6 + $0x4] ss:$12 sps:$4 sm:$0xff]   ;;  %v20785_v1 = vld [vmem:[#allocation6 + $0xc8] ss:$12 sps:$4 sm:$0xff]  }
  0x4d   :  { %10907 = vmatprep.subr.bf16.mxu0 %v20783_v0  ;;  %v20786_v2 = vld [vmem:[#allocation6] ss:$12 sps:$4 sm:$0xff]   ;;  %18244 = vmatprep.subr.bf16.mxu1 %v20785_v1  ;;  %v20787_v3 = vld [vmem:[#allocation6 + $0x8] ss:$12 sps:$4 sm:$0xff]   ;;  %v20791_v6 = vld [vmem:[#allocation6 + $0x18] ss:$12 sps:$4 sm:$0xff]  }
  0x4e   :  { %10908 = vmatpush1.bf16.msra.mxu0 %v20786_v2  ;;  %v20788_v4 = vld [vmem:[#allocation6 + $0x1c] ss:$12 sps:$4 sm:$0xff]   ;;  %18245 = vmatpush3.bf16.msra.mxu1 %v20787_v3  ;;  %v20790_v5 = vld [vmem:[#allocation6 + $0xe0] ss:$12 sps:$4 sm:$0xff]   ;;  %v20795_v9 = vld [vmem:[#allocation6 + $0xf8] ss:$12 sps:$4 sm:$0xff]  }
  0x4f   :  { %10909 = vmatprep.subr.bf16.mxu0 %v20788_v4  ;;  %v20792_v7 = vld [vmem:[#allocation6 + $0x20] ss:$12 sps:$4 sm:$0xff]   ;;  %18246 = vmatprep.subr.bf16.mxu1 %v20790_v5  ;;  %v20796_v10 = vld [vmem:[#allocation6 + $0x30] ss:$12 sps:$4 sm:$0xff]   ;;  %v20797_v11 = vld [vmem:[#allocation6 + $0x38] ss:$12 sps:$4 sm:$0xff]  }
  0x50   :  { %v20793_v8 = vld [vmem:[#allocation6 + $0x34] ss:$12 sps:$4 sm:$0xff]   ;;  %v20798_v12 = vld [vmem:[#allocation6 + $0x4c] ss:$12 sps:$4 sm:$0xff]   ;;  %v20800_v13 = vld [vmem:[#allocation6 + $0x110] ss:$12 sps:$4 sm:$0xff]  }
  0x51   :  { %v20801_v14 = vld [vmem:[#allocation6 + $0x48] ss:$12 sps:$4 sm:$0xff]   ;;  %v20802_v15 = vld [vmem:[#allocation6 + $0x50] ss:$12 sps:$4 sm:$0xff]   ;;  %v20806_v18 = vld [vmem:[#allocation6 + $0x60] ss:$12 sps:$4 sm:$0xff]  }
  0x52   :  { %10910 = vmatpush1.bf16.msra.mxu0 %v20791_v6  ;;  %18247 = vmatpush3.bf16.msra.mxu1 %v20792_v7  ;;  %v20803_v16 = vld [vmem:[#allocation6 + $0x64] ss:$12 sps:$4 sm:$0xff]   ;;  %v20805_v17 = vld [vmem:[#allocation6 + $0x128] ss:$12 sps:$4 sm:$0xff]   ;;  %v20810_v21 = vld [vmem:[#allocation6 + $0x140] ss:$12 sps:$4 sm:$0xff]  }
  0x53   :  { %10911 = vmatprep.subr.bf16.mxu0 %v20793_v8  ;;  %18248 = vmatprep.subr.bf16.mxu1 %v20795_v9  ;;  %v20807_v19 = vld [vmem:[#allocation6 + $0x68] ss:$12 sps:$4 sm:$0xff]   ;;  %v20811_v22 = vld [vmem:[#allocation6 + $0x78] ss:$12 sps:$4 sm:$0xff]   ;;  %v20812_v23 = vld [vmem:[#allocation6 + $0x80] ss:$12 sps:$4 sm:$0xff]  }
  0x54   :  { %v20808_v20 = vld [vmem:[#allocation6 + $0x7c] ss:$12 sps:$4 sm:$0xff]   ;;  %v20813_v24 = vld [vmem:[#allocation6 + $0x94] ss:$12 sps:$4 sm:$0xff]   ;;  %v20815_v25 = vld [vmem:[#allocation6 + $0x158] ss:$12 sps:$4 sm:$0xff]  }
  0x55   :  { %v20816_v26 = vld [vmem:[#allocation6 + $0x90] ss:$12 sps:$4 sm:$0xff]   ;;  %v20817_v27 = vld [vmem:[#allocation6 + $0x98] ss:$12 sps:$4 sm:$0xff]   ;;  %v20821_v30 = vld [vmem:[#allocation6 + $0xa8] ss:$12 sps:$4 sm:$0xff]  }
  0x56   :  { %10912 = vmatpush1.bf16.msra.mxu0 %v20796_v10  ;;  %18249 = vmatpush3.bf16.msra.mxu1 %v20797_v11  ;;  %v20818_v28 = vld [vmem:[#allocation6 + $0xac] ss:$12 sps:$4 sm:$0xff]   ;;  %v20820_v29 = vld [vmem:[#allocation6 + $0x170] ss:$12 sps:$4 sm:$0xff]   ;;  %v20825_v31 = vld [vmem:[#allocation3 + $0x4] ss:$208 sps:$4 sm:$0xff]  }
  0x57   :  { %10913 = vmatprep.subr.bf16.mxu0 %v20798_v12  ;;  %18250 = vmatprep.subr.bf16.mxu1 %v20800_v13  ;;  %v20822_v32 = vld [vmem:[#allocation6 + $0xb0] ss:$12 sps:$4 sm:$0xff]   ;;  %v20828_v35 = vld [vmem:[#allocation6 + $0xc0] ss:$12 sps:$4 sm:$0xff]   ;;  %v23286_v37 = vld [vmem:[#allocation3 + $0x1a4] ss:$208 sps:$4 sm:$0xff]  }
  0x58   :  { %v20826_v33 = vld [vmem:[#allocation6 + $0xc4] ss:$12 sps:$4 sm:$0xff]   ;;  %13877 = vmatprep.mubr.bf16.mxu1 %v20825_v31  ;;  %10939 = vmatprep.mubr.bf16.mxu0 %v20825_v31  ;;  %v20829_v36 = vld [vmem:[#allocation6 + $0xdc] ss:$12 sps:$4 sm:$0xff]   ;;  %v20834_v39 = vld [vmem:[#allocation6 + $0xf4] ss:$12 sps:$4 sm:$0xff]  }
  0x59   :  { %v23284_v34 = vld [vmem:[#allocation3] ss:$208 sps:$4 sm:$0xff]   ;;  %v20831_v38 = vld [vmem:[#allocation6 + $0xd8] ss:$12 sps:$4 sm:$0xff]   ;;  %v20840_v44 = vld [vmem:[#allocation6 + $0x108] ss:$12 sps:$4 sm:$0xff]  }
  0x5a   :  { %10914 = vmatpush1.bf16.msra.mxu0 %v20801_v14  ;;  %18251 = vmatpush3.bf16.msra.mxu1 %v20802_v15  ;;  %v23290_v40 = vld [vmem:[#allocation3 + $0x1a0] ss:$208 sps:$4 sm:$0xff]   ;;  %v20838_v42 = vld [vmem:[#allocation6 + $0x10c] ss:$12 sps:$4 sm:$0xff]   ;;  %v23292_v43 = vld [vmem:[#allocation3 + $0x344] ss:$208 sps:$4 sm:$0xff]  }
  0x5b   :  { %10915 = vmatprep.subr.bf16.mxu0 %v20803_v16  ;;  %18252 = vmatprep.subr.bf16.mxu1 %v20805_v17  ;;  %v20837_v41 = vld [vmem:[#allocation6 + $0xf0] ss:$12 sps:$4 sm:$0xff]   ;;  %v20846_v47 = vld [vmem:[#allocation6 + $0x120] ss:$12 sps:$4 sm:$0xff]   ;;  %v20865_v48 = vld [vmem:[#allocation6 + $0x248] ss:$12 sps:$4 sm:$0xff]  }
  0x5c   :  { %v20843_v45 = vld [vmem:[#allocation6 + $0x124] ss:$12 sps:$4 sm:$0xff]   ;;  %v20866_v49 = vld [vmem:[#allocation6 + $0x188] ss:$12 sps:$4 sm:$0xff]   ;;  %v20870_v52 = vld [vmem:[#allocation6 + $0x260] ss:$12 sps:$4 sm:$0xff]  }
  0x5d   :  { %v23296_v46 = vld [vmem:[#allocation3 + $0x340] ss:$208 sps:$4 sm:$0xff]   ;;  %v20847_v50 = vld [vmem:[#allocation6 + $0x13c] ss:$12 sps:$4 sm:$0xff]   ;;  %v23298_v51 = vld [vmem:[#allocation3 + $0x4e4] ss:$208 sps:$4 sm:$0xff]  }
  0x5e   :  { %10916 = vmatpush1.bf16.msra.mxu0 %v20806_v18  ;;  %18253 = vmatpush3.bf16.msra.mxu1 %v20807_v19  ;;  %v20871_v53 = vld [vmem:[#allocation6 + $0x1a0] ss:$12 sps:$4 sm:$0xff]   ;;  %v20849_v54 = vld [vmem:[#allocation6 + $0x138] ss:$12 sps:$4 sm:$0xff]   ;;  %v20855_v57 = vld [vmem:[#allocation6 + $0x150] ss:$12 sps:$4 sm:$0xff]  }
  0x5f   :  { %10917 = vmatprep.subr.bf16.mxu0 %v20808_v20  ;;  %18254 = vmatprep.subr.bf16.mxu1 %v20810_v21  ;;  %v20852_v55 = vld [vmem:[#allocation6 + $0x154] ss:$12 sps:$4 sm:$0xff]   ;;  %v20878_v58 = vld [vmem:[#allocation6 + $0x278] ss:$12 sps:$4 sm:$0xff]   ;;  %v20883_v62 = vld [vmem:[#allocation6 + $0x290] ss:$12 sps:$4 sm:$0xff]  }
  0x60   :  { %v23302_v56 = vld [vmem:[#allocation3 + $0x4e0] ss:$208 sps:$4 sm:$0xff]   ;;  %v20879_v59 = vld [vmem:[#allocation6 + $0x1b8] ss:$12 sps:$4 sm:$0xff]   ;;  %v20858_v0 = vld [vmem:[#allocation6 + $0x168] ss:$12 sps:$4 sm:$0xff]  }
  0x61   :  { %v20856_v60 = vld [vmem:[#allocation6 + $0x16c] ss:$12 sps:$4 sm:$0xff]   ;;  %v23304_v61 = vld [vmem:[#allocation3 + $0x684] ss:$208 sps:$4 sm:$0xff]   ;;  %v20884_v63 = vld [vmem:[#allocation6 + $0x1d0] ss:$12 sps:$4 sm:$0xff]  }
  0x62   :  { %10918 = vmatpush1.bf16.msra.mxu0 %v20811_v22  ;;  %18255 = vmatpush3.bf16.msra.mxu1 %v20812_v23  ;;  %v20863_v1 = vld [vmem:[#allocation6 + $0x184] ss:$12 sps:$4 sm:$0xff]   ;;  %v20861_v2 = vld [vmem:[#allocation6 + $0x180] ss:$12 sps:$4 sm:$0xff]   ;;  %v20891_v4 = vld [vmem:[#allocation6 + $0x2a8] ss:$12 sps:$4 sm:$0xff]  }
  0x63   :  { %10919 = vmatprep.subr.bf16.mxu0 %v20813_v24  ;;  %18256 = vmatprep.subr.bf16.mxu1 %v20815_v25  ;;  %v23308_v3 = vld [vmem:[#allocation3 + $0x680] ss:$208 sps:$4 sm:$0xff]   ;;  %v20892_v5 = vld [vmem:[#allocation6 + $0x1e8] ss:$12 sps:$4 sm:$0xff]   ;;  %v20867_v10 = vld [vmem:[#allocation6 + $0x198] ss:$12 sps:$4 sm:$0xff]  }
  0x64   :  { %v20869_v6 = vld [vmem:[#allocation6 + $0x19c] ss:$12 sps:$4 sm:$0xff]   ;;  %v23310_v7 = vld [vmem:[#allocation3 + $0x824] ss:$208 sps:$4 sm:$0xff]   ;;  %v20896_v8 = vld [vmem:[#allocation6 + $0x2c0] ss:$12 sps:$4 sm:$0xff]  }
  0x65   :  { %v20897_v9 = vld [vmem:[#allocation6 + $0x200] ss:$12 sps:$4 sm:$0xff]   ;;  %v20874_v12 = vld [vmem:[#allocation6 + $0x1b0] ss:$12 sps:$4 sm:$0xff]   ;;  %v20904_v14 = vld [vmem:[#allocation6 + $0x2d8] ss:$12 sps:$4 sm:$0xff]  }
  0x66   :  { %10920 = vmatpush1.bf16.msra.mxu0 %v20816_v26  ;;  %18257 = vmatpush3.bf16.msra.mxu1 %v20817_v27  ;;  %v20876_v11 = vld [vmem:[#allocation6 + $0x1b4] ss:$12 sps:$4 sm:$0xff]   ;;  %v20905_v15 = vld [vmem:[#allocation6 + $0x218] ss:$12 sps:$4 sm:$0xff]   ;;  %v20909_v18 = vld [vmem:[#allocation6 + $0x2f0] ss:$12 sps:$4 sm:$0xff]  }
  0x67   :  { %10921 = vmatprep.subr.bf16.mxu0 %v20818_v28  ;;  %18258 = vmatprep.subr.bf16.mxu1 %v20820_v29  ;;  %v23316_v13 = vld [vmem:[#allocation3 + $0x820] ss:$208 sps:$4 sm:$0xff]   ;;  %v20882_v16 = vld [vmem:[#allocation6 + $0x1cc] ss:$12 sps:$4 sm:$0xff]   ;;  %v23318_v17 = vld [vmem:[#allocation3 + $0x9c4] ss:$208 sps:$4 sm:$0xff]  }
  0x68   :  { %v20910_v19 = vld [vmem:[#allocation6 + $0x230] ss:$12 sps:$4 sm:$0xff]   ;;  %v20880_v20 = vld [vmem:[#allocation6 + $0x1c8] ss:$12 sps:$4 sm:$0xff]   ;;  %v20887_v22 = vld [vmem:[#allocation6 + $0x1e0] ss:$12 sps:$4 sm:$0xff]  }
  0x69   :  { %v20889_v21 = vld [vmem:[#allocation6 + $0x1e4] ss:$12 sps:$4 sm:$0xff]   ;;  %v20895_v24 = vld [vmem:[#allocation6 + $0x1fc] ss:$12 sps:$4 sm:$0xff]   ;;  %v20902_v27 = vld [vmem:[#allocation6 + $0x214] ss:$12 sps:$4 sm:$0xff]  }
  0x6a   :  { %10922 = vmatpush1.bf16.msra.mxu0 %v20821_v30  ;;  %18259 = vmatpush3.bf16.msra.mxu1 %v20822_v32  ;;  %v23324_v23 = vld [vmem:[#allocation3 + $0x9c0] ss:$208 sps:$4 sm:$0xff]   ;;  %v23326_v25 = vld [vmem:[#allocation3 + $0xb64] ss:$208 sps:$4 sm:$0xff]   ;;  %v20908_v30 = vld [vmem:[#allocation6 + $0x22c] ss:$12 sps:$4 sm:$0xff]  }
  0x6b   :  { %10923 = vmatprep.subr.bf16.mxu0 %v20826_v33  ;;  %18308 = vmatprep.subr.bf16.mxu1 %v20865_v48  ;;  %v20893_v26 = vld [vmem:[#allocation6 + $0x1f8] ss:$12 sps:$4 sm:$0xff]   ;;  %v20900_v28 = vld [vmem:[#allocation6 + $0x210] ss:$12 sps:$4 sm:$0xff]   ;;  %v20906_v32 = vld [vmem:[#allocation6 + $0x228] ss:$12 sps:$4 sm:$0xff]  }
  0x6c   :  { %v23332_v29 = vld [vmem:[#allocation3 + $0xb60] ss:$208 sps:$4 sm:$0xff]   ;;  %v23334_v31 = vld [vmem:[#allocation3 + $0xc] ss:$208 sps:$4 sm:$0xff]   ;;  %vm23204_vm0 = vmmov 0   ;;  %s23205_s19 = smov [#allocation11]  }
  0x6d   :  { %13878 = vmatmul.mubr.bf16.vlgmr.msra.gmra.mrb[0].mxu1 %v23284_v34  ;;  %v20916_v33 = vld [vmem:[#allocation6 + $0x244] ss:$12 sps:$4 sm:$0xff]   ;;  %v23350_v48 = vld [vmem:[#allocation3 + $0x34c] ss:$208 sps:$4 sm:$0xff]   ;;  %s16567_s20 = sshll.u32 %s23205_s19, 4  ;;  %vm16558_vm1 = vcmask 1040384   ;;  %s16568_s20 = int_to_ptr.vmem [resolvable:$true] %s16567_s20 }
  0x6e   :  { %10924 = vmatpush1.bf16.msra.mxu0 %v20828_v35  ;;  %13885 = vmatprep.mubr.bf16.mxu1 %v23286_v37  ;;  %v23340_v35 = vld [vmem:[#allocation3 + $0x8] ss:$208 sps:$4 sm:$0xff]   ;;  %p23169_p5 = scmp.lt.s32.totalorder %s16568_s20, %s16568_s20 }
  0x6f   :  { %10925 = vmatprep.subr.bf16.mxu0 %v20829_v36  ;;  %18309 = vmatpush3.bf16.msra.mxu1 %v20866_v49  ;;  %v20914_v36 = vld [vmem:[#allocation6 + $0x240] ss:$12 sps:$4 sm:$0xff]   ;;  %v20967_v49 = vld [vmem:[#allocation6 + $0x338] ss:$12 sps:$4 sm:$0xff]  }
  0x70   :  { %18310 = vmatprep.subr.bf16.mxu1 %v20870_v52  ;;  %v20933_v52 = vld [vmem:[#allocation6 + $0x2a4] ss:$12 sps:$4 sm:$0xff]  }
  0x72   :  { %10926 = vmatpush1.bf16.msra.mxu0 %v20831_v38  ;;  %v23342_v38 = vld [vmem:[#allocation3 + $0x1ac] ss:$208 sps:$4 sm:$0xff]  }
  0x73   :  { %10927 = vmatprep.subr.bf16.mxu0 %v20834_v39  ;;  %18311 = vmatpush3.bf16.msra.mxu1 %v20871_v53  ;;  %v20954_v39 = vld [vmem:[#allocation6 + $0x308] ss:$12 sps:$4 sm:$0xff]   ;;  %v20931_v53 = vld [vmem:[#allocation6 + $0x2a0] ss:$12 sps:$4 sm:$0xff]  }
  0x74   :  { %18312 = vmatprep.subr.bf16.mxu1 %v20878_v58  ;;  %v23358_v58 = vld [vmem:[#allocation3 + $0x4ec] ss:$208 sps:$4 sm:$0xff]  }
  0x75   :  { %13886 = vmatmul.mubr.bf16.gmra.mrb[4].mxu1 %v23290_v40 }
  0x76   :  { %10928 = vmatpush1.bf16.msra.mxu0 %v20837_v41  ;;  %13893 = vmatprep.mubr.bf16.mxu1 %v23292_v43  ;;  %v20917_v41 = vld [vmem:[#allocation6 + $0x258] ss:$12 sps:$4 sm:$0xff]  }
  0x77   :  { %10929 = vmatprep.subr.bf16.mxu0 %v20838_v42  ;;  %18313 = vmatpush3.bf16.msra.mxu1 %v20879_v59  ;;  %v20924_v42 = vld [vmem:[#allocation6 + $0x274] ss:$12 sps:$4 sm:$0xff]  }
  0x78   :  { %18314 = vmatprep.subr.bf16.mxu1 %v20883_v62  ;;  %v20980_v59 = vld [vmem:[#allocation6 + $0x368] ss:$12 sps:$4 sm:$0xff]  }
  0x79   :  { %v20942_v62 = vld [vmem:[#allocation6 + $0x2d4] ss:$12 sps:$4 sm:$0xff]  }
  0x7a   :  { %10930 = vmatpush1.bf16.msra.mxu0 %v20840_v44  ;;  %v20959_v44 = vld [vmem:[#allocation6 + $0x320] ss:$12 sps:$4 sm:$0xff]  }
  0x7b   :  { %10931 = vmatprep.subr.bf16.mxu0 %v20843_v45  ;;  %18315 = vmatpush3.bf16.msra.mxu1 %v20884_v63  ;;  %v20966_v45 = vld [vmem:[#allocation6 + $0x3f8] ss:$12 sps:$4 sm:$0xff]   ;;  %v20940_v63 = vld [vmem:[#allocation6 + $0x2d0] ss:$12 sps:$4 sm:$0xff]  }
  0x7c   :  { %18316 = vmatprep.subr.bf16.mxu1 %v20891_v4  ;;  %v23366_v4 = vld [vmem:[#allocation3 + $0x68c] ss:$208 sps:$4 sm:$0xff]  }
  0x7d   :  { %13894 = vmatmul.mubr.bf16.gmra.mrb[8].mxu1 %v23296_v46 }
  0x7e   :  { %10932 = vmatpush1.bf16.msra.mxu0 %v20846_v47  ;;  %13901 = vmatprep.mubr.bf16.mxu1 %v23298_v51  ;;  %v20928_v47 = vld [vmem:[#allocation6 + $0x28c] ss:$12 sps:$4 sm:$0xff]  }
  0x7f   :  { %10933 = vmatprep.subr.bf16.mxu0 %v20847_v50  ;;  %18317 = vmatpush3.bf16.msra.mxu1 %v20892_v5  ;;  %v20971_v50 = vld [vmem:[#allocation6 + $0x410] ss:$12 sps:$4 sm:$0xff]   ;;  %v20993_v5 = vld [vmem:[#allocation6 + $0x398] ss:$12 sps:$4 sm:$0xff]  }
  0x80   :  { %18318 = vmatprep.subr.bf16.mxu1 %v20896_v8  ;;  %v20951_v8 = vld [vmem:[#allocation6 + $0x304] ss:$12 sps:$4 sm:$0xff]  }
  0x82   :  { %10934 = vmatpush1.bf16.msra.mxu0 %v20849_v54  ;;  %v20972_v54 = vld [vmem:[#allocation6 + $0x350] ss:$12 sps:$4 sm:$0xff]  }
  0x83   :  { %10935 = vmatprep.subr.bf16.mxu0 %v20852_v55  ;;  %18319 = vmatpush3.bf16.msra.mxu1 %v20897_v9  ;;  %v20979_v55 = vld [vmem:[#allocation6 + $0x428] ss:$12 sps:$4 sm:$0xff]   ;;  %v20998_v9 = vld [vmem:[#allocation6 + $0x3b0] ss:$12 sps:$4 sm:$0xff]  }
  0x84   :  { %18320 = vmatprep.subr.bf16.mxu1 %v20904_v14  ;;  %v20955_v14 = vld [vmem:[#allocation6 + $0x318] ss:$12 sps:$4 sm:$0xff]  }
  0x85   :  { %13902 = vmatmul.mubr.bf16.gmra.mrb[12].mxu1 %v23302_v56 }
  0x86   :  { %10936 = vmatpush1.bf16.msra.mxu0 %v20855_v57  ;;  %13909 = vmatprep.mubr.bf16.mxu1 %v23304_v61  ;;  %v20937_v57 = vld [vmem:[#allocation6 + $0x2bc] ss:$12 sps:$4 sm:$0xff]  }
  0x87   :  { %10937 = vmatprep.subr.bf16.mxu0 %v20856_v60  ;;  %18321 = vmatpush3.bf16.msra.mxu1 %v20905_v15  ;;  %v20984_v60 = vld [vmem:[#allocation6 + $0x440] ss:$12 sps:$4 sm:$0xff]  }
  0x88   :  { %18322 = vmatprep.subr.bf16.mxu1 %v20909_v18  ;;  %v20964_v15 = vld [vmem:[#allocation6 + $0x334] ss:$12 sps:$4 sm:$0xff]   ;;  %v20970_v18 = vld [vmem:[#allocation6 + $0x34c] ss:$12 sps:$4 sm:$0xff]  }
  0x8a   :  { %10938 = vmatpush1.bf16.msra.mxu0 %v20858_v0  ;;  %v20985_v0 = vld [vmem:[#allocation6 + $0x380] ss:$12 sps:$4 sm:$0xff]  }
  0x8b   :  { %11020 = vmatprep.subr.bf16.mxu0 %v20863_v1  ;;  %18323 = vmatpush3.bf16.msra.mxu1 %v20910_v19  ;;  %v20992_v1 = vld [vmem:[#allocation6 + $0x458] ss:$12 sps:$4 sm:$0xff]   ;;  %v23382_v19 = vld [vmem:[#allocation3 + $0x9cc] ss:$208 sps:$4 sm:$0xff]  }
  0x8d   :  { %10940 = vmatmul.mubr.bf16.vlgmr.msra.gmra.mrb[0].mxu0 %v23284_v34  ;;  %13910 = vmatmul.mubr.bf16.gmra.mrb[16].mxu1 %v23308_v3  ;;  %v20953_v34 = vld [vmem:[#allocation6 + $0x3c8] ss:$12 sps:$4 sm:$0xff]  }
  0x8e   :  { %11021 = vmatpush1.bf16.msra.mxu0 %v20861_v2  ;;  %10949 = vmatprep.mubr.bf16.mxu0 %v23286_v37  ;;  %v20919_v37 = vld [vmem:[#allocation6 + $0x25c] ss:$12 sps:$4 sm:$0xff]  }
  0x8f   :  { %11022 = vmatprep.subr.bf16.mxu0 %v20869_v6  ;;  %13917 = vmatprep.mubr.bf16.mxu1 %v23310_v7  ;;  %v23364_v2 = vld [vmem:[#allocation3 + $0x4e8] ss:$208 sps:$4 sm:$0xff]   ;;  %v20997_v6 = vld [vmem:[#allocation6 + $0x470] ss:$12 sps:$4 sm:$0xff]  }
  0x90   :  { %18372 = vmatprep.subr.bf16.mxu1 %v20953_v34  ;;  %v21004_v34 = vld [vmem:[#allocation6 + $0x3c4] ss:$12 sps:$4 sm:$0xff]  }
  0x92   :  { %11023 = vmatpush1.bf16.msra.mxu0 %v20867_v10  ;;  %v20949_v10 = vld [vmem:[#allocation6 + $0x300] ss:$12 sps:$4 sm:$0xff]  }
  0x93   :  { %11024 = vmatprep.subr.bf16.mxu0 %v20876_v11  ;;  %v23372_v11 = vld [vmem:[#allocation3 + $0x688] ss:$208 sps:$4 sm:$0xff]  }
  0x95   :  { %10950 = vmatmul.mubr.bf16.gmra.mrb[4].mxu0 %v23290_v40  ;;  %13918 = vmatmul.mubr.bf16.gmra.mrb[20].mxu1 %v23316_v13  ;;  %v20958_v40 = vld [vmem:[#allocation6 + $0x3e0] ss:$12 sps:$4 sm:$0xff]  }
  0x96   :  { %11025 = vmatpush1.bf16.msra.mxu0 %v20874_v12  ;;  %10959 = vmatprep.mubr.bf16.mxu0 %v23292_v43  ;;  %v20922_v43 = vld [vmem:[#allocation6 + $0x270] ss:$12 sps:$4 sm:$0xff]  }
  0x97   :  { %11026 = vmatprep.subr.bf16.mxu0 %v20882_v16  ;;  %13925 = vmatprep.mubr.bf16.mxu1 %v23318_v17  ;;  %v20957_v12 = vld [vmem:[#allocation6 + $0x31c] ss:$12 sps:$4 sm:$0xff]  }
  0x98   :  { %v20962_v16 = vld [vmem:[#allocation6 + $0x330] ss:$12 sps:$4 sm:$0xff]  }
  0x9a   :  { %11027 = vmatpush1.bf16.msra.mxu0 %v20880_v20  ;;  %v20968_v20 = vld [vmem:[#allocation6 + $0x348] ss:$12 sps:$4 sm:$0xff]  }
  0x9b   :  { %11028 = vmatprep.subr.bf16.mxu0 %v20889_v21  ;;  %v20977_v21 = vld [vmem:[#allocation6 + $0x364] ss:$12 sps:$4 sm:$0xff]  }
  0x9d   :  { %10960 = vmatmul.mubr.bf16.gmra.mrb[8].mxu0 %v23296_v46  ;;  %13926 = vmatmul.mubr.bf16.gmra.mrb[24].mxu1 %v23324_v23  ;;  %v23348_v46 = vld [vmem:[#allocation3 + $0x1a8] ss:$208 sps:$4 sm:$0xff]  }
  0x9e   :  { %11029 = vmatpush1.bf16.msra.mxu0 %v20887_v22  ;;  %10969 = vmatprep.mubr.bf16.mxu0 %v23298_v51  ;;  %v20926_v51 = vld [vmem:[#allocation6 + $0x288] ss:$12 sps:$4 sm:$0xff]  }
  0x9f   :  { %11030 = vmatprep.subr.bf16.mxu0 %v20895_v24  ;;  %13933 = vmatprep.mubr.bf16.mxu1 %v23326_v25  ;;  %v21041_v22 = vld [vmem:[#allocation6 + $0x548] ss:$12 sps:$4 sm:$0xff]  }
  0xa0   :  { %v23388_v24 = vld [vmem:[#allocation3 + $0x9c8] ss:$208 sps:$4 sm:$0xff]  }
  0xa2   :  { %11031 = vmatpush1.bf16.msra.mxu0 %v20893_v26  ;;  %v23390_v26 = vld [vmem:[#allocation3 + $0xb6c] ss:$208 sps:$4 sm:$0xff]  }
  0xa3   :  { %11032 = vmatprep.subr.bf16.mxu0 %v20902_v27  ;;  %v20981_v27 = vld [vmem:[#allocation6 + $0x378] ss:$12 sps:$4 sm:$0xff]  }
  0xa5   :  { %10970 = vmatmul.mubr.bf16.gmra.mrb[12].mxu0 %v23302_v56  ;;  %13934 = vmatmul.mubr.bf16.gmra.mrb[28].mxu1 %v23332_v29  ;;  %v23356_v56 = vld [vmem:[#allocation3 + $0x348] ss:$208 sps:$4 sm:$0xff]  }
  0xa6   :  { %11033 = vmatpush1.bf16.msra.mxu0 %v20900_v28  ;;  %10979 = vmatprep.mubr.bf16.mxu0 %v23304_v61  ;;  %v20935_v61 = vld [vmem:[#allocation6 + $0x2b8] ss:$12 sps:$4 sm:$0xff]   ;;  %v20990_v28 = vld [vmem:[#allocation6 + $0x394] ss:$12 sps:$4 sm:$0xff]  }
  0xa7   :  { %11034 = vmatprep.subr.bf16.mxu0 %v20908_v30  ;;  %13974 = vmatprep.mubr.bf16.mxu1 %v23334_v31  ;;  %v23396_v30 = vld [vmem:[#allocation3 + $0xb68] ss:$208 sps:$4 sm:$0xff]  }
  0xaa   :  { %11035 = vmatpush1.bf16.msra.mxu0 %v20906_v32  ;;  %v23398_v32 = vld [vmem:[#allocation3 + $0x14] ss:$208 sps:$4 sm:$0xff]  }
  0xab   :  { %11036 = vmatprep.subr.bf16.mxu0 %v20916_v33  ;;  %v20994_v33 = vld [vmem:[#allocation6 + $0x3a8] ss:$12 sps:$4 sm:$0xff]  }
  0xad   :  { %10980 = vmatmul.mubr.bf16.gmra.mrb[16].mxu0 %v23308_v3  ;;  %13975 = vmatmul.mubr.bf16.vlgmr.msra.gmra.mrb[32].mxu1 %v23340_v35  ;;  %v20946_v3 = vld [vmem:[#allocation6 + $0x2ec] ss:$12 sps:$4 sm:$0xff]  }
  0xae   :  { %11037 = vmatpush1.bf16.msra.mxu0 %v20914_v36  ;;  %10989 = vmatprep.mubr.bf16.mxu0 %v23310_v7  ;;  %v20944_v7 = vld [vmem:[#allocation6 + $0x2e8] ss:$12 sps:$4 sm:$0xff]   ;;  %v21002_v36 = vld [vmem:[#allocation6 + $0x3c0] ss:$12 sps:$4 sm:$0xff]  }
  0xaf   :  { %11038 = vmatprep.subr.bf16.mxu0 %v20919_v37  ;;  %13982 = vmatprep.mubr.bf16.mxu1 %v23342_v38  ;;  %v21007_v37 = vld [vmem:[#allocation6 + $0x3dc] ss:$12 sps:$4 sm:$0xff]  }
  0xb0   :  { %18373 = vmatpush3.bf16.msra.mxu1 %v20954_v39  ;;  %v21042_v39 = vld [vmem:[#allocation6 + $0x488] ss:$12 sps:$4 sm:$0xff]  }
  0xb1   :  { %18374 = vmatprep.subr.bf16.mxu1 %v20958_v40  ;;  %v21046_v40 = vld [vmem:[#allocation6 + $0x560] ss:$12 sps:$4 sm:$0xff]  }
  0xb2   :  { %11039 = vmatpush1.bf16.msra.mxu0 %v20917_v41  ;;  %v21005_v41 = vld [vmem:[#allocation6 + $0x3d8] ss:$12 sps:$4 sm:$0xff]  }
  0xb3   :  { %11040 = vmatprep.subr.bf16.mxu0 %v20924_v42  ;;  %v21012_v42 = vld [vmem:[#allocation6 + $0x3f4] ss:$12 sps:$4 sm:$0xff]  }
  0xb4   :  { %18375 = vmatpush3.bf16.msra.mxu1 %v20959_v44  ;;  %v21047_v44 = vld [vmem:[#allocation6 + $0x4a0] ss:$12 sps:$4 sm:$0xff]  }
  0xb5   :  { %10990 = vmatmul.mubr.bf16.gmra.mrb[20].mxu0 %v23316_v13  ;;  %18376 = vmatprep.subr.bf16.mxu1 %v20966_v45  ;;  %v23374_v13 = vld [vmem:[#allocation3 + $0x82c] ss:$208 sps:$4 sm:$0xff]   ;;  %v21054_v45 = vld [vmem:[#allocation6 + $0x578] ss:$12 sps:$4 sm:$0xff]  }
  0xb6   :  { %13983 = vmatmul.mubr.bf16.gmra.mrb[36].mxu1 %v23348_v46  ;;  %11041 = vmatpush1.bf16.msra.mxu0 %v20922_v43  ;;  %v21010_v43 = vld [vmem:[#allocation6 + $0x3f0] ss:$12 sps:$4 sm:$0xff]  }
  0xb7   :  { %11042 = vmatprep.subr.bf16.mxu0 %v20928_v47  ;;  %10999 = vmatprep.mubr.bf16.mxu0 %v23318_v17  ;;  %v23380_v17 = vld [vmem:[#allocation3 + $0x828] ss:$208 sps:$4 sm:$0xff]  }
  0xb8   :  { %13990 = vmatprep.mubr.bf16.mxu1 %v23350_v48  ;;  %18377 = vmatpush3.bf16.msra.mxu1 %v20967_v49  ;;  %v21016_v47 = vld [vmem:[#allocation6 + $0x40c] ss:$12 sps:$4 sm:$0xff]  }
  0xb9   :  { %18378 = vmatprep.subr.bf16.mxu1 %v20971_v50  ;;  %v21055_v49 = vld [vmem:[#allocation6 + $0x4b8] ss:$12 sps:$4 sm:$0xff]   ;;  %v21059_v50 = vld [vmem:[#allocation6 + $0x590] ss:$12 sps:$4 sm:$0xff]  }
  0xba   :  { %11043 = vmatpush1.bf16.msra.mxu0 %v20926_v51  ;;  %v21014_v51 = vld [vmem:[#allocation6 + $0x408] ss:$12 sps:$4 sm:$0xff]  }
  0xbb   :  { %11044 = vmatprep.subr.bf16.mxu0 %v20933_v52  ;;  %v21021_v52 = vld [vmem:[#allocation6 + $0x424] ss:$12 sps:$4 sm:$0xff]  }
  0xbc   :  { %18379 = vmatpush3.bf16.msra.mxu1 %v20972_v54  ;;  %v21067_v54 = vld [vmem:[#allocation6 + $0x5a8] ss:$12 sps:$4 sm:$0xff]  }
  0xbd   :  { %11000 = vmatmul.mubr.bf16.gmra.mrb[24].mxu0 %v23324_v23  ;;  %18380 = vmatprep.subr.bf16.mxu1 %v20979_v55  ;;  %v20975_v23 = vld [vmem:[#allocation6 + $0x360] ss:$12 sps:$4 sm:$0xff]  }
  0xbe   :  { %13991 = vmatmul.mubr.bf16.gmra.mrb[40].mxu1 %v23356_v56  ;;  %11045 = vmatpush1.bf16.msra.mxu0 %v20931_v53  ;;  %v21060_v53 = vld [vmem:[#allocation6 + $0x4d0] ss:$12 sps:$4 sm:$0xff]   ;;  %v21019_v55 = vld [vmem:[#allocation6 + $0x420] ss:$12 sps:$4 sm:$0xff]  }
  0xbf   :  { %11046 = vmatprep.subr.bf16.mxu0 %v20937_v57  ;;  %11009 = vmatprep.mubr.bf16.mxu0 %v23326_v25  ;;  %v20983_v25 = vld [vmem:[#allocation6 + $0x37c] ss:$12 sps:$4 sm:$0xff]  }
  0xc0   :  { %13998 = vmatprep.mubr.bf16.mxu1 %v23358_v58  ;;  %18381 = vmatpush3.bf16.msra.mxu1 %v20980_v59  ;;  %v21025_v57 = vld [vmem:[#allocation6 + $0x43c] ss:$12 sps:$4 sm:$0xff]  }
  0xc1   :  { %18382 = vmatprep.subr.bf16.mxu1 %v20984_v60  ;;  %v21068_v59 = vld [vmem:[#allocation6 + $0x4e8] ss:$12 sps:$4 sm:$0xff]   ;;  %v21072_v60 = vld [vmem:[#allocation6 + $0x5c0] ss:$12 sps:$4 sm:$0xff]  }
  0xc2   :  { %11047 = vmatpush1.bf16.msra.mxu0 %v20935_v61  ;;  %v21023_v61 = vld [vmem:[#allocation6 + $0x438] ss:$12 sps:$4 sm:$0xff]  }
  0xc3   :  { %11048 = vmatprep.subr.bf16.mxu0 %v20942_v62  ;;  %v21030_v62 = vld [vmem:[#allocation6 + $0x454] ss:$12 sps:$4 sm:$0xff]  }
  0xc4   :  { %18383 = vmatpush3.bf16.msra.mxu1 %v20985_v0  ;;  %v21080_v0 = vld [vmem:[#allocation6 + $0x5d8] ss:$12 sps:$4 sm:$0xff]  }
  0xc5   :  { %11010 = vmatmul.mubr.bf16.gmra.mrb[28].mxu0 %v23332_v29  ;;  %18384 = vmatprep.subr.bf16.mxu1 %v20992_v1  ;;  %v20988_v29 = vld [vmem:[#allocation6 + $0x390] ss:$12 sps:$4 sm:$0xff]  }
  0xc6   :  { %13999 = vmatmul.mubr.bf16.gmra.mrb[44].mxu1 %v23364_v2  ;;  %11049 = vmatpush1.bf16.msra.mxu0 %v20940_v63  ;;  %v21073_v63 = vld [vmem:[#allocation6 + $0x500] ss:$12 sps:$4 sm:$0xff]   ;;  %v21028_v1 = vld [vmem:[#allocation6 + $0x450] ss:$12 sps:$4 sm:$0xff]  }
  0xc7   :  { %11050 = vmatprep.subr.bf16.mxu0 %v20946_v3  ;;  %11052 = vmatprep.mubr.bf16.mxu0 %v23334_v31  ;;  %v20996_v31 = vld [vmem:[#allocation6 + $0x3ac] ss:$12 sps:$4 sm:$0xff]  }
  0xc8   :  { %14006 = vmatprep.mubr.bf16.mxu1 %v23366_v4  ;;  %18385 = vmatpush3.bf16.msra.mxu1 %v20993_v5  ;;  %v21034_v3 = vld [vmem:[#allocation6 + $0x46c] ss:$12 sps:$4 sm:$0xff]  }
  0xc9   :  { %18386 = vmatprep.subr.bf16.mxu1 %v20997_v6  ;;  %v21081_v5 = vld [vmem:[#allocation6 + $0x518] ss:$12 sps:$4 sm:$0xff]   ;;  %v21085_v6 = vld [vmem:[#allocation6 + $0x5f0] ss:$12 sps:$4 sm:$0xff]  }
  0xca   :  { %11051 = vmatpush1.bf16.msra.mxu0 %v20944_v7  ;;  %v21032_v7 = vld [vmem:[#allocation6 + $0x468] ss:$12 sps:$4 sm:$0xff]  }
  0xcb   :  { %11133 = vmatprep.subr.bf16.mxu0 %v20951_v8  ;;  %v21039_v8 = vld [vmem:[#allocation6 + $0x484] ss:$12 sps:$4 sm:$0xff]  }
  0xcc   :  { %18387 = vmatpush3.bf16.msra.mxu1 %v20998_v9  ;;  %v21086_v9 = vld [vmem:[#allocation6 + $0x530] ss:$12 sps:$4 sm:$0xff]  }
  0xcd   :  { %11053 = vmatmul.mubr.bf16.vlgmr.msra.gmra.mrb[0].mxu0 %v23340_v35  ;;  %18436 = vmatprep.subr.bf16.mxu1 %v21041_v22  ;;  %v23404_v35 = vld [vmem:[#allocation3 + $0x10] ss:$208 sps:$4 sm:$0xff]  }
  0xce   :  { %14007 = vmatmul.mubr.bf16.gmra.mrb[48].mxu1 %v23372_v11  ;;  %11134 = vmatpush1.bf16.msra.mxu0 %v20949_v10  ;;  %v21129_v10 = vld [vmem:[#allocation6 + $0x6c8] ss:$12 sps:$4 sm:$0xff]   ;;  %v21065_v22 = vld [vmem:[#allocation6 + $0x4e4] ss:$12 sps:$4 sm:$0xff]  }
  0xcf   :  { %11135 = vmatprep.subr.bf16.mxu0 %v20957_v12  ;;  %11062 = vmatprep.mubr.bf16.mxu0 %v23342_v38  ;;  %v23406_v38 = vld [vmem:[#allocation3 + $0x1b4] ss:$208 sps:$4 sm:$0xff]   ;;  %v21040_v12 = vld [vmem:[#allocation3 + $0x690] ss:$208 sps:$4 sm:$0xff]  }
  0xd0   :  { %14014 = vmatprep.mubr.bf16.mxu1 %v23374_v13 }
  0xd2   :  { %11136 = vmatpush1.bf16.msra.mxu0 %v20955_v14  ;;  %v23436_v14 = vld [vmem:[#allocation3 + $0x834] ss:$208 sps:$4 sm:$0xff]  }
  0xd3   :  { %11137 = vmatprep.subr.bf16.mxu0 %v20964_v15  ;;  %v21043_v15 = vld [vmem:[#allocation6 + $0x498] ss:$12 sps:$4 sm:$0xff]  }
  0xd5   :  { %11063 = vmatmul.mubr.bf16.gmra.mrb[4].mxu0 %v23348_v46  ;;  %v23412_v46 = vld [vmem:[#allocation3 + $0x1b0] ss:$208 sps:$4 sm:$0xff]  }
  0xd6   :  { %14015 = vmatmul.mubr.bf16.gmra.mrb[52].mxu1 %v23380_v17  ;;  %11138 = vmatpush1.bf16.msra.mxu0 %v20962_v16  ;;  %v21052_v16 = vld [vmem:[#allocation6 + $0x4b4] ss:$12 sps:$4 sm:$0xff]  }
  0xd7   :  { %11139 = vmatprep.subr.bf16.mxu0 %v20970_v18  ;;  %11072 = vmatprep.mubr.bf16.mxu0 %v23350_v48  ;;  %v23414_v48 = vld [vmem:[#allocation3 + $0x354] ss:$208 sps:$4 sm:$0xff]   ;;  %v23441_v18 = vld [vmem:[#allocation3 + $0x830] ss:$208 sps:$4 sm:$0xff]  }
  0xd8   :  { %14022 = vmatprep.mubr.bf16.mxu1 %v23382_v19 }
  0xda   :  { %11140 = vmatpush1.bf16.msra.mxu0 %v20968_v20  ;;  %v23443_v20 = vld [vmem:[#allocation3 + $0x9d4] ss:$208 sps:$4 sm:$0xff]  }
  0xdb   :  { %11141 = vmatprep.subr.bf16.mxu0 %v20977_v21  ;;  %v21056_v21 = vld [vmem:[#allocation6 + $0x4c8] ss:$12 sps:$4 sm:$0xff]  }
  0xdd   :  { %11073 = vmatmul.mubr.bf16.gmra.mrb[8].mxu0 %v23356_v56  ;;  %v23420_v56 = vld [vmem:[#allocation3 + $0x350] ss:$208 sps:$4 sm:$0xff]  }
  0xde   :  { %14023 = vmatmul.mubr.bf16.gmra.mrb[56].mxu1 %v23388_v24  ;;  %11142 = vmatpush1.bf16.msra.mxu0 %v20975_v23  ;;  %v21063_v23 = vld [vmem:[#allocation6 + $0x4e0] ss:$12 sps:$4 sm:$0xff]  }
  0xdf   :  { %11143 = vmatprep.subr.bf16.mxu0 %v20983_v25  ;;  %11082 = vmatprep.mubr.bf16.mxu0 %v23358_v58  ;;  %v23422_v58 = vld [vmem:[#allocation3 + $0x4f4] ss:$208 sps:$4 sm:$0xff]   ;;  %v21071_v25 = vld [vmem:[#allocation6 + $0x4fc] ss:$12 sps:$4 sm:$0xff]  }
  0xe0   :  { %14030 = vmatprep.mubr.bf16.mxu1 %v23390_v26 }
  0xe2   :  { %11144 = vmatpush1.bf16.msra.mxu0 %v20981_v27  ;;  %v21069_v27 = vld [vmem:[#allocation6 + $0x4f8] ss:$12 sps:$4 sm:$0xff]  }
  0xe3   :  { %11145 = vmatprep.subr.bf16.mxu0 %v20990_v28  ;;  %v21078_v28 = vld [vmem:[#allocation6 + $0x514] ss:$12 sps:$4 sm:$0xff]  }
  0xe5   :  { %11083 = vmatmul.mubr.bf16.gmra.mrb[12].mxu0 %v23364_v2  ;;  %v23428_v2 = vld [vmem:[#allocation3 + $0x4f0] ss:$208 sps:$4 sm:$0xff]  }
  0xe6   :  { %14031 = vmatmul.mubr.bf16.gmra.mrb[60].mxu1 %v23396_v30  ;;  %11146 = vmatpush1.bf16.msra.mxu0 %v20988_v29  ;;  %v21076_v29 = vld [vmem:[#allocation6 + $0x510] ss:$12 sps:$4 sm:$0xff]  }
  0xe7   :  { %11147 = vmatprep.subr.bf16.mxu0 %v20996_v31  ;;  %11092 = vmatprep.mubr.bf16.mxu0 %v23366_v4  ;;  %v23430_v4 = vld [vmem:[#allocation3 + $0x694] ss:$208 sps:$4 sm:$0xff]   ;;  %v21084_v31 = vld [vmem:[#allocation6 + $0x52c] ss:$12 sps:$4 sm:$0xff]  }
  0xe8   :  { %14071 = vmatprep.mubr.bf16.mxu1 %v23398_v32 }
  0xea   :  { %11148 = vmatpush1.bf16.msra.mxu0 %v20994_v33  ;;  %v21082_v33 = vld [vmem:[#allocation6 + $0x528] ss:$12 sps:$4 sm:$0xff]  }
  0xeb   :  { %11149 = vmatprep.subr.bf16.mxu0 %v21004_v34  ;;  %v21092_v34 = vld [vmem:[#allocation6 + $0x544] ss:$12 sps:$4 sm:$0xff]  }
  0xed   :  { %11093 = vmatmul.mubr.bf16.gmra.mrb[16].mxu0 %v23372_v11  ;;  %v21037_v11 = vld [vmem:[#allocation6 + $0x480] ss:$12 sps:$4 sm:$0xff]  }
  0xee   :  { %14072 = vmatmul.mubr.bf16.vlgmr.msra.gmra.mrb[64].mxu1 %v23404_v35  ;;  %11150 = vmatpush1.bf16.msra.mxu0 %v21002_v36  ;;  %v21090_v36 = vld [vmem:[#allocation6 + $0x540] ss:$12 sps:$4 sm:$0xff]  }
  0xef   :  { %11151 = vmatprep.subr.bf16.mxu0 %v21007_v37  ;;  %11102 = vmatprep.mubr.bf16.mxu0 %v23374_v13  ;;  %v21045_v13 = vld [vmem:[#allocation6 + $0x49c] ss:$12 sps:$4 sm:$0xff]  }
  0xf0   :  { %14079 = vmatprep.mubr.bf16.mxu1 %v23406_v38  ;;  %18437 = vmatpush3.bf16.msra.mxu1 %v21042_v39  ;;  %v21095_v37 = vld [vmem:[#allocation6 + $0x55c] ss:$12 sps:$4 sm:$0xff]  }
  0xf1   :  { %18438 = vmatprep.subr.bf16.mxu1 %v21046_v40  ;;  %v21130_v39 = vld [vmem:[#allocation6 + $0x608] ss:$12 sps:$4 sm:$0xff]   ;;  %v21134_v40 = vld [vmem:[#allocation6 + $0x6e0] ss:$12 sps:$4 sm:$0xff]  }
  0xf2   :  { %11152 = vmatpush1.bf16.msra.mxu0 %v21005_v41  ;;  %v21093_v41 = vld [vmem:[#allocation6 + $0x558] ss:$12 sps:$4 sm:$0xff]  }
  0xf3   :  { %11153 = vmatprep.subr.bf16.mxu0 %v21012_v42  ;;  %v21100_v42 = vld [vmem:[#allocation6 + $0x574] ss:$12 sps:$4 sm:$0xff]  }
  0xf4   :  { %18439 = vmatpush3.bf16.msra.mxu1 %v21047_v44  ;;  %v21135_v44 = vld [vmem:[#allocation6 + $0x620] ss:$12 sps:$4 sm:$0xff]  }
  0xf5   :  { %11103 = vmatmul.mubr.bf16.gmra.mrb[20].mxu0 %v23380_v17  ;;  %18440 = vmatprep.subr.bf16.mxu1 %v21054_v45  ;;  %v21050_v17 = vld [vmem:[#allocation6 + $0x4b0] ss:$12 sps:$4 sm:$0xff]   ;;  %v21142_v45 = vld [vmem:[#allocation6 + $0x6f8] ss:$12 sps:$4 sm:$0xff]  }
  0xf6   :  { %14080 = vmatmul.mubr.bf16.gmra.mrb[68].mxu1 %v23412_v46  ;;  %11154 = vmatpush1.bf16.msra.mxu0 %v21010_v43  ;;  %v21098_v43 = vld [vmem:[#allocation6 + $0x570] ss:$12 sps:$4 sm:$0xff]  }
  0xf7   :  { %11155 = vmatprep.subr.bf16.mxu0 %v21016_v47  ;;  %11112 = vmatprep.mubr.bf16.mxu0 %v23382_v19  ;;  %v21058_v19 = vld [vmem:[#allocation6 + $0x4cc] ss:$12 sps:$4 sm:$0xff]  }
  0xf8   :  { %14087 = vmatprep.mubr.bf16.mxu1 %v23414_v48  ;;  %18441 = vmatpush3.bf16.msra.mxu1 %v21055_v49  ;;  %v21104_v47 = vld [vmem:[#allocation6 + $0x58c] ss:$12 sps:$4 sm:$0xff]  }
  0xf9   :  { %18442 = vmatprep.subr.bf16.mxu1 %v21059_v50  ;;  %v21143_v49 = vld [vmem:[#allocation6 + $0x638] ss:$12 sps:$4 sm:$0xff]   ;;  %v21147_v50 = vld [vmem:[#allocation6 + $0x710] ss:$12 sps:$4 sm:$0xff]  }
  0xfa   :  { %11156 = vmatpush1.bf16.msra.mxu0 %v21014_v51  ;;  %v21102_v51 = vld [vmem:[#allocation6 + $0x588] ss:$12 sps:$4 sm:$0xff]  }
  0xfb   :  { %11157 = vmatprep.subr.bf16.mxu0 %v21021_v52  ;;  %v21109_v52 = vld [vmem:[#allocation6 + $0x5a4] ss:$12 sps:$4 sm:$0xff]  }
  0xfc   :  { %18443 = vmatpush3.bf16.msra.mxu1 %v21060_v53  ;;  %v21107_v53 = vld [vmem:[#allocation6 + $0x5a0] ss:$12 sps:$4 sm:$0xff]  }
  0xfd   :  { %11113 = vmatmul.mubr.bf16.gmra.mrb[24].mxu0 %v23388_v24  ;;  %18444 = vmatprep.subr.bf16.mxu1 %v21067_v54  ;;  %v23449_v24 = vld [vmem:[#allocation3 + $0x9d0] ss:$208 sps:$4 sm:$0xff]  }
  0xfe   :  { %14088 = vmatmul.mubr.bf16.gmra.mrb[72].mxu1 %v23420_v56  ;;  %11158 = vmatpush1.bf16.msra.mxu0 %v21019_v55  ;;  %v21148_v54 = vld [vmem:[#allocation6 + $0x650] ss:$12 sps:$4 sm:$0xff]   ;;  %v21155_v55 = vld [vmem:[#allocation6 + $0x728] ss:$12 sps:$4 sm:$0xff]  }
  0xff   :  { %11159 = vmatprep.subr.bf16.mxu0 %v21025_v57  ;;  %11122 = vmatprep.mubr.bf16.mxu0 %v23390_v26  ;;  %v23451_v26 = vld [vmem:[#allocation3 + $0xb74] ss:$208 sps:$4 sm:$0xff]   ;;  %v21113_v57 = vld [vmem:[#allocation6 + $0x5bc] ss:$12 sps:$4 sm:$0xff]  }
 0x100   :  { %14095 = vmatprep.mubr.bf16.mxu1 %v23422_v58  ;;  %18445 = vmatpush3.bf16.msra.mxu1 %v21068_v59  ;;  %v21156_v59 = vld [vmem:[#allocation6 + $0x668] ss:$12 sps:$4 sm:$0xff]  }
 0x101   :  { %18446 = vmatprep.subr.bf16.mxu1 %v21072_v60  ;;  %v21160_v60 = vld [vmem:[#allocation6 + $0x740] ss:$12 sps:$4 sm:$0xff]  }
 0x102   :  { %11160 = vmatpush1.bf16.msra.mxu0 %v21023_v61  ;;  %v21111_v61 = vld [vmem:[#allocation6 + $0x5b8] ss:$12 sps:$4 sm:$0xff]  }
 0x103   :  { %11161 = vmatprep.subr.bf16.mxu0 %v21030_v62  ;;  %v21118_v62 = vld [vmem:[#allocation6 + $0x5d4] ss:$12 sps:$4 sm:$0xff]  }
 0x104   :  { %18447 = vmatpush3.bf16.msra.mxu1 %v21073_v63  ;;  %v21116_v63 = vld [vmem:[#allocation6 + $0x5d0] ss:$12 sps:$4 sm:$0xff]  }
 0x105   :  { %11123 = vmatmul.mubr.bf16.gmra.mrb[28].mxu0 %v23396_v30  ;;  %18448 = vmatprep.subr.bf16.mxu1 %v21080_v0  ;;  %v23457_v30 = vld [vmem:[#allocation3 + $0xb70] ss:$208 sps:$4 sm:$0xff]   ;;  %v23488_v0 = vld [vmem:[#allocation3 + $0x4f8] ss:$208 sps:$4 sm:$0xff]  }
 0x106   :  { %14096 = vmatmul.mubr.bf16.gmra.mrb[76].mxu1 %v23428_v2  ;;  %11162 = vmatpush1.bf16.msra.mxu0 %v21028_v1  ;;  %v21161_v1 = vld [vmem:[#allocation6 + $0x680] ss:$12 sps:$4 sm:$0xff]  }
 0x107   :  { %11163 = vmatprep.subr.bf16.mxu0 %v21034_v3  ;;  %11165 = vmatprep.mubr.bf16.mxu0 %v23398_v32  ;;  %v23459_v32 = vld [vmem:[#allocation3 + $0x1c] ss:$208 sps:$4 sm:$0xff]   ;;  %v21168_v3 = vld [vmem:[#allocation6 + $0x758] ss:$12 sps:$4 sm:$0xff]  }
 0x108   :  { %14103 = vmatprep.mubr.bf16.mxu1 %v23430_v4  ;;  %18449 = vmatpush3.bf16.msra.mxu1 %v21081_v5  ;;  %v23490_v5 = vld [vmem:[#allocation3 + $0x69c] ss:$208 sps:$4 sm:$0xff]  }
 0x109   :  { %18450 = vmatprep.subr.bf16.mxu1 %v21085_v6 }
 0x10a   :  { %11164 = vmatpush1.bf16.msra.mxu0 %v21032_v7 }
 0x10b   :  { %11246 = vmatprep.subr.bf16.mxu0 %v21039_v8 }
 0x10c   :  { %18451 = vmatpush3.bf16.msra.mxu1 %v21086_v9 }
 0x10d   :  { %11166 = vmatmul.mubr.bf16.vlgmr.msra.gmra.mrb[0].mxu0 %v23404_v35  ;;  %18500 = vmatprep.subr.bf16.mxu1 %v21129_v10  ;;  %v23465_v35 = vld [vmem:[#allocation3 + $0x18] ss:$208 sps:$4 sm:$0xff]  }
 0x10e   :  { %14104 = vmatmul.mubr.bf16.gmra.mrb[80].mxu1 %v21040_v12  ;;  %11247 = vmatpush1.bf16.msra.mxu0 %v21037_v11  ;;  %v21169_v10 = vld [vmem:[#allocation6 + $0x698] ss:$12 sps:$4 sm:$0xff]  }
 0x10f   :  { %11248 = vmatprep.subr.bf16.mxu0 %v21045_v13  ;;  %11175 = vmatprep.mubr.bf16.mxu0 %v23406_v38  ;;  %v23467_v38 = vld [vmem:[#allocation3 + $0x1bc] ss:$208 sps:$4 sm:$0xff]   ;;  %v21120_v13 = vld [vmem:[#allocation6 + $0x5e8] ss:$12 sps:$4 sm:$0xff]  }
 0x110   :  { %14111 = vmatprep.mubr.bf16.mxu1 %v23436_v14 }
 0x112   :  { %11249 = vmatpush1.bf16.msra.mxu0 %v21043_v15  ;;  %v21125_v15 = vld [vmem:[#allocation6 + $0x600] ss:$12 sps:$4 sm:$0xff]  }
 0x113   :  { %11250 = vmatprep.subr.bf16.mxu0 %v21052_v16  ;;  %v21174_v16 = vld [vmem:[#allocation6 + $0x6b0] ss:$12 sps:$4 sm:$0xff]  }
 0x115   :  { %11176 = vmatmul.mubr.bf16.gmra.mrb[4].mxu0 %v23412_v46  ;;  %v23472_v46 = vld [vmem:[#allocation3 + $0x1b8] ss:$208 sps:$4 sm:$0xff]  }
 0x116   :  { %14112 = vmatmul.mubr.bf16.gmra.mrb[84].mxu1 %v23441_v18  ;;  %11251 = vmatpush1.bf16.msra.mxu0 %v21050_v17 }
 0x117   :  { %11252 = vmatprep.subr.bf16.mxu0 %v21058_v19  ;;  %11185 = vmatprep.mubr.bf16.mxu0 %v23414_v48  ;;  %v23474_v48 = vld [vmem:[#allocation3 + $0x35c] ss:$208 sps:$4 sm:$0xff]   ;;  %v23500_v19 = vld [vmem:[#allocation3 + $0x698] ss:$208 sps:$4 sm:$0xff]  }
 0x118   :  { %14119 = vmatprep.mubr.bf16.mxu1 %v23443_v20 }
 0x11a   :  { %11253 = vmatpush1.bf16.msra.mxu0 %v21056_v21 }
 0x11b   :  { %11254 = vmatprep.subr.bf16.mxu0 %v21065_v22 }
 0x11d   :  { %11186 = vmatmul.mubr.bf16.gmra.mrb[8].mxu0 %v23420_v56  ;;  %v23480_v56 = vld [vmem:[#allocation3 + $0x358] ss:$208 sps:$4 sm:$0xff]  }
 0x11e   :  { %14120 = vmatmul.mubr.bf16.gmra.mrb[88].mxu1 %v23449_v24  ;;  %11255 = vmatpush1.bf16.msra.mxu0 %v21063_v23 }
 0x11f   :  { %11256 = vmatprep.subr.bf16.mxu0 %v21071_v25  ;;  %11195 = vmatprep.mubr.bf16.mxu0 %v23422_v58  ;;  %v23482_v58 = vld [vmem:[#allocation3 + $0x4fc] ss:$208 sps:$4 sm:$0xff]  }
 0x120   :  { %14127 = vmatprep.mubr.bf16.mxu1 %v23451_v26 }
 0x122   :  { %11257 = vmatpush1.bf16.msra.mxu0 %v21069_v27  ;;  %v21131_v27 = vld [vmem:[#allocation6 + $0x618] ss:$12 sps:$4 sm:$0xff]  }
 0x123   :  { %11258 = vmatprep.subr.bf16.mxu0 %v21078_v28  ;;  %v21140_v28 = vld [vmem:[#allocation6 + $0x634] ss:$12 sps:$4 sm:$0xff]  }
 0x125   :  { %11196 = vmatmul.mubr.bf16.gmra.mrb[12].mxu0 %v23428_v2 }
 0x126   :  { %14128 = vmatmul.mubr.bf16.gmra.mrb[92].mxu1 %v23457_v30  ;;  %11259 = vmatpush1.bf16.msra.mxu0 %v21076_v29  ;;  %v21138_v29 = vld [vmem:[#allocation6 + $0x630] ss:$12 sps:$4 sm:$0xff]  }
 0x127   :  { %11260 = vmatprep.subr.bf16.mxu0 %v21084_v31  ;;  %11205 = vmatprep.mubr.bf16.mxu0 %v23430_v4  ;;  %v21122_v4 = vld [vmem:[#allocation6 + $0x5ec] ss:$12 sps:$4 sm:$0xff]  }
 0x128   :  { %14168 = vmatprep.mubr.bf16.mxu1 %v23459_v32  ;;  %v23512_v31 = vld [vmem:[#allocation3 + $0x838] ss:$208 sps:$4 sm:$0xff]  }
 0x12a   :  { %11261 = vmatpush1.bf16.msra.mxu0 %v21082_v33 }
 0x12b   :  { %11262 = vmatprep.subr.bf16.mxu0 %v21092_v34 }
 0x12d   :  { %11206 = vmatmul.mubr.bf16.gmra.mrb[16].mxu0 %v21040_v12  ;;  %v21173_v12 = vld [vmem:[#allocation6 + $0x770] ss:$12 sps:$4 sm:$0xff]  }
 0x12e   :  { %14169 = vmatmul.mubr.bf16.vlgmr.msra.gmra.mrb[96].mxu1 %v23465_v35  ;;  %11263 = vmatpush1.bf16.msra.mxu0 %v21090_v36  ;;  %v23516_v36 = vld [vmem:[#allocation3 + $0x9dc] ss:$208 sps:$4 sm:$0xff]  }
 0x12f   :  { %11264 = vmatprep.subr.bf16.mxu0 %v21095_v37  ;;  %11215 = vmatprep.mubr.bf16.mxu0 %v23436_v14  ;;  %v21127_v14 = vld [vmem:[#allocation6 + $0x604] ss:$12 sps:$4 sm:$0xff]  }
 0x130   :  { %14176 = vmatprep.mubr.bf16.mxu1 %v23467_v38  ;;  %18501 = vmatpush3.bf16.msra.mxu1 %v21130_v39  ;;  %v21144_v39 = vld [vmem:[#allocation6 + $0x648] ss:$12 sps:$4 sm:$0xff]  }
 0x131   :  { %18502 = vmatprep.subr.bf16.mxu1 %v21134_v40  ;;  %v21153_v40 = vld [vmem:[#allocation6 + $0x664] ss:$12 sps:$4 sm:$0xff]  }
 0x132   :  { %11265 = vmatpush1.bf16.msra.mxu0 %v21093_v41  ;;  %v21151_v41 = vld [vmem:[#allocation6 + $0x660] ss:$12 sps:$4 sm:$0xff]  }
 0x133   :  { %11266 = vmatprep.subr.bf16.mxu0 %v21100_v42 }
 0x134   :  { %18503 = vmatpush3.bf16.msra.mxu1 %v21135_v44 }
 0x135   :  { %11216 = vmatmul.mubr.bf16.gmra.mrb[20].mxu0 %v23441_v18  ;;  %18504 = vmatprep.subr.bf16.mxu1 %v21142_v45  ;;  %v21217_v18 = vld [vmem:[#allocation6 + $0x848] ss:$12 sps:$4 sm:$0xff]  }
 0x136   :  { %14177 = vmatmul.mubr.bf16.gmra.mrb[100].mxu1 %v23472_v46  ;;  %11267 = vmatpush1.bf16.msra.mxu0 %v21098_v43  ;;  %v23524_v43 = vld [vmem:[#allocation3 + $0x9d8] ss:$208 sps:$4 sm:$0xff]  }
 0x137   :  { %11268 = vmatprep.subr.bf16.mxu0 %v21104_v47  ;;  %11225 = vmatprep.mubr.bf16.mxu0 %v23443_v20  ;;  %v21133_v20 = vld [vmem:[#allocation6 + $0x61c] ss:$12 sps:$4 sm:$0xff]  }
 0x138   :  { %14184 = vmatprep.mubr.bf16.mxu1 %v23474_v48  ;;  %18505 = vmatpush3.bf16.msra.mxu1 %v21143_v49  ;;  %v21159_v45 = vld [vmem:[#allocation6 + $0x67c] ss:$12 sps:$4 sm:$0xff]  }
 0x139   :  { %18506 = vmatprep.subr.bf16.mxu1 %v21147_v50  ;;  %v23528_v49 = vld [vmem:[#allocation3 + $0xb7c] ss:$208 sps:$4 sm:$0xff]  }
 0x13a   :  { %11269 = vmatpush1.bf16.msra.mxu0 %v21102_v51  ;;  %v21157_v51 = vld [vmem:[#allocation6 + $0x678] ss:$12 sps:$4 sm:$0xff]  }
 0x13b   :  { %11270 = vmatprep.subr.bf16.mxu0 %v21109_v52  ;;  %v21166_v52 = vld [vmem:[#allocation6 + $0x694] ss:$12 sps:$4 sm:$0xff]  }
 0x13c   :  { %18507 = vmatpush3.bf16.msra.mxu1 %v21148_v54 }
 0x13d   :  { %11226 = vmatmul.mubr.bf16.gmra.mrb[24].mxu0 %v23449_v24  ;;  %18508 = vmatprep.subr.bf16.mxu1 %v21155_v55  ;;  %v23504_v24 = vld [vmem:[#allocation3 + $0x83c] ss:$208 sps:$4 sm:$0xff]   ;;  %v23536_v55 = vld [vmem:[#allocation3 + $0xb78] ss:$208 sps:$4 sm:$0xff]  }
 0x13e   :  { %14185 = vmatmul.mubr.bf16.gmra.mrb[104].mxu1 %v23480_v56  ;;  %11271 = vmatpush1.bf16.msra.mxu0 %v21107_v53  ;;  %v21164_v53 = vld [vmem:[#allocation6 + $0x690] ss:$12 sps:$4 sm:$0xff]  }
 0x13f   :  { %11272 = vmatprep.subr.bf16.mxu0 %v21113_v57  ;;  %11235 = vmatprep.mubr.bf16.mxu0 %v23451_v26 }
 0x140   :  { %14192 = vmatprep.mubr.bf16.mxu1 %v23482_v58  ;;  %18509 = vmatpush3.bf16.msra.mxu1 %v21156_v59  ;;  %v18260_v2 = vpop.f32.mrb[0].mxu1 }
 0x141   :  { %18510 = vmatprep.subr.bf16.mxu1 %v21160_v60  ;;  %v18261_v6 = vpop.f32.mrb[1].mxu1 }
 0x142   :  { %11273 = vmatpush1.bf16.msra.mxu0 %v21111_v61  ;;  %v23492_v7 = vadd.f32 %v18261_v6, %v18260_v2  ;;  %v18263_v8 = vpop.f32.mrb[2].mxu1  ;;  %v23540_v61 = vld [vmem:[#allocation3 + $0x24] ss:$208 sps:$4 sm:$0xff]   ;;  %v23547_v2 = vld [vmem:[#allocation3 + $0x20] ss:$208 sps:$4 sm:$0xff]  }
 0x143   :  { %11274 = vmatprep.subr.bf16.mxu0 %v21118_v62  ;;  %v18264_v9 = vpop.f32.mrb[3].mxu1  ;;  %v21183_v6 = vld [vmem:[#allocation6 + $0x6dc] ss:$12 sps:$4 sm:$0xff]  }
 0x144   :  { %18511 = vmatpush3.bf16.msra.mxu1 %v21161_v1  ;;  %v23495_v11 = vadd.f32 %v18264_v9, %v18263_v8  ;;  %v21180_v1 = vld [vmem:[#allocation6 + $0x6c4] ss:$12 sps:$4 sm:$0xff]   ;;  %v2156_v9 = vlaneseq }
 0x145   :  { %11236 = vmatmul.mubr.bf16.gmra.mrb[28].mxu0 %v23457_v30  ;;  %18512 = vmatprep.subr.bf16.mxu1 %v21168_v3  ;;  %v21178_v3 = vld [vmem:[#allocation6 + $0x6c0] ss:$12 sps:$4 sm:$0xff]   ;;  %v23550_v8 = vld [vmem:[#allocation3 + $0x1c4] ss:$208 sps:$4 sm:$0xff]  }
 0x146   :  { %14193 = vmatmul.mubr.bf16.gmra.mrb[108].mxu1 %v23488_v0  ;;  %11275 = vmatpush1.bf16.msra.mxu0 %v21116_v63  ;;  %v21170_v63 = vld [vmem:[#allocation6 + $0x6a8] ss:$12 sps:$4 sm:$0xff]  }
 0x147   :  { %11276 = vmatprep.subr.bf16.mxu0 %v21122_v4  ;;  %11278 = vmatprep.mubr.bf16.mxu0 %v23459_v32  ;;  %v21146_v32 = vld [vmem:[#allocation6 + $0x64c] ss:$12 sps:$4 sm:$0xff]  }
 0x148   :  { %14200 = vmatprep.mubr.bf16.mxu1 %v23490_v5  ;;  %18513 = vmatpush3.bf16.msra.mxu1 %v21169_v10  ;;  %v18266_v17 = vpop.f32.mrb[4].mxu1 }
 0x149   :  { %18514 = vmatprep.subr.bf16.mxu1 %v21173_v12  ;;  %v18267_v21 = vpop.f32.mrb[5].mxu1 }
 0x14a   :  { %11277 = vmatpush1.bf16.msra.mxu0 %v21120_v13  ;;  %v23502_v22 = vadd.f32 %v18267_v21, %v18266_v17  ;;  %v18269_v23 = vpop.f32.mrb[6].mxu1  ;;  %v23558_v17 = vshrl.u32 %v2156_v9, 7  ;;  %v23562_v21 = vld [vmem:[#allocation3 + $0x1c0] ss:$208 sps:$4 sm:$0xff]   ;;  %v21256_v9 = vld [vmem:[#allocation6 + $0x8d8] ss:$12 sps:$4 sm:$0xff]  }
 0x14b   :  { %11359 = vmatprep.subr.bf16.mxu0 %v21127_v14  ;;  %v18270_v25 = vpop.f32.mrb[7].mxu1  ;;  %v21218_v14 = vld [vmem:[#allocation6 + $0x788] ss:$12 sps:$4 sm:$0xff]  }
 0x14c   :  { %18515 = vmatpush3.bf16.msra.mxu1 %v21174_v16  ;;  %v23507_v26 = vadd.f32 %v18270_v25, %v18269_v23  ;;  %v21181_v16 = vld [vmem:[#allocation6 + $0x6d8] ss:$12 sps:$4 sm:$0xff]  }
 0x14d   :  { %11279 = vmatmul.mubr.bf16.vlgmr.msra.gmra.mrb[0].mxu0 %v23465_v35  ;;  %18564 = vmatprep.subr.bf16.mxu1 %v21217_v18  ;;  %v21188_v18 = vld [vmem:[#allocation6 + $0x6f4] ss:$12 sps:$4 sm:$0xff]   ;;  %v21230_v25 = vld [vmem:[#allocation6 + $0x878] ss:$12 sps:$4 sm:$0xff]  }
 0x14e   :  { %14201 = vmatmul.mubr.bf16.gmra.mrb[112].mxu1 %v23500_v19  ;;  %11360 = vmatpush1.bf16.msra.mxu0 %v21125_v15  ;;  %v21222_v15 = vld [vmem:[#allocation6 + $0x860] ss:$12 sps:$4 sm:$0xff]  }
 0x14f   :  { %11361 = vmatprep.subr.bf16.mxu0 %v21133_v20  ;;  %11288 = vmatprep.mubr.bf16.mxu0 %v23467_v38  ;;  %v21186_v20 = vld [vmem:[#allocation6 + $0x6f0] ss:$12 sps:$4 sm:$0xff]  }
 0x150   :  { %14208 = vmatprep.mubr.bf16.mxu1 %v23504_v24  ;;  %v18272_v30 = vpop.f32.mrb[8].mxu1 }
 0x151   :  { %v18273_v33 = vpop.f32.mrb[9].mxu1 }
 0x152   :  { %11362 = vmatpush1.bf16.msra.mxu0 %v21131_v27  ;;  %v23514_v34 = vadd.f32 %v18273_v33, %v18272_v30  ;;  %v18275_v35 = vpop.f32.mrb[10].mxu1  ;;  %v21192_v27 = vld [vmem:[#allocation6 + $0x70c] ss:$12 sps:$4 sm:$0xff]  }
 0x153   :  { %11363 = vmatprep.subr.bf16.mxu0 %v21140_v28  ;;  %v18276_v37 = vpop.f32.mrb[11].mxu1  ;;  %v21231_v33 = vld [vmem:[#allocation6 + $0x7b8] ss:$12 sps:$4 sm:$0xff]  }
 0x154   :  { %v23519_v38 = vadd.f32 %v18276_v37, %v18275_v35  ;;  %v21235_v37 = vld [vmem:[#allocation6 + $0x890] ss:$12 sps:$4 sm:$0xff]  }
 0x155   :  { %11289 = vmatmul.mubr.bf16.gmra.mrb[4].mxu0 %v23472_v46 }
 0x156   :  { %14209 = vmatmul.mubr.bf16.gmra.mrb[116].mxu1 %v23512_v31  ;;  %11364 = vmatpush1.bf16.msra.mxu0 %v21138_v29  ;;  %v23564_v29 = vld [vmem:[#allocation3 + $0x364] ss:$208 sps:$4 sm:$0xff]  }
 0x157   :  { %11365 = vmatprep.subr.bf16.mxu0 %v21146_v32  ;;  %11298 = vmatprep.mubr.bf16.mxu0 %v23474_v48 }
 0x158   :  { %14216 = vmatprep.mubr.bf16.mxu1 %v23516_v36  ;;  %v18278_v42 = vpop.f32.mrb[12].mxu1 }
 0x159   :  { %v18279_v44 = vpop.f32.mrb[13].mxu1 }
 0x15a   :  { %11366 = vmatpush1.bf16.msra.mxu0 %v21144_v39  ;;  %v23526_v46 = vadd.f32 %v18279_v44, %v18278_v42  ;;  %v18281_v47 = vpop.f32.mrb[14].mxu1  ;;  %v21190_v39 = vld [vmem:[#allocation6 + $0x708] ss:$12 sps:$4 sm:$0xff]   ;;  %v21195_v42 = vld [vmem:[#allocation6 + $0x720] ss:$12 sps:$4 sm:$0xff]  }
 0x15b   :  { %11367 = vmatprep.subr.bf16.mxu0 %v21153_v40  ;;  %v18282_v50 = vpop.f32.mrb[15].mxu1  ;;  %v2166_v40 = vsub.s32 2, %v23558_v17  ;;  %v23575_v44 = vld [vmem:[#allocation3 + $0x360] ss:$208 sps:$4 sm:$0xff]  }
 0x15c   :  { %v23531_v48 = vadd.f32 %v18282_v50, %v18281_v47  ;;  %v21243_v47 = vld [vmem:[#allocation6 + $0x8a8] ss:$12 sps:$4 sm:$0xff]   ;;  %v2154_v50 = vld [vmem:[#allocation8] sm:$0x7] }
 0x15d   :  { %11299 = vmatmul.mubr.bf16.gmra.mrb[8].mxu0 %v23480_v56  ;;  %v21172_v56 = vld [vmem:[#allocation6 + $0x6ac] ss:$12 sps:$4 sm:$0xff]  }
 0x15e   :  { %14217 = vmatmul.mubr.bf16.gmra.mrb[120].mxu1 %v23524_v43  ;;  %11368 = vmatpush1.bf16.msra.mxu0 %v21151_v41  ;;  %v21197_v41 = vld [vmem:[#allocation6 + $0x724] ss:$12 sps:$4 sm:$0xff]  }
 0x15f   :  { %11369 = vmatprep.subr.bf16.mxu0 %v21159_v45  ;;  %11308 = vmatprep.mubr.bf16.mxu0 %v23482_v58 }
 0x160   :  { %14224 = vmatprep.mubr.bf16.mxu1 %v23528_v49  ;;  %v18284_v54 = vpop.f32.mrb[16].mxu1 }
 0x161   :  { %v18285_v57 = vpop.f32.mrb[17].mxu1 }
 0x162   :  { %11370 = vmatpush1.bf16.msra.mxu0 %v21157_v51  ;;  %v23538_v59 = vadd.f32 %v18285_v57, %v18284_v54  ;;  %v18287_v60 = vpop.f32.mrb[18].mxu1 }
 0x163   :  { %11371 = vmatprep.subr.bf16.mxu0 %v21166_v52  ;;  %v18288_v62 = vpop.f32.mrb[19].mxu1  ;;  %v21201_v52 = vld [vmem:[#allocation6 + $0x73c] ss:$12 sps:$4 sm:$0xff]  }
 0x164   :  { %v23543_v58 = vadd.f32 %v18288_v62, %v18287_v60  ;;  %v21248_v62 = vld [vmem:[#allocation6 + $0x8c0] ss:$12 sps:$4 sm:$0xff]  }
 0x165   :  { %11309 = vmatmul.mubr.bf16.gmra.mrb[12].mxu0 %v23488_v0 }
 0x166   :  { %14225 = vmatmul.mubr.bf16.gmra.mrb[124].mxu1 %v23536_v55  ;;  %11372 = vmatpush1.bf16.msra.mxu0 %v21164_v53  ;;  %v23577_v53 = vld [vmem:[#allocation3 + $0x504] ss:$208 sps:$4 sm:$0xff]  }
 0x167   :  { %11373 = vmatprep.subr.bf16.mxu0 %v21172_v56  ;;  %11318 = vmatprep.mubr.bf16.mxu0 %v23490_v5  ;;  %v21244_v56 = vld [vmem:[#allocation6 + $0x7e8] ss:$12 sps:$4 sm:$0xff]  }
 0x168   :  { %14265 = vmatprep.mubr.bf16.mxu1 %v23540_v61  ;;  %v18290_v4 = vpop.f32.mrb[20].mxu1 }
 0x169   :  { %v18291_v0 = vpop.f32.mrb[21].mxu1 }
 0x16a   :  { %11374 = vmatpush1.bf16.msra.mxu0 %v21170_v63  ;;  %v23552_v10 = vadd.f32 %v18291_v0, %v18290_v4  ;;  %v18293_v12 = vpop.f32.mrb[22].mxu1  ;;  %v21199_v63 = vld [vmem:[#allocation6 + $0x738] ss:$12 sps:$4 sm:$0xff]   ;;  %v21204_v4 = vld [vmem:[#allocation6 + $0x750] ss:$12 sps:$4 sm:$0xff]  }
 0x16b   :  { %11375 = vmatprep.subr.bf16.mxu0 %v21180_v1  ;;  %v18294_v13 = vpop.f32.mrb[23].mxu1  ;;  %v23585_v1 = vrot.slane %v2154_v50, %v2166_v40 }
 0x16c   :  { %v23555_v5 = vadd.f32 %v18294_v13, %v18293_v12  ;;  %v21210_v13 = vld [vmem:[#allocation6 + $0x76c] ss:$12 sps:$4 sm:$0xff]  }
 0x16d   :  { %11319 = vmatmul.mubr.bf16.gmra.mrb[16].mxu0 %v23500_v19  ;;  %v21223_v19 = vld [vmem:[#allocation6 + $0x7a0] ss:$12 sps:$4 sm:$0xff]   ;;  %v13888_v40 = vadd.f32 %v23502_v22, %v23585_v1  ;;  %v21219_v22 = vld [vmem:[#allocation6 + $0x798] ss:$12 sps:$4 sm:$0xff]  }
 0x16e   :  { %14266 = vmatmul.mubr.bf16.vlgmr.msra.gmra.mrb[128].mxu1 %v23547_v2  ;;  %11376 = vmatpush1.bf16.msra.mxu0 %v21178_v3  ;;  %v21206_v3 = vld [vmem:[#allocation6 + $0x754] ss:$12 sps:$4 sm:$0xff]  }
 0x16f   :  { %11377 = vmatprep.subr.bf16.mxu0 %v21183_v6  ;;  %11328 = vmatprep.mubr.bf16.mxu0 %v23504_v24  ;;  %v23589_v6 = vld [vmem:[#allocation3 + $0x500] ss:$208 sps:$4 sm:$0xff]  }
 0x170   :  { %14273 = vmatprep.mubr.bf16.mxu1 %v23550_v8  ;;  %18565 = vmatpush3.bf16.msra.mxu1 %v21218_v14  ;;  %v18296_v23 = vpop.f32.mrb[24].mxu1  ;;  %v23591_v14 = vld [vmem:[#allocation3 + $0x6a4] ss:$208 sps:$4 sm:$0xff]  }
 0x171   :  { %18566 = vmatprep.subr.bf16.mxu1 %v21222_v15  ;;  %v18297_v28 = vpop.f32.mrb[25].mxu1  ;;  %v13880_v15 = vadd.f32 %v23492_v7, %v23585_v1  ;;  %v21208_v7 = vld [vmem:[#allocation6 + $0x768] ss:$12 sps:$4 sm:$0xff]  }
 0x172   :  { %11378 = vmatpush1.bf16.msra.mxu0 %v21181_v16  ;;  %v23566_v30 = vadd.f32 %v18297_v28, %v18296_v23  ;;  %v18299_v24 = vpop.f32.mrb[26].mxu1 }
 0x173   :  { %11379 = vmatprep.subr.bf16.mxu0 %v21188_v18  ;;  %v18300_v32 = vpop.f32.mrb[27].mxu1 }
 0x174   :  { %18567 = vmatpush3.bf16.msra.mxu1 %v21223_v19  ;;  %v23569_v35 = vadd.f32 %v18300_v32, %v18299_v24  ;;  %v13883_v19 = vadd.f32 %v23495_v11, %v23585_v1  ;;  %v21215_v24 = vld [vmem:[#allocation6 + $0x784] ss:$12 sps:$4 sm:$0xff]   ;;  %v21213_v11 = vld [vmem:[#allocation6 + $0x780] ss:$12 sps:$4 sm:$0xff]  }
 0x175   :  { %11329 = vmatmul.mubr.bf16.gmra.mrb[20].mxu0 %v23512_v31  ;;  %18568 = vmatprep.subr.bf16.mxu1 %v21230_v25  ;;  %v21236_v31 = vld [vmem:[#allocation6 + $0x7d0] ss:$12 sps:$4 sm:$0xff]  }
 0x176   :  { %14274 = vmatmul.mubr.bf16.gmra.mrb[132].mxu1 %v23562_v21  ;;  %11380 = vmatpush1.bf16.msra.mxu0 %v21186_v20  ;;  %v21257_v20 = vld [vmem:[#allocation6 + $0x818] ss:$12 sps:$4 sm:$0xff]   ;;  %v21262_v32 = vld [vmem:[#allocation6 + $0x830] ss:$12 sps:$4 sm:$0xff]  }
 0x177   :  { %11381 = vmatprep.subr.bf16.mxu0 %v21192_v27  ;;  %11338 = vmatprep.mubr.bf16.mxu0 %v23516_v36  ;;  %v21261_v27 = vld [vmem:[#allocation6 + $0x8f0] ss:$12 sps:$4 sm:$0xff]  }
 0x178   :  { %14281 = vmatprep.mubr.bf16.mxu1 %v23564_v29  ;;  %18569 = vmatpush3.bf16.msra.mxu1 %v21231_v33  ;;  %v18302_v45 = vpop.f32.mrb[28].mxu1 }
 0x179   :  { %18570 = vmatprep.subr.bf16.mxu1 %v21235_v37  ;;  %v18303_v51 = vpop.f32.mrb[29].mxu1 }
 0x17a   :  { %11382 = vmatpush1.bf16.msra.mxu0 %v21190_v39  ;;  %v23579_v54 = vadd.f32 %v18303_v51, %v18302_v45  ;;  %v18305_v36 = vpop.f32.mrb[30].mxu1  ;;  %v23605_v39 = vld [vmem:[#allocation3 + $0x6a0] ss:$208 sps:$4 sm:$0xff]   ;;  %v23609_v45 = vld [vmem:[#allocation3 + $0x844] ss:$208 sps:$4 sm:$0xff]  }
 0x17b   :  { %11383 = vmatprep.subr.bf16.mxu0 %v21197_v41  ;;  %v18306_v57 = vpop.f32.mrb[31].mxu1 }
 0x17c   :  { %18571 = vmatpush3.bf16.msra.mxu1 %v21236_v31  ;;  %v23582_v60 = vadd.f32 %v18306_v57, %v18305_v36  ;;  %v21228_v36 = vld [vmem:[#allocation6 + $0x7b4] ss:$12 sps:$4 sm:$0xff]  }
 0x17d   :  { %11339 = vmatmul.mubr.bf16.gmra.mrb[24].mxu0 %v23524_v43  ;;  %18572 = vmatprep.subr.bf16.mxu1 %v21243_v47  ;;  %v21249_v43 = vld [vmem:[#allocation6 + $0x800] ss:$12 sps:$4 sm:$0xff]   ;;  %v13891_v47 = vadd.f32 %v23507_v26, %v23585_v1  ;;  %v21226_v26 = vld [vmem:[#allocation6 + $0x7b0] ss:$12 sps:$4 sm:$0xff]  }
 0x17e   :  { %14282 = vmatmul.mubr.bf16.gmra.mrb[136].mxu1 %v23575_v44  ;;  %11384 = vmatpush1.bf16.msra.mxu0 %v21195_v42 }
 0x17f   :  { %11385 = vmatprep.subr.bf16.mxu0 %v21201_v52  ;;  %11348 = vmatprep.mubr.bf16.mxu0 %v23528_v49 }
 0x180   :  { %14289 = vmatprep.mubr.bf16.mxu1 %v23577_v53  ;;  %18573 = vmatpush3.bf16.msra.mxu1 %v21244_v56  ;;  %v18324_v0 = vpop.f32.mrb[32].mxu1 }
 0x181   :  { %18574 = vmatprep.subr.bf16.mxu1 %v21248_v62  ;;  %v18325_v12 = vpop.f32.mrb[33].mxu1  ;;  %v23621_v62 = vld [vmem:[#allocation3 + $0x840] ss:$208 sps:$4 sm:$0xff]  }
 0x182   :  { %11386 = vmatpush1.bf16.msra.mxu0 %v21199_v63  ;;  %v18326_v49 = vadd.f32 %v18325_v12, %v18324_v0  ;;  %v18327_v16 = vpop.f32.mrb[34].mxu1  ;;  %v23625_v0 = vld [vmem:[#allocation3 + $0x9e4] ss:$208 sps:$4 sm:$0xff]  }
 0x183   :  { %11387 = vmatprep.subr.bf16.mxu0 %v21206_v3  ;;  %v18328_v18 = vpop.f32.mrb[35].mxu1 }
 0x184   :  { %18575 = vmatpush3.bf16.msra.mxu1 %v21249_v43  ;;  %v23597_v23 = vadd.f32 %v18326_v49, %v13880_v15  ;;  %v18329_v25 = vadd.f32 %v18328_v18, %v18327_v16  ;;  %v21241_v15 = vld [vmem:[#allocation6 + $0x7e4] ss:$12 sps:$4 sm:$0xff]   ;;  %v21239_v16 = vld [vmem:[#allocation6 + $0x7e0] ss:$12 sps:$4 sm:$0xff]  }
 0x185   :  { %11349 = vmatmul.mubr.bf16.gmra.mrb[28].mxu0 %v23536_v55  ;;  %18576 = vmatprep.subr.bf16.mxu1 %v21256_v9  ;;  %v21305_v55 = vld [vmem:[#allocation6 + $0x9c8] ss:$12 sps:$4 sm:$0xff]   ;;  %v23637_v18 = vld [vmem:[#allocation3 + $0x9e0] ss:$208 sps:$4 sm:$0xff]  }
 0x186   :  { %14290 = vmatmul.mubr.bf16.gmra.mrb[140].mxu1 %v23589_v6  ;;  %11388 = vmatpush1.bf16.msra.mxu0 %v21204_v4  ;;  %v23601_v28 = vadd.f32 %v18329_v25, %v13883_v19  ;;  %v21234_v4 = vld [vmem:[#allocation6 + $0x7cc] ss:$12 sps:$4 sm:$0xff]  }
 0x187   :  { %11389 = vmatprep.subr.bf16.mxu0 %v21210_v13  ;;  %11391 = vmatprep.mubr.bf16.mxu0 %v23540_v61  ;;  %v21221_v61 = vld [vmem:[#allocation6 + $0x79c] ss:$12 sps:$4 sm:$0xff]  }
 0x188   :  { %14297 = vmatprep.mubr.bf16.mxu1 %v23591_v14  ;;  %18577 = vmatpush3.bf16.msra.mxu1 %v21257_v20  ;;  %v21232_v13 = vld [vmem:[#allocation6 + $0x7c8] ss:$12 sps:$4 sm:$0xff]  }
 0x189   :  { %v18330_v33 = vpop.f32.mrb[36].mxu1  ;;  %18578 = vmatprep.subr.bf16.mxu1 %v21261_v27  ;;  %v21247_v20 = vld [vmem:[#allocation6 + $0x7fc] ss:$12 sps:$4 sm:$0xff]  }
 0x18a   :  { %v18331_v37 = vpop.f32.mrb[37].mxu1  ;;  %11390 = vmatpush1.bf16.msra.mxu0 %v21208_v7  ;;  %v23641_v7 = vld [vmem:[#allocation3 + $0xb84] ss:$208 sps:$4 sm:$0xff]  }
 0x18b   :  { %v18332_v41 = vadd.f32 %v18331_v37, %v18330_v33  ;;  %v18333_v42 = vpop.f32.mrb[38].mxu1  ;;  %11472 = vmatprep.subr.bf16.mxu0 %v21215_v24  ;;  %v21252_v37 = vld [vmem:[#allocation6 + $0x810] ss:$12 sps:$4 sm:$0xff]  }
 0x18c   :  { %v18334_v31 = vpop.f32.mrb[39].mxu1  ;;  %18579 = vmatpush3.bf16.msra.mxu1 %v21262_v32  ;;  %v21245_v32 = vld [vmem:[#allocation6 + $0x7f8] ss:$12 sps:$4 sm:$0xff]  }
 0x18d   :  { %v23613_v50 = vadd.f32 %v18332_v41, %v13888_v40  ;;  %v18335_v51 = vadd.f32 %v18334_v31, %v18333_v42  ;;  %11392 = vmatmul.mubr.bf16.vlgmr.msra.gmra.mrb[0].mxu0 %v23547_v2  ;;  %18628 = vmatprep.subr.bf16.mxu1 %v21305_v55  ;;  %v13896_v2 = vadd.f32 %v23514_v34, %v23585_v1  ;;  %v23653_v40 = vld [vmem:[#allocation3 + $0xb80] ss:$208 sps:$4 sm:$0xff]   ;;  %v21260_v41 = vld [vmem:[#allocation6 + $0x82c] ss:$12 sps:$4 sm:$0xff]  }
 0x18e   :  { %14298 = vmatmul.mubr.bf16.gmra.mrb[144].mxu1 %v23605_v39  ;;  %11473 = vmatpush1.bf16.msra.mxu0 %v21213_v11 }
 0x18f   :  { %v23617_v52 = vadd.f32 %v18335_v51, %v13891_v47  ;;  %11474 = vmatprep.subr.bf16.mxu0 %v21221_v61  ;;  %11401 = vmatprep.mubr.bf16.mxu0 %v23550_v8  ;;  %v13899_v8 = vadd.f32 %v23519_v38, %v23585_v1  ;;  %v23657_v47 = vld [vmem:[#allocation3 + $0x2c] ss:$208 sps:$4 sm:$0xff]  }
 0x190   :  { %14305 = vmatprep.mubr.bf16.mxu1 %v23609_v45 }
 0x191   :  { %v18336_v57 = vpop.f32.mrb[40].mxu1 }
 0x192   :  { %v18337_v56 = vpop.f32.mrb[41].mxu1  ;;  %11475 = vmatpush1.bf16.msra.mxu0 %v21219_v22 }
 0x193   :  { %v18338_v63 = vadd.f32 %v18337_v56, %v18336_v57  ;;  %v18339_v3 = vpop.f32.mrb[42].mxu1  ;;  %11476 = vmatprep.subr.bf16.mxu0 %v21228_v36  ;;  %v21258_v36 = vld [vmem:[#allocation6 + $0x828] ss:$12 sps:$4 sm:$0xff]   ;;  %v21266_v56 = vld [vmem:[#allocation6 + $0x840] ss:$12 sps:$4 sm:$0xff]  }
 0x194   :  { %v18340_v43 = vpop.f32.mrb[43].mxu1 }
 0x195   :  { %v23629_v9 = vadd.f32 %v18338_v63, %v13896_v2  ;;  %v18341_v12 = vadd.f32 %v18340_v43, %v18339_v3  ;;  %11402 = vmatmul.mubr.bf16.gmra.mrb[4].mxu0 %v23562_v21  ;;  %v13904_v21 = vadd.f32 %v23526_v46, %v23585_v1  ;;  %v21254_v46 = vld [vmem:[#allocation6 + $0x814] ss:$12 sps:$4 sm:$0xff]   ;;  %v21271_v63 = vld [vmem:[#allocation6 + $0x85c] ss:$12 sps:$4 sm:$0xff]   ;;  %v13920_v3 = vadd.f32 %v23552_v10, %v23585_v1 }
 0x196   :  { %14306 = vmatmul.mubr.bf16.gmra.mrb[148].mxu1 %v23621_v62  ;;  %11477 = vmatpush1.bf16.msra.mxu0 %v21226_v26  ;;  %v23668_v26 = vld [vmem:[#allocation3 + $0x28] ss:$208 sps:$4 sm:$0xff]   ;;  %v21276_v10 = vld [vmem:[#allocation6 + $0x874] ss:$12 sps:$4 sm:$0xff]  }
 0x197   :  { %v23633_v34 = vadd.f32 %v18341_v12, %v13899_v8  ;;  %11478 = vmatprep.subr.bf16.mxu0 %v21234_v4  ;;  %11411 = vmatprep.mubr.bf16.mxu0 %v23564_v29  ;;  %v13907_v29 = vadd.f32 %v23531_v48, %v23585_v1  ;;  %v13923_v12 = vadd.f32 %v23555_v5, %v23585_v1  ;;  %v23685_v5 = vld [vmem:[#allocation3 + $0x1c8] ss:$208 sps:$4 sm:$0xff]  }
 0x198   :  { %14313 = vmatprep.mubr.bf16.mxu1 %v23625_v0 }
 0x199   :  { %v18342_v49 = vpop.f32.mrb[44].mxu1 }
 0x19a   :  { %v18343_v38 = vpop.f32.mrb[45].mxu1  ;;  %11479 = vmatpush1.bf16.msra.mxu0 %v21232_v13 }
 0x19b   :  { %v18344_v19 = vadd.f32 %v18343_v38, %v18342_v49  ;;  %v18345_v25 = vpop.f32.mrb[46].mxu1  ;;  %11480 = vmatprep.subr.bf16.mxu0 %v21241_v15  ;;  %v21310_v49 = vld [vmem:[#allocation6 + $0x9e0] ss:$12 sps:$4 sm:$0xff]  }
 0x19c   :  { %v18346_v27 = vpop.f32.mrb[47].mxu1 }
 0x19d   :  { %v23645_v24 = vadd.f32 %v18344_v19, %v13904_v21  ;;  %v18347_v11 = vadd.f32 %v18346_v27, %v18345_v25  ;;  %11412 = vmatmul.mubr.bf16.gmra.mrb[8].mxu0 %v23575_v44  ;;  %v13912_v44 = vadd.f32 %v23538_v59, %v23585_v1  ;;  %v21268_v59 = vld [vmem:[#allocation6 + $0x844] ss:$12 sps:$4 sm:$0xff]   ;;  %v21311_v21 = vld [vmem:[#allocation6 + $0x920] ss:$12 sps:$4 sm:$0xff]  }
 0x19e   :  { %14314 = vmatmul.mubr.bf16.gmra.mrb[152].mxu1 %v23637_v18  ;;  %11481 = vmatpush1.bf16.msra.mxu0 %v21239_v16  ;;  %v21269_v16 = vld [vmem:[#allocation6 + $0x858] ss:$12 sps:$4 sm:$0xff]  }
 0x19f   :  { %v23649_v33 = vadd.f32 %v18347_v11, %v13907_v29  ;;  %11482 = vmatprep.subr.bf16.mxu0 %v21247_v20  ;;  %11421 = vmatprep.mubr.bf16.mxu0 %v23577_v53  ;;  %v13915_v53 = vadd.f32 %v23543_v58, %v23585_v1  ;;  %v21274_v20 = vld [vmem:[#allocation6 + $0x870] ss:$12 sps:$4 sm:$0xff]   ;;  %v21280_v27 = vld [vmem:[#allocation6 + $0x88c] ss:$12 sps:$4 sm:$0xff]   ;;  %v13928_v11 = vadd.f32 %v23566_v30, %v23585_v1  ;;  %v21278_v30 = vld [vmem:[#allocation6 + $0x888] ss:$12 sps:$4 sm:$0xff]  }
 0x1a0   :  { %14321 = vmatprep.mubr.bf16.mxu1 %v23641_v7  ;;  %v23687_v29 = vld [vmem:[#allocation3 + $0x36c] ss:$208 sps:$4 sm:$0xff]  }
 0x1a1   :  { %v18348_v55 = vpop.f32.mrb[48].mxu1 }
 0x1a2   :  { %v18349_v48 = vpop.f32.mrb[49].mxu1  ;;  %11483 = vmatpush1.bf16.msra.mxu0 %v21245_v32 }
 0x1a3   :  { %v18350_v42 = vadd.f32 %v18349_v48, %v18348_v55  ;;  %v18351_v61 = vpop.f32.mrb[50].mxu1  ;;  %11484 = vmatprep.subr.bf16.mxu0 %v21254_v46  ;;  %v21319_v55 = vld [vmem:[#allocation6 + $0x938] ss:$12 sps:$4 sm:$0xff]  }
 0x1a4   :  { %v18352_v31 = vpop.f32.mrb[51].mxu1 }
 0x1a5   :  { %v23661_v51 = vadd.f32 %v18350_v42, %v13912_v44  ;;  %v18353_v22 = vadd.f32 %v18352_v31, %v18351_v61  ;;  %11422 = vmatmul.mubr.bf16.gmra.mrb[12].mxu0 %v23589_v6  ;;  %v23671_v6 = vld [vmem:[#allocation3 + $0x1cc] ss:$208 sps:$4 sm:$0xff]   ;;  %v21285_v61 = vld [vmem:[#allocation6 + $0x8a4] ss:$12 sps:$4 sm:$0xff]  }
 0x1a6   :  { %14322 = vmatmul.mubr.bf16.gmra.mrb[156].mxu1 %v23653_v40  ;;  %11485 = vmatpush1.bf16.msra.mxu0 %v21252_v37  ;;  %v13931_v37 = vadd.f32 %v23569_v35, %v23585_v1  ;;  %v21323_v44 = vld [vmem:[#allocation6 + $0xa10] ss:$12 sps:$4 sm:$0xff]   ;;  %v21283_v35 = vld [vmem:[#allocation6 + $0x8a0] ss:$12 sps:$4 sm:$0xff]  }
 0x1a7   :  { %v23665_v57 = vadd.f32 %v18353_v22, %v13915_v53  ;;  %11486 = vmatprep.subr.bf16.mxu0 %v21260_v41  ;;  %11431 = vmatprep.mubr.bf16.mxu0 %v23591_v14  ;;  %v21306_v14 = vld [vmem:[#allocation6 + $0x908] ss:$12 sps:$4 sm:$0xff]   ;;  %v21324_v31 = vld [vmem:[#allocation6 + $0x950] ss:$12 sps:$4 sm:$0xff]  }
 0x1a8   :  { %14362 = vmatprep.mubr.bf16.mxu1 %v23657_v47 }
 0x1a9   :  { %v18354_v58 = vpop.f32.mrb[52].mxu1 }
 0x1aa   :  { %v18355_v2 = vpop.f32.mrb[53].mxu1  ;;  %11487 = vmatpush1.bf16.msra.mxu0 %v21258_v36  ;;  %v23701_v36 = vld [vmem:[#allocation3 + $0x368] ss:$208 sps:$4 sm:$0xff]  }
 0x1ab   :  { %v18356_v4 = vadd.f32 %v18355_v2, %v18354_v58  ;;  %v18357_v43 = vpop.f32.mrb[54].mxu1  ;;  %11488 = vmatprep.subr.bf16.mxu0 %v21268_v59  ;;  %v13936_v59 = vadd.f32 %v23579_v54, %v23585_v1  ;;  %v21287_v54 = vld [vmem:[#allocation6 + $0x8b8] ss:$12 sps:$4 sm:$0xff]  }
 0x1ac   :  { %v18358_v8 = vpop.f32.mrb[55].mxu1 }
 0x1ad   :  { %v23677_v13 = vadd.f32 %v18356_v4, %v13920_v3  ;;  %v18359_v15 = vadd.f32 %v18358_v8, %v18357_v43  ;;  %11432 = vmatmul.mubr.bf16.gmra.mrb[16].mxu0 %v23605_v39  ;;  %v21318_v39 = vld [vmem:[#allocation6 + $0x9f8] ss:$12 sps:$4 sm:$0xff]   ;;  %v21332_v3 = vld [vmem:[#allocation6 + $0x968] ss:$12 sps:$4 sm:$0xff]   ;;  %v13939_v4 = vadd.f32 %v23582_v60, %v23585_v1  ;;  %v21292_v60 = vld [vmem:[#allocation6 + $0x8d0] ss:$12 sps:$4 sm:$0xff]  }
 0x1ae   :  { %14363 = vmatmul.mubr.bf16.vlgmr.msra.gmra.mrb[160].mxu1 %v23668_v26  ;;  %11489 = vmatpush1.bf16.msra.mxu0 %v21266_v56  ;;  %v23717_v1 = vld [vmem:[#allocation3 + $0x508] ss:$208 sps:$4 sm:$0xff]  }
 0x1af   :  { %v23681_v38 = vadd.f32 %v18359_v15, %v13923_v12  ;;  %11490 = vmatprep.subr.bf16.mxu0 %v21271_v63  ;;  %11441 = vmatprep.mubr.bf16.mxu0 %v23609_v45  ;;  %v23705_v63 = vld [vmem:[#allocation3 + $0x50c] ss:$208 sps:$4 sm:$0xff]   ;;  %v21294_v15 = vld [vmem:[#allocation6 + $0x8d4] ss:$12 sps:$4 sm:$0xff]  }
 0x1b0   :  { %14370 = vmatprep.mubr.bf16.mxu1 %v23671_v6  ;;  %18629 = vmatpush3.bf16.msra.mxu1 %v21306_v14  ;;  %v21336_v14 = vld [vmem:[#allocation6 + $0xa40] ss:$12 sps:$4 sm:$0xff]  }
 0x1b1   :  { %v18360_v19 = vpop.f32.mrb[56].mxu1  ;;  %18630 = vmatprep.subr.bf16.mxu1 %v21310_v49  ;;  %v21337_v49 = vld [vmem:[#allocation6 + $0x980] ss:$12 sps:$4 sm:$0xff]  }
 0x1b2   :  { %v18361_v25 = vpop.f32.mrb[57].mxu1  ;;  %11491 = vmatpush1.bf16.msra.mxu0 %v21269_v16  ;;  %v21344_v16 = vld [vmem:[#allocation6 + $0xa58] ss:$12 sps:$4 sm:$0xff]  }
 0x1b3   :  { %v18362_v45 = vadd.f32 %v18361_v25, %v18360_v19  ;;  %v18363_v32 = vpop.f32.mrb[58].mxu1  ;;  %11492 = vmatprep.subr.bf16.mxu0 %v21276_v10  ;;  %v21298_v19 = vld [vmem:[#allocation6 + $0x8ec] ss:$12 sps:$4 sm:$0xff]   ;;  %v21296_v25 = vld [vmem:[#allocation6 + $0x8e8] ss:$12 sps:$4 sm:$0xff]  }
 0x1b4   :  { %v18364_v46 = vpop.f32.mrb[59].mxu1  ;;  %18631 = vmatpush3.bf16.msra.mxu1 %v21311_v21 }
 0x1b5   :  { %v23693_v48 = vadd.f32 %v18362_v45, %v13928_v11  ;;  %v18365_v41 = vadd.f32 %v18364_v46, %v18363_v32  ;;  %11442 = vmatmul.mubr.bf16.gmra.mrb[20].mxu0 %v23621_v62  ;;  %18632 = vmatprep.subr.bf16.mxu1 %v21318_v39  ;;  %v21331_v62 = vld [vmem:[#allocation6 + $0xa28] ss:$12 sps:$4 sm:$0xff]   ;;  %v21303_v32 = vld [vmem:[#allocation6 + $0x904] ss:$12 sps:$4 sm:$0xff]  }
 0x1b6   :  { %14371 = vmatmul.mubr.bf16.gmra.mrb[164].mxu1 %v23685_v5  ;;  %11493 = vmatpush1.bf16.msra.mxu0 %v21274_v20  ;;  %v21349_v46 = vld [vmem:[#allocation6 + $0xa70] ss:$12 sps:$4 sm:$0xff]  }
 0x1b7   :  { %v23697_v42 = vadd.f32 %v18365_v41, %v13931_v37  ;;  %11494 = vmatprep.subr.bf16.mxu0 %v21280_v27  ;;  %11451 = vmatprep.mubr.bf16.mxu0 %v23625_v0  ;;  %v21289_v0 = vld [vmem:[#allocation6 + $0x8bc] ss:$12 sps:$4 sm:$0xff]   ;;  %v21345_v27 = vld [vmem:[#allocation6 + $0x998] ss:$12 sps:$4 sm:$0xff]   ;;  %v21301_v37 = vld [vmem:[#allocation6 + $0x900] ss:$12 sps:$4 sm:$0xff]  }
 0x1b8   :  { %14378 = vmatprep.mubr.bf16.mxu1 %v23687_v29  ;;  %18633 = vmatpush3.bf16.msra.mxu1 %v21319_v55  ;;  %v21350_v41 = vld [vmem:[#allocation6 + $0x9b0] ss:$12 sps:$4 sm:$0xff]  }
 0x1b9   :  { %v18366_v53 = vpop.f32.mrb[60].mxu1  ;;  %18634 = vmatprep.subr.bf16.mxu1 %v21323_v44  ;;  %v21393_v44 = vld [vmem:[#allocation6 + $0xb48] ss:$12 sps:$4 sm:$0xff]  }
 0x1ba   :  { %v18367_v22 = vpop.f32.mrb[61].mxu1  ;;  %11495 = vmatpush1.bf16.msra.mxu0 %v21278_v30 }
 0x1bb   :  { %v18368_v58 = vadd.f32 %v18367_v22, %v18366_v53  ;;  %v18369_v56 = vpop.f32.mrb[62].mxu1  ;;  %11496 = vmatprep.subr.bf16.mxu0 %v21285_v61  ;;  %v23733_v53 = vld [vmem:[#allocation3 + $0x84c] ss:$208 sps:$4 sm:$0xff]   ;;  %v21307_v22 = vld [vmem:[#allocation6 + $0x918] ss:$12 sps:$4 sm:$0xff]  }
 0x1bc   :  { %v18370_v2 = vpop.f32.mrb[63].mxu1  ;;  %18635 = vmatpush3.bf16.msra.mxu1 %v21324_v31 }
 0x1bd   :  { %v23709_v43 = vadd.f32 %v18368_v58, %v13936_v59  ;;  %v18371_v8 = vadd.f32 %v18370_v2, %v18369_v56  ;;  %11452 = vmatmul.mubr.bf16.gmra.mrb[24].mxu0 %v23637_v18  ;;  %18636 = vmatprep.subr.bf16.mxu1 %v21331_v62  ;;  %v21316_v59 = vld [vmem:[#allocation6 + $0x934] ss:$12 sps:$4 sm:$0xff]  }
 0x1be   :  { %14379 = vmatmul.mubr.bf16.gmra.mrb[168].mxu1 %v23701_v36  ;;  %11497 = vmatpush1.bf16.msra.mxu0 %v21283_v35 }
 0x1bf   :  { %v23713_v12 = vadd.f32 %v18371_v8, %v13939_v4  ;;  %11498 = vmatprep.subr.bf16.mxu0 %v21289_v0  ;;  %11461 = vmatprep.mubr.bf16.mxu0 %v23641_v7  ;;  %v23719_v7 = vld [vmem:[#allocation3 + $0x6ac] ss:$208 sps:$4 sm:$0xff]   ;;  %v23745_v0 = vld [vmem:[#allocation3 + $0x848] ss:$208 sps:$4 sm:$0xff]  }
 0x1c0   :  { %14386 = vmatprep.mubr.bf16.mxu1 %v23705_v63  ;;  %18637 = vmatpush3.bf16.msra.mxu1 %v21332_v3  ;;  %v21322_v4 = vld [vmem:[#allocation6 + $0x94c] ss:$12 sps:$4 sm:$0xff]  }
 0x1c1   :  { %v18388_v18 = vpop.f32.mrb[64].mxu1  ;;  %18638 = vmatprep.subr.bf16.mxu1 %v21336_v14  ;;  %v23747_v14 = vld [vmem:[#allocation3 + $0x9ec] ss:$208 sps:$4 sm:$0xff]  }
 0x1c2   :  { %v18389_v10 = vpop.f32.mrb[65].mxu1  ;;  %11499 = vmatpush1.bf16.msra.mxu0 %v21287_v54 }
 0x1c3   :  { %v18390_v20 = vadd.f32 %v18389_v10, %v18388_v18  ;;  %v18391_v21 = vpop.f32.mrb[66].mxu1  ;;  %11500 = vmatprep.subr.bf16.mxu0 %v21294_v15  ;;  %v21329_v15 = vld [vmem:[#allocation6 + $0x964] ss:$12 sps:$4 sm:$0xff]   ;;  %v21327_v18 = vld [vmem:[#allocation6 + $0x960] ss:$12 sps:$4 sm:$0xff]  }
 0x1c4   :  { %v18392_v39 = vpop.f32.mrb[67].mxu1  ;;  %18639 = vmatpush3.bf16.msra.mxu1 %v21337_v49 }
 0x1c5   :  { %v23722_v11 = vadd.f32 %v18390_v20, %v23597_v23  ;;  %v18393_v45 = vadd.f32 %v18392_v39, %v18391_v21  ;;  %11462 = vmatmul.mubr.bf16.gmra.mrb[28].mxu0 %v23653_v40  ;;  %18640 = vmatprep.subr.bf16.mxu1 %v21344_v16  ;;  %v23731_v23 = vld [vmem:[#allocation3 + $0x6a8] ss:$208 sps:$4 sm:$0xff]  }
 0x1c6   :  { %14387 = vmatmul.mubr.bf16.gmra.mrb[172].mxu1 %v23717_v1  ;;  %11501 = vmatpush1.bf16.msra.mxu0 %v21292_v60  ;;  %v21335_v20 = vld [vmem:[#allocation6 + $0x97c] ss:$12 sps:$4 sm:$0xff]  }
 0x1c7   :  { %v23727_v55 = vadd.f32 %v18393_v45, %v23601_v28  ;;  %11502 = vmatprep.subr.bf16.mxu0 %v21298_v19  ;;  %11504 = vmatprep.mubr.bf16.mxu0 %v23657_v47  ;;  %v21309_v28 = vld [vmem:[#allocation6 + $0x91c] ss:$12 sps:$4 sm:$0xff]  }
 0x1c8   :  { %14394 = vmatprep.mubr.bf16.mxu1 %v23719_v7  ;;  %18641 = vmatpush3.bf16.msra.mxu1 %v21345_v27  ;;  %v23761_v19 = vld [vmem:[#allocation3 + $0xb8c] ss:$208 sps:$4 sm:$0xff]  }
 0x1c9   :  { %v18394_v40 = vpop.f32.mrb[68].mxu1  ;;  %18642 = vmatprep.subr.bf16.mxu1 %v21349_v46 }
 0x1ca   :  { %v18395_v30 = vpop.f32.mrb[69].mxu1  ;;  %11503 = vmatpush1.bf16.msra.mxu0 %v21296_v25  ;;  %v21342_v25 = vld [vmem:[#allocation6 + $0x994] ss:$12 sps:$4 sm:$0xff]  }
 0x1cb   :  { %v18396_v61 = vadd.f32 %v18395_v30, %v18394_v40  ;;  %v18397_v35 = vpop.f32.mrb[70].mxu1  ;;  %11585 = vmatprep.subr.bf16.mxu0 %v21303_v32  ;;  %v21340_v32 = vld [vmem:[#allocation6 + $0x990] ss:$12 sps:$4 sm:$0xff]  }
 0x1cc   :  { %v18398_v31 = vpop.f32.mrb[71].mxu1  ;;  %18643 = vmatpush3.bf16.msra.mxu1 %v21350_v41  ;;  %v21348_v41 = vld [vmem:[#allocation6 + $0x9ac] ss:$12 sps:$4 sm:$0xff]  }
 0x1cd   :  { %v23736_v47 = vadd.f32 %v18396_v61, %v23613_v50  ;;  %v18399_v62 = vadd.f32 %v18398_v31, %v18397_v35  ;;  %11505 = vmatmul.mubr.bf16.vlgmr.msra.gmra.mrb[0].mxu0 %v23668_v26  ;;  %18692 = vmatprep.subr.bf16.mxu1 %v21393_v44  ;;  %v21314_v50 = vld [vmem:[#allocation6 + $0x930] ss:$12 sps:$4 sm:$0xff]   ;;  %v23775_v44 = vld [vmem:[#allocation3 + $0x34] ss:$208 sps:$4 sm:$0xff]  }
 0x1ce   :  { %14395 = vmatmul.mubr.bf16.gmra.mrb[176].mxu1 %v23731_v23  ;;  %11586 = vmatpush1.bf16.msra.mxu0 %v21301_v37  ;;  %v21356_v61 = vld [vmem:[#allocation6 + $0x9c4] ss:$12 sps:$4 sm:$0xff]  }
 0x1cf   :  { %v23741_v58 = vadd.f32 %v18399_v62, %v23617_v52  ;;  %11587 = vmatprep.subr.bf16.mxu0 %v21309_v28  ;;  %11514 = vmatprep.mubr.bf16.mxu0 %v23671_v6  ;;  %v21320_v6 = vld [vmem:[#allocation6 + $0x948] ss:$12 sps:$4 sm:$0xff]   ;;  %v23787_v31 = vld [vmem:[#allocation3 + $0x30] ss:$208 sps:$4 sm:$0xff]  }
 0x1d0   :  { %14402 = vmatprep.mubr.bf16.mxu1 %v23733_v53 }
 0x1d1   :  { %v18400_v56 = vpop.f32.mrb[72].mxu1 }
 0x1d2   :  { %v18401_v2 = vpop.f32.mrb[73].mxu1  ;;  %11588 = vmatpush1.bf16.msra.mxu0 %v21307_v22 }
 0x1d3   :  { %v18402_v26 = vadd.f32 %v18401_v2, %v18400_v56  ;;  %v18403_v3 = vpop.f32.mrb[74].mxu1  ;;  %11589 = vmatprep.subr.bf16.mxu0 %v21316_v59  ;;  %v21359_v59 = vld [vmem:[#allocation6 + $0x9dc] ss:$12 sps:$4 sm:$0xff]   ;;  %v23789_v2 = vld [vmem:[#allocation3 + $0x1d4] ss:$208 sps:$4 sm:$0xff]  }
 0x1d4   :  { %v18404_v8 = vpop.f32.mrb[75].mxu1 }
 0x1d5   :  { %v23750_v52 = vadd.f32 %v18402_v26, %v23629_v9  ;;  %v18405_v54 = vadd.f32 %v18404_v8, %v18403_v3  ;;  %11515 = vmatmul.mubr.bf16.gmra.mrb[4].mxu0 %v23685_v5  ;;  %v23759_v9 = vld [vmem:[#allocation3 + $0x9e8] ss:$208 sps:$4 sm:$0xff]   ;;  %v21364_v3 = vld [vmem:[#allocation6 + $0x9f4] ss:$12 sps:$4 sm:$0xff]  }
 0x1d6   :  { %14403 = vmatmul.mubr.bf16.gmra.mrb[180].mxu1 %v23745_v0  ;;  %11590 = vmatpush1.bf16.msra.mxu0 %v21314_v50  ;;  %v21357_v50 = vld [vmem:[#allocation6 + $0x9d8] ss:$12 sps:$4 sm:$0xff]  }
 0x1d7   :  { %v23755_v60 = vadd.f32 %v18405_v54, %v23633_v34  ;;  %11591 = vmatprep.subr.bf16.mxu0 %v21322_v4  ;;  %11524 = vmatprep.mubr.bf16.mxu0 %v23687_v29  ;;  %v21333_v29 = vld [vmem:[#allocation6 + $0x978] ss:$12 sps:$4 sm:$0xff]   ;;  %v21398_v4 = vld [vmem:[#allocation6 + $0xb60] ss:$12 sps:$4 sm:$0xff]   ;;  %v21362_v54 = vld [vmem:[#allocation6 + $0x9f0] ss:$12 sps:$4 sm:$0xff]  }
 0x1d8   :  { %14410 = vmatprep.mubr.bf16.mxu1 %v23747_v14 }
 0x1d9   :  { %v18406_v49 = vpop.f32.mrb[76].mxu1 }
 0x1da   :  { %v18407_v16 = vpop.f32.mrb[77].mxu1  ;;  %11592 = vmatpush1.bf16.msra.mxu0 %v21320_v6  ;;  %v23801_v6 = vld [vmem:[#allocation3 + $0x1d0] ss:$208 sps:$4 sm:$0xff]  }
 0x1db   :  { %v18408_v5 = vadd.f32 %v18407_v16, %v18406_v49  ;;  %v18409_v10 = vpop.f32.mrb[78].mxu1  ;;  %11593 = vmatprep.subr.bf16.mxu0 %v21329_v15 }
 0x1dc   :  { %v18410_v21 = vpop.f32.mrb[79].mxu1 }
 0x1dd   :  { %v23764_v34 = vadd.f32 %v18408_v5, %v23645_v24  ;;  %v18411_v39 = vadd.f32 %v18410_v21, %v18409_v10  ;;  %11525 = vmatmul.mubr.bf16.gmra.mrb[8].mxu0 %v23701_v36  ;;  %v23773_v24 = vld [vmem:[#allocation3 + $0xb88] ss:$208 sps:$4 sm:$0xff]  }
 0x1de   :  { %14411 = vmatmul.mubr.bf16.gmra.mrb[184].mxu1 %v23759_v9  ;;  %11594 = vmatpush1.bf16.msra.mxu0 %v21327_v18  ;;  %v21366_v10 = vld [vmem:[#allocation6 + $0xa08] ss:$12 sps:$4 sm:$0xff]  }
 0x1df   :  { %v23769_v27 = vadd.f32 %v18411_v39, %v23649_v33  ;;  %11595 = vmatprep.subr.bf16.mxu0 %v21335_v20  ;;  %11534 = vmatprep.mubr.bf16.mxu0 %v23705_v63  ;;  %v21346_v63 = vld [vmem:[#allocation6 + $0x9a8] ss:$12 sps:$4 sm:$0xff]  }
 0x1e0   :  { %14418 = vmatprep.mubr.bf16.mxu1 %v23761_v19  ;;  %v23803_v20 = vld [vmem:[#allocation3 + $0x374] ss:$208 sps:$4 sm:$0xff]  }
 0x1e1   :  { %v18412_v45 = vpop.f32.mrb[80].mxu1 }
 0x1e2   :  { %v18413_v46 = vpop.f32.mrb[81].mxu1  ;;  %11596 = vmatpush1.bf16.msra.mxu0 %v21333_v29  ;;  %v21373_v29 = vld [vmem:[#allocation6 + $0xa24] ss:$12 sps:$4 sm:$0xff]  }
 0x1e3   :  { %v18414_v36 = vadd.f32 %v18413_v46, %v18412_v45  ;;  %v18415_v37 = vpop.f32.mrb[82].mxu1  ;;  %11597 = vmatprep.subr.bf16.mxu0 %v21342_v25  ;;  %v21411_v25 = vld [vmem:[#allocation6 + $0xb90] ss:$12 sps:$4 sm:$0xff]  }
 0x1e4   :  { %v18416_v40 = vpop.f32.mrb[83].mxu1  ;;  %v21412_v46 = vld [vmem:[#allocation6 + $0xad0] ss:$12 sps:$4 sm:$0xff]  }
 0x1e5   :  { %v23778_v33 = vadd.f32 %v18414_v36, %v23661_v51  ;;  %v18417_v30 = vadd.f32 %v18416_v40, %v18415_v37  ;;  %11535 = vmatmul.mubr.bf16.gmra.mrb[12].mxu0 %v23717_v1  ;;  %v21354_v51 = vld [vmem:[#allocation6 + $0x9c0] ss:$12 sps:$4 sm:$0xff]   ;;  %v21419_v36 = vld [vmem:[#allocation6 + $0xba8] ss:$12 sps:$4 sm:$0xff]  }
 0x1e6   :  { %14419 = vmatmul.mubr.bf16.gmra.mrb[188].mxu1 %v23773_v24  ;;  %11598 = vmatpush1.bf16.msra.mxu0 %v21340_v32  ;;  %v21371_v32 = vld [vmem:[#allocation6 + $0xa20] ss:$12 sps:$4 sm:$0xff]  }
 0x1e7   :  { %v23783_v35 = vadd.f32 %v18417_v30, %v23665_v57  ;;  %11599 = vmatprep.subr.bf16.mxu0 %v21348_v41  ;;  %11544 = vmatprep.mubr.bf16.mxu0 %v23719_v7  ;;  %v21394_v57 = vld [vmem:[#allocation6 + $0xa88] ss:$12 sps:$4 sm:$0xff]  }
 0x1e8   :  { %14459 = vmatprep.mubr.bf16.mxu1 %v23775_v44 }
 0x1e9   :  { %v18418_v28 = vpop.f32.mrb[84].mxu1 }
 0x1ea   :  { %v18419_v62 = vpop.f32.mrb[85].mxu1  ;;  %11600 = vmatpush1.bf16.msra.mxu0 %v21346_v63  ;;  %v21375_v63 = vld [vmem:[#allocation6 + $0xa38] ss:$12 sps:$4 sm:$0xff]  }
 0x1eb   :  { %v18420_v1 = vadd.f32 %v18419_v62, %v18418_v28  ;;  %v18421_v22 = vpop.f32.mrb[86].mxu1  ;;  %11601 = vmatprep.subr.bf16.mxu0 %v21356_v61  ;;  %v23817_v61 = vld [vmem:[#allocation3 + $0x514] ss:$208 sps:$4 sm:$0xff]  }
 0x1ec   :  { %v18422_v56 = vpop.f32.mrb[87].mxu1  ;;  %v21382_v62 = vld [vmem:[#allocation6 + $0xa54] ss:$12 sps:$4 sm:$0xff]  }
 0x1ed   :  { %v23792_v26 = vadd.f32 %v18420_v1, %v23677_v13  ;;  %v18423_v7 = vadd.f32 %v18422_v56, %v18421_v22  ;;  %11545 = vmatmul.mubr.bf16.gmra.mrb[16].mxu0 %v23731_v23  ;;  %v21399_v13 = vld [vmem:[#allocation6 + $0xaa0] ss:$12 sps:$4 sm:$0xff]   ;;  %v21406_v23 = vld [vmem:[#allocation6 + $0xb78] ss:$12 sps:$4 sm:$0xff]  }
 0x1ee   :  { %14460 = vmatmul.mubr.bf16.vlgmr.msra.gmra.mrb[192].mxu1 %v23787_v31  ;;  %11602 = vmatpush1.bf16.msra.mxu0 %v21354_v51  ;;  %v21424_v1 = vld [vmem:[#allocation6 + $0xbc0] ss:$12 sps:$4 sm:$0xff]  }
 0x1ef   :  { %v23797_v8 = vadd.f32 %v18423_v7, %v23681_v38  ;;  %11603 = vmatprep.subr.bf16.mxu0 %v21359_v59  ;;  %11554 = vmatprep.mubr.bf16.mxu0 %v23733_v53  ;;  %v21368_v38 = vld [vmem:[#allocation6 + $0xa0c] ss:$12 sps:$4 sm:$0xff]   ;;  %v21380_v59 = vld [vmem:[#allocation6 + $0xa50] ss:$12 sps:$4 sm:$0xff]  }
 0x1f0   :  { %14467 = vmatprep.mubr.bf16.mxu1 %v23789_v2  ;;  %18693 = vmatpush3.bf16.msra.mxu1 %v21394_v57  ;;  %v21407_v53 = vld [vmem:[#allocation6 + $0xab8] ss:$12 sps:$4 sm:$0xff]   ;;  %v21425_v56 = vld [vmem:[#allocation6 + $0xb00] ss:$12 sps:$4 sm:$0xff]  }
 0x1f1   :  { %v18424_v15 = vpop.f32.mrb[88].mxu1  ;;  %18694 = vmatprep.subr.bf16.mxu1 %v21398_v4 }
 0x1f2   :  { %v18425_v49 = vpop.f32.mrb[89].mxu1  ;;  %11604 = vmatpush1.bf16.msra.mxu0 %v21357_v50  ;;  %v21432_v50 = vld [vmem:[#allocation6 + $0xbd8] ss:$12 sps:$4 sm:$0xff]  }
 0x1f3   :  { %v18426_v18 = vadd.f32 %v18425_v49, %v18424_v15  ;;  %v18427_v16 = vpop.f32.mrb[90].mxu1  ;;  %11605 = vmatprep.subr.bf16.mxu0 %v21364_v3  ;;  %v21391_v49 = vld [vmem:[#allocation6 + $0xa84] ss:$12 sps:$4 sm:$0xff]  }
 0x1f4   :  { %v18428_v5 = vpop.f32.mrb[91].mxu1  ;;  %18695 = vmatpush3.bf16.msra.mxu1 %v21399_v13  ;;  %v23831_v13 = vld [vmem:[#allocation3 + $0x6b4] ss:$208 sps:$4 sm:$0xff]  }
 0x1f5   :  { %v23806_v21 = vadd.f32 %v18426_v18, %v23693_v48  ;;  %v18429_v39 = vadd.f32 %v18428_v5, %v18427_v16  ;;  %11555 = vmatmul.mubr.bf16.gmra.mrb[20].mxu0 %v23745_v0  ;;  %18696 = vmatprep.subr.bf16.mxu1 %v21406_v23  ;;  %v23815_v48 = vld [vmem:[#allocation3 + $0x370] ss:$208 sps:$4 sm:$0xff]  }
 0x1f6   :  { %14468 = vmatmul.mubr.bf16.gmra.mrb[196].mxu1 %v23801_v6  ;;  %11606 = vmatpush1.bf16.msra.mxu0 %v21362_v54  ;;  %v21384_v54 = vld [vmem:[#allocation6 + $0xa68] ss:$12 sps:$4 sm:$0xff]   ;;  %v21437_v18 = vld [vmem:[#allocation6 + $0xbf0] ss:$12 sps:$4 sm:$0xff]  }
 0x1f7   :  { %v23811_v45 = vadd.f32 %v18429_v39, %v23697_v42  ;;  %11607 = vmatprep.subr.bf16.mxu0 %v21368_v38  ;;  %11564 = vmatprep.mubr.bf16.mxu0 %v23747_v14  ;;  %v21377_v42 = vld [vmem:[#allocation6 + $0xa3c] ss:$12 sps:$4 sm:$0xff]   ;;  %v21389_v38 = vld [vmem:[#allocation6 + $0xa80] ss:$12 sps:$4 sm:$0xff]  }
 0x1f8   :  { %14475 = vmatprep.mubr.bf16.mxu1 %v23803_v20  ;;  %18697 = vmatpush3.bf16.msra.mxu1 %v21407_v53  ;;  %v21420_v14 = vld [vmem:[#allocation6 + $0xae8] ss:$12 sps:$4 sm:$0xff]   ;;  %v21438_v5 = vld [vmem:[#allocation6 + $0xb30] ss:$12 sps:$4 sm:$0xff]  }
 0x1f9   :  { %v18430_v0 = vpop.f32.mrb[92].mxu1  ;;  %18698 = vmatprep.subr.bf16.mxu1 %v21411_v25 }
 0x1fa   :  { %v18431_v37 = vpop.f32.mrb[93].mxu1  ;;  %11608 = vmatpush1.bf16.msra.mxu0 %v21366_v10  ;;  %v21481_v10 = vld [vmem:[#allocation6 + $0xcc8] ss:$12 sps:$4 sm:$0xff]  }
 0x1fb   :  { %v18432_v41 = vadd.f32 %v18431_v37, %v18430_v0  ;;  %v18433_v40 = vpop.f32.mrb[94].mxu1  ;;  %11609 = vmatprep.subr.bf16.mxu0 %v21373_v29  ;;  %v21395_v0 = vld [vmem:[#allocation6 + $0xa98] ss:$12 sps:$4 sm:$0xff]  }
 0x1fc   :  { %v18434_v30 = vpop.f32.mrb[95].mxu1  ;;  %18699 = vmatpush3.bf16.msra.mxu1 %v21412_v46 }
 0x1fd   :  { %v23820_v28 = vadd.f32 %v18432_v41, %v23709_v43  ;;  %v18435_v51 = vadd.f32 %v18434_v30, %v18433_v40  ;;  %11565 = vmatmul.mubr.bf16.gmra.mrb[24].mxu0 %v23759_v9  ;;  %18700 = vmatprep.subr.bf16.mxu1 %v21419_v36  ;;  %v23829_v43 = vld [vmem:[#allocation3 + $0x510] ss:$208 sps:$4 sm:$0xff]  }
 0x1fe   :  { %14476 = vmatmul.mubr.bf16.gmra.mrb[200].mxu1 %v23815_v48  ;;  %11610 = vmatpush1.bf16.msra.mxu0 %v21371_v32  ;;  %v23845_v32 = vld [vmem:[#allocation3 + $0x854] ss:$208 sps:$4 sm:$0xff]   ;;  %v23857_v40 = vld [vmem:[#allocation3 + $0x850] ss:$208 sps:$4 sm:$0xff]  }
 0x1ff   :  { %v23825_v22 = vadd.f32 %v18435_v51, %v23713_v12  ;;  %11611 = vmatprep.subr.bf16.mxu0 %v21377_v42  ;;  %11574 = vmatprep.mubr.bf16.mxu0 %v23761_v19  ;;  %v21386_v12 = vld [vmem:[#allocation6 + $0xa6c] ss:$12 sps:$4 sm:$0xff]   ;;  %v21404_v36 = vld [vmem:[#allocation6 + $0xab4] ss:$12 sps:$4 sm:$0xff]  }
 0x200   :  { %14483 = vmatprep.mubr.bf16.mxu1 %v23817_v61  ;;  %18701 = vmatpush3.bf16.msra.mxu1 %v21420_v14  ;;  %v21433_v19 = vld [vmem:[#allocation6 + $0xb18] ss:$12 sps:$4 sm:$0xff]  }
 0x201   :  { %v18452_v9 = vpop.f32.mrb[96].mxu1  ;;  %18702 = vmatprep.subr.bf16.mxu1 %v21424_v1  ;;  %v23859_v51 = vld [vmem:[#allocation3 + $0x9f4] ss:$208 sps:$4 sm:$0xff]  }
 0x202   :  { %v18453_v57 = vpop.f32.mrb[97].mxu1  ;;  %11612 = vmatpush1.bf16.msra.mxu0 %v21375_v63  ;;  %v21410_v63 = vld [vmem:[#allocation6 + $0xacc] ss:$12 sps:$4 sm:$0xff]   ;;  %v21417_v1 = vld [vmem:[#allocation6 + $0xae4] ss:$12 sps:$4 sm:$0xff]  }
 0x203   :  { %v18454_v7 = vadd.f32 %v18453_v57, %v18452_v9  ;;  %v18455_v3 = vpop.f32.mrb[98].mxu1  ;;  %11613 = vmatprep.subr.bf16.mxu0 %v21382_v62  ;;  %v21415_v9 = vld [vmem:[#allocation6 + $0xae0] ss:$12 sps:$4 sm:$0xff]  }
 0x204   :  { %v18456_v4 = vpop.f32.mrb[99].mxu1  ;;  %18703 = vmatpush3.bf16.msra.mxu1 %v21425_v56 }
 0x205   :  { %v23834_v15 = vadd.f32 %v18454_v7, %v23722_v11  ;;  %v18457_v23 = vadd.f32 %v18456_v4, %v18455_v3  ;;  %11575 = vmatmul.mubr.bf16.gmra.mrb[28].mxu0 %v23773_v24  ;;  %18704 = vmatprep.subr.bf16.mxu1 %v21432_v50  ;;  %v23843_v11 = vld [vmem:[#allocation3 + $0x6b0] ss:$208 sps:$4 sm:$0xff]   ;;  %v21423_v7 = vld [vmem:[#allocation6 + $0xafc] ss:$12 sps:$4 sm:$0xff]  }
 0x206   :  { %14484 = vmatmul.mubr.bf16.gmra.mrb[204].mxu1 %v23829_v43  ;;  %11614 = vmatpush1.bf16.msra.mxu0 %v21380_v59 }
 0x207   :  { %v23839_v16 = vadd.f32 %v18457_v23, %v23727_v55  ;;  %11615 = vmatprep.subr.bf16.mxu0 %v21386_v12  ;;  %11617 = vmatprep.mubr.bf16.mxu0 %v23775_v44  ;;  %v21397_v55 = vld [vmem:[#allocation6 + $0xa9c] ss:$12 sps:$4 sm:$0xff]   ;;  %v23873_v12 = vld [vmem:[#allocation3 + $0xb94] ss:$208 sps:$4 sm:$0xff]  }
 0x208   :  { %14491 = vmatprep.mubr.bf16.mxu1 %v23831_v13  ;;  %18705 = vmatpush3.bf16.msra.mxu1 %v21433_v19 }
 0x209   :  { %v18458_v24 = vpop.f32.mrb[100].mxu1  ;;  %18706 = vmatprep.subr.bf16.mxu1 %v21437_v18 }
 0x20a   :  { %v18459_v53 = vpop.f32.mrb[101].mxu1  ;;  %11616 = vmatpush1.bf16.msra.mxu0 %v21384_v54  ;;  %v21430_v54 = vld [vmem:[#allocation6 + $0xb14] ss:$12 sps:$4 sm:$0xff]  }
 0x20b   :  { %v18460_v39 = vadd.f32 %v18459_v53, %v18458_v24  ;;  %v18461_v29 = vpop.f32.mrb[102].mxu1  ;;  %11698 = vmatprep.subr.bf16.mxu0 %v21391_v49  ;;  %v21428_v49 = vld [vmem:[#allocation6 + $0xb10] ss:$12 sps:$4 sm:$0xff]  }
 0x20c   :  { %v18462_v25 = vpop.f32.mrb[103].mxu1  ;;  %18707 = vmatpush3.bf16.msra.mxu1 %v21438_v5  ;;  %v21436_v5 = vld [vmem:[#allocation6 + $0xb2c] ss:$12 sps:$4 sm:$0xff]  }
 0x20d   :  { %v23848_v44 = vadd.f32 %v18460_v39, %v23736_v47  ;;  %v18463_v46 = vadd.f32 %v18462_v25, %v18461_v29  ;;  %11618 = vmatmul.mubr.bf16.vlgmr.msra.gmra.mrb[0].mxu0 %v23787_v31  ;;  %18756 = vmatprep.subr.bf16.mxu1 %v21481_v10  ;;  %v21402_v47 = vld [vmem:[#allocation6 + $0xab0] ss:$12 sps:$4 sm:$0xff]   ;;  %v23899_v25 = vld [vmem:[#allocation3 + $0x38] ss:$208 sps:$4 sm:$0xff]  }
 0x20e   :  { %14492 = vmatmul.mubr.bf16.gmra.mrb[208].mxu1 %v23843_v11  ;;  %11699 = vmatpush1.bf16.msra.mxu0 %v21389_v38  ;;  %v23887_v10 = vld [vmem:[#allocation3 + $0x3c] ss:$208 sps:$4 sm:$0xff]   ;;  %v21444_v39 = vld [vmem:[#allocation6 + $0xb44] ss:$12 sps:$4 sm:$0xff]  }
 0x20f   :  { %v23853_v37 = vadd.f32 %v18463_v46, %v23741_v58  ;;  %11700 = vmatprep.subr.bf16.mxu0 %v21397_v55  ;;  %11627 = vmatprep.mubr.bf16.mxu0 %v23789_v2  ;;  %v21408_v2 = vld [vmem:[#allocation6 + $0xac8] ss:$12 sps:$4 sm:$0xff]  }
 0x210   :  { %14499 = vmatprep.mubr.bf16.mxu1 %v23845_v32 }
 0x211   :  { %v18464_v41 = vpop.f32.mrb[104].mxu1 }
 0x212   :  { %v18465_v42 = vpop.f32.mrb[105].mxu1  ;;  %11701 = vmatpush1.bf16.msra.mxu0 %v21395_v0 }
 0x213   :  { %v18466_v31 = vadd.f32 %v18465_v42, %v18464_v41  ;;  %v18467_v30 = vpop.f32.mrb[106].mxu1  ;;  %11702 = vmatprep.subr.bf16.mxu0 %v21404_v36  ;;  %v21447_v36 = vld [vmem:[#allocation6 + $0xb5c] ss:$12 sps:$4 sm:$0xff]  }
 0x214   :  { %v18468_v14 = vpop.f32.mrb[107].mxu1  ;;  %v23901_v42 = vld [vmem:[#allocation3 + $0x1dc] ss:$208 sps:$4 sm:$0xff]  }
 0x215   :  { %v23862_v58 = vadd.f32 %v18466_v31, %v23750_v52  ;;  %v18469_v62 = vadd.f32 %v18468_v14, %v18467_v30  ;;  %11628 = vmatmul.mubr.bf16.gmra.mrb[4].mxu0 %v23801_v6  ;;  %v23871_v52 = vld [vmem:[#allocation3 + $0x9f0] ss:$208 sps:$4 sm:$0xff]  }
 0x216   :  { %14500 = vmatmul.mubr.bf16.gmra.mrb[212].mxu1 %v23857_v40  ;;  %11703 = vmatpush1.bf16.msra.mxu0 %v21402_v47  ;;  %v21445_v47 = vld [vmem:[#allocation6 + $0xb58] ss:$12 sps:$4 sm:$0xff]   ;;  %v21452_v30 = vld [vmem:[#allocation6 + $0xb74] ss:$12 sps:$4 sm:$0xff]  }
 0x217   :  { %v23867_v59 = vadd.f32 %v18469_v62, %v23755_v60  ;;  %11704 = vmatprep.subr.bf16.mxu0 %v21410_v63  ;;  %11637 = vmatprep.mubr.bf16.mxu0 %v23803_v20  ;;  %v21421_v20 = vld [vmem:[#allocation6 + $0xaf8] ss:$12 sps:$4 sm:$0xff]   ;;  %v21486_v63 = vld [vmem:[#allocation6 + $0xce0] ss:$12 sps:$4 sm:$0xff]   ;;  %v21450_v62 = vld [vmem:[#allocation6 + $0xb70] ss:$12 sps:$4 sm:$0xff]  }
 0x218   :  { %14507 = vmatprep.mubr.bf16.mxu1 %v23859_v51 }
 0x219   :  { %v18470_v56 = vpop.f32.mrb[108].mxu1 }
 0x21a   :  { %v18471_v50 = vpop.f32.mrb[109].mxu1  ;;  %11705 = vmatpush1.bf16.msra.mxu0 %v21408_v2  ;;  %v23913_v2 = vld [vmem:[#allocation3 + $0x1d8] ss:$208 sps:$4 sm:$0xff]  }
 0x21b   :  { %v18472_v6 = vadd.f32 %v18471_v50, %v18470_v56  ;;  %v18473_v57 = vpop.f32.mrb[110].mxu1  ;;  %11706 = vmatprep.subr.bf16.mxu0 %v21417_v1 }
 0x21c   :  { %v18474_v3 = vpop.f32.mrb[111].mxu1 }
 0x21d   :  { %v23876_v60 = vadd.f32 %v18472_v6, %v23764_v34  ;;  %v18475_v4 = vadd.f32 %v18474_v3, %v18473_v57  ;;  %11638 = vmatmul.mubr.bf16.gmra.mrb[8].mxu0 %v23815_v48  ;;  %v23885_v34 = vld [vmem:[#allocation3 + $0xb90] ss:$208 sps:$4 sm:$0xff]   ;;  %v21454_v57 = vld [vmem:[#allocation6 + $0xb88] ss:$12 sps:$4 sm:$0xff]  }
 0x21e   :  { %14508 = vmatmul.mubr.bf16.gmra.mrb[216].mxu1 %v23871_v52  ;;  %11707 = vmatpush1.bf16.msra.mxu0 %v21415_v9 }
 0x21f   :  { %v23881_v19 = vadd.f32 %v18475_v4, %v23769_v27  ;;  %11708 = vmatprep.subr.bf16.mxu0 %v21423_v7  ;;  %11647 = vmatprep.mubr.bf16.mxu0 %v23817_v61  ;;  %v21434_v61 = vld [vmem:[#allocation6 + $0xb28] ss:$12 sps:$4 sm:$0xff]   ;;  %v23915_v7 = vld [vmem:[#allocation3 + $0x37c] ss:$208 sps:$4 sm:$0xff]  }
 0x220   :  { %14515 = vmatprep.mubr.bf16.mxu1 %v23873_v12 }
 0x221   :  { %v18476_v23 = vpop.f32.mrb[112].mxu1 }
 0x222   :  { %v18477_v18 = vpop.f32.mrb[113].mxu1  ;;  %11709 = vmatpush1.bf16.msra.mxu0 %v21421_v20  ;;  %v21461_v20 = vld [vmem:[#allocation6 + $0xba4] ss:$12 sps:$4 sm:$0xff]  }
 0x223   :  { %v18478_v48 = vadd.f32 %v18477_v18, %v18476_v23  ;;  %v18479_v38 = vpop.f32.mrb[114].mxu1  ;;  %11710 = vmatprep.subr.bf16.mxu0 %v21430_v54  ;;  %v21499_v54 = vld [vmem:[#allocation6 + $0xd10] ss:$12 sps:$4 sm:$0xff]  }
 0x224   :  { %v18480_v24 = vpop.f32.mrb[115].mxu1  ;;  %v21500_v18 = vld [vmem:[#allocation6 + $0xc50] ss:$12 sps:$4 sm:$0xff]  }
 0x225   :  { %v23890_v27 = vadd.f32 %v18478_v48, %v23778_v33  ;;  %v18481_v53 = vadd.f32 %v18480_v24, %v18479_v38  ;;  %11648 = vmatmul.mubr.bf16.gmra.mrb[12].mxu0 %v23829_v43  ;;  %v21442_v33 = vld [vmem:[#allocation6 + $0xb40] ss:$12 sps:$4 sm:$0xff]   ;;  %v21507_v48 = vld [vmem:[#allocation6 + $0xd28] ss:$12 sps:$4 sm:$0xff]  }
 0x226   :  { %14516 = vmatmul.mubr.bf16.gmra.mrb[220].mxu1 %v23885_v34  ;;  %11711 = vmatpush1.bf16.msra.mxu0 %v21428_v49  ;;  %v21459_v49 = vld [vmem:[#allocation6 + $0xba0] ss:$12 sps:$4 sm:$0xff]  }
 0x227   :  { %v23895_v29 = vadd.f32 %v18481_v53, %v23783_v35  ;;  %11712 = vmatprep.subr.bf16.mxu0 %v21436_v5  ;;  %11657 = vmatprep.mubr.bf16.mxu0 %v23831_v13  ;;  %v21482_v35 = vld [vmem:[#allocation6 + $0xc08] ss:$12 sps:$4 sm:$0xff]  }
 0x228   :  { %14556 = vmatprep.mubr.bf16.mxu1 %v23887_v10 }
 0x229   :  { %v18482_v55 = vpop.f32.mrb[116].mxu1 }
 0x22a   :  { %v18483_v46 = vpop.f32.mrb[117].mxu1  ;;  %11713 = vmatpush1.bf16.msra.mxu0 %v21434_v61  ;;  %v21463_v61 = vld [vmem:[#allocation6 + $0xbb8] ss:$12 sps:$4 sm:$0xff]  }
 0x22b   :  { %v18484_v43 = vadd.f32 %v18483_v46, %v18482_v55  ;;  %v18485_v0 = vpop.f32.mrb[118].mxu1  ;;  %11714 = vmatprep.subr.bf16.mxu0 %v21444_v39  ;;  %v23929_v39 = vld [vmem:[#allocation3 + $0x51c] ss:$208 sps:$4 sm:$0xff]   ;;  %v21470_v46 = vld [vmem:[#allocation6 + $0xbd4] ss:$12 sps:$4 sm:$0xff]  }
 0x22c   :  { %v18486_v41 = vpop.f32.mrb[119].mxu1 }
 0x22d   :  { %v23904_v31 = vadd.f32 %v18484_v43, %v23792_v26  ;;  %v18487_v13 = vadd.f32 %v18486_v41, %v18485_v0  ;;  %11658 = vmatmul.mubr.bf16.gmra.mrb[16].mxu0 %v23843_v11  ;;  %v21487_v26 = vld [vmem:[#allocation6 + $0xc20] ss:$12 sps:$4 sm:$0xff]   ;;  %v21494_v11 = vld [vmem:[#allocation6 + $0xcf8] ss:$12 sps:$4 sm:$0xff]  }
 0x22e   :  { %14557 = vmatmul.mubr.bf16.vlgmr.msra.gmra.mrb[224].mxu1 %v23899_v25  ;;  %11715 = vmatpush1.bf16.msra.mxu0 %v21442_v33  ;;  %v21512_v43 = vld [vmem:[#allocation6 + $0xd40] ss:$12 sps:$4 sm:$0xff]  }
 0x22f   :  { %v23909_v14 = vadd.f32 %v18487_v13, %v23797_v8  ;;  %11716 = vmatprep.subr.bf16.mxu0 %v21447_v36  ;;  %11667 = vmatprep.mubr.bf16.mxu0 %v23845_v32  ;;  %v21456_v8 = vld [vmem:[#allocation6 + $0xb8c] ss:$12 sps:$4 sm:$0xff]   ;;  %v21468_v36 = vld [vmem:[#allocation6 + $0xbd0] ss:$12 sps:$4 sm:$0xff]  }
 0x230   :  { %14564 = vmatprep.mubr.bf16.mxu1 %v23901_v42  ;;  %18757 = vmatpush3.bf16.msra.mxu1 %v21482_v35  ;;  %v21495_v32 = vld [vmem:[#allocation6 + $0xc38] ss:$12 sps:$4 sm:$0xff]   ;;  %v21513_v41 = vld [vmem:[#allocation6 + $0xc80] ss:$12 sps:$4 sm:$0xff]  }
 0x231   :  { %v18488_v1 = vpop.f32.mrb[120].mxu1  ;;  %18758 = vmatprep.subr.bf16.mxu1 %v21486_v63 }
 0x232   :  { %v18489_v56 = vpop.f32.mrb[121].mxu1  ;;  %11717 = vmatpush1.bf16.msra.mxu0 %v21445_v47  ;;  %v21520_v47 = vld [vmem:[#allocation6 + $0xd58] ss:$12 sps:$4 sm:$0xff]  }
 0x233   :  { %v18490_v9 = vadd.f32 %v18489_v56, %v18488_v1  ;;  %v18491_v50 = vpop.f32.mrb[122].mxu1  ;;  %11718 = vmatprep.subr.bf16.mxu0 %v21452_v30  ;;  %v21479_v56 = vld [vmem:[#allocation6 + $0xc04] ss:$12 sps:$4 sm:$0xff]  }
 0x234   :  { %v18492_v6 = vpop.f32.mrb[123].mxu1  ;;  %18759 = vmatpush3.bf16.msra.mxu1 %v21487_v26  ;;  %v23943_v26 = vld [vmem:[#allocation3 + $0x6bc] ss:$208 sps:$4 sm:$0xff]  }
 0x235   :  { %v23918_v3 = vadd.f32 %v18490_v9, %v23806_v21  ;;  %v18493_v4 = vadd.f32 %v18492_v6, %v18491_v50  ;;  %11668 = vmatmul.mubr.bf16.gmra.mrb[20].mxu0 %v23857_v40  ;;  %18760 = vmatprep.subr.bf16.mxu1 %v21494_v11  ;;  %v23927_v21 = vld [vmem:[#allocation3 + $0x378] ss:$208 sps:$4 sm:$0xff]   ;;  %v21525_v9 = vld [vmem:[#allocation6 + $0xd70] ss:$12 sps:$4 sm:$0xff]  }
 0x236   :  { %14565 = vmatmul.mubr.bf16.gmra.mrb[228].mxu1 %v23913_v2  ;;  %11719 = vmatpush1.bf16.msra.mxu0 %v21450_v62  ;;  %v21472_v62 = vld [vmem:[#allocation6 + $0xbe8] ss:$12 sps:$4 sm:$0xff]   ;;  %v21526_v6 = vld [vmem:[#allocation6 + $0xcb0] ss:$12 sps:$4 sm:$0xff]  }
 0x237   :  { %v23923_v23 = vadd.f32 %v18493_v4, %v23811_v45  ;;  %11720 = vmatprep.subr.bf16.mxu0 %v21456_v8  ;;  %11677 = vmatprep.mubr.bf16.mxu0 %v23859_v51  ;;  %v21465_v45 = vld [vmem:[#allocation6 + $0xbbc] ss:$12 sps:$4 sm:$0xff]   ;;  %v21477_v8 = vld [vmem:[#allocation6 + $0xc00] ss:$12 sps:$4 sm:$0xff]  }
 0x238   :  { %14572 = vmatprep.mubr.bf16.mxu1 %v23915_v7  ;;  %18761 = vmatpush3.bf16.msra.mxu1 %v21495_v32  ;;  %v21508_v51 = vld [vmem:[#allocation6 + $0xc68] ss:$12 sps:$4 sm:$0xff]  }
 0x239   :  { %v18494_v40 = vpop.f32.mrb[124].mxu1  ;;  %18762 = vmatprep.subr.bf16.mxu1 %v21499_v54 }
 0x23a   :  { %v18495_v38 = vpop.f32.mrb[125].mxu1  ;;  %11721 = vmatpush1.bf16.msra.mxu0 %v21454_v57  ;;  %v21569_v57 = vld [vmem:[#allocation6 + $0xe48] ss:$12 sps:$4 sm:$0xff]  }
 0x23b   :  { %v18496_v5 = vadd.f32 %v18495_v38, %v18494_v40  ;;  %v18497_v24 = vpop.f32.mrb[126].mxu1  ;;  %11722 = vmatprep.subr.bf16.mxu0 %v21461_v20  ;;  %v21483_v40 = vld [vmem:[#allocation6 + $0xc18] ss:$12 sps:$4 sm:$0xff]  }
 0x23c   :  { %v18498_v53 = vpop.f32.mrb[127].mxu1  ;;  %18763 = vmatpush3.bf16.msra.mxu1 %v21500_v18 }
 0x23d   :  { %v23932_v55 = vadd.f32 %v18496_v5, %v23820_v28  ;;  %v18499_v33 = vadd.f32 %v18498_v53, %v18497_v24  ;;  %11678 = vmatmul.mubr.bf16.gmra.mrb[24].mxu0 %v23871_v52  ;;  %18764 = vmatprep.subr.bf16.mxu1 %v21507_v48  ;;  %v23941_v28 = vld [vmem:[#allocation3 + $0x518] ss:$208 sps:$4 sm:$0xff]   ;;  %v21492_v48 = vld [vmem:[#allocation6 + $0xc34] ss:$12 sps:$4 sm:$0xff]  }
 0x23e   :  { %14573 = vmatmul.mubr.bf16.gmra.mrb[232].mxu1 %v23927_v21  ;;  %11723 = vmatpush1.bf16.msra.mxu0 %v21459_v49  ;;  %v23957_v49 = vld [vmem:[#allocation3 + $0x85c] ss:$208 sps:$4 sm:$0xff]   ;;  %v23969_v24 = vld [vmem:[#allocation3 + $0x858] ss:$208 sps:$4 sm:$0xff]  }
 0x23f   :  { %v23937_v0 = vadd.f32 %v18499_v33, %v23825_v22  ;;  %11724 = vmatprep.subr.bf16.mxu0 %v21465_v45  ;;  %11687 = vmatprep.mubr.bf16.mxu0 %v23873_v12  ;;  %v21474_v22 = vld [vmem:[#allocation6 + $0xbec] ss:$12 sps:$4 sm:$0xff]  }
 0x240   :  { %14580 = vmatprep.mubr.bf16.mxu1 %v23929_v39  ;;  %18765 = vmatpush3.bf16.msra.mxu1 %v21508_v51  ;;  %v21521_v12 = vld [vmem:[#allocation6 + $0xc98] ss:$12 sps:$4 sm:$0xff]   ;;  %v23971_v33 = vld [vmem:[#allocation3 + $0x9fc] ss:$208 sps:$4 sm:$0xff]  }
 0x241   :  { %v18516_v52 = vpop.f32.mrb[128].mxu1  ;;  %18766 = vmatprep.subr.bf16.mxu1 %v21512_v43  ;;  %v21505_v43 = vld [vmem:[#allocation6 + $0xc64] ss:$12 sps:$4 sm:$0xff]  }
 0x242   :  { %v18517_v35 = vpop.f32.mrb[129].mxu1  ;;  %11725 = vmatpush1.bf16.msra.mxu0 %v21463_v61  ;;  %v21498_v61 = vld [vmem:[#allocation6 + $0xc4c] ss:$12 sps:$4 sm:$0xff]  }
 0x243   :  { %v18518_v13 = vadd.f32 %v18517_v35, %v18516_v52  ;;  %v18519_v30 = vpop.f32.mrb[130].mxu1  ;;  %11726 = vmatprep.subr.bf16.mxu0 %v21470_v46  ;;  %v21503_v52 = vld [vmem:[#allocation6 + $0xc60] ss:$12 sps:$4 sm:$0xff]  }
 0x244   :  { %v18520_v63 = vpop.f32.mrb[131].mxu1  ;;  %18767 = vmatpush3.bf16.msra.mxu1 %v21513_v41 }
 0x245   :  { %v23946_v1 = vadd.f32 %v18518_v13, %v23834_v15  ;;  %v18521_v11 = vadd.f32 %v18520_v63, %v18519_v30  ;;  %11688 = vmatmul.mubr.bf16.gmra.mrb[28].mxu0 %v23885_v34  ;;  %18768 = vmatprep.subr.bf16.mxu1 %v21520_v47  ;;  %v23955_v15 = vld [vmem:[#allocation3 + $0x6b8] ss:$208 sps:$4 sm:$0xff]  }
 0x246   :  { %14581 = vmatmul.mubr.bf16.gmra.mrb[236].mxu1 %v23941_v28  ;;  %11727 = vmatpush1.bf16.msra.mxu0 %v21468_v36  ;;  %v21511_v13 = vld [vmem:[#allocation6 + $0xc7c] ss:$12 sps:$4 sm:$0xff]  }
 0x247   :  { %v23951_v50 = vadd.f32 %v18521_v11, %v23839_v16  ;;  %11728 = vmatprep.subr.bf16.mxu0 %v21474_v22  ;;  %11730 = vmatprep.mubr.bf16.mxu0 %v23887_v10  ;;  %v21485_v16 = vld [vmem:[#allocation6 + $0xc1c] ss:$12 sps:$4 sm:$0xff]  }
 0x248   :  { %14588 = vmatprep.mubr.bf16.mxu1 %v23943_v26  ;;  %18769 = vmatpush3.bf16.msra.mxu1 %v21521_v12  ;;  %v23985_v22 = vld [vmem:[#allocation3 + $0xb9c] ss:$208 sps:$4 sm:$0xff]  }
 0x249   :  { %v18522_v34 = vpop.f32.mrb[132].mxu1  ;;  %18770 = vmatprep.subr.bf16.mxu1 %v21525_v9 }
 0x24a   :  { %v18523_v32 = vpop.f32.mrb[133].mxu1  ;;  %11729 = vmatpush1.bf16.msra.mxu0 %v21472_v62  ;;  %v21518_v62 = vld [vmem:[#allocation6 + $0xc94] ss:$12 sps:$4 sm:$0xff]  }
 0x24b   :  { %v18524_v4 = vadd.f32 %v18523_v32, %v18522_v34  ;;  %v18525_v20 = vpop.f32.mrb[134].mxu1  ;;  %11811 = vmatprep.subr.bf16.mxu0 %v21479_v56  ;;  %v21516_v56 = vld [vmem:[#allocation6 + $0xc90] ss:$12 sps:$4 sm:$0xff]  }
 0x24c   :  { %v18526_v54 = vpop.f32.mrb[135].mxu1  ;;  %18771 = vmatpush3.bf16.msra.mxu1 %v21526_v6  ;;  %v21524_v6 = vld [vmem:[#allocation6 + $0xcac] ss:$12 sps:$4 sm:$0xff]  }
 0x24d   :  { %v23960_v10 = vadd.f32 %v18524_v4, %v23848_v44  ;;  %v18527_v18 = vadd.f32 %v18526_v54, %v18525_v20  ;;  %11731 = vmatmul.mubr.bf16.vlgmr.msra.gmra.mrb[0].mxu0 %v23899_v25  ;;  %18820 = vmatprep.subr.bf16.mxu1 %v21569_v57  ;;  %v21490_v44 = vld [vmem:[#allocation6 + $0xc30] ss:$12 sps:$4 sm:$0xff]   ;;  %v23999_v57 = vld [vmem:[#allocation3 + $0x44] ss:$208 sps:$4 sm:$0xff]  }
 0x24e   :  { %14589 = vmatmul.mubr.bf16.gmra.mrb[240].mxu1 %v23955_v15  ;;  %11812 = vmatpush1.bf16.msra.mxu0 %v21477_v8  ;;  %v21532_v4 = vld [vmem:[#allocation6 + $0xcc4] ss:$12 sps:$4 sm:$0xff]  }
 0x24f   :  { %v23965_v38 = vadd.f32 %v18527_v18, %v23853_v37  ;;  %11813 = vmatprep.subr.bf16.mxu0 %v21485_v16  ;;  %11740 = vmatprep.mubr.bf16.mxu0 %v23901_v42  ;;  %v21496_v42 = vld [vmem:[#allocation6 + $0xc48] ss:$12 sps:$4 sm:$0xff]   ;;  %v24011_v54 = vld [vmem:[#allocation3 + $0x40] ss:$208 sps:$4 sm:$0xff]  }
 0x250   :  { %14596 = vmatprep.mubr.bf16.mxu1 %v23957_v49 }
 0x251   :  { %v18528_v5 = vpop.f32.mrb[136].mxu1 }
 0x252   :  { %v18529_v45 = vpop.f32.mrb[137].mxu1  ;;  %11814 = vmatpush1.bf16.msra.mxu0 %v21483_v40 }
 0x253   :  { %v18530_v25 = vadd.f32 %v18529_v45, %v18528_v5  ;;  %v18531_v53 = vpop.f32.mrb[138].mxu1  ;;  %11815 = vmatprep.subr.bf16.mxu0 %v21492_v48  ;;  %v21535_v48 = vld [vmem:[#allocation6 + $0xcdc] ss:$12 sps:$4 sm:$0xff]   ;;  %v24013_v45 = vld [vmem:[#allocation3 + $0x1e4] ss:$208 sps:$4 sm:$0xff]  }
 0x254   :  { %v18532_v51 = vpop.f32.mrb[139].mxu1 }
 0x255   :  { %v23974_v37 = vadd.f32 %v18530_v25, %v23862_v58  ;;  %v18533_v46 = vadd.f32 %v18532_v51, %v18531_v53  ;;  %11741 = vmatmul.mubr.bf16.gmra.mrb[4].mxu0 %v23913_v2  ;;  %v23983_v58 = vld [vmem:[#allocation3 + $0x9f8] ss:$208 sps:$4 sm:$0xff]   ;;  %v21541_v53 = vld [vmem:[#allocation6 + $0xcf4] ss:$12 sps:$4 sm:$0xff]  }
 0x256   :  { %14597 = vmatmul.mubr.bf16.gmra.mrb[244].mxu1 %v23969_v24  ;;  %11816 = vmatpush1.bf16.msra.mxu0 %v21490_v44  ;;  %v21533_v44 = vld [vmem:[#allocation6 + $0xcd8] ss:$12 sps:$4 sm:$0xff]  }
 0x257   :  { %v23979_v36 = vadd.f32 %v18533_v46, %v23867_v59  ;;  %11817 = vmatprep.subr.bf16.mxu0 %v21498_v61  ;;  %11750 = vmatprep.mubr.bf16.mxu0 %v23915_v7  ;;  %v21509_v7 = vld [vmem:[#allocation6 + $0xc78] ss:$12 sps:$4 sm:$0xff]   ;;  %v21574_v61 = vld [vmem:[#allocation6 + $0xe60] ss:$12 sps:$4 sm:$0xff]  }
 0x258   :  { %14604 = vmatprep.mubr.bf16.mxu1 %v23971_v33  ;;  %v24024_v46 = vld [vmem:[#allocation3 + $0x1e0] ss:$208 sps:$4 sm:$0xff]  }
 0x259   :  { %v18534_v41 = vpop.f32.mrb[140].mxu1 }
 0x25a   :  { %v18535_v47 = vpop.f32.mrb[141].mxu1  ;;  %11818 = vmatpush1.bf16.msra.mxu0 %v21496_v42  ;;  %v21575_v42 = vld [vmem:[#allocation6 + $0xda0] ss:$12 sps:$4 sm:$0xff]  }
 0x25b   :  { %v18536_v2 = vadd.f32 %v18535_v47, %v18534_v41  ;;  %v18537_v35 = vpop.f32.mrb[142].mxu1  ;;  %11819 = vmatprep.subr.bf16.mxu0 %v21505_v43 }
 0x25c   :  { %v18538_v30 = vpop.f32.mrb[143].mxu1 }
 0x25d   :  { %v23988_v59 = vadd.f32 %v18536_v2, %v23876_v60  ;;  %v18539_v63 = vadd.f32 %v18538_v30, %v18537_v35  ;;  %11751 = vmatmul.mubr.bf16.gmra.mrb[8].mxu0 %v23927_v21  ;;  %v23997_v60 = vld [vmem:[#allocation3 + $0xb98] ss:$208 sps:$4 sm:$0xff]  }
 0x25e   :  { %14605 = vmatmul.mubr.bf16.gmra.mrb[248].mxu1 %v23983_v58  ;;  %11820 = vmatpush1.bf16.msra.mxu0 %v21503_v52  ;;  %v21542_v35 = vld [vmem:[#allocation6 + $0xd08] ss:$12 sps:$4 sm:$0xff]  }
 0x25f   :  { %v23993_v12 = vadd.f32 %v18539_v63, %v23881_v19  ;;  %11821 = vmatprep.subr.bf16.mxu0 %v21511_v13  ;;  %11760 = vmatprep.mubr.bf16.mxu0 %v23929_v39  ;;  %v21522_v39 = vld [vmem:[#allocation6 + $0xca8] ss:$12 sps:$4 sm:$0xff]  }
 0x260   :  { %14612 = vmatprep.mubr.bf16.mxu1 %v23985_v22  ;;  %v24027_v13 = vld [vmem:[#allocation3 + $0x384] ss:$208 sps:$4 sm:$0xff]  }
 0x261   :  { %v18540_v11 = vpop.f32.mrb[144].mxu1 }
 0x262   :  { %v18541_v9 = vpop.f32.mrb[145].mxu1  ;;  %11822 = vmatpush1.bf16.msra.mxu0 %v21509_v7  ;;  %v21550_v7 = vld [vmem:[#allocation6 + $0xd24] ss:$12 sps:$4 sm:$0xff]  }
 0x263   :  { %v18542_v21 = vadd.f32 %v18541_v9, %v18540_v11  ;;  %v18543_v8 = vpop.f32.mrb[146].mxu1  ;;  %11823 = vmatprep.subr.bf16.mxu0 %v21518_v62  ;;  %v21587_v62 = vld [vmem:[#allocation6 + $0xe90] ss:$12 sps:$4 sm:$0xff]  }
 0x264   :  { %v18544_v34 = vpop.f32.mrb[147].mxu1  ;;  %v21588_v9 = vld [vmem:[#allocation6 + $0xdd0] ss:$12 sps:$4 sm:$0xff]  }
 0x265   :  { %v24002_v19 = vadd.f32 %v18542_v21, %v23890_v27  ;;  %v18545_v32 = vadd.f32 %v18544_v34, %v18543_v8  ;;  %11761 = vmatmul.mubr.bf16.gmra.mrb[12].mxu0 %v23941_v28  ;;  %v21530_v27 = vld [vmem:[#allocation6 + $0xcc0] ss:$12 sps:$4 sm:$0xff]   ;;  %v21595_v21 = vld [vmem:[#allocation6 + $0xea8] ss:$12 sps:$4 sm:$0xff]  }
 0x266   :  { %14613 = vmatmul.mubr.bf16.gmra.mrb[252].mxu1 %v23997_v60  ;;  %11824 = vmatpush1.bf16.msra.mxu0 %v21516_v56  ;;  %v24038_v56 = vld [vmem:[#allocation3 + $0x380] ss:$208 sps:$4 sm:$0xff]  }
 0x267   :  { %v24007_v20 = vadd.f32 %v18545_v32, %v23895_v29  ;;  %11825 = vmatprep.subr.bf16.mxu0 %v21524_v6  ;;  %11770 = vmatprep.mubr.bf16.mxu0 %v23943_v26  ;;  %v21570_v29 = vld [vmem:[#allocation6 + $0xd88] ss:$12 sps:$4 sm:$0xff]  }
 0x268   :  { %14653 = vmatprep.mubr.bf16.mxu1 %v23999_v57 }
 0x269   :  { %v18546_v16 = vpop.f32.mrb[148].mxu1 }
 0x26a   :  { %v18547_v18 = vpop.f32.mrb[149].mxu1  ;;  %11826 = vmatpush1.bf16.msra.mxu0 %v21522_v39  ;;  %v21551_v39 = vld [vmem:[#allocation6 + $0xd38] ss:$12 sps:$4 sm:$0xff]  }
 0x26b   :  { %v18548_v28 = vadd.f32 %v18547_v18, %v18546_v16  ;;  %v18549_v40 = vpop.f32.mrb[150].mxu1  ;;  %11827 = vmatprep.subr.bf16.mxu0 %v21532_v4  ;;  %v24041_v4 = vld [vmem:[#allocation3 + $0x524] ss:$208 sps:$4 sm:$0xff]  }
 0x26c   :  { %v18550_v5 = vpop.f32.mrb[151].mxu1  ;;  %v21559_v18 = vld [vmem:[#allocation6 + $0xd54] ss:$12 sps:$4 sm:$0xff]  }
 0x26d   :  { %v24016_v25 = vadd.f32 %v18548_v28, %v23904_v31  ;;  %v18551_v26 = vadd.f32 %v18550_v5, %v18549_v40  ;;  %11771 = vmatmul.mubr.bf16.gmra.mrb[16].mxu0 %v23955_v15  ;;  %v21539_v31 = vld [vmem:[#allocation6 + $0xcf0] ss:$12 sps:$4 sm:$0xff]   ;;  %v21582_v15 = vld [vmem:[#allocation6 + $0xe78] ss:$12 sps:$4 sm:$0xff]   ;;  %v21600_v28 = vld [vmem:[#allocation6 + $0xec0] ss:$12 sps:$4 sm:$0xff]  }
 0x26e   :  { %14654 = vmatmul.mubr.bf16.vlgmr.msra.gmra.mrb[0].mxu1 %v24011_v54  ;;  %11828 = vmatpush1.bf16.msra.mxu0 %v21530_v27  ;;  %v21601_v5 = vld [vmem:[#allocation6 + $0xe00] ss:$12 sps:$4 sm:$0xff]  }
 0x26f   :  { %v24021_v51 = vadd.f32 %v18551_v26, %v23909_v14  ;;  %11829 = vmatprep.subr.bf16.mxu0 %v21535_v48  ;;  %11780 = vmatprep.mubr.bf16.mxu0 %v23957_v49  ;;  %v21544_v14 = vld [vmem:[#allocation6 + $0xd0c] ss:$12 sps:$4 sm:$0xff]   ;;  %v24052_v48 = vld [vmem:[#allocation3 + $0x520] ss:$208 sps:$4 sm:$0xff]  }
 0x270   :  { %14661 = vmatprep.mubr.bf16.mxu1 %v24013_v45  ;;  %18821 = vmatpush3.bf16.msra.mxu1 %v21570_v29  ;;  %v21583_v49 = vld [vmem:[#allocation6 + $0xdb8] ss:$12 sps:$4 sm:$0xff]  }
 0x271   :  { %v18552_v43 = vpop.f32.mrb[152].mxu1  ;;  %18822 = vmatprep.subr.bf16.mxu1 %v21574_v61 }
 0x272   :  { %v18553_v41 = vpop.f32.mrb[153].mxu1  ;;  %11830 = vmatpush1.bf16.msra.mxu0 %v21533_v44  ;;  %v21608_v44 = vld [vmem:[#allocation6 + $0xed8] ss:$12 sps:$4 sm:$0xff]  }
 0x273   :  { %v18554_v52 = vadd.f32 %v18553_v41, %v18552_v43  ;;  %v18555_v47 = vpop.f32.mrb[154].mxu1  ;;  %11831 = vmatprep.subr.bf16.mxu0 %v21541_v53  ;;  %v21568_v41 = vld [vmem:[#allocation6 + $0xd84] ss:$12 sps:$4 sm:$0xff]  }
 0x274   :  { %v18556_v2 = vpop.f32.mrb[155].mxu1  ;;  %18823 = vmatpush3.bf16.msra.mxu1 %v21575_v42  ;;  %v24055_v42 = vld [vmem:[#allocation3 + $0x6c4] ss:$208 sps:$4 sm:$0xff]  }
 0x275   :  { %v24030_v30 = vadd.f32 %v18554_v52, %v23918_v3  ;;  %v18557_v63 = vadd.f32 %v18556_v2, %v18555_v47  ;;  %11781 = vmatmul.mubr.bf16.gmra.mrb[20].mxu0 %v23969_v24  ;;  %18824 = vmatprep.subr.bf16.mxu1 %v21582_v15  ;;  %v21548_v3 = vld [vmem:[#allocation6 + $0xd20] ss:$12 sps:$4 sm:$0xff]   ;;  %v21613_v52 = vld [vmem:[#allocation6 + $0xef0] ss:$12 sps:$4 sm:$0xff]  }
 0x276   :  { %14662 = vmatmul.mubr.bf16.gmra.mrb[4].mxu1 %v24024_v46  ;;  %11832 = vmatpush1.bf16.msra.mxu0 %v21539_v31  ;;  %v21560_v31 = vld [vmem:[#allocation6 + $0xd68] ss:$12 sps:$4 sm:$0xff]   ;;  %v21614_v2 = vld [vmem:[#allocation6 + $0xe30] ss:$12 sps:$4 sm:$0xff]  }
 0x277   :  { %v24035_v11 = vadd.f32 %v18557_v63, %v23923_v23  ;;  %11833 = vmatprep.subr.bf16.mxu0 %v21544_v14  ;;  %11790 = vmatprep.mubr.bf16.mxu0 %v23971_v33  ;;  %v21553_v23 = vld [vmem:[#allocation6 + $0xd3c] ss:$12 sps:$4 sm:$0xff]   ;;  %v24066_v14 = vld [vmem:[#allocation3 + $0x6c0] ss:$208 sps:$4 sm:$0xff]  }
 0x278   :  { %14669 = vmatprep.mubr.bf16.mxu1 %v24027_v13  ;;  %18825 = vmatpush3.bf16.msra.mxu1 %v21583_v49  ;;  %v21596_v33 = vld [vmem:[#allocation6 + $0xde8] ss:$12 sps:$4 sm:$0xff]  }
 0x279   :  { %v18558_v24 = vpop.f32.mrb[156].mxu1  ;;  %18826 = vmatprep.subr.bf16.mxu1 %v21587_v62 }
 0x27a   :  { %v18559_v8 = vpop.f32.mrb[157].mxu1  ;;  %11834 = vmatpush1.bf16.msra.mxu0 %v21542_v35  ;;  %v21657_v35 = vld [vmem:[#allocation6 + $0xfc8] ss:$12 sps:$4 sm:$0xff]  }
 0x27b   :  { %v18560_v6 = vadd.f32 %v18559_v8, %v18558_v24  ;;  %v18561_v34 = vpop.f32.mrb[158].mxu1  ;;  %11835 = vmatprep.subr.bf16.mxu0 %v21550_v7  ;;  %v21571_v24 = vld [vmem:[#allocation6 + $0xd98] ss:$12 sps:$4 sm:$0xff]  }
 0x27c   :  { %v18562_v32 = vpop.f32.mrb[159].mxu1  ;;  %18827 = vmatpush3.bf16.msra.mxu1 %v21588_v9 }
 0x27d   :  { %v24044_v16 = vadd.f32 %v18560_v6, %v23932_v55  ;;  %v18563_v27 = vadd.f32 %v18562_v32, %v18561_v34  ;;  %11791 = vmatmul.mubr.bf16.gmra.mrb[24].mxu0 %v23983_v58  ;;  %18828 = vmatprep.subr.bf16.mxu1 %v21595_v21  ;;  %v21557_v55 = vld [vmem:[#allocation6 + $0xd50] ss:$12 sps:$4 sm:$0xff]   ;;  %v21581_v21 = vld [vmem:[#allocation6 + $0xdb4] ss:$12 sps:$4 sm:$0xff]  }
 0x27e   :  { %14670 = vmatmul.mubr.bf16.gmra.mrb[8].mxu1 %v24038_v56  ;;  %11836 = vmatpush1.bf16.msra.mxu0 %v21548_v3  ;;  %v24069_v3 = vld [vmem:[#allocation3 + $0x864] ss:$208 sps:$4 sm:$0xff]   ;;  %v21579_v34 = vld [vmem:[#allocation6 + $0xdb0] ss:$12 sps:$4 sm:$0xff]  }
 0x27f   :  { %v24049_v40 = vadd.f32 %v18563_v27, %v23937_v0  ;;  %11837 = vmatprep.subr.bf16.mxu0 %v21553_v23  ;;  %11800 = vmatprep.mubr.bf16.mxu0 %v23985_v22  ;;  %v21562_v0 = vld [vmem:[#allocation6 + $0xd6c] ss:$12 sps:$4 sm:$0xff]   ;;  %v24083_v27 = vld [vmem:[#allocation3 + $0xa04] ss:$208 sps:$4 sm:$0xff]  }
 0x280   :  { %14677 = vmatprep.mubr.bf16.mxu1 %v24041_v4  ;;  %18829 = vmatpush3.bf16.msra.mxu1 %v21596_v33  ;;  %v21609_v22 = vld [vmem:[#allocation6 + $0xe18] ss:$12 sps:$4 sm:$0xff]  }
 0x281   :  { %v18580_v58 = vpop.f32.mrb[160].mxu1  ;;  %18830 = vmatprep.subr.bf16.mxu1 %v21600_v28  ;;  %v21594_v28 = vld [vmem:[#allocation6 + $0xde4] ss:$12 sps:$4 sm:$0xff]  }
 0x282   :  { %v18581_v29 = vpop.f32.mrb[161].mxu1  ;;  %11838 = vmatpush1.bf16.msra.mxu0 %v21551_v39  ;;  %v21586_v39 = vld [vmem:[#allocation6 + $0xdcc] ss:$12 sps:$4 sm:$0xff]  }
 0x283   :  { %v18582_v26 = vadd.f32 %v18581_v29, %v18580_v58  ;;  %v18583_v53 = vpop.f32.mrb[162].mxu1  ;;  %11839 = vmatprep.subr.bf16.mxu0 %v21559_v18  ;;  %v24095_v58 = vld [vmem:[#allocation3 + $0xa00] ss:$208 sps:$4 sm:$0xff]  }
 0x284   :  { %v18584_v61 = vpop.f32.mrb[163].mxu1  ;;  %18831 = vmatpush3.bf16.msra.mxu1 %v21601_v5 }
 0x285   :  { %v24058_v43 = vadd.f32 %v18582_v26, %v23946_v1  ;;  %v18585_v15 = vadd.f32 %v18584_v61, %v18583_v53  ;;  %11801 = vmatmul.mubr.bf16.gmra.mrb[28].mxu0 %v23997_v60  ;;  %18832 = vmatprep.subr.bf16.mxu1 %v21608_v44  ;;  %v21566_v1 = vld [vmem:[#allocation6 + $0xd80] ss:$12 sps:$4 sm:$0xff]   ;;  %v21599_v26 = vld [vmem:[#allocation6 + $0xdfc] ss:$12 sps:$4 sm:$0xff]  }
 0x286   :  { %14678 = vmatmul.mubr.bf16.gmra.mrb[12].mxu1 %v24052_v48  ;;  %11840 = vmatpush1.bf16.msra.mxu0 %v21557_v55 }
 0x287   :  { %v24063_v47 = vadd.f32 %v18585_v15, %v23951_v50  ;;  %11841 = vmatprep.subr.bf16.mxu0 %v21562_v0  ;;  %11843 = vmatprep.mubr.bf16.mxu0 %v23999_v57  ;;  %v21573_v50 = vld [vmem:[#allocation6 + $0xd9c] ss:$12 sps:$4 sm:$0xff]   ;;  %v24097_v0 = vld [vmem:[#allocation3 + $0xba4] ss:$208 sps:$4 sm:$0xff]  }
 0x288   :  { %14685 = vmatprep.mubr.bf16.mxu1 %v24055_v42  ;;  %18833 = vmatpush3.bf16.msra.mxu1 %v21609_v22 }
 0x289   :  { %v18586_v60 = vpop.f32.mrb[164].mxu1  ;;  %18834 = vmatprep.subr.bf16.mxu1 %v21613_v52 }
 0x28a   :  { %v18587_v49 = vpop.f32.mrb[165].mxu1  ;;  %11842 = vmatpush1.bf16.msra.mxu0 %v21560_v31  ;;  %v21607_v31 = vld [vmem:[#allocation6 + $0xe14] ss:$12 sps:$4 sm:$0xff]  }
 0x28b   :  { %v18588_v63 = vadd.f32 %v18587_v49, %v18586_v60  ;;  %v18589_v7 = vpop.f32.mrb[166].mxu1  ;;  %11924 = vmatprep.subr.bf16.mxu0 %v21568_v41  ;;  %v24109_v41 = vld [vmem:[#allocation3 + $0xba0] ss:$208 sps:$4 sm:$0xff]  }
 0x28c   :  { %v18590_v62 = vpop.f32.mrb[167].mxu1  ;;  %18835 = vmatpush3.bf16.msra.mxu1 %v21614_v2  ;;  %v21612_v2 = vld [vmem:[#allocation6 + $0xe2c] ss:$12 sps:$4 sm:$0xff]  }
 0x28d   :  { %v24072_v57 = vadd.f32 %v18588_v63, %v23960_v10  ;;  %v18591_v9 = vadd.f32 %v18590_v62, %v18589_v7  ;;  %11844 = vmatmul.mubr.bf16.vlgmr.msra.gmra.mrb[0].mxu0 %v24011_v54  ;;  %18884 = vmatprep.subr.bf16.mxu1 %v21657_v35  ;;  %v24081_v10 = vld [vmem:[#allocation3 + $0x860] ss:$208 sps:$4 sm:$0xff]   ;;  %v24111_v35 = vld [vmem:[#allocation3 + $0x4c] ss:$208 sps:$4 sm:$0xff]   ;;  %v24123_v62 = vld [vmem:[#allocation3 + $0x48] ss:$208 sps:$4 sm:$0xff]  }
 0x28e   :  { %14686 = vmatmul.mubr.bf16.gmra.mrb[16].mxu1 %v24066_v14  ;;  %11925 = vmatpush1.bf16.msra.mxu0 %v21566_v1  ;;  %v21620_v63 = vld [vmem:[#allocation6 + $0xe44] ss:$12 sps:$4 sm:$0xff]  }
 0x28f   :  { %v24077_v8 = vadd.f32 %v18591_v9, %v23965_v38  ;;  %11926 = vmatprep.subr.bf16.mxu0 %v21573_v50  ;;  %11853 = vmatprep.mubr.bf16.mxu0 %v24013_v45  ;;  %v21584_v45 = vld [vmem:[#allocation6 + $0xdc8] ss:$12 sps:$4 sm:$0xff]  }
 0x290   :  { %14693 = vmatprep.mubr.bf16.mxu1 %v24069_v3 }
 0x291   :  { %v18592_v6 = vpop.f32.mrb[168].mxu1 }
 0x292   :  { %v18593_v23 = vpop.f32.mrb[169].mxu1  ;;  %11927 = vmatpush1.bf16.msra.mxu0 %v21571_v24 }
 0x293   :  { %v18594_v54 = vadd.f32 %v18593_v23, %v18592_v6  ;;  %v18595_v32 = vpop.f32.mrb[170].mxu1  ;;  %11928 = vmatprep.subr.bf16.mxu0 %v21581_v21  ;;  %v21623_v21 = vld [vmem:[#allocation6 + $0xe5c] ss:$12 sps:$4 sm:$0xff]  }
 0x294   :  { %v18596_v33 = vpop.f32.mrb[171].mxu1  ;;  %v24125_v23 = vld [vmem:[#allocation3 + $0x1ec] ss:$208 sps:$4 sm:$0xff]  }
 0x295   :  { %v24086_v38 = vadd.f32 %v18594_v54, %v23974_v37  ;;  %v18597_v18 = vadd.f32 %v18596_v33, %v18595_v32  ;;  %11854 = vmatmul.mubr.bf16.gmra.mrb[4].mxu0 %v24024_v46  ;;  %v21592_v37 = vld [vmem:[#allocation6 + $0xde0] ss:$12 sps:$4 sm:$0xff]  }
 0x296   :  { %14694 = vmatmul.mubr.bf16.gmra.mrb[20].mxu1 %v24081_v10  ;;  %11929 = vmatpush1.bf16.msra.mxu0 %v21579_v34  ;;  %v21621_v34 = vld [vmem:[#allocation6 + $0xe58] ss:$12 sps:$4 sm:$0xff]   ;;  %v21629_v32 = vld [vmem:[#allocation6 + $0xe74] ss:$12 sps:$4 sm:$0xff]  }
 0x297   :  { %v24091_v55 = vadd.f32 %v18597_v18, %v23979_v36  ;;  %11930 = vmatprep.subr.bf16.mxu0 %v21586_v39  ;;  %11863 = vmatprep.mubr.bf16.mxu0 %v24027_v13  ;;  %v21597_v13 = vld [vmem:[#allocation6 + $0xdf8] ss:$12 sps:$4 sm:$0xff]   ;;  %v21662_v39 = vld [vmem:[#allocation6 + $0xfe0] ss:$12 sps:$4 sm:$0xff]  }
 0x298   :  { %14701 = vmatprep.mubr.bf16.mxu1 %v24083_v27  ;;  %v24136_v18 = vld [vmem:[#allocation3 + $0x1e8] ss:$208 sps:$4 sm:$0xff]  }
 0x299   :  { %v18598_v5 = vpop.f32.mrb[172].mxu1 }
 0x29a   :  { %v18599_v44 = vpop.f32.mrb[173].mxu1  ;;  %11931 = vmatpush1.bf16.msra.mxu0 %v21584_v45  ;;  %v21663_v45 = vld [vmem:[#allocation6 + $0xf20] ss:$12 sps:$4 sm:$0xff]  }
 0x29b   :  { %v18600_v46 = vadd.f32 %v18599_v44, %v18598_v5  ;;  %v18601_v29 = vpop.f32.mrb[174].mxu1  ;;  %11932 = vmatprep.subr.bf16.mxu0 %v21594_v28 }
 0x29c   :  { %v18602_v53 = vpop.f32.mrb[175].mxu1 }
 0x29d   :  { %v24100_v36 = vadd.f32 %v18600_v46, %v23988_v59  ;;  %v18603_v61 = vadd.f32 %v18602_v53, %v18601_v29  ;;  %11864 = vmatmul.mubr.bf16.gmra.mrb[8].mxu0 %v24038_v56  ;;  %v21605_v59 = vld [vmem:[#allocation6 + $0xe10] ss:$12 sps:$4 sm:$0xff]   ;;  %v21630_v29 = vld [vmem:[#allocation6 + $0xe88] ss:$12 sps:$4 sm:$0xff]  }
 0x29e   :  { %14702 = vmatmul.mubr.bf16.gmra.mrb[24].mxu1 %v24095_v58  ;;  %11933 = vmatpush1.bf16.msra.mxu0 %v21592_v37 }
 0x29f   :  { %v24105_v22 = vadd.f32 %v18603_v61, %v23993_v12  ;;  %11934 = vmatprep.subr.bf16.mxu0 %v21599_v26  ;;  %11873 = vmatprep.mubr.bf16.mxu0 %v24041_v4  ;;  %v21610_v4 = vld [vmem:[#allocation6 + $0xe28] ss:$12 sps:$4 sm:$0xff]   ;;  %v24139_v26 = vld [vmem:[#allocation3 + $0x38c] ss:$208 sps:$4 sm:$0xff]  }
 0x2a0   :  { %14709 = vmatprep.mubr.bf16.mxu1 %v24097_v0 }
 0x2a1   :  { %v18604_v15 = vpop.f32.mrb[176].mxu1 }
 0x2a2   :  { %v18605_v52 = vpop.f32.mrb[177].mxu1  ;;  %11935 = vmatpush1.bf16.msra.mxu0 %v21597_v13  ;;  %v21638_v13 = vld [vmem:[#allocation6 + $0xea4] ss:$12 sps:$4 sm:$0xff]  }
 0x2a3   :  { %v18606_v56 = vadd.f32 %v18605_v52, %v18604_v15  ;;  %v18607_v1 = vpop.f32.mrb[178].mxu1  ;;  %11936 = vmatprep.subr.bf16.mxu0 %v21607_v31  ;;  %v21675_v31 = vld [vmem:[#allocation6 + $0x1010] ss:$12 sps:$4 sm:$0xff]  }
 0x2a4   :  { %v18608_v60 = vpop.f32.mrb[179].mxu1  ;;  %v21676_v52 = vld [vmem:[#allocation6 + $0xf50] ss:$12 sps:$4 sm:$0xff]  }
 0x2a5   :  { %v24114_v12 = vadd.f32 %v18606_v56, %v24002_v19  ;;  %v18609_v49 = vadd.f32 %v18608_v60, %v18607_v1  ;;  %11874 = vmatmul.mubr.bf16.gmra.mrb[12].mxu0 %v24052_v48  ;;  %v21618_v19 = vld [vmem:[#allocation6 + $0xe40] ss:$12 sps:$4 sm:$0xff]   ;;  %v21683_v56 = vld [vmem:[#allocation6 + $0x1028] ss:$12 sps:$4 sm:$0xff]  }
 0x2a6   :  { %14710 = vmatmul.mubr.bf16.gmra.mrb[28].mxu1 %v24109_v41  ;;  %11937 = vmatpush1.bf16.msra.mxu0 %v21605_v59  ;;  %v24150_v59 = vld [vmem:[#allocation3 + $0x388] ss:$208 sps:$4 sm:$0xff]  }
 0x2a7   :  { %v24119_v7 = vadd.f32 %v18609_v49, %v24007_v20  ;;  %11938 = vmatprep.subr.bf16.mxu0 %v21612_v2  ;;  %11883 = vmatprep.mubr.bf16.mxu0 %v24055_v42  ;;  %v21658_v20 = vld [vmem:[#allocation6 + $0xf08] ss:$12 sps:$4 sm:$0xff]  }
 0x2a8   :  { %14750 = vmatprep.mubr.bf16.mxu1 %v24111_v35 }
 0x2a9   :  { %v18610_v50 = vpop.f32.mrb[180].mxu1 }
 0x2aa   :  { %v18611_v9 = vpop.f32.mrb[181].mxu1  ;;  %11939 = vmatpush1.bf16.msra.mxu0 %v21610_v4  ;;  %v21639_v4 = vld [vmem:[#allocation6 + $0xeb8] ss:$12 sps:$4 sm:$0xff]  }
 0x2ab   :  { %v18612_v48 = vadd.f32 %v18611_v9, %v18610_v50  ;;  %v18613_v24 = vpop.f32.mrb[182].mxu1  ;;  %11940 = vmatprep.subr.bf16.mxu0 %v21620_v63  ;;  %v24153_v63 = vld [vmem:[#allocation3 + $0x52c] ss:$208 sps:$4 sm:$0xff]   ;;  %v21647_v9 = vld [vmem:[#allocation6 + $0xed4] ss:$12 sps:$4 sm:$0xff]  }
 0x2ac   :  { %v18614_v6 = vpop.f32.mrb[183].mxu1 }
 0x2ad   :  { %v24128_v54 = vadd.f32 %v18612_v48, %v24016_v25  ;;  %v18615_v42 = vadd.f32 %v18614_v6, %v18613_v24  ;;  %11884 = vmatmul.mubr.bf16.gmra.mrb[16].mxu0 %v24066_v14  ;;  %v21627_v25 = vld [vmem:[#allocation6 + $0xe70] ss:$12 sps:$4 sm:$0xff]   ;;  %v21670_v14 = vld [vmem:[#allocation6 + $0xff8] ss:$12 sps:$4 sm:$0xff]   ;;  %v21688_v48 = vld [vmem:[#allocation6 + $0x1040] ss:$12 sps:$4 sm:$0xff]  }
 0x2ae   :  { %14751 = vmatmul.mubr.bf16.vlgmr.msra.gmra.mrb[32].mxu1 %v24123_v62  ;;  %11941 = vmatpush1.bf16.msra.mxu0 %v21618_v19  ;;  %v21689_v6 = vld [vmem:[#allocation6 + $0xf80] ss:$12 sps:$4 sm:$0xff]  }
 0x2af   :  { %v24133_v33 = vadd.f32 %v18615_v42, %v24021_v51  ;;  %11942 = vmatprep.subr.bf16.mxu0 %v21623_v21  ;;  %11893 = vmatprep.mubr.bf16.mxu0 %v24069_v3  ;;  %v21632_v51 = vld [vmem:[#allocation6 + $0xe8c] ss:$12 sps:$4 sm:$0xff]  }
 0x2b0   :  { %14758 = vmatprep.mubr.bf16.mxu1 %v24125_v23  ;;  %18885 = vmatpush3.bf16.msra.mxu1 %v21658_v20  ;;  %v21671_v3 = vld [vmem:[#allocation6 + $0xf38] ss:$12 sps:$4 sm:$0xff]  }
 0x2b1   :  { %v18616_v28 = vpop.f32.mrb[184].mxu1  ;;  %18886 = vmatprep.subr.bf16.mxu1 %v21662_v39  ;;  %v24164_v21 = vld [vmem:[#allocation3 + $0x528] ss:$208 sps:$4 sm:$0xff]  }
 0x2b2   :  { %v18617_v5 = vpop.f32.mrb[185].mxu1  ;;  %11943 = vmatpush1.bf16.msra.mxu0 %v21621_v34  ;;  %v21696_v34 = vld [vmem:[#allocation6 + $0x1058] ss:$12 sps:$4 sm:$0xff]  }
 0x2b3   :  { %v18618_v37 = vadd.f32 %v18617_v5, %v18616_v28  ;;  %v18619_v44 = vpop.f32.mrb[186].mxu1  ;;  %11944 = vmatprep.subr.bf16.mxu0 %v21629_v32  ;;  %v21656_v5 = vld [vmem:[#allocation6 + $0xf04] ss:$12 sps:$4 sm:$0xff]  }
 0x2b4   :  { %v18620_v46 = vpop.f32.mrb[187].mxu1  ;;  %18887 = vmatpush3.bf16.msra.mxu1 %v21663_v45  ;;  %v24167_v45 = vld [vmem:[#allocation3 + $0x6cc] ss:$208 sps:$4 sm:$0xff]  }
 0x2b5   :  { %v24142_v53 = vadd.f32 %v18618_v37, %v24030_v30  ;;  %v18621_v61 = vadd.f32 %v18620_v46, %v18619_v44  ;;  %11894 = vmatmul.mubr.bf16.gmra.mrb[20].mxu0 %v24081_v10  ;;  %18888 = vmatprep.subr.bf16.mxu1 %v21670_v14  ;;  %v21636_v30 = vld [vmem:[#allocation6 + $0xea0] ss:$12 sps:$4 sm:$0xff]   ;;  %v21701_v37 = vld [vmem:[#allocation6 + $0x1070] ss:$12 sps:$4 sm:$0xff]  }
 0x2b6   :  { %14759 = vmatmul.mubr.bf16.gmra.mrb[36].mxu1 %v24136_v18  ;;  %11945 = vmatpush1.bf16.msra.mxu0 %v21627_v25  ;;  %v21648_v25 = vld [vmem:[#allocation6 + $0xee8] ss:$12 sps:$4 sm:$0xff]   ;;  %v21702_v46 = vld [vmem:[#allocation6 + $0xfb0] ss:$12 sps:$4 sm:$0xff]  }
 0x2b7   :  { %v24147_v15 = vadd.f32 %v18621_v61, %v24035_v11  ;;  %11946 = vmatprep.subr.bf16.mxu0 %v21632_v51  ;;  %11903 = vmatprep.mubr.bf16.mxu0 %v24083_v27  ;;  %v21641_v11 = vld [vmem:[#allocation6 + $0xebc] ss:$12 sps:$4 sm:$0xff]  }
 0x2b8   :  { %14766 = vmatprep.mubr.bf16.mxu1 %v24139_v26  ;;  %18889 = vmatpush3.bf16.msra.mxu1 %v21671_v3  ;;  %v21684_v27 = vld [vmem:[#allocation6 + $0xf68] ss:$12 sps:$4 sm:$0xff]  }
 0x2b9   :  { %v18622_v10 = vpop.f32.mrb[188].mxu1  ;;  %18890 = vmatprep.subr.bf16.mxu1 %v21675_v31  ;;  %v24178_v51 = vld [vmem:[#allocation3 + $0x6c8] ss:$208 sps:$4 sm:$0xff]  }
 0x2ba   :  { %v18623_v1 = vpop.f32.mrb[189].mxu1  ;;  %11947 = vmatpush1.bf16.msra.mxu0 %v21630_v29  ;;  %v21745_v29 = vld [vmem:[#allocation6 + $0x1148] ss:$12 sps:$4 sm:$0xff]  }
 0x2bb   :  { %v18624_v2 = vadd.f32 %v18623_v1, %v18622_v10  ;;  %v18625_v60 = vpop.f32.mrb[190].mxu1  ;;  %11948 = vmatprep.subr.bf16.mxu0 %v21638_v13  ;;  %v21659_v10 = vld [vmem:[#allocation6 + $0xf18] ss:$12 sps:$4 sm:$0xff]  }
 0x2bc   :  { %v18626_v49 = vpop.f32.mrb[191].mxu1  ;;  %18891 = vmatpush3.bf16.msra.mxu1 %v21676_v52 }
 0x2bd   :  { %v24156_v50 = vadd.f32 %v18624_v2, %v24044_v16  ;;  %v18627_v19 = vadd.f32 %v18626_v49, %v18625_v60  ;;  %11904 = vmatmul.mubr.bf16.gmra.mrb[24].mxu0 %v24095_v58  ;;  %18892 = vmatprep.subr.bf16.mxu1 %v21683_v56  ;;  %v21645_v16 = vld [vmem:[#allocation6 + $0xed0] ss:$12 sps:$4 sm:$0xff]   ;;  %v21669_v56 = vld [vmem:[#allocation6 + $0xf34] ss:$12 sps:$4 sm:$0xff]  }
 0x2be   :  { %14767 = vmatmul.mubr.bf16.gmra.mrb[40].mxu1 %v24150_v59  ;;  %11949 = vmatpush1.bf16.msra.mxu0 %v21636_v30  ;;  %v24181_v30 = vld [vmem:[#allocation3 + $0x86c] ss:$208 sps:$4 sm:$0xff]  }
 0x2bf   :  { %v24161_v24 = vadd.f32 %v18627_v19, %v24049_v40  ;;  %11950 = vmatprep.subr.bf16.mxu0 %v21641_v11  ;;  %11913 = vmatprep.mubr.bf16.mxu0 %v24097_v0  ;;  %v21650_v40 = vld [vmem:[#allocation6 + $0xeec] ss:$12 sps:$4 sm:$0xff]   ;;  %v21667_v60 = vld [vmem:[#allocation6 + $0xf30] ss:$12 sps:$4 sm:$0xff]  }
 0x2c0   :  { %14774 = vmatprep.mubr.bf16.mxu1 %v24153_v63  ;;  %18893 = vmatpush3.bf16.msra.mxu1 %v21684_v27  ;;  %v21697_v0 = vld [vmem:[#allocation6 + $0xf98] ss:$12 sps:$4 sm:$0xff]   ;;  %v24195_v19 = vld [vmem:[#allocation3 + $0xa0c] ss:$208 sps:$4 sm:$0xff]  }
 0x2c1   :  { %v18644_v58 = vpop.f32.mrb[192].mxu1  ;;  %18894 = vmatprep.subr.bf16.mxu1 %v21688_v48  ;;  %v21682_v48 = vld [vmem:[#allocation6 + $0xf64] ss:$12 sps:$4 sm:$0xff]  }
 0x2c2   :  { %v18645_v20 = vpop.f32.mrb[193].mxu1  ;;  %11951 = vmatpush1.bf16.msra.mxu0 %v21639_v4  ;;  %v21674_v4 = vld [vmem:[#allocation6 + $0xf4c] ss:$12 sps:$4 sm:$0xff]  }
 0x2c3   :  { %v18646_v42 = vadd.f32 %v18645_v20, %v18644_v58  ;;  %v18647_v32 = vpop.f32.mrb[194].mxu1  ;;  %11952 = vmatprep.subr.bf16.mxu0 %v21647_v9  ;;  %v24207_v58 = vld [vmem:[#allocation3 + $0xa08] ss:$208 sps:$4 sm:$0xff]  }
 0x2c4   :  { %v18648_v39 = vpop.f32.mrb[195].mxu1  ;;  %18895 = vmatpush3.bf16.msra.mxu1 %v21689_v6 }
 0x2c5   :  { %v24170_v28 = vadd.f32 %v18646_v42, %v24058_v43  ;;  %v18649_v14 = vadd.f32 %v18648_v39, %v18647_v32  ;;  %11914 = vmatmul.mubr.bf16.gmra.mrb[28].mxu0 %v24109_v41  ;;  %18896 = vmatprep.subr.bf16.mxu1 %v21696_v34  ;;  %v21654_v43 = vld [vmem:[#allocation6 + $0xf00] ss:$12 sps:$4 sm:$0xff]   ;;  %v21687_v42 = vld [vmem:[#allocation6 + $0xf7c] ss:$12 sps:$4 sm:$0xff]  }
 0x2c6   :  { %14775 = vmatmul.mubr.bf16.gmra.mrb[44].mxu1 %v24164_v21  ;;  %11953 = vmatpush1.bf16.msra.mxu0 %v21645_v16 }
 0x2c7   :  { %v24175_v44 = vadd.f32 %v18649_v14, %v24063_v47  ;;  %11954 = vmatprep.subr.bf16.mxu0 %v21650_v40  ;;  %11956 = vmatprep.mubr.bf16.mxu0 %v24111_v35  ;;  %v21661_v47 = vld [vmem:[#allocation6 + $0xf1c] ss:$12 sps:$4 sm:$0xff]  }
 0x2c8   :  { %14782 = vmatprep.mubr.bf16.mxu1 %v24167_v45  ;;  %18897 = vmatpush3.bf16.msra.mxu1 %v21697_v0  ;;  %v24209_v40 = vld [vmem:[#allocation3 + $0xbac] ss:$208 sps:$4 sm:$0xff]  }
 0x2c9   :  { %v18650_v41 = vpop.f32.mrb[196].mxu1  ;;  %18898 = vmatprep.subr.bf16.mxu1 %v21701_v37 }
 0x2ca   :  { %v18651_v3 = vpop.f32.mrb[197].mxu1  ;;  %11955 = vmatpush1.bf16.msra.mxu0 %v21648_v25  ;;  %v21695_v25 = vld [vmem:[#allocation6 + $0xf94] ss:$12 sps:$4 sm:$0xff]  }
 0x2cb   :  { %v18652_v61 = vadd.f32 %v18651_v3, %v18650_v41  ;;  %v18653_v13 = vpop.f32.mrb[198].mxu1  ;;  %12037 = vmatprep.subr.bf16.mxu0 %v21656_v5  ;;  %v24221_v5 = vld [vmem:[#allocation3 + $0xba8] ss:$208 sps:$4 sm:$0xff]  }
 0x2cc   :  { %v18654_v31 = vpop.f32.mrb[199].mxu1  ;;  %18899 = vmatpush3.bf16.msra.mxu1 %v21702_v46  ;;  %v21700_v46 = vld [vmem:[#allocation6 + $0xfac] ss:$12 sps:$4 sm:$0xff]  }
 0x2cd   :  { %v24184_v35 = vadd.f32 %v18652_v61, %v24072_v57  ;;  %v18655_v52 = vadd.f32 %v18654_v31, %v18653_v13  ;;  %11957 = vmatmul.mubr.bf16.vlgmr.msra.gmra.mrb[0].mxu0 %v24123_v62  ;;  %18948 = vmatprep.subr.bf16.mxu1 %v21745_v29  ;;  %v24193_v57 = vld [vmem:[#allocation3 + $0x868] ss:$208 sps:$4 sm:$0xff]   ;;  %v24223_v29 = vld [vmem:[#allocation3 + $0x54] ss:$208 sps:$4 sm:$0xff]   ;;  %v24235_v31 = vld [vmem:[#allocation3 + $0x50] ss:$208 sps:$4 sm:$0xff]  }
 0x2ce   :  { %14783 = vmatmul.mubr.bf16.gmra.mrb[48].mxu1 %v24178_v51  ;;  %12038 = vmatpush1.bf16.msra.mxu0 %v21654_v43  ;;  %v21708_v61 = vld [vmem:[#allocation6 + $0xfc4] ss:$12 sps:$4 sm:$0xff]  }
 0x2cf   :  { %v24189_v1 = vadd.f32 %v18655_v52, %v24077_v8  ;;  %12039 = vmatprep.subr.bf16.mxu0 %v21661_v47  ;;  %11966 = vmatprep.mubr.bf16.mxu0 %v24125_v23  ;;  %v21672_v23 = vld [vmem:[#allocation6 + $0xf48] ss:$12 sps:$4 sm:$0xff]  }
 0x2d0   :  { %14790 = vmatprep.mubr.bf16.mxu1 %v24181_v30 }
 0x2d1   :  { %v18656_v2 = vpop.f32.mrb[200].mxu1 }
 0x2d2   :  { %v18657_v11 = vpop.f32.mrb[201].mxu1  ;;  %12040 = vmatpush1.bf16.msra.mxu0 %v21659_v10 }
 0x2d3   :  { %v18658_v62 = vadd.f32 %v18657_v11, %v18656_v2  ;;  %v18659_v49 = vpop.f32.mrb[202].mxu1  ;;  %12041 = vmatprep.subr.bf16.mxu0 %v21669_v56  ;;  %v21711_v56 = vld [vmem:[#allocation6 + $0xfdc] ss:$12 sps:$4 sm:$0xff]   ;;  %v24237_v11 = vld [vmem:[#allocation3 + $0x1f4] ss:$208 sps:$4 sm:$0xff]  }
 0x2d4   :  { %v18660_v27 = vpop.f32.mrb[203].mxu1 }
 0x2d5   :  { %v24198_v8 = vadd.f32 %v18658_v62, %v24086_v38  ;;  %v18661_v9 = vadd.f32 %v18660_v27, %v18659_v49  ;;  %11967 = vmatmul.mubr.bf16.gmra.mrb[4].mxu0 %v24136_v18  ;;  %v21680_v38 = vld [vmem:[#allocation6 + $0xf60] ss:$12 sps:$4 sm:$0xff]  }
 0x2d6   :  { %14791 = vmatmul.mubr.bf16.gmra.mrb[52].mxu1 %v24193_v57  ;;  %12042 = vmatpush1.bf16.msra.mxu0 %v21667_v60  ;;  %v21709_v60 = vld [vmem:[#allocation6 + $0xfd8] ss:$12 sps:$4 sm:$0xff]   ;;  %v21717_v49 = vld [vmem:[#allocation6 + $0xff4] ss:$12 sps:$4 sm:$0xff]  }
 0x2d7   :  { %v24203_v16 = vadd.f32 %v18661_v9, %v24091_v55  ;;  %12043 = vmatprep.subr.bf16.mxu0 %v21674_v4  ;;  %11976 = vmatprep.mubr.bf16.mxu0 %v24139_v26  ;;  %v21685_v26 = vld [vmem:[#allocation6 + $0xf78] ss:$12 sps:$4 sm:$0xff]   ;;  %v21750_v4 = vld [vmem:[#allocation6 + $0x1160] ss:$12 sps:$4 sm:$0xff]  }
 0x2d8   :  { %14798 = vmatprep.mubr.bf16.mxu1 %v24195_v19  ;;  %v24248_v9 = vld [vmem:[#allocation3 + $0x1f0] ss:$208 sps:$4 sm:$0xff]  }
 0x2d9   :  { %v18662_v6 = vpop.f32.mrb[204].mxu1 }
 0x2da   :  { %v18663_v34 = vpop.f32.mrb[205].mxu1  ;;  %12044 = vmatpush1.bf16.msra.mxu0 %v21672_v23  ;;  %v21751_v23 = vld [vmem:[#allocation6 + $0x10a0] ss:$12 sps:$4 sm:$0xff]  }
 0x2db   :  { %v18664_v18 = vadd.f32 %v18663_v34, %v18662_v6  ;;  %v18665_v20 = vpop.f32.mrb[206].mxu1  ;;  %12045 = vmatprep.subr.bf16.mxu0 %v21682_v48 }
 0x2dc   :  { %v18666_v32 = vpop.f32.mrb[207].mxu1 }
 0x2dd   :  { %v24212_v55 = vadd.f32 %v18664_v18, %v24100_v36  ;;  %v18667_v39 = vadd.f32 %v18666_v32, %v18665_v20  ;;  %11977 = vmatmul.mubr.bf16.gmra.mrb[8].mxu0 %v24150_v59  ;;  %v21693_v36 = vld [vmem:[#allocation6 + $0xf90] ss:$12 sps:$4 sm:$0xff]   ;;  %v21718_v20 = vld [vmem:[#allocation6 + $0x1008] ss:$12 sps:$4 sm:$0xff]  }
 0x2de   :  { %14799 = vmatmul.mubr.bf16.gmra.mrb[56].mxu1 %v24207_v58  ;;  %12046 = vmatpush1.bf16.msra.mxu0 %v21680_v38 }
 0x2df   :  { %v24217_v0 = vadd.f32 %v18667_v39, %v24105_v22  ;;  %12047 = vmatprep.subr.bf16.mxu0 %v21687_v42  ;;  %11986 = vmatprep.mubr.bf16.mxu0 %v24153_v63  ;;  %v21698_v63 = vld [vmem:[#allocation6 + $0xfa8] ss:$12 sps:$4 sm:$0xff]  }
 0x2e0   :  { %14806 = vmatprep.mubr.bf16.mxu1 %v24209_v40  ;;  %v24251_v42 = vld [vmem:[#allocation3 + $0x394] ss:$208 sps:$4 sm:$0xff]  }
 0x2e1   :  { %v18668_v14 = vpop.f32.mrb[208].mxu1 }
 0x2e2   :  { %v18669_v37 = vpop.f32.mrb[209].mxu1  ;;  %12048 = vmatpush1.bf16.msra.mxu0 %v21685_v26  ;;  %v21726_v26 = vld [vmem:[#allocation6 + $0x1024] ss:$12 sps:$4 sm:$0xff]  }
 0x2e3   :  { %v18670_v59 = vadd.f32 %v18669_v37, %v18668_v14  ;;  %v18671_v43 = vpop.f32.mrb[210].mxu1  ;;  %12049 = vmatprep.subr.bf16.mxu0 %v21695_v25  ;;  %v21763_v25 = vld [vmem:[#allocation6 + $0x1190] ss:$12 sps:$4 sm:$0xff]  }
 0x2e4   :  { %v18672_v41 = vpop.f32.mrb[211].mxu1  ;;  %v21764_v37 = vld [vmem:[#allocation6 + $0x10d0] ss:$12 sps:$4 sm:$0xff]  }
 0x2e5   :  { %v24226_v22 = vadd.f32 %v18670_v59, %v24114_v12  ;;  %v18673_v3 = vadd.f32 %v18672_v41, %v18671_v43  ;;  %11987 = vmatmul.mubr.bf16.gmra.mrb[12].mxu0 %v24164_v21  ;;  %v21706_v12 = vld [vmem:[#allocation6 + $0xfc0] ss:$12 sps:$4 sm:$0xff]   ;;  %v21771_v59 = vld [vmem:[#allocation6 + $0x11a8] ss:$12 sps:$4 sm:$0xff]  }
 0x2e6   :  { %14807 = vmatmul.mubr.bf16.gmra.mrb[60].mxu1 %v24221_v5  ;;  %12050 = vmatpush1.bf16.msra.mxu0 %v21693_v36  ;;  %v24262_v36 = vld [vmem:[#allocation3 + $0x390] ss:$208 sps:$4 sm:$0xff]  }
 0x2e7   :  { %v24231_v13 = vadd.f32 %v18673_v3, %v24119_v7  ;;  %12051 = vmatprep.subr.bf16.mxu0 %v21700_v46  ;;  %11996 = vmatprep.mubr.bf16.mxu0 %v24167_v45  ;;  %v21746_v7 = vld [vmem:[#allocation6 + $0x1088] ss:$12 sps:$4 sm:$0xff]  }
 0x2e8   :  { %14847 = vmatprep.mubr.bf16.mxu1 %v24223_v29 }
 0x2e9   :  { %v18674_v47 = vpop.f32.mrb[212].mxu1 }
 0x2ea   :  { %v18675_v52 = vpop.f32.mrb[213].mxu1  ;;  %12052 = vmatpush1.bf16.msra.mxu0 %v21698_v63  ;;  %v21727_v63 = vld [vmem:[#allocation6 + $0x1038] ss:$12 sps:$4 sm:$0xff]  }
 0x2eb   :  { %v18676_v21 = vadd.f32 %v18675_v52, %v18674_v47  ;;  %v18677_v10 = vpop.f32.mrb[214].mxu1  ;;  %12053 = vmatprep.subr.bf16.mxu0 %v21708_v61  ;;  %v24265_v61 = vld [vmem:[#allocation3 + $0x534] ss:$208 sps:$4 sm:$0xff]  }
 0x2ec   :  { %v18678_v2 = vpop.f32.mrb[215].mxu1  ;;  %v21735_v52 = vld [vmem:[#allocation6 + $0x1054] ss:$12 sps:$4 sm:$0xff]  }
 0x2ed   :  { %v24240_v62 = vadd.f32 %v18676_v21, %v24128_v54  ;;  %v18679_v45 = vadd.f32 %v18678_v2, %v18677_v10  ;;  %11997 = vmatmul.mubr.bf16.gmra.mrb[16].mxu0 %v24178_v51  ;;  %v21715_v54 = vld [vmem:[#allocation6 + $0xff0] ss:$12 sps:$4 sm:$0xff]   ;;  %v21758_v51 = vld [vmem:[#allocation6 + $0x1178] ss:$12 sps:$4 sm:$0xff]   ;;  %v21776_v21 = vld [vmem:[#allocation6 + $0x11c0] ss:$12 sps:$4 sm:$0xff]  }
 0x2ee   :  { %14848 = vmatmul.mubr.bf16.vlgmr.msra.gmra.mrb[64].mxu1 %v24235_v31  ;;  %12054 = vmatpush1.bf16.msra.mxu0 %v21706_v12  ;;  %v21777_v2 = vld [vmem:[#allocation6 + $0x1100] ss:$12 sps:$4 sm:$0xff]  }
 0x2ef   :  { %v24245_v27 = vadd.f32 %v18679_v45, %v24133_v33  ;;  %12055 = vmatprep.subr.bf16.mxu0 %v21711_v56  ;;  %12006 = vmatprep.mubr.bf16.mxu0 %v24181_v30  ;;  %v21720_v33 = vld [vmem:[#allocation6 + $0x100c] ss:$12 sps:$4 sm:$0xff]   ;;  %v24276_v56 = vld [vmem:[#allocation3 + $0x530] ss:$208 sps:$4 sm:$0xff]  }
 0x2f0   :  { %14855 = vmatprep.mubr.bf16.mxu1 %v24237_v11  ;;  %18949 = vmatpush3.bf16.msra.mxu1 %v21746_v7  ;;  %v21759_v30 = vld [vmem:[#allocation6 + $0x10b8] ss:$12 sps:$4 sm:$0xff]  }
 0x2f1   :  { %v18680_v48 = vpop.f32.mrb[216].mxu1  ;;  %18950 = vmatprep.subr.bf16.mxu1 %v21750_v4 }
 0x2f2   :  { %v18681_v6 = vpop.f32.mrb[217].mxu1  ;;  %12056 = vmatpush1.bf16.msra.mxu0 %v21709_v60  ;;  %v21784_v60 = vld [vmem:[#allocation6 + $0x11d8] ss:$12 sps:$4 sm:$0xff]  }
 0x2f3   :  { %v18682_v38 = vadd.f32 %v18681_v6, %v18680_v48  ;;  %v18683_v34 = vpop.f32.mrb[218].mxu1  ;;  %12057 = vmatprep.subr.bf16.mxu0 %v21717_v49  ;;  %v21744_v6 = vld [vmem:[#allocation6 + $0x1084] ss:$12 sps:$4 sm:$0xff]  }
 0x2f4   :  { %v18684_v18 = vpop.f32.mrb[219].mxu1  ;;  %18951 = vmatpush3.bf16.msra.mxu1 %v21751_v23  ;;  %v24279_v23 = vld [vmem:[#allocation3 + $0x6d4] ss:$208 sps:$4 sm:$0xff]  }
 0x2f5   :  { %v24254_v32 = vadd.f32 %v18682_v38, %v24142_v53  ;;  %v18685_v39 = vadd.f32 %v18684_v18, %v18683_v34  ;;  %12007 = vmatmul.mubr.bf16.gmra.mrb[20].mxu0 %v24193_v57  ;;  %18952 = vmatprep.subr.bf16.mxu1 %v21758_v51  ;;  %v21724_v53 = vld [vmem:[#allocation6 + $0x1020] ss:$12 sps:$4 sm:$0xff]   ;;  %v21789_v38 = vld [vmem:[#allocation6 + $0x11f0] ss:$12 sps:$4 sm:$0xff]  }
 0x2f6   :  { %14856 = vmatmul.mubr.bf16.gmra.mrb[68].mxu1 %v24248_v9  ;;  %12058 = vmatpush1.bf16.msra.mxu0 %v21715_v54  ;;  %v21736_v54 = vld [vmem:[#allocation6 + $0x1068] ss:$12 sps:$4 sm:$0xff]   ;;  %v21790_v18 = vld [vmem:[#allocation6 + $0x1130] ss:$12 sps:$4 sm:$0xff]  }
 0x2f7   :  { %v24259_v14 = vadd.f32 %v18685_v39, %v24147_v15  ;;  %12059 = vmatprep.subr.bf16.mxu0 %v21720_v33  ;;  %12016 = vmatprep.mubr.bf16.mxu0 %v24195_v19  ;;  %v21729_v15 = vld [vmem:[#allocation6 + $0x103c] ss:$12 sps:$4 sm:$0xff]   ;;  %v24290_v33 = vld [vmem:[#allocation3 + $0x6d0] ss:$208 sps:$4 sm:$0xff]  }
 0x2f8   :  { %14863 = vmatprep.mubr.bf16.mxu1 %v24251_v42  ;;  %18953 = vmatpush3.bf16.msra.mxu1 %v21759_v30  ;;  %v21772_v19 = vld [vmem:[#allocation6 + $0x10e8] ss:$12 sps:$4 sm:$0xff]  }
 0x2f9   :  { %v18686_v57 = vpop.f32.mrb[220].mxu1  ;;  %18954 = vmatprep.subr.bf16.mxu1 %v21763_v25 }
 0x2fa   :  { %v18687_v43 = vpop.f32.mrb[221].mxu1  ;;  %12060 = vmatpush1.bf16.msra.mxu0 %v21718_v20  ;;  %v21833_v20 = vld [vmem:[#allocation6 + $0x12c8] ss:$12 sps:$4 sm:$0xff]  }
 0x2fb   :  { %v18688_v46 = vadd.f32 %v18687_v43, %v18686_v57  ;;  %v18689_v41 = vpop.f32.mrb[222].mxu1  ;;  %12061 = vmatprep.subr.bf16.mxu0 %v21726_v26  ;;  %v21747_v57 = vld [vmem:[#allocation6 + $0x1098] ss:$12 sps:$4 sm:$0xff]  }
 0x2fc   :  { %v18690_v3 = vpop.f32.mrb[223].mxu1  ;;  %18955 = vmatpush3.bf16.msra.mxu1 %v21764_v37 }
 0x2fd   :  { %v24268_v47 = vadd.f32 %v18688_v46, %v24156_v50  ;;  %v18691_v12 = vadd.f32 %v18690_v3, %v18689_v41  ;;  %12017 = vmatmul.mubr.bf16.gmra.mrb[24].mxu0 %v24207_v58  ;;  %18956 = vmatprep.subr.bf16.mxu1 %v21771_v59  ;;  %v21733_v50 = vld [vmem:[#allocation6 + $0x1050] ss:$12 sps:$4 sm:$0xff]   ;;  %v21757_v59 = vld [vmem:[#allocation6 + $0x10b4] ss:$12 sps:$4 sm:$0xff]  }
 0x2fe   :  { %14864 = vmatmul.mubr.bf16.gmra.mrb[72].mxu1 %v24262_v36  ;;  %12062 = vmatpush1.bf16.msra.mxu0 %v21724_v53  ;;  %v24293_v53 = vld [vmem:[#allocation3 + $0x874] ss:$208 sps:$4 sm:$0xff]   ;;  %v21755_v41 = vld [vmem:[#allocation6 + $0x10b0] ss:$12 sps:$4 sm:$0xff]  }
 0x2ff   :  { %v24273_v10 = vadd.f32 %v18691_v12, %v24161_v24  ;;  %12063 = vmatprep.subr.bf16.mxu0 %v21729_v15  ;;  %12026 = vmatprep.mubr.bf16.mxu0 %v24209_v40  ;;  %v21738_v24 = vld [vmem:[#allocation6 + $0x106c] ss:$12 sps:$4 sm:$0xff]   ;;  %v24307_v12 = vld [vmem:[#allocation3 + $0xa14] ss:$208 sps:$4 sm:$0xff]  }
 0x300   :  { %14871 = vmatprep.mubr.bf16.mxu1 %v24265_v61  ;;  %18957 = vmatpush3.bf16.msra.mxu1 %v21772_v19  ;;  %v21785_v40 = vld [vmem:[#allocation6 + $0x1118] ss:$12 sps:$4 sm:$0xff]  }
 0x301   :  { %v18708_v58 = vpop.f32.mrb[224].mxu1  ;;  %18958 = vmatprep.subr.bf16.mxu1 %v21776_v21  ;;  %v21770_v21 = vld [vmem:[#allocation6 + $0x10e4] ss:$12 sps:$4 sm:$0xff]  }
 0x302   :  { %v18709_v7 = vpop.f32.mrb[225].mxu1  ;;  %12064 = vmatpush1.bf16.msra.mxu0 %v21727_v63  ;;  %v21762_v63 = vld [vmem:[#allocation6 + $0x10cc] ss:$12 sps:$4 sm:$0xff]  }
 0x303   :  { %v18710_v45 = vadd.f32 %v18709_v7, %v18708_v58  ;;  %v18711_v49 = vpop.f32.mrb[226].mxu1  ;;  %12065 = vmatprep.subr.bf16.mxu0 %v21735_v52  ;;  %v24319_v58 = vld [vmem:[#allocation3 + $0xa10] ss:$208 sps:$4 sm:$0xff]  }
 0x304   :  { %v18712_v4 = vpop.f32.mrb[227].mxu1  ;;  %18959 = vmatpush3.bf16.msra.mxu1 %v21777_v2 }
 0x305   :  { %v24282_v48 = vadd.f32 %v18710_v45, %v24170_v28  ;;  %v18713_v51 = vadd.f32 %v18712_v4, %v18711_v49  ;;  %12027 = vmatmul.mubr.bf16.gmra.mrb[28].mxu0 %v24221_v5  ;;  %18960 = vmatprep.subr.bf16.mxu1 %v21784_v60  ;;  %v21742_v28 = vld [vmem:[#allocation6 + $0x1080] ss:$12 sps:$4 sm:$0xff]   ;;  %v21775_v45 = vld [vmem:[#allocation6 + $0x10fc] ss:$12 sps:$4 sm:$0xff]  }
 0x306   :  { %14872 = vmatmul.mubr.bf16.gmra.mrb[76].mxu1 %v24276_v56  ;;  %12066 = vmatpush1.bf16.msra.mxu0 %v21733_v50 }
 0x307   :  { %v24287_v34 = vadd.f32 %v18713_v51, %v24175_v44  ;;  %12067 = vmatprep.subr.bf16.mxu0 %v21738_v24  ;;  %12069 = vmatprep.mubr.bf16.mxu0 %v24223_v29  ;;  %v21749_v44 = vld [vmem:[#allocation6 + $0x109c] ss:$12 sps:$4 sm:$0xff]   ;;  %v24321_v24 = vld [vmem:[#allocation3 + $0xbb4] ss:$208 sps:$4 sm:$0xff]  }
 0x308   :  { %14879 = vmatprep.mubr.bf16.mxu1 %v24279_v23  ;;  %18961 = vmatpush3.bf16.msra.mxu1 %v21785_v40 }
 0x309   :  { %v18714_v5 = vpop.f32.mrb[228].mxu1  ;;  %18962 = vmatprep.subr.bf16.mxu1 %v21789_v38 }
 0x30a   :  { %v18715_v30 = vpop.f32.mrb[229].mxu1  ;;  %12068 = vmatpush1.bf16.msra.mxu0 %v21736_v54  ;;  %v21783_v54 = vld [vmem:[#allocation6 + $0x1114] ss:$12 sps:$4 sm:$0xff]  }
 0x30b   :  { %v18716_v39 = vadd.f32 %v18715_v30, %v18714_v5  ;;  %v18717_v26 = vpop.f32.mrb[230].mxu1  ;;  %12150 = vmatprep.subr.bf16.mxu0 %v21744_v6  ;;  %v24333_v6 = vld [vmem:[#allocation3 + $0xbb0] ss:$208 sps:$4 sm:$0xff]  }
 0x30c   :  { %v18718_v25 = vpop.f32.mrb[231].mxu1  ;;  %18963 = vmatpush3.bf16.msra.mxu1 %v21790_v18  ;;  %v21788_v18 = vld [vmem:[#allocation6 + $0x112c] ss:$12 sps:$4 sm:$0xff]  }
 0x30d   :  { %v24296_v29 = vadd.f32 %v18716_v39, %v24184_v35  ;;  %v18719_v37 = vadd.f32 %v18718_v25, %v18717_v26  ;;  %12070 = vmatmul.mubr.bf16.vlgmr.msra.gmra.mrb[0].mxu0 %v24235_v31  ;;  %19012 = vmatprep.subr.bf16.mxu1 %v21833_v20  ;;  %v24305_v35 = vld [vmem:[#allocation3 + $0x870] ss:$208 sps:$4 sm:$0xff]   ;;  %v24335_v20 = vld [vmem:[#allocation3 + $0x5c] ss:$208 sps:$4 sm:$0xff]   ;;  %v24347_v25 = vld [vmem:[#allocation3 + $0x58] ss:$208 sps:$4 sm:$0xff]  }
 0x30e   :  { %14880 = vmatmul.mubr.bf16.gmra.mrb[80].mxu1 %v24290_v33  ;;  %12151 = vmatpush1.bf16.msra.mxu0 %v21742_v28  ;;  %v21796_v39 = vld [vmem:[#allocation6 + $0x1144] ss:$12 sps:$4 sm:$0xff]  }
 0x30f   :  { %v24301_v43 = vadd.f32 %v18719_v37, %v24189_v1  ;;  %12152 = vmatprep.subr.bf16.mxu0 %v21749_v44  ;;  %12079 = vmatprep.mubr.bf16.mxu0 %v24237_v11  ;;  %v21760_v11 = vld [vmem:[#allocation6 + $0x10c8] ss:$12 sps:$4 sm:$0xff]  }
 0x310   :  { %14887 = vmatprep.mubr.bf16.mxu1 %v24293_v53 }
 0x311   :  { %v18720_v46 = vpop.f32.mrb[232].mxu1 }
 0x312   :  { %v18721_v15 = vpop.f32.mrb[233].mxu1  ;;  %12153 = vmatpush1.bf16.msra.mxu0 %v21747_v57 }
 0x313   :  { %v18722_v31 = vadd.f32 %v18721_v15, %v18720_v46  ;;  %v18723_v3 = vpop.f32.mrb[234].mxu1  ;;  %12154 = vmatprep.subr.bf16.mxu0 %v21757_v59  ;;  %v21799_v59 = vld [vmem:[#allocation6 + $0x115c] ss:$12 sps:$4 sm:$0xff]  }
 0x314   :  { %v18724_v19 = vpop.f32.mrb[235].mxu1  ;;  %v24349_v15 = vld [vmem:[#allocation3 + $0x1fc] ss:$208 sps:$4 sm:$0xff]  }
 0x315   :  { %v24310_v1 = vadd.f32 %v18722_v31, %v24198_v8  ;;  %v18725_v52 = vadd.f32 %v18724_v19, %v18723_v3  ;;  %12080 = vmatmul.mubr.bf16.gmra.mrb[4].mxu0 %v24248_v9  ;;  %v21768_v8 = vld [vmem:[#allocation6 + $0x10e0] ss:$12 sps:$4 sm:$0xff]  }
 0x316   :  { %14888 = vmatmul.mubr.bf16.gmra.mrb[84].mxu1 %v24305_v35  ;;  %12155 = vmatpush1.bf16.msra.mxu0 %v21755_v41  ;;  %v21797_v41 = vld [vmem:[#allocation6 + $0x1158] ss:$12 sps:$4 sm:$0xff]   ;;  %v21805_v3 = vld [vmem:[#allocation6 + $0x1174] ss:$12 sps:$4 sm:$0xff]  }
 0x317   :  { %v24315_v50 = vadd.f32 %v18725_v52, %v24203_v16  ;;  %12156 = vmatprep.subr.bf16.mxu0 %v21762_v63  ;;  %12089 = vmatprep.mubr.bf16.mxu0 %v24251_v42  ;;  %v21773_v42 = vld [vmem:[#allocation6 + $0x10f8] ss:$12 sps:$4 sm:$0xff]   ;;  %v21838_v63 = vld [vmem:[#allocation6 + $0x12e0] ss:$12 sps:$4 sm:$0xff]  }
 0x318   :  { %14895 = vmatprep.mubr.bf16.mxu1 %v24307_v12  ;;  %v24360_v52 = vld [vmem:[#allocation3 + $0x1f8] ss:$208 sps:$4 sm:$0xff]  }
 0x319   :  { %v18726_v2 = vpop.f32.mrb[236].mxu1 }
 0x31a   :  { %v18727_v60 = vpop.f32.mrb[237].mxu1  ;;  %12157 = vmatpush1.bf16.msra.mxu0 %v21760_v11  ;;  %v21839_v11 = vld [vmem:[#allocation6 + $0x1220] ss:$12 sps:$4 sm:$0xff]  }
 0x31b   :  { %v18728_v9 = vadd.f32 %v18727_v60, %v18726_v2  ;;  %v18729_v7 = vpop.f32.mrb[238].mxu1  ;;  %12158 = vmatprep.subr.bf16.mxu0 %v21770_v21 }
 0x31c   :  { %v18730_v49 = vpop.f32.mrb[239].mxu1 }
 0x31d   :  { %v24324_v16 = vadd.f32 %v18728_v9, %v24212_v55  ;;  %v18731_v4 = vadd.f32 %v18730_v49, %v18729_v7  ;;  %12090 = vmatmul.mubr.bf16.gmra.mrb[8].mxu0 %v24262_v36  ;;  %v21781_v55 = vld [vmem:[#allocation6 + $0x1110] ss:$12 sps:$4 sm:$0xff]   ;;  %v21806_v7 = vld [vmem:[#allocation6 + $0x1188] ss:$12 sps:$4 sm:$0xff]  }
 0x31e   :  { %14896 = vmatmul.mubr.bf16.gmra.mrb[88].mxu1 %v24319_v58  ;;  %12159 = vmatpush1.bf16.msra.mxu0 %v21768_v8 }
 0x31f   :  { %v24329_v40 = vadd.f32 %v18731_v4, %v24217_v0  ;;  %12160 = vmatprep.subr.bf16.mxu0 %v21775_v45  ;;  %12099 = vmatprep.mubr.bf16.mxu0 %v24265_v61  ;;  %v21786_v61 = vld [vmem:[#allocation6 + $0x1128] ss:$12 sps:$4 sm:$0xff]   ;;  %v24363_v45 = vld [vmem:[#allocation3 + $0x39c] ss:$208 sps:$4 sm:$0xff]  }
 0x320   :  { %14903 = vmatprep.mubr.bf16.mxu1 %v24321_v24 }
 0x321   :  { %v18732_v51 = vpop.f32.mrb[240].mxu1 }
 0x322   :  { %v18733_v38 = vpop.f32.mrb[241].mxu1  ;;  %12161 = vmatpush1.bf16.msra.mxu0 %v21773_v42  ;;  %v21814_v42 = vld [vmem:[#allocation6 + $0x11a4] ss:$12 sps:$4 sm:$0xff]  }
 0x323   :  { %v18734_v36 = vadd.f32 %v18733_v38, %v18732_v51  ;;  %v18735_v28 = vpop.f32.mrb[242].mxu1  ;;  %12162 = vmatprep.subr.bf16.mxu0 %v21783_v54  ;;  %v21851_v54 = vld [vmem:[#allocation6 + $0x1310] ss:$12 sps:$4 sm:$0xff]  }
 0x324   :  { %v18736_v5 = vpop.f32.mrb[243].mxu1  ;;  %v21852_v38 = vld [vmem:[#allocation6 + $0x1250] ss:$12 sps:$4 sm:$0xff]  }
 0x325   :  { %v24338_v0 = vadd.f32 %v18734_v36, %v24226_v22  ;;  %v18737_v30 = vadd.f32 %v18736_v5, %v18735_v28  ;;  %12100 = vmatmul.mubr.bf16.gmra.mrb[12].mxu0 %v24276_v56  ;;  %v21794_v22 = vld [vmem:[#allocation6 + $0x1140] ss:$12 sps:$4 sm:$0xff]   ;;  %v21859_v36 = vld [vmem:[#allocation6 + $0x1328] ss:$12 sps:$4 sm:$0xff]  }
 0x326   :  { %14904 = vmatmul.mubr.bf16.gmra.mrb[92].mxu1 %v24333_v6  ;;  %12163 = vmatpush1.bf16.msra.mxu0 %v21781_v55  ;;  %v24374_v55 = vld [vmem:[#allocation3 + $0x398] ss:$208 sps:$4 sm:$0xff]  }
 0x327   :  { %v24343_v26 = vadd.f32 %v18737_v30, %v24231_v13  ;;  %12164 = vmatprep.subr.bf16.mxu0 %v21788_v18  ;;  %12109 = vmatprep.mubr.bf16.mxu0 %v24279_v23  ;;  %v21834_v13 = vld [vmem:[#allocation6 + $0x1208] ss:$12 sps:$4 sm:$0xff]  }
 0x328   :  { %14944 = vmatprep.mubr.bf16.mxu1 %v24335_v20 }
 0x329   :  { %v18738_v44 = vpop.f32.mrb[244].mxu1 }
 0x32a   :  { %v18739_v37 = vpop.f32.mrb[245].mxu1  ;;  %12165 = vmatpush1.bf16.msra.mxu0 %v21786_v61  ;;  %v21815_v61 = vld [vmem:[#allocation6 + $0x11b8] ss:$12 sps:$4 sm:$0xff]  }
 0x32b   :  { %v18740_v56 = vadd.f32 %v18739_v37, %v18738_v44  ;;  %v18741_v57 = vpop.f32.mrb[246].mxu1  ;;  %12166 = vmatprep.subr.bf16.mxu0 %v21796_v39  ;;  %v24377_v39 = vld [vmem:[#allocation3 + $0x53c] ss:$208 sps:$4 sm:$0xff]   ;;  %v21823_v37 = vld [vmem:[#allocation6 + $0x11d4] ss:$12 sps:$4 sm:$0xff]  }
 0x32c   :  { %v18742_v46 = vpop.f32.mrb[247].mxu1 }
 0x32d   :  { %v24352_v31 = vadd.f32 %v18740_v56, %v24240_v62  ;;  %v18743_v23 = vadd.f32 %v18742_v46, %v18741_v57  ;;  %12110 = vmatmul.mubr.bf16.gmra.mrb[16].mxu0 %v24290_v33  ;;  %v21803_v62 = vld [vmem:[#allocation6 + $0x1170] ss:$12 sps:$4 sm:$0xff]   ;;  %v21846_v33 = vld [vmem:[#allocation6 + $0x12f8] ss:$12 sps:$4 sm:$0xff]   ;;  %v21864_v56 = vld [vmem:[#allocation6 + $0x1340] ss:$12 sps:$4 sm:$0xff]  }
 0x32e   :  { %14945 = vmatmul.mubr.bf16.vlgmr.msra.gmra.mrb[96].mxu1 %v24347_v25  ;;  %12167 = vmatpush1.bf16.msra.mxu0 %v21794_v22  ;;  %v21865_v46 = vld [vmem:[#allocation6 + $0x1280] ss:$12 sps:$4 sm:$0xff]  }
 0x32f   :  { %v24357_v19 = vadd.f32 %v18743_v23, %v24245_v27  ;;  %12168 = vmatprep.subr.bf16.mxu0 %v21799_v59  ;;  %12119 = vmatprep.mubr.bf16.mxu0 %v24293_v53  ;;  %v21808_v27 = vld [vmem:[#allocation6 + $0x118c] ss:$12 sps:$4 sm:$0xff]  }
 0x330   :  { %14952 = vmatprep.mubr.bf16.mxu1 %v24349_v15  ;;  %19013 = vmatpush3.bf16.msra.mxu1 %v21834_v13  ;;  %v21847_v53 = vld [vmem:[#allocation6 + $0x1238] ss:$12 sps:$4 sm:$0xff]  }
 0x331   :  { %v18744_v21 = vpop.f32.mrb[248].mxu1  ;;  %19014 = vmatprep.subr.bf16.mxu1 %v21838_v63  ;;  %v24388_v59 = vld [vmem:[#allocation3 + $0x538] ss:$208 sps:$4 sm:$0xff]  }
 0x332   :  { %v18745_v2 = vpop.f32.mrb[249].mxu1  ;;  %12169 = vmatpush1.bf16.msra.mxu0 %v21797_v41  ;;  %v21872_v41 = vld [vmem:[#allocation6 + $0x1358] ss:$12 sps:$4 sm:$0xff]  }
 0x333   :  { %v18746_v8 = vadd.f32 %v18745_v2, %v18744_v21  ;;  %v18747_v60 = vpop.f32.mrb[250].mxu1  ;;  %12170 = vmatprep.subr.bf16.mxu0 %v21805_v3  ;;  %v21832_v2 = vld [vmem:[#allocation6 + $0x1204] ss:$12 sps:$4 sm:$0xff]  }
 0x334   :  { %v18748_v9 = vpop.f32.mrb[251].mxu1  ;;  %19015 = vmatpush3.bf16.msra.mxu1 %v21839_v11  ;;  %v24391_v11 = vld [vmem:[#allocation3 + $0x6dc] ss:$208 sps:$4 sm:$0xff]  }
 0x335   :  { %v24366_v49 = vadd.f32 %v18746_v8, %v24254_v32  ;;  %v18749_v4 = vadd.f32 %v18748_v9, %v18747_v60  ;;  %12120 = vmatmul.mubr.bf16.gmra.mrb[20].mxu0 %v24305_v35  ;;  %19016 = vmatprep.subr.bf16.mxu1 %v21846_v33  ;;  %v21812_v32 = vld [vmem:[#allocation6 + $0x11a0] ss:$12 sps:$4 sm:$0xff]   ;;  %v21877_v8 = vld [vmem:[#allocation6 + $0x1370] ss:$12 sps:$4 sm:$0xff]  }
 0x336   :  { %14953 = vmatmul.mubr.bf16.gmra.mrb[100].mxu1 %v24360_v52  ;;  %12171 = vmatpush1.bf16.msra.mxu0 %v21803_v62  ;;  %v21824_v62 = vld [vmem:[#allocation6 + $0x11e8] ss:$12 sps:$4 sm:$0xff]   ;;  %v21878_v9 = vld [vmem:[#allocation6 + $0x12b0] ss:$12 sps:$4 sm:$0xff]  }
 0x337   :  { %v24371_v51 = vadd.f32 %v18749_v4, %v24259_v14  ;;  %12172 = vmatprep.subr.bf16.mxu0 %v21808_v27  ;;  %12129 = vmatprep.mubr.bf16.mxu0 %v24307_v12  ;;  %v21817_v14 = vld [vmem:[#allocation6 + $0x11bc] ss:$12 sps:$4 sm:$0xff]  }
 0x338   :  { %14960 = vmatprep.mubr.bf16.mxu1 %v24363_v45  ;;  %19017 = vmatpush3.bf16.msra.mxu1 %v21847_v53  ;;  %v21860_v12 = vld [vmem:[#allocation6 + $0x1268] ss:$12 sps:$4 sm:$0xff]  }
 0x339   :  { %v18750_v35 = vpop.f32.mrb[252].mxu1  ;;  %19018 = vmatprep.subr.bf16.mxu1 %v21851_v54  ;;  %v24402_v27 = vld [vmem:[#allocation3 + $0x6d8] ss:$208 sps:$4 sm:$0xff]  }
 0x33a   :  { %v18751_v28 = vpop.f32.mrb[253].mxu1  ;;  %12173 = vmatpush1.bf16.msra.mxu0 %v21806_v7  ;;  %v21921_v7 = vld [vmem:[#allocation6 + $0x1448] ss:$12 sps:$4 sm:$0xff]  }
 0x33b   :  { %v18752_v18 = vadd.f32 %v18751_v28, %v18750_v35  ;;  %v18753_v5 = vpop.f32.mrb[254].mxu1  ;;  %12174 = vmatprep.subr.bf16.mxu0 %v21814_v42  ;;  %v21835_v35 = vld [vmem:[#allocation6 + $0x1218] ss:$12 sps:$4 sm:$0xff]  }
 0x33c   :  { %v18754_v30 = vpop.f32.mrb[255].mxu1  ;;  %19019 = vmatpush3.bf16.msra.mxu1 %v21852_v38 }
 0x33d   :  { %v24380_v44 = vadd.f32 %v18752_v18, %v24268_v47  ;;  %v18755_v22 = vadd.f32 %v18754_v30, %v18753_v5  ;;  %12130 = vmatmul.mubr.bf16.gmra.mrb[24].mxu0 %v24319_v58  ;;  %19020 = vmatprep.subr.bf16.mxu1 %v21859_v36  ;;  %v21821_v47 = vld [vmem:[#allocation6 + $0x11d0] ss:$12 sps:$4 sm:$0xff]   ;;  %v21845_v36 = vld [vmem:[#allocation6 + $0x1234] ss:$12 sps:$4 sm:$0xff]  }
 0x33e   :  { %14961 = vmatmul.mubr.bf16.gmra.mrb[104].mxu1 %v24374_v55  ;;  %12175 = vmatpush1.bf16.msra.mxu0 %v21812_v32  ;;  %v24405_v32 = vld [vmem:[#allocation3 + $0x87c] ss:$208 sps:$4 sm:$0xff]  }
 0x33f   :  { %v24385_v57 = vadd.f32 %v18755_v22, %v24273_v10  ;;  %12176 = vmatprep.subr.bf16.mxu0 %v21817_v14  ;;  %12139 = vmatprep.mubr.bf16.mxu0 %v24321_v24  ;;  %v21826_v10 = vld [vmem:[#allocation6 + $0x11ec] ss:$12 sps:$4 sm:$0xff]   ;;  %v21843_v5 = vld [vmem:[#allocation6 + $0x1230] ss:$12 sps:$4 sm:$0xff]  }
 0x340   :  { %14968 = vmatprep.mubr.bf16.mxu1 %v24377_v39  ;;  %19021 = vmatpush3.bf16.msra.mxu1 %v21860_v12  ;;  %v21873_v24 = vld [vmem:[#allocation6 + $0x1298] ss:$12 sps:$4 sm:$0xff]   ;;  %v24419_v22 = vld [vmem:[#allocation3 + $0xa1c] ss:$208 sps:$4 sm:$0xff]  }
 0x341   :  { %v18772_v58 = vpop.f32.mrb[0].mxu1  ;;  %19022 = vmatprep.subr.bf16.mxu1 %v21864_v56  ;;  %v21858_v56 = vld [vmem:[#allocation6 + $0x1264] ss:$12 sps:$4 sm:$0xff]  }
 0x342   :  { %v18773_v13 = vpop.f32.mrb[1].mxu1  ;;  %12177 = vmatpush1.bf16.msra.mxu0 %v21815_v61  ;;  %v21850_v61 = vld [vmem:[#allocation6 + $0x124c] ss:$12 sps:$4 sm:$0xff]  }
 0x343   :  { %v18774_v23 = vadd.f32 %v18773_v13, %v18772_v58  ;;  %v18775_v3 = vpop.f32.mrb[2].mxu1  ;;  %12178 = vmatprep.subr.bf16.mxu0 %v21823_v37  ;;  %v24431_v58 = vld [vmem:[#allocation3 + $0xa18] ss:$208 sps:$4 sm:$0xff]  }
 0x344   :  { %v18776_v63 = vpop.f32.mrb[3].mxu1  ;;  %19023 = vmatpush3.bf16.msra.mxu1 %v21865_v46 }
 0x345   :  { %v24394_v21 = vadd.f32 %v18774_v23, %v24282_v48  ;;  %v18777_v33 = vadd.f32 %v18776_v63, %v18775_v3  ;;  %12140 = vmatmul.mubr.bf16.gmra.mrb[28].mxu0 %v24333_v6  ;;  %19024 = vmatprep.subr.bf16.mxu1 %v21872_v41  ;;  %v21830_v48 = vld [vmem:[#allocation6 + $0x1200] ss:$12 sps:$4 sm:$0xff]   ;;  %v21863_v23 = vld [vmem:[#allocation6 + $0x127c] ss:$12 sps:$4 sm:$0xff]  }
 0x346   :  { %14969 = vmatmul.mubr.bf16.gmra.mrb[108].mxu1 %v24388_v59  ;;  %12179 = vmatpush1.bf16.msra.mxu0 %v21821_v47 }
 0x347   :  { %v24399_v60 = vadd.f32 %v18777_v33, %v24287_v34  ;;  %12180 = vmatprep.subr.bf16.mxu0 %v21826_v10  ;;  %12182 = vmatprep.mubr.bf16.mxu0 %v24335_v20  ;;  %v21837_v34 = vld [vmem:[#allocation6 + $0x121c] ss:$12 sps:$4 sm:$0xff]  }
 0x348   :  { %14976 = vmatprep.mubr.bf16.mxu1 %v24391_v11  ;;  %19025 = vmatpush3.bf16.msra.mxu1 %v21873_v24  ;;  %v24433_v10 = vld [vmem:[#allocation3 + $0xbbc] ss:$208 sps:$4 sm:$0xff]  }
 0x349   :  { %v18778_v6 = vpop.f32.mrb[4].mxu1  ;;  %19026 = vmatprep.subr.bf16.mxu1 %v21877_v8 }
 0x34a   :  { %v18779_v53 = vpop.f32.mrb[5].mxu1  ;;  %12181 = vmatpush1.bf16.msra.mxu0 %v21824_v62  ;;  %v21871_v62 = vld [vmem:[#allocation6 + $0x1294] ss:$12 sps:$4 sm:$0xff]  }
 0x34b   :  { %v18780_v4 = vadd.f32 %v18779_v53, %v18778_v6  ;;  %v18781_v42 = vpop.f32.mrb[6].mxu1  ;;  %12263 = vmatprep.subr.bf16.mxu0 %v21832_v2  ;;  %v24445_v2 = vld [vmem:[#allocation3 + $0xbb8] ss:$208 sps:$4 sm:$0xff]  }
 0x34c   :  { %v18782_v54 = vpop.f32.mrb[7].mxu1  ;;  %19027 = vmatpush3.bf16.msra.mxu1 %v21878_v9  ;;  %v21876_v9 = vld [vmem:[#allocation6 + $0x12ac] ss:$12 sps:$4 sm:$0xff]  }
 0x34d   :  { %v24408_v20 = vadd.f32 %v18780_v4, %v24296_v29  ;;  %v18783_v38 = vadd.f32 %v18782_v54, %v18781_v42  ;;  %12183 = vmatmul.mubr.bf16.vlgmr.msra.gmra.mrb[0].mxu0 %v24347_v25  ;;  %19076 = vmatprep.subr.bf16.mxu1 %v21921_v7  ;;  %v24417_v29 = vld [vmem:[#allocation3 + $0x878] ss:$208 sps:$4 sm:$0xff]   ;;  %v24447_v7 = vld [vmem:[#allocation3 + $0x64] ss:$208 sps:$4 sm:$0xff]   ;;  %v24459_v54 = vld [vmem:[#allocation3 + $0x60] ss:$208 sps:$4 sm:$0xff]  }
 0x34e   :  { %14977 = vmatmul.mubr.bf16.gmra.mrb[112].mxu1 %v24402_v27  ;;  %12264 = vmatpush1.bf16.msra.mxu0 %v21830_v48  ;;  %v21884_v4 = vld [vmem:[#allocation6 + $0x12c4] ss:$12 sps:$4 sm:$0xff]  }
 0x34f   :  { %v24413_v28 = vadd.f32 %v18783_v38, %v24301_v43  ;;  %12265 = vmatprep.subr.bf16.mxu0 %v21837_v34  ;;  %12192 = vmatprep.mubr.bf16.mxu0 %v24349_v15  ;;  %v21848_v15 = vld [vmem:[#allocation6 + $0x1248] ss:$12 sps:$4 sm:$0xff]  }
 0x350   :  { %14984 = vmatprep.mubr.bf16.mxu1 %v24405_v32 }
 0x351   :  { %v18784_v18 = vpop.f32.mrb[8].mxu1 }
 0x352   :  { %v18785_v14 = vpop.f32.mrb[9].mxu1  ;;  %12266 = vmatpush1.bf16.msra.mxu0 %v21835_v35 }
 0x353   :  { %v18786_v25 = vadd.f32 %v18785_v14, %v18784_v18  ;;  %v18787_v30 = vpop.f32.mrb[10].mxu1  ;;  %12267 = vmatprep.subr.bf16.mxu0 %v21845_v36  ;;  %v21887_v36 = vld [vmem:[#allocation6 + $0x12dc] ss:$12 sps:$4 sm:$0xff]   ;;  %v24461_v14 = vld [vmem:[#allocation3 + $0x204] ss:$208 sps:$4 sm:$0xff]  }
 0x354   :  { %v18788_v12 = vpop.f32.mrb[11].mxu1 }
 0x355   :  { %v24422_v43 = vadd.f32 %v18786_v25, %v24310_v1  ;;  %v18789_v37 = vadd.f32 %v18788_v12, %v18787_v30  ;;  %12193 = vmatmul.mubr.bf16.gmra.mrb[4].mxu0 %v24360_v52  ;;  %v21856_v1 = vld [vmem:[#allocation6 + $0x1260] ss:$12 sps:$4 sm:$0xff]  }
 0x356   :  { %14985 = vmatmul.mubr.bf16.gmra.mrb[116].mxu1 %v24417_v29  ;;  %12268 = vmatpush1.bf16.msra.mxu0 %v21843_v5  ;;  %v21885_v5 = vld [vmem:[#allocation6 + $0x12d8] ss:$12 sps:$4 sm:$0xff]   ;;  %v21893_v30 = vld [vmem:[#allocation6 + $0x12f4] ss:$12 sps:$4 sm:$0xff]  }
 0x357   :  { %v24427_v47 = vadd.f32 %v18789_v37, %v24315_v50  ;;  %12269 = vmatprep.subr.bf16.mxu0 %v21850_v61  ;;  %12202 = vmatprep.mubr.bf16.mxu0 %v24363_v45  ;;  %v21861_v45 = vld [vmem:[#allocation6 + $0x1278] ss:$12 sps:$4 sm:$0xff]   ;;  %v21926_v61 = vld [vmem:[#allocation6 + $0x1460] ss:$12 sps:$4 sm:$0xff]  }
 0x358   :  { %14992 = vmatprep.mubr.bf16.mxu1 %v24419_v22  ;;  %v24472_v37 = vld [vmem:[#allocation3 + $0x200] ss:$208 sps:$4 sm:$0xff]  }
 0x359   :  { %v18790_v46 = vpop.f32.mrb[12].mxu1 }
 0x35a   :  { %v18791_v41 = vpop.f32.mrb[13].mxu1  ;;  %12270 = vmatpush1.bf16.msra.mxu0 %v21848_v15  ;;  %v21927_v15 = vld [vmem:[#allocation6 + $0x13a0] ss:$12 sps:$4 sm:$0xff]  }
 0x35b   :  { %v18792_v52 = vadd.f32 %v18791_v41, %v18790_v46  ;;  %v18793_v13 = vpop.f32.mrb[14].mxu1  ;;  %12271 = vmatprep.subr.bf16.mxu0 %v21858_v56 }
 0x35c   :  { %v18794_v3 = vpop.f32.mrb[15].mxu1 }
 0x35d   :  { %v24436_v50 = vadd.f32 %v18792_v52, %v24324_v16  ;;  %v18795_v63 = vadd.f32 %v18794_v3, %v18793_v13  ;;  %12203 = vmatmul.mubr.bf16.gmra.mrb[8].mxu0 %v24374_v55  ;;  %v21869_v16 = vld [vmem:[#allocation6 + $0x1290] ss:$12 sps:$4 sm:$0xff]   ;;  %v21894_v13 = vld [vmem:[#allocation6 + $0x1308] ss:$12 sps:$4 sm:$0xff]  }
 0x35e   :  { %14993 = vmatmul.mubr.bf16.gmra.mrb[120].mxu1 %v24431_v58  ;;  %12272 = vmatpush1.bf16.msra.mxu0 %v21856_v1 }
 0x35f   :  { %v24441_v24 = vadd.f32 %v18795_v63, %v24329_v40  ;;  %12273 = vmatprep.subr.bf16.mxu0 %v21863_v23  ;;  %12212 = vmatprep.mubr.bf16.mxu0 %v24377_v39  ;;  %v21874_v39 = vld [vmem:[#allocation6 + $0x12a8] ss:$12 sps:$4 sm:$0xff]  }
 0x360   :  { %15000 = vmatprep.mubr.bf16.mxu1 %v24433_v10  ;;  %v24475_v23 = vld [vmem:[#allocation3 + $0x3a4] ss:$208 sps:$4 sm:$0xff]  }
 0x361   :  { %v18796_v33 = vpop.f32.mrb[16].mxu1 }
 0x362   :  { %v18797_v8 = vpop.f32.mrb[17].mxu1  ;;  %12274 = vmatpush1.bf16.msra.mxu0 %v21861_v45  ;;  %v21902_v45 = vld [vmem:[#allocation6 + $0x1324] ss:$12 sps:$4 sm:$0xff]  }
 0x363   :  { %v18798_v55 = vadd.f32 %v18797_v8, %v18796_v33  ;;  %v18799_v48 = vpop.f32.mrb[18].mxu1  ;;  %12275 = vmatprep.subr.bf16.mxu0 %v21871_v62  ;;  %v21939_v62 = vld [vmem:[#allocation6 + $0x1490] ss:$12 sps:$4 sm:$0xff]  }
 0x364   :  { %v18800_v6 = vpop.f32.mrb[19].mxu1  ;;  %v21940_v8 = vld [vmem:[#allocation6 + $0x13d0] ss:$12 sps:$4 sm:$0xff]  }
 0x365   :  { %v24450_v40 = vadd.f32 %v18798_v55, %v24338_v0  ;;  %v18801_v53 = vadd.f32 %v18800_v6, %v18799_v48  ;;  %12213 = vmatmul.mubr.bf16.gmra.mrb[12].mxu0 %v24388_v59  ;;  %v21882_v0 = vld [vmem:[#allocation6 + $0x12c0] ss:$12 sps:$4 sm:$0xff]   ;;  %v21947_v55 = vld [vmem:[#allocation6 + $0x14a8] ss:$12 sps:$4 sm:$0xff]  }
 0x366   :  { %15001 = vmatmul.mubr.bf16.gmra.mrb[124].mxu1 %v24445_v2  ;;  %12276 = vmatpush1.bf16.msra.mxu0 %v21869_v16  ;;  %v24486_v16 = vld [vmem:[#allocation3 + $0x3a0] ss:$208 sps:$4 sm:$0xff]  }
 0x367   :  { %v24455_v42 = vadd.f32 %v18801_v53, %v24343_v26  ;;  %12277 = vmatprep.subr.bf16.mxu0 %v21876_v9  ;;  %12222 = vmatprep.mubr.bf16.mxu0 %v24391_v11  ;;  %v21922_v26 = vld [vmem:[#allocation6 + $0x1388] ss:$12 sps:$4 sm:$0xff]  }
 0x368   :  { %15041 = vmatprep.mubr.bf16.mxu1 %v24447_v7 }
 0x369   :  { %v18802_v34 = vpop.f32.mrb[20].mxu1 }
 0x36a   :  { %v18803_v38 = vpop.f32.mrb[21].mxu1  ;;  %12278 = vmatpush1.bf16.msra.mxu0 %v21874_v39  ;;  %v21903_v39 = vld [vmem:[#allocation6 + $0x1338] ss:$12 sps:$4 sm:$0xff]  }
 0x36b   :  { %v18804_v59 = vadd.f32 %v18803_v38, %v18802_v34  ;;  %v18805_v35 = vpop.f32.mrb[22].mxu1  ;;  %12279 = vmatprep.subr.bf16.mxu0 %v21884_v4  ;;  %v24489_v4 = vld [vmem:[#allocation3 + $0x544] ss:$208 sps:$4 sm:$0xff]  }
 0x36c   :  { %v18806_v18 = vpop.f32.mrb[23].mxu1  ;;  %v21911_v38 = vld [vmem:[#allocation6 + $0x1354] ss:$12 sps:$4 sm:$0xff]  }
 0x36d   :  { %v24464_v25 = vadd.f32 %v18804_v59, %v24352_v31  ;;  %v18807_v11 = vadd.f32 %v18806_v18, %v18805_v35  ;;  %12223 = vmatmul.mubr.bf16.gmra.mrb[16].mxu0 %v24402_v27  ;;  %v21891_v31 = vld [vmem:[#allocation6 + $0x12f0] ss:$12 sps:$4 sm:$0xff]   ;;  %v21934_v27 = vld [vmem:[#allocation6 + $0x1478] ss:$12 sps:$4 sm:$0xff]   ;;  %v21952_v59 = vld [vmem:[#allocation6 + $0x14c0] ss:$12 sps:$4 sm:$0xff]  }
 0x36e   :  { %15042 = vmatmul.mubr.bf16.vlgmr.msra.gmra.mrb[128].mxu1 %v24459_v54  ;;  %12280 = vmatpush1.bf16.msra.mxu0 %v21882_v0  ;;  %v21953_v18 = vld [vmem:[#allocation6 + $0x1400] ss:$12 sps:$4 sm:$0xff]  }
 0x36f   :  { %v24469_v12 = vadd.f32 %v18807_v11, %v24357_v19  ;;  %12281 = vmatprep.subr.bf16.mxu0 %v21887_v36  ;;  %12232 = vmatprep.mubr.bf16.mxu0 %v24405_v32  ;;  %v21896_v19 = vld [vmem:[#allocation6 + $0x130c] ss:$12 sps:$4 sm:$0xff]   ;;  %v24500_v36 = vld [vmem:[#allocation3 + $0x540] ss:$208 sps:$4 sm:$0xff]  }
 0x370   :  { %15049 = vmatprep.mubr.bf16.mxu1 %v24461_v14  ;;  %19077 = vmatpush3.bf16.msra.mxu1 %v21922_v26  ;;  %v21935_v32 = vld [vmem:[#allocation6 + $0x13b8] ss:$12 sps:$4 sm:$0xff]  }
 0x371   :  { %v18808_v56 = vpop.f32.mrb[24].mxu1  ;;  %19078 = vmatprep.subr.bf16.mxu1 %v21926_v61 }
 0x372   :  { %v18809_v46 = vpop.f32.mrb[25].mxu1  ;;  %12282 = vmatpush1.bf16.msra.mxu0 %v21885_v5  ;;  %v21960_v5 = vld [vmem:[#allocation6 + $0x14d8] ss:$12 sps:$4 sm:$0xff]  }
 0x373   :  { %v18810_v1 = vadd.f32 %v18809_v46, %v18808_v56  ;;  %v18811_v41 = vpop.f32.mrb[26].mxu1  ;;  %12283 = vmatprep.subr.bf16.mxu0 %v21893_v30  ;;  %v21920_v46 = vld [vmem:[#allocation6 + $0x1384] ss:$12 sps:$4 sm:$0xff]  }
 0x374   :  { %v18812_v52 = vpop.f32.mrb[27].mxu1  ;;  %19079 = vmatpush3.bf16.msra.mxu1 %v21927_v15  ;;  %v24503_v15 = vld [vmem:[#allocation3 + $0x6e4] ss:$208 sps:$4 sm:$0xff]  }
 0x375   :  { %v24478_v3 = vadd.f32 %v18810_v1, %v24366_v49  ;;  %v18813_v63 = vadd.f32 %v18812_v52, %v18811_v41  ;;  %12233 = vmatmul.mubr.bf16.gmra.mrb[20].mxu0 %v24417_v29  ;;  %19080 = vmatprep.subr.bf16.mxu1 %v21934_v27  ;;  %v21900_v49 = vld [vmem:[#allocation6 + $0x1320] ss:$12 sps:$4 sm:$0xff]   ;;  %v21965_v1 = vld [vmem:[#allocation6 + $0x14f0] ss:$12 sps:$4 sm:$0xff]  }
 0x376   :  { %15050 = vmatmul.mubr.bf16.gmra.mrb[132].mxu1 %v24472_v37  ;;  %12284 = vmatpush1.bf16.msra.mxu0 %v21891_v31  ;;  %v21912_v31 = vld [vmem:[#allocation6 + $0x1368] ss:$12 sps:$4 sm:$0xff]   ;;  %v21966_v52 = vld [vmem:[#allocation6 + $0x1430] ss:$12 sps:$4 sm:$0xff]  }
 0x377   :  { %v24483_v33 = vadd.f32 %v18813_v63, %v24371_v51  ;;  %12285 = vmatprep.subr.bf16.mxu0 %v21896_v19  ;;  %12242 = vmatprep.mubr.bf16.mxu0 %v24419_v22  ;;  %v21905_v51 = vld [vmem:[#allocation6 + $0x133c] ss:$12 sps:$4 sm:$0xff]   ;;  %v24514_v19 = vld [vmem:[#allocation3 + $0x6e0] ss:$208 sps:$4 sm:$0xff]  }
 0x378   :  { %15057 = vmatprep.mubr.bf16.mxu1 %v24475_v23  ;;  %19081 = vmatpush3.bf16.msra.mxu1 %v21935_v32  ;;  %v21948_v22 = vld [vmem:[#allocation6 + $0x13e8] ss:$12 sps:$4 sm:$0xff]  }
 0x379   :  { %v18814_v29 = vpop.f32.mrb[28].mxu1  ;;  %19082 = vmatprep.subr.bf16.mxu1 %v21939_v62 }
 0x37a   :  { %v18815_v48 = vpop.f32.mrb[29].mxu1  ;;  %12286 = vmatpush1.bf16.msra.mxu0 %v21894_v13  ;;  %v22009_v13 = vld [vmem:[#allocation6 + $0x15c8] ss:$12 sps:$4 sm:$0xff]  }
 0x37b   :  { %v18816_v9 = vadd.f32 %v18815_v48, %v18814_v29  ;;  %v18817_v6 = vpop.f32.mrb[30].mxu1  ;;  %12287 = vmatprep.subr.bf16.mxu0 %v21902_v45  ;;  %v21923_v29 = vld [vmem:[#allocation6 + $0x1398] ss:$12 sps:$4 sm:$0xff]  }
 0x37c   :  { %v18818_v53 = vpop.f32.mrb[31].mxu1  ;;  %19083 = vmatpush3.bf16.msra.mxu1 %v21940_v8 }
 0x37d   :  { %v24492_v34 = vadd.f32 %v18816_v9, %v24380_v44  ;;  %v18819_v0 = vadd.f32 %v18818_v53, %v18817_v6  ;;  %12243 = vmatmul.mubr.bf16.gmra.mrb[24].mxu0 %v24431_v58  ;;  %19084 = vmatprep.subr.bf16.mxu1 %v21947_v55  ;;  %v21909_v44 = vld [vmem:[#allocation6 + $0x1350] ss:$12 sps:$4 sm:$0xff]   ;;  %v21933_v55 = vld [vmem:[#allocation6 + $0x13b4] ss:$12 sps:$4 sm:$0xff]  }
 0x37e   :  { %15058 = vmatmul.mubr.bf16.gmra.mrb[136].mxu1 %v24486_v16  ;;  %12288 = vmatpush1.bf16.msra.mxu0 %v21900_v49  ;;  %v24517_v49 = vld [vmem:[#allocation3 + $0x884] ss:$208 sps:$4 sm:$0xff]   ;;  %v21931_v6 = vld [vmem:[#allocation6 + $0x13b0] ss:$12 sps:$4 sm:$0xff]  }
 0x37f   :  { %v24497_v35 = vadd.f32 %v18819_v0, %v24385_v57  ;;  %12289 = vmatprep.subr.bf16.mxu0 %v21905_v51  ;;  %12252 = vmatprep.mubr.bf16.mxu0 %v24433_v10  ;;  %v21914_v57 = vld [vmem:[#allocation6 + $0x136c] ss:$12 sps:$4 sm:$0xff]   ;;  %v24531_v0 = vld [vmem:[#allocation3 + $0xa24] ss:$208 sps:$4 sm:$0xff]  }
 0x380   :  { %15065 = vmatprep.mubr.bf16.mxu1 %v24489_v4  ;;  %19085 = vmatpush3.bf16.msra.mxu1 %v21948_v22  ;;  %v21961_v10 = vld [vmem:[#allocation6 + $0x1418] ss:$12 sps:$4 sm:$0xff]  }
 0x381   :  { %v18836_v58 = vpop.f32.mrb[32].mxu1  ;;  %19086 = vmatprep.subr.bf16.mxu1 %v21952_v59  ;;  %v21946_v59 = vld [vmem:[#allocation6 + $0x13e4] ss:$12 sps:$4 sm:$0xff]  }
 0x382   :  { %v18837_v26 = vpop.f32.mrb[33].mxu1  ;;  %12290 = vmatpush1.bf16.msra.mxu0 %v21903_v39  ;;  %v21938_v39 = vld [vmem:[#allocation6 + $0x13cc] ss:$12 sps:$4 sm:$0xff]  }
 0x383   :  { %v18838_v11 = vadd.f32 %v18837_v26, %v18836_v58  ;;  %v18839_v30 = vpop.f32.mrb[34].mxu1  ;;  %12291 = vmatprep.subr.bf16.mxu0 %v21911_v38  ;;  %v24543_v58 = vld [vmem:[#allocation3 + $0xa20] ss:$208 sps:$4 sm:$0xff]  }
 0x384   :  { %v18840_v61 = vpop.f32.mrb[35].mxu1  ;;  %19087 = vmatpush3.bf16.msra.mxu1 %v21953_v18 }
 0x385   :  { %v24506_v56 = vadd.f32 %v18838_v11, %v24394_v21  ;;  %v18841_v27 = vadd.f32 %v18840_v61, %v18839_v30  ;;  %12253 = vmatmul.mubr.bf16.gmra.mrb[28].mxu0 %v24445_v2  ;;  %19088 = vmatprep.subr.bf16.mxu1 %v21960_v5  ;;  %v21918_v21 = vld [vmem:[#allocation6 + $0x1380] ss:$12 sps:$4 sm:$0xff]   ;;  %v21951_v11 = vld [vmem:[#allocation6 + $0x13fc] ss:$12 sps:$4 sm:$0xff]  }
 0x386   :  { %15066 = vmatmul.mubr.bf16.gmra.mrb[140].mxu1 %v24500_v36  ;;  %12292 = vmatpush1.bf16.msra.mxu0 %v21909_v44 }
 0x387   :  { %v24511_v41 = vadd.f32 %v18841_v27, %v24399_v60  ;;  %12293 = vmatprep.subr.bf16.mxu0 %v21914_v57  ;;  %12295 = vmatprep.mubr.bf16.mxu0 %v24447_v7  ;;  %v21925_v60 = vld [vmem:[#allocation6 + $0x139c] ss:$12 sps:$4 sm:$0xff]   ;;  %v24545_v57 = vld [vmem:[#allocation3 + $0xbc4] ss:$208 sps:$4 sm:$0xff]  }
 0x388   :  { %15073 = vmatprep.mubr.bf16.mxu1 %v24503_v15  ;;  %19089 = vmatpush3.bf16.msra.mxu1 %v21961_v10 }
 0x389   :  { %v18842_v2 = vpop.f32.mrb[36].mxu1  ;;  %19090 = vmatprep.subr.bf16.mxu1 %v21965_v1 }
 0x38a   :  { %v18843_v32 = vpop.f32.mrb[37].mxu1  ;;  %12294 = vmatpush1.bf16.msra.mxu0 %v21912_v31  ;;  %v21959_v31 = vld [vmem:[#allocation6 + $0x1414] ss:$12 sps:$4 sm:$0xff]  }
 0x38b   :  { %v18844_v63 = vadd.f32 %v18843_v32, %v18842_v2  ;;  %v18845_v45 = vpop.f32.mrb[38].mxu1  ;;  %12376 = vmatprep.subr.bf16.mxu0 %v21920_v46  ;;  %v24557_v46 = vld [vmem:[#allocation3 + $0xbc0] ss:$208 sps:$4 sm:$0xff]  }
 0x38c   :  { %v18846_v62 = vpop.f32.mrb[39].mxu1  ;;  %19091 = vmatpush3.bf16.msra.mxu1 %v21966_v52  ;;  %v21964_v52 = vld [vmem:[#allocation6 + $0x142c] ss:$12 sps:$4 sm:$0xff]  }
 0x38d   :  { %v24520_v7 = vadd.f32 %v18844_v63, %v24408_v20  ;;  %v18847_v8 = vadd.f32 %v18846_v62, %v18845_v45  ;;  %12296 = vmatmul.mubr.bf16.vlgmr.msra.gmra.mrb[0].mxu0 %v24459_v54  ;;  %19140 = vmatprep.subr.bf16.mxu1 %v22009_v13  ;;  %v24529_v20 = vld [vmem:[#allocation3 + $0x880] ss:$208 sps:$4 sm:$0xff]   ;;  %v24559_v13 = vld [vmem:[#allocation3 + $0x6c] ss:$208 sps:$4 sm:$0xff]   ;;  %v24571_v62 = vld [vmem:[#allocation3 + $0x68] ss:$208 sps:$4 sm:$0xff]  }
 0x38e   :  { %15074 = vmatmul.mubr.bf16.gmra.mrb[144].mxu1 %v24514_v19  ;;  %12377 = vmatpush1.bf16.msra.mxu0 %v21918_v21  ;;  %v21972_v63 = vld [vmem:[#allocation6 + $0x1444] ss:$12 sps:$4 sm:$0xff]  }
 0x38f   :  { %v24525_v48 = vadd.f32 %v18847_v8, %v24413_v28  ;;  %12378 = vmatprep.subr.bf16.mxu0 %v21925_v60  ;;  %12305 = vmatprep.mubr.bf16.mxu0 %v24461_v14  ;;  %v21936_v14 = vld [vmem:[#allocation6 + $0x13c8] ss:$12 sps:$4 sm:$0xff]  }
 0x390   :  { %15081 = vmatprep.mubr.bf16.mxu1 %v24517_v49 }
 0x391   :  { %v18848_v9 = vpop.f32.mrb[40].mxu1 }
 0x392   :  { %v18849_v51 = vpop.f32.mrb[41].mxu1  ;;  %12379 = vmatpush1.bf16.msra.mxu0 %v21923_v29 }
 0x393   :  { %v18850_v54 = vadd.f32 %v18849_v51, %v18848_v9  ;;  %v18851_v53 = vpop.f32.mrb[42].mxu1  ;;  %12380 = vmatprep.subr.bf16.mxu0 %v21933_v55  ;;  %v21975_v55 = vld [vmem:[#allocation6 + $0x145c] ss:$12 sps:$4 sm:$0xff]  }
 0x394   :  { %v18852_v22 = vpop.f32.mrb[43].mxu1  ;;  %v24573_v51 = vld [vmem:[#allocation3 + $0x20c] ss:$208 sps:$4 sm:$0xff]  }
 0x395   :  { %v24534_v28 = vadd.f32 %v18850_v54, %v24422_v43  ;;  %v18853_v38 = vadd.f32 %v18852_v22, %v18851_v53  ;;  %12306 = vmatmul.mubr.bf16.gmra.mrb[4].mxu0 %v24472_v37  ;;  %v21944_v43 = vld [vmem:[#allocation6 + $0x13e0] ss:$12 sps:$4 sm:$0xff]  }
 0x396   :  { %15082 = vmatmul.mubr.bf16.gmra.mrb[148].mxu1 %v24529_v20  ;;  %12381 = vmatpush1.bf16.msra.mxu0 %v21931_v6  ;;  %v21973_v6 = vld [vmem:[#allocation6 + $0x1458] ss:$12 sps:$4 sm:$0xff]   ;;  %v21981_v53 = vld [vmem:[#allocation6 + $0x1474] ss:$12 sps:$4 sm:$0xff]  }
 0x397   :  { %v24539_v44 = vadd.f32 %v18853_v38, %v24427_v47  ;;  %12382 = vmatprep.subr.bf16.mxu0 %v21938_v39  ;;  %12315 = vmatprep.mubr.bf16.mxu0 %v24475_v23  ;;  %v21949_v23 = vld [vmem:[#allocation6 + $0x13f8] ss:$12 sps:$4 sm:$0xff]   ;;  %v22014_v39 = vld [vmem:[#allocation6 + $0x15e0] ss:$12 sps:$4 sm:$0xff]  }
 0x398   :  { %15089 = vmatprep.mubr.bf16.mxu1 %v24531_v0  ;;  %v24584_v38 = vld [vmem:[#allocation3 + $0x208] ss:$208 sps:$4 sm:$0xff]  }
 0x399   :  { %v18854_v18 = vpop.f32.mrb[44].mxu1 }
 0x39a   :  { %v18855_v5 = vpop.f32.mrb[45].mxu1  ;;  %12383 = vmatpush1.bf16.msra.mxu0 %v21936_v14  ;;  %v22015_v14 = vld [vmem:[#allocation6 + $0x1520] ss:$12 sps:$4 sm:$0xff]  }
 0x39b   :  { %v18856_v37 = vadd.f32 %v18855_v5, %v18854_v18  ;;  %v18857_v26 = vpop.f32.mrb[46].mxu1  ;;  %12384 = vmatprep.subr.bf16.mxu0 %v21946_v59 }
 0x39c   :  { %v18858_v30 = vpop.f32.mrb[47].mxu1 }
 0x39d   :  { %v24548_v47 = vadd.f32 %v18856_v37, %v24436_v50  ;;  %v18859_v61 = vadd.f32 %v18858_v30, %v18857_v26  ;;  %12316 = vmatmul.mubr.bf16.gmra.mrb[8].mxu0 %v24486_v16  ;;  %v21957_v50 = vld [vmem:[#allocation6 + $0x1410] ss:$12 sps:$4 sm:$0xff]   ;;  %v21982_v26 = vld [vmem:[#allocation6 + $0x1488] ss:$12 sps:$4 sm:$0xff]  }
 0x39e   :  { %15090 = vmatmul.mubr.bf16.gmra.mrb[152].mxu1 %v24543_v58  ;;  %12385 = vmatpush1.bf16.msra.mxu0 %v21944_v43 }
 0x39f   :  { %v24553_v10 = vadd.f32 %v18859_v61, %v24441_v24  ;;  %12386 = vmatprep.subr.bf16.mxu0 %v21951_v11  ;;  %12325 = vmatprep.mubr.bf16.mxu0 %v24489_v4  ;;  %v21962_v4 = vld [vmem:[#allocation6 + $0x1428] ss:$12 sps:$4 sm:$0xff]   ;;  %v24587_v11 = vld [vmem:[#allocation3 + $0x3ac] ss:$208 sps:$4 sm:$0xff]  }
 0x3a0   :  { %15097 = vmatprep.mubr.bf16.mxu1 %v24545_v57 }
 0x3a1   :  { %v18860_v27 = vpop.f32.mrb[48].mxu1 }
 0x3a2   :  { %v18861_v1 = vpop.f32.mrb[49].mxu1  ;;  %12387 = vmatpush1.bf16.msra.mxu0 %v21949_v23  ;;  %v21990_v23 = vld [vmem:[#allocation6 + $0x14a4] ss:$12 sps:$4 sm:$0xff]  }
 0x3a3   :  { %v18862_v16 = vadd.f32 %v18861_v1, %v18860_v27  ;;  %v18863_v21 = vpop.f32.mrb[50].mxu1  ;;  %12388 = vmatprep.subr.bf16.mxu0 %v21959_v31  ;;  %v22027_v31 = vld [vmem:[#allocation6 + $0x1610] ss:$12 sps:$4 sm:$0xff]  }
 0x3a4   :  { %v18864_v2 = vpop.f32.mrb[51].mxu1  ;;  %v22028_v1 = vld [vmem:[#allocation6 + $0x1550] ss:$12 sps:$4 sm:$0xff]  }
 0x3a5   :  { %v24562_v24 = vadd.f32 %v18862_v16, %v24450_v40  ;;  %v18865_v32 = vadd.f32 %v18864_v2, %v18863_v21  ;;  %12326 = vmatmul.mubr.bf16.gmra.mrb[12].mxu0 %v24500_v36  ;;  %v21970_v40 = vld [vmem:[#allocation6 + $0x1440] ss:$12 sps:$4 sm:$0xff]   ;;  %v22035_v16 = vld [vmem:[#allocation6 + $0x1628] ss:$12 sps:$4 sm:$0xff]  }
 0x3a6   :  { %15098 = vmatmul.mubr.bf16.gmra.mrb[156].mxu1 %v24557_v46  ;;  %12389 = vmatpush1.bf16.msra.mxu0 %v21957_v50  ;;  %v24598_v50 = vld [vmem:[#allocation3 + $0x3a8] ss:$208 sps:$4 sm:$0xff]  }
 0x3a7   :  { %v24567_v45 = vadd.f32 %v18865_v32, %v24455_v42  ;;  %12390 = vmatprep.subr.bf16.mxu0 %v21964_v52  ;;  %12335 = vmatprep.mubr.bf16.mxu0 %v24503_v15  ;;  %v22010_v42 = vld [vmem:[#allocation6 + $0x1508] ss:$12 sps:$4 sm:$0xff]  }
 0x3a8   :  { %15138 = vmatprep.mubr.bf16.mxu1 %v24559_v13 }
 0x3a9   :  { %v18866_v60 = vpop.f32.mrb[52].mxu1 }
 0x3aa   :  { %v18867_v8 = vpop.f32.mrb[53].mxu1  ;;  %12391 = vmatpush1.bf16.msra.mxu0 %v21962_v4  ;;  %v21991_v4 = vld [vmem:[#allocation6 + $0x14b8] ss:$12 sps:$4 sm:$0xff]  }
 0x3ab   :  { %v18868_v36 = vadd.f32 %v18867_v8, %v18866_v60  ;;  %v18869_v29 = vpop.f32.mrb[54].mxu1  ;;  %12392 = vmatprep.subr.bf16.mxu0 %v21972_v63  ;;  %v24601_v63 = vld [vmem:[#allocation3 + $0x54c] ss:$208 sps:$4 sm:$0xff]   ;;  %v21999_v8 = vld [vmem:[#allocation6 + $0x14d4] ss:$12 sps:$4 sm:$0xff]  }
 0x3ac   :  { %v18870_v9 = vpop.f32.mrb[55].mxu1 }
 0x3ad   :  { %v24576_v54 = vadd.f32 %v18868_v36, %v24464_v25  ;;  %v18871_v15 = vadd.f32 %v18870_v9, %v18869_v29  ;;  %12336 = vmatmul.mubr.bf16.gmra.mrb[16].mxu0 %v24514_v19  ;;  %v21979_v25 = vld [vmem:[#allocation6 + $0x1470] ss:$12 sps:$4 sm:$0xff]   ;;  %v22022_v19 = vld [vmem:[#allocation6 + $0x15f8] ss:$12 sps:$4 sm:$0xff]   ;;  %v22040_v36 = vld [vmem:[#allocation6 + $0x1640] ss:$12 sps:$4 sm:$0xff]  }
 0x3ae   :  { %15139 = vmatmul.mubr.bf16.vlgmr.msra.gmra.mrb[160].mxu1 %v24571_v62  ;;  %12393 = vmatpush1.bf16.msra.mxu0 %v21970_v40  ;;  %v22041_v9 = vld [vmem:[#allocation6 + $0x1580] ss:$12 sps:$4 sm:$0xff]  }
 0x3af   :  { %v24581_v22 = vadd.f32 %v18871_v15, %v24469_v12  ;;  %12394 = vmatprep.subr.bf16.mxu0 %v21975_v55  ;;  %12345 = vmatprep.mubr.bf16.mxu0 %v24517_v49  ;;  %v21984_v12 = vld [vmem:[#allocation6 + $0x148c] ss:$12 sps:$4 sm:$0xff]  }
 0x3b0   :  { %15146 = vmatprep.mubr.bf16.mxu1 %v24573_v51  ;;  %19141 = vmatpush3.bf16.msra.mxu1 %v22010_v42  ;;  %v22023_v49 = vld [vmem:[#allocation6 + $0x1538] ss:$12 sps:$4 sm:$0xff]  }
 0x3b1   :  { %v18872_v59 = vpop.f32.mrb[56].mxu1  ;;  %19142 = vmatprep.subr.bf16.mxu1 %v22014_v39  ;;  %v24612_v55 = vld [vmem:[#allocation3 + $0x548] ss:$208 sps:$4 sm:$0xff]  }
 0x3b2   :  { %v18873_v18 = vpop.f32.mrb[57].mxu1  ;;  %12395 = vmatpush1.bf16.msra.mxu0 %v21973_v6  ;;  %v22048_v6 = vld [vmem:[#allocation6 + $0x1658] ss:$12 sps:$4 sm:$0xff]  }
 0x3b3   :  { %v18874_v43 = vadd.f32 %v18873_v18, %v18872_v59  ;;  %v18875_v5 = vpop.f32.mrb[58].mxu1  ;;  %12396 = vmatprep.subr.bf16.mxu0 %v21981_v53  ;;  %v22008_v18 = vld [vmem:[#allocation6 + $0x1504] ss:$12 sps:$4 sm:$0xff]  }
 0x3b4   :  { %v18876_v37 = vpop.f32.mrb[59].mxu1  ;;  %19143 = vmatpush3.bf16.msra.mxu1 %v22015_v14  ;;  %v24615_v14 = vld [vmem:[#allocation3 + $0x6ec] ss:$208 sps:$4 sm:$0xff]  }
 0x3b5   :  { %v24590_v30 = vadd.f32 %v18874_v43, %v24478_v3  ;;  %v18877_v61 = vadd.f32 %v18876_v37, %v18875_v5  ;;  %12346 = vmatmul.mubr.bf16.gmra.mrb[20].mxu0 %v24529_v20  ;;  %19144 = vmatprep.subr.bf16.mxu1 %v22022_v19  ;;  %v21988_v3 = vld [vmem:[#allocation6 + $0x14a0] ss:$12 sps:$4 sm:$0xff]   ;;  %v22053_v43 = vld [vmem:[#allocation6 + $0x1670] ss:$12 sps:$4 sm:$0xff]  }
 0x3b6   :  { %15147 = vmatmul.mubr.bf16.gmra.mrb[164].mxu1 %v24584_v38  ;;  %12397 = vmatpush1.bf16.msra.mxu0 %v21979_v25  ;;  %v22000_v25 = vld [vmem:[#allocation6 + $0x14e8] ss:$12 sps:$4 sm:$0xff]   ;;  %v22054_v37 = vld [vmem:[#allocation6 + $0x15b0] ss:$12 sps:$4 sm:$0xff]  }
 0x3b7   :  { %v24595_v27 = vadd.f32 %v18877_v61, %v24483_v33  ;;  %12398 = vmatprep.subr.bf16.mxu0 %v21984_v12  ;;  %12355 = vmatprep.mubr.bf16.mxu0 %v24531_v0  ;;  %v21993_v33 = vld [vmem:[#allocation6 + $0x14bc] ss:$12 sps:$4 sm:$0xff]  }
 0x3b8   :  { %15154 = vmatprep.mubr.bf16.mxu1 %v24587_v11  ;;  %19145 = vmatpush3.bf16.msra.mxu1 %v22023_v49  ;;  %v22036_v0 = vld [vmem:[#allocation6 + $0x1568] ss:$12 sps:$4 sm:$0xff]  }
 0x3b9   :  { %v18878_v20 = vpop.f32.mrb[60].mxu1  ;;  %19146 = vmatprep.subr.bf16.mxu1 %v22027_v31  ;;  %v24626_v12 = vld [vmem:[#allocation3 + $0x6e8] ss:$208 sps:$4 sm:$0xff]  }
 0x3ba   :  { %v18879_v21 = vpop.f32.mrb[61].mxu1  ;;  %12399 = vmatpush1.bf16.msra.mxu0 %v21982_v26  ;;  %v22097_v26 = vld [vmem:[#allocation6 + $0x1748] ss:$12 sps:$4 sm:$0xff]  }
 0x3bb   :  { %v18880_v52 = vadd.f32 %v18879_v21, %v18878_v20  ;;  %v18881_v2 = vpop.f32.mrb[62].mxu1  ;;  %12400 = vmatprep.subr.bf16.mxu0 %v21990_v23  ;;  %v22011_v20 = vld [vmem:[#allocation6 + $0x1518] ss:$12 sps:$4 sm:$0xff]  }
 0x3bc   :  { %v18882_v32 = vpop.f32.mrb[63].mxu1  ;;  %19147 = vmatpush3.bf16.msra.mxu1 %v22028_v1 }
 0x3bd   :  { %v24604_v60 = vadd.f32 %v18880_v52, %v24492_v34  ;;  %v18883_v40 = vadd.f32 %v18882_v32, %v18881_v2  ;;  %12356 = vmatmul.mubr.bf16.gmra.mrb[24].mxu0 %v24543_v58  ;;  %19148 = vmatprep.subr.bf16.mxu1 %v22035_v16  ;;  %v21997_v34 = vld [vmem:[#allocation6 + $0x14d0] ss:$12 sps:$4 sm:$0xff]   ;;  %v22021_v16 = vld [vmem:[#allocation6 + $0x1534] ss:$12 sps:$4 sm:$0xff]  }
 0x3be   :  { %15155 = vmatmul.mubr.bf16.gmra.mrb[168].mxu1 %v24598_v50  ;;  %12401 = vmatpush1.bf16.msra.mxu0 %v21988_v3  ;;  %v24629_v3 = vld [vmem:[#allocation3 + $0x88c] ss:$208 sps:$4 sm:$0xff]  }
 0x3bf   :  { %v24609_v29 = vadd.f32 %v18883_v40, %v24497_v35  ;;  %12402 = vmatprep.subr.bf16.mxu0 %v21993_v33  ;;  %12365 = vmatprep.mubr.bf16.mxu0 %v24545_v57  ;;  %v22002_v35 = vld [vmem:[#allocation6 + $0x14ec] ss:$12 sps:$4 sm:$0xff]   ;;  %v22019_v2 = vld [vmem:[#allocation6 + $0x1530] ss:$12 sps:$4 sm:$0xff]  }
 0x3c0   :  { %15162 = vmatprep.mubr.bf16.mxu1 %v24601_v63  ;;  %19149 = vmatpush3.bf16.msra.mxu1 %v22036_v0  ;;  %v22049_v57 = vld [vmem:[#allocation6 + $0x1598] ss:$12 sps:$4 sm:$0xff]   ;;  %v24643_v40 = vld [vmem:[#allocation3 + $0xa2c] ss:$208 sps:$4 sm:$0xff]  }
 0x3c1   :  { %v18900_v58 = vpop.f32.mrb[64].mxu1  ;;  %19150 = vmatprep.subr.bf16.mxu1 %v22040_v36  ;;  %v22034_v36 = vld [vmem:[#allocation6 + $0x1564] ss:$12 sps:$4 sm:$0xff]  }
 0x3c2   :  { %v18901_v42 = vpop.f32.mrb[65].mxu1  ;;  %12403 = vmatpush1.bf16.msra.mxu0 %v21991_v4  ;;  %v22026_v4 = vld [vmem:[#allocation6 + $0x154c] ss:$12 sps:$4 sm:$0xff]  }
 0x3c3   :  { %v18902_v15 = vadd.f32 %v18901_v42, %v18900_v58  ;;  %v18903_v53 = vpop.f32.mrb[66].mxu1  ;;  %12404 = vmatprep.subr.bf16.mxu0 %v21999_v8  ;;  %v24655_v58 = vld [vmem:[#allocation3 + $0xa28] ss:$208 sps:$4 sm:$0xff]  }
 0x3c4   :  { %v18904_v39 = vpop.f32.mrb[67].mxu1  ;;  %19151 = vmatpush3.bf16.msra.mxu1 %v22041_v9 }
 0x3c5   :  { %v24618_v59 = vadd.f32 %v18902_v15, %v24506_v56  ;;  %v18905_v19 = vadd.f32 %v18904_v39, %v18903_v53  ;;  %12366 = vmatmul.mubr.bf16.gmra.mrb[28].mxu0 %v24557_v46  ;;  %19152 = vmatprep.subr.bf16.mxu1 %v22048_v6  ;;  %v22006_v56 = vld [vmem:[#allocation6 + $0x1500] ss:$12 sps:$4 sm:$0xff]   ;;  %v22039_v15 = vld [vmem:[#allocation6 + $0x157c] ss:$12 sps:$4 sm:$0xff]  }
 0x3c6   :  { %15163 = vmatmul.mubr.bf16.gmra.mrb[172].mxu1 %v24612_v55  ;;  %12405 = vmatpush1.bf16.msra.mxu0 %v21997_v34 }
 0x3c7   :  { %v24623_v5 = vadd.f32 %v18905_v19, %v24511_v41  ;;  %12406 = vmatprep.subr.bf16.mxu0 %v22002_v35  ;;  %12408 = vmatprep.mubr.bf16.mxu0 %v24559_v13  ;;  %v22013_v41 = vld [vmem:[#allocation6 + $0x151c] ss:$12 sps:$4 sm:$0xff]  }
 0x3c8   :  { %15170 = vmatprep.mubr.bf16.mxu1 %v24615_v14  ;;  %19153 = vmatpush3.bf16.msra.mxu1 %v22049_v57  ;;  %v24657_v35 = vld [vmem:[#allocation3 + $0xbcc] ss:$208 sps:$4 sm:$0xff]  }
 0x3c9   :  { %v18906_v46 = vpop.f32.mrb[68].mxu1  ;;  %19154 = vmatprep.subr.bf16.mxu1 %v22053_v43 }
 0x3ca   :  { %v18907_v49 = vpop.f32.mrb[69].mxu1  ;;  %12407 = vmatpush1.bf16.msra.mxu0 %v22000_v25  ;;  %v22047_v25 = vld [vmem:[#allocation6 + $0x1594] ss:$12 sps:$4 sm:$0xff]  }
 0x3cb   :  { %v18908_v61 = vadd.f32 %v18907_v49, %v18906_v46  ;;  %v18909_v23 = vpop.f32.mrb[70].mxu1  ;;  %12489 = vmatprep.subr.bf16.mxu0 %v22008_v18  ;;  %v24669_v18 = vld [vmem:[#allocation3 + $0xbc8] ss:$208 sps:$4 sm:$0xff]  }
 0x3cc   :  { %v18910_v31 = vpop.f32.mrb[71].mxu1  ;;  %19155 = vmatpush3.bf16.msra.mxu1 %v22054_v37  ;;  %v22052_v37 = vld [vmem:[#allocation6 + $0x15ac] ss:$12 sps:$4 sm:$0xff]  }
 0x3cd   :  { %v24632_v13 = vadd.f32 %v18908_v61, %v24520_v7  ;;  %v18911_v1 = vadd.f32 %v18910_v31, %v18909_v23  ;;  %12409 = vmatmul.mubr.bf16.vlgmr.msra.gmra.mrb[0].mxu0 %v24571_v62  ;;  %19204 = vmatprep.subr.bf16.mxu1 %v22097_v26  ;;  %v24641_v7 = vld [vmem:[#allocation3 + $0x888] ss:$208 sps:$4 sm:$0xff]   ;;  %v24671_v26 = vld [vmem:[#allocation3 + $0x74] ss:$208 sps:$4 sm:$0xff]   ;;  %v24683_v31 = vld [vmem:[#allocation3 + $0x70] ss:$208 sps:$4 sm:$0xff]  }
 0x3ce   :  { %15171 = vmatmul.mubr.bf16.gmra.mrb[176].mxu1 %v24626_v12  ;;  %12490 = vmatpush1.bf16.msra.mxu0 %v22006_v56  ;;  %v22060_v61 = vld [vmem:[#allocation6 + $0x15c4] ss:$12 sps:$4 sm:$0xff]  }
 0x3cf   :  { %v24637_v21 = vadd.f32 %v18911_v1, %v24525_v48  ;;  %12491 = vmatprep.subr.bf16.mxu0 %v22013_v41  ;;  %12418 = vmatprep.mubr.bf16.mxu0 %v24573_v51  ;;  %v22024_v51 = vld [vmem:[#allocation6 + $0x1548] ss:$12 sps:$4 sm:$0xff]  }
 0x3d0   :  { %15178 = vmatprep.mubr.bf16.mxu1 %v24629_v3 }
 0x3d1   :  { %v18912_v52 = vpop.f32.mrb[72].mxu1 }
 0x3d2   :  { %v18913_v33 = vpop.f32.mrb[73].mxu1  ;;  %12492 = vmatpush1.bf16.msra.mxu0 %v22011_v20 }
 0x3d3   :  { %v18914_v62 = vadd.f32 %v18913_v33, %v18912_v52  ;;  %v18915_v32 = vpop.f32.mrb[74].mxu1  ;;  %12493 = vmatprep.subr.bf16.mxu0 %v22021_v16  ;;  %v22063_v16 = vld [vmem:[#allocation6 + $0x15dc] ss:$12 sps:$4 sm:$0xff]   ;;  %v24685_v33 = vld [vmem:[#allocation3 + $0x214] ss:$208 sps:$4 sm:$0xff]  }
 0x3d4   :  { %v18916_v0 = vpop.f32.mrb[75].mxu1 }
 0x3d5   :  { %v24646_v48 = vadd.f32 %v18914_v62, %v24534_v28  ;;  %v18917_v8 = vadd.f32 %v18916_v0, %v18915_v32  ;;  %12419 = vmatmul.mubr.bf16.gmra.mrb[4].mxu0 %v24584_v38  ;;  %v22032_v28 = vld [vmem:[#allocation6 + $0x1560] ss:$12 sps:$4 sm:$0xff]  }
 0x3d6   :  { %15179 = vmatmul.mubr.bf16.gmra.mrb[180].mxu1 %v24641_v7  ;;  %12494 = vmatpush1.bf16.msra.mxu0 %v22019_v2  ;;  %v22061_v2 = vld [vmem:[#allocation6 + $0x15d8] ss:$12 sps:$4 sm:$0xff]   ;;  %v22069_v32 = vld [vmem:[#allocation6 + $0x15f4] ss:$12 sps:$4 sm:$0xff]  }
 0x3d7   :  { %v24651_v34 = vadd.f32 %v18917_v8, %v24539_v44  ;;  %12495 = vmatprep.subr.bf16.mxu0 %v22026_v4  ;;  %12428 = vmatprep.mubr.bf16.mxu0 %v24587_v11  ;;  %v22037_v11 = vld [vmem:[#allocation6 + $0x1578] ss:$12 sps:$4 sm:$0xff]   ;;  %v22102_v4 = vld [vmem:[#allocation6 + $0x1760] ss:$12 sps:$4 sm:$0xff]  }
 0x3d8   :  { %15186 = vmatprep.mubr.bf16.mxu1 %v24643_v40  ;;  %v24696_v8 = vld [vmem:[#allocation3 + $0x210] ss:$208 sps:$4 sm:$0xff]  }
 0x3d9   :  { %v18918_v9 = vpop.f32.mrb[76].mxu1 }
 0x3da   :  { %v18919_v6 = vpop.f32.mrb[77].mxu1  ;;  %12496 = vmatpush1.bf16.msra.mxu0 %v22024_v51  ;;  %v22103_v51 = vld [vmem:[#allocation6 + $0x16a0] ss:$12 sps:$4 sm:$0xff]  }
 0x3db   :  { %v18920_v38 = vadd.f32 %v18919_v6, %v18918_v9  ;;  %v18921_v42 = vpop.f32.mrb[78].mxu1  ;;  %12497 = vmatprep.subr.bf16.mxu0 %v22034_v36 }
 0x3dc   :  { %v18922_v53 = vpop.f32.mrb[79].mxu1 }
 0x3dd   :  { %v24660_v44 = vadd.f32 %v18920_v38, %v24548_v47  ;;  %v18923_v39 = vadd.f32 %v18922_v53, %v18921_v42  ;;  %12429 = vmatmul.mubr.bf16.gmra.mrb[8].mxu0 %v24598_v50  ;;  %v22045_v47 = vld [vmem:[#allocation6 + $0x1590] ss:$12 sps:$4 sm:$0xff]   ;;  %v22070_v42 = vld [vmem:[#allocation6 + $0x1608] ss:$12 sps:$4 sm:$0xff]  }
 0x3de   :  { %15187 = vmatmul.mubr.bf16.gmra.mrb[184].mxu1 %v24655_v58  ;;  %12498 = vmatpush1.bf16.msra.mxu0 %v22032_v28 }
 0x3df   :  { %v24665_v57 = vadd.f32 %v18923_v39, %v24553_v10  ;;  %12499 = vmatprep.subr.bf16.mxu0 %v22039_v15  ;;  %12438 = vmatprep.mubr.bf16.mxu0 %v24601_v63  ;;  %v22050_v63 = vld [vmem:[#allocation6 + $0x15a8] ss:$12 sps:$4 sm:$0xff]  }
 0x3e0   :  { %15194 = vmatprep.mubr.bf16.mxu1 %v24657_v35  ;;  %v24699_v15 = vld [vmem:[#allocation3 + $0x3b4] ss:$208 sps:$4 sm:$0xff]  }
 0x3e1   :  { %v18924_v19 = vpop.f32.mrb[80].mxu1 }
 0x3e2   :  { %v18925_v43 = vpop.f32.mrb[81].mxu1  ;;  %12500 = vmatpush1.bf16.msra.mxu0 %v22037_v11  ;;  %v22078_v11 = vld [vmem:[#allocation6 + $0x1624] ss:$12 sps:$4 sm:$0xff]  }
 0x3e3   :  { %v18926_v50 = vadd.f32 %v18925_v43, %v18924_v19  ;;  %v18927_v56 = vpop.f32.mrb[82].mxu1  ;;  %12501 = vmatprep.subr.bf16.mxu0 %v22047_v25  ;;  %v22115_v25 = vld [vmem:[#allocation6 + $0x1790] ss:$12 sps:$4 sm:$0xff]  }
 0x3e4   :  { %v18928_v46 = vpop.f32.mrb[83].mxu1  ;;  %v22116_v43 = vld [vmem:[#allocation6 + $0x16d0] ss:$12 sps:$4 sm:$0xff]  }
 0x3e5   :  { %v24674_v10 = vadd.f32 %v18926_v50, %v24562_v24  ;;  %v18929_v49 = vadd.f32 %v18928_v46, %v18927_v56  ;;  %12439 = vmatmul.mubr.bf16.gmra.mrb[12].mxu0 %v24612_v55  ;;  %v22058_v24 = vld [vmem:[#allocation6 + $0x15c0] ss:$12 sps:$4 sm:$0xff]   ;;  %v22123_v50 = vld [vmem:[#allocation6 + $0x17a8] ss:$12 sps:$4 sm:$0xff]  }
 0x3e6   :  { %15195 = vmatmul.mubr.bf16.gmra.mrb[188].mxu1 %v24669_v18  ;;  %12502 = vmatpush1.bf16.msra.mxu0 %v22045_v47  ;;  %v24710_v47 = vld [vmem:[#allocation3 + $0x3b0] ss:$208 sps:$4 sm:$0xff]  }
 0x3e7   :  { %v24679_v23 = vadd.f32 %v18929_v49, %v24567_v45  ;;  %12503 = vmatprep.subr.bf16.mxu0 %v22052_v37  ;;  %12448 = vmatprep.mubr.bf16.mxu0 %v24615_v14  ;;  %v22098_v45 = vld [vmem:[#allocation6 + $0x1688] ss:$12 sps:$4 sm:$0xff]  }
 0x3e8   :  { %15235 = vmatprep.mubr.bf16.mxu1 %v24671_v26 }
 0x3e9   :  { %v18930_v41 = vpop.f32.mrb[84].mxu1 }
 0x3ea   :  { %v18931_v1 = vpop.f32.mrb[85].mxu1  ;;  %12504 = vmatpush1.bf16.msra.mxu0 %v22050_v63  ;;  %v22079_v63 = vld [vmem:[#allocation6 + $0x1638] ss:$12 sps:$4 sm:$0xff]  }
 0x3eb   :  { %v18932_v55 = vadd.f32 %v18931_v1, %v18930_v41  ;;  %v18933_v20 = vpop.f32.mrb[86].mxu1  ;;  %12505 = vmatprep.subr.bf16.mxu0 %v22060_v61  ;;  %v24713_v61 = vld [vmem:[#allocation3 + $0x554] ss:$208 sps:$4 sm:$0xff]  }
 0x3ec   :  { %v18934_v52 = vpop.f32.mrb[87].mxu1  ;;  %v22087_v1 = vld [vmem:[#allocation6 + $0x1654] ss:$12 sps:$4 sm:$0xff]  }
 0x3ed   :  { %v24688_v62 = vadd.f32 %v18932_v55, %v24576_v54  ;;  %v18935_v14 = vadd.f32 %v18934_v52, %v18933_v20  ;;  %12449 = vmatmul.mubr.bf16.gmra.mrb[16].mxu0 %v24626_v12  ;;  %v22067_v54 = vld [vmem:[#allocation6 + $0x15f0] ss:$12 sps:$4 sm:$0xff]   ;;  %v22110_v12 = vld [vmem:[#allocation6 + $0x1778] ss:$12 sps:$4 sm:$0xff]   ;;  %v22128_v55 = vld [vmem:[#allocation6 + $0x17c0] ss:$12 sps:$4 sm:$0xff]  }
 0x3ee   :  { %15236 = vmatmul.mubr.bf16.vlgmr.msra.gmra.mrb[192].mxu1 %v24683_v31  ;;  %12506 = vmatpush1.bf16.msra.mxu0 %v22058_v24  ;;  %v22129_v52 = vld [vmem:[#allocation6 + $0x1700] ss:$12 sps:$4 sm:$0xff]  }
 0x3ef   :  { %v24693_v0 = vadd.f32 %v18935_v14, %v24581_v22  ;;  %12507 = vmatprep.subr.bf16.mxu0 %v22063_v16  ;;  %12458 = vmatprep.mubr.bf16.mxu0 %v24629_v3  ;;  %v22072_v22 = vld [vmem:[#allocation6 + $0x160c] ss:$12 sps:$4 sm:$0xff]   ;;  %v24724_v16 = vld [vmem:[#allocation3 + $0x550] ss:$208 sps:$4 sm:$0xff]  }
 0x3f0   :  { %15243 = vmatprep.mubr.bf16.mxu1 %v24685_v33  ;;  %19205 = vmatpush3.bf16.msra.mxu1 %v22098_v45  ;;  %v22111_v3 = vld [vmem:[#allocation6 + $0x16b8] ss:$12 sps:$4 sm:$0xff]  }
 0x3f1   :  { %v18936_v36 = vpop.f32.mrb[88].mxu1  ;;  %19206 = vmatprep.subr.bf16.mxu1 %v22102_v4 }
 0x3f2   :  { %v18937_v9 = vpop.f32.mrb[89].mxu1  ;;  %12508 = vmatpush1.bf16.msra.mxu0 %v22061_v2  ;;  %v22136_v2 = vld [vmem:[#allocation6 + $0x17d8] ss:$12 sps:$4 sm:$0xff]  }
 0x3f3   :  { %v18938_v28 = vadd.f32 %v18937_v9, %v18936_v36  ;;  %v18939_v6 = vpop.f32.mrb[90].mxu1  ;;  %12509 = vmatprep.subr.bf16.mxu0 %v22069_v32  ;;  %v22096_v9 = vld [vmem:[#allocation6 + $0x1684] ss:$12 sps:$4 sm:$0xff]  }
 0x3f4   :  { %v18940_v38 = vpop.f32.mrb[91].mxu1  ;;  %19207 = vmatpush3.bf16.msra.mxu1 %v22103_v51  ;;  %v24727_v51 = vld [vmem:[#allocation3 + $0x6f4] ss:$208 sps:$4 sm:$0xff]  }
 0x3f5   :  { %v24702_v53 = vadd.f32 %v18938_v28, %v24590_v30  ;;  %v18941_v39 = vadd.f32 %v18940_v38, %v18939_v6  ;;  %12459 = vmatmul.mubr.bf16.gmra.mrb[20].mxu0 %v24641_v7  ;;  %19208 = vmatprep.subr.bf16.mxu1 %v22110_v12  ;;  %v22076_v30 = vld [vmem:[#allocation6 + $0x1620] ss:$12 sps:$4 sm:$0xff]   ;;  %v22141_v28 = vld [vmem:[#allocation6 + $0x17f0] ss:$12 sps:$4 sm:$0xff]  }
 0x3f6   :  { %15244 = vmatmul.mubr.bf16.gmra.mrb[196].mxu1 %v24696_v8  ;;  %12510 = vmatpush1.bf16.msra.mxu0 %v22067_v54  ;;  %v22088_v54 = vld [vmem:[#allocation6 + $0x1668] ss:$12 sps:$4 sm:$0xff]   ;;  %v22142_v38 = vld [vmem:[#allocation6 + $0x1730] ss:$12 sps:$4 sm:$0xff]  }
 0x3f7   :  { %v24707_v19 = vadd.f32 %v18941_v39, %v24595_v27  ;;  %12511 = vmatprep.subr.bf16.mxu0 %v22072_v22  ;;  %12468 = vmatprep.mubr.bf16.mxu0 %v24643_v40  ;;  %v22081_v27 = vld [vmem:[#allocation6 + $0x163c] ss:$12 sps:$4 sm:$0xff]   ;;  %v24738_v22 = vld [vmem:[#allocation3 + $0x6f0] ss:$208 sps:$4 sm:$0xff]  }
 0x3f8   :  { %15251 = vmatprep.mubr.bf16.mxu1 %v24699_v15  ;;  %19209 = vmatpush3.bf16.msra.mxu1 %v22111_v3  ;;  %v22124_v40 = vld [vmem:[#allocation6 + $0x16e8] ss:$12 sps:$4 sm:$0xff]  }
 0x3f9   :  { %v18942_v7 = vpop.f32.mrb[92].mxu1  ;;  %19210 = vmatprep.subr.bf16.mxu1 %v22115_v25 }
 0x3fa   :  { %v18943_v56 = vpop.f32.mrb[93].mxu1  ;;  %12512 = vmatpush1.bf16.msra.mxu0 %v22070_v42  ;;  %v22185_v42 = vld [vmem:[#allocation6 + $0x18c8] ss:$12 sps:$4 sm:$0xff]  }
 0x3fb   :  { %v18944_v37 = vadd.f32 %v18943_v56, %v18942_v7  ;;  %v18945_v46 = vpop.f32.mrb[94].mxu1  ;;  %12513 = vmatprep.subr.bf16.mxu0 %v22078_v11  ;;  %v22099_v7 = vld [vmem:[#allocation6 + $0x1698] ss:$12 sps:$4 sm:$0xff]  }
 0x3fc   :  { %v18946_v49 = vpop.f32.mrb[95].mxu1  ;;  %19211 = vmatpush3.bf16.msra.mxu1 %v22116_v43 }
 0x3fd   :  { %v24716_v41 = vadd.f32 %v18944_v37, %v24604_v60  ;;  %v18947_v24 = vadd.f32 %v18946_v49, %v18945_v46  ;;  %12469 = vmatmul.mubr.bf16.gmra.mrb[24].mxu0 %v24655_v58  ;;  %19212 = vmatprep.subr.bf16.mxu1 %v22123_v50  ;;  %v22085_v60 = vld [vmem:[#allocation6 + $0x1650] ss:$12 sps:$4 sm:$0xff]   ;;  %v22109_v50 = vld [vmem:[#allocation6 + $0x16b4] ss:$12 sps:$4 sm:$0xff]  }
 0x3fe   :  { %15252 = vmatmul.mubr.bf16.gmra.mrb[200].mxu1 %v24710_v47  ;;  %12514 = vmatpush1.bf16.msra.mxu0 %v22076_v30  ;;  %v24741_v30 = vld [vmem:[#allocation3 + $0x894] ss:$208 sps:$4 sm:$0xff]   ;;  %v22107_v46 = vld [vmem:[#allocation6 + $0x16b0] ss:$12 sps:$4 sm:$0xff]  }
 0x3ff   :  { %v24721_v20 = vadd.f32 %v18947_v24, %v24609_v29  ;;  %12515 = vmatprep.subr.bf16.mxu0 %v22081_v27  ;;  %12478 = vmatprep.mubr.bf16.mxu0 %v24657_v35  ;;  %v22090_v29 = vld [vmem:[#allocation6 + $0x166c] ss:$12 sps:$4 sm:$0xff]   ;;  %v24755_v24 = vld [vmem:[#allocation3 + $0xa34] ss:$208 sps:$4 sm:$0xff]  }
 0x400   :  { %15259 = vmatprep.mubr.bf16.mxu1 %v24713_v61  ;;  %19213 = vmatpush3.bf16.msra.mxu1 %v22124_v40  ;;  %v22137_v35 = vld [vmem:[#allocation6 + $0x1718] ss:$12 sps:$4 sm:$0xff]  }
 0x401   :  { %v18964_v58 = vpop.f32.mrb[96].mxu1  ;;  %19214 = vmatprep.subr.bf16.mxu1 %v22128_v55  ;;  %v22122_v55 = vld [vmem:[#allocation6 + $0x16e4] ss:$12 sps:$4 sm:$0xff]  }
 0x402   :  { %v18965_v45 = vpop.f32.mrb[97].mxu1  ;;  %12516 = vmatpush1.bf16.msra.mxu0 %v22079_v63  ;;  %v22114_v63 = vld [vmem:[#allocation6 + $0x16cc] ss:$12 sps:$4 sm:$0xff]  }
 0x403   :  { %v18966_v14 = vadd.f32 %v18965_v45, %v18964_v58  ;;  %v18967_v32 = vpop.f32.mrb[98].mxu1  ;;  %12517 = vmatprep.subr.bf16.mxu0 %v22087_v1  ;;  %v24767_v58 = vld [vmem:[#allocation3 + $0xa30] ss:$208 sps:$4 sm:$0xff]  }
 0x404   :  { %v18968_v4 = vpop.f32.mrb[99].mxu1  ;;  %19215 = vmatpush3.bf16.msra.mxu1 %v22129_v52 }
 0x405   :  { %v24730_v36 = vadd.f32 %v18966_v14, %v24618_v59  ;;  %v18969_v12 = vadd.f32 %v18968_v4, %v18967_v32  ;;  %12479 = vmatmul.mubr.bf16.gmra.mrb[28].mxu0 %v24669_v18  ;;  %19216 = vmatprep.subr.bf16.mxu1 %v22136_v2  ;;  %v22094_v59 = vld [vmem:[#allocation6 + $0x1680] ss:$12 sps:$4 sm:$0xff]   ;;  %v22127_v14 = vld [vmem:[#allocation6 + $0x16fc] ss:$12 sps:$4 sm:$0xff]  }
 0x406   :  { %15260 = vmatmul.mubr.bf16.gmra.mrb[204].mxu1 %v24724_v16  ;;  %12518 = vmatpush1.bf16.msra.mxu0 %v22085_v60 }
 0x407   :  { %v24735_v6 = vadd.f32 %v18969_v12, %v24623_v5  ;;  %12519 = vmatprep.subr.bf16.mxu0 %v22090_v29  ;;  %12521 = vmatprep.mubr.bf16.mxu0 %v24671_v26  ;;  %v22101_v5 = vld [vmem:[#allocation6 + $0x169c] ss:$12 sps:$4 sm:$0xff]   ;;  %v24769_v29 = vld [vmem:[#allocation3 + $0xbd4] ss:$208 sps:$4 sm:$0xff]  }
 0x408   :  { %15267 = vmatprep.mubr.bf16.mxu1 %v24727_v51  ;;  %19217 = vmatpush3.bf16.msra.mxu1 %v22137_v35 }
 0x409   :  { %v18970_v18 = vpop.f32.mrb[100].mxu1  ;;  %19218 = vmatprep.subr.bf16.mxu1 %v22141_v28 }
 0x40a   :  { %v18971_v3 = vpop.f32.mrb[101].mxu1  ;;  %12520 = vmatpush1.bf16.msra.mxu0 %v22088_v54  ;;  %v22135_v54 = vld [vmem:[#allocation6 + $0x1714] ss:$12 sps:$4 sm:$0xff]  }
 0x40b   :  { %v18972_v39 = vadd.f32 %v18971_v3, %v18970_v18  ;;  %v18973_v11 = vpop.f32.mrb[102].mxu1  ;;  %12602 = vmatprep.subr.bf16.mxu0 %v22096_v9  ;;  %v24781_v9 = vld [vmem:[#allocation3 + $0xbd0] ss:$208 sps:$4 sm:$0xff]  }
 0x40c   :  { %v18974_v25 = vpop.f32.mrb[103].mxu1  ;;  %19219 = vmatpush3.bf16.msra.mxu1 %v22142_v38  ;;  %v22140_v38 = vld [vmem:[#allocation6 + $0x172c] ss:$12 sps:$4 sm:$0xff]  }
 0x40d   :  { %v24744_v26 = vadd.f32 %v18972_v39, %v24632_v13  ;;  %v18975_v43 = vadd.f32 %v18974_v25, %v18973_v11  ;;  %12522 = vmatmul.mubr.bf16.vlgmr.msra.gmra.mrb[0].mxu0 %v24683_v31  ;;  %19268 = vmatprep.subr.bf16.mxu1 %v22185_v42  ;;  %v24753_v13 = vld [vmem:[#allocation3 + $0x890] ss:$208 sps:$4 sm:$0xff]   ;;  %v24783_v42 = vld [vmem:[#allocation3 + $0x7c] ss:$208 sps:$4 sm:$0xff]   ;;  %v24795_v25 = vld [vmem:[#allocation3 + $0x78] ss:$208 sps:$4 sm:$0xff]  }
 0x40e   :  { %15268 = vmatmul.mubr.bf16.gmra.mrb[208].mxu1 %v24738_v22  ;;  %12603 = vmatpush1.bf16.msra.mxu0 %v22094_v59  ;;  %v22148_v39 = vld [vmem:[#allocation6 + $0x1744] ss:$12 sps:$4 sm:$0xff]  }
 0x40f   :  { %v24749_v56 = vadd.f32 %v18975_v43, %v24637_v21  ;;  %12604 = vmatprep.subr.bf16.mxu0 %v22101_v5  ;;  %12531 = vmatprep.mubr.bf16.mxu0 %v24685_v33  ;;  %v22112_v33 = vld [vmem:[#allocation6 + $0x16c8] ss:$12 sps:$4 sm:$0xff]  }
 0x410   :  { %15275 = vmatprep.mubr.bf16.mxu1 %v24741_v30 }
 0x411   :  { %v18976_v37 = vpop.f32.mrb[104].mxu1 }
 0x412   :  { %v18977_v27 = vpop.f32.mrb[105].mxu1  ;;  %12605 = vmatpush1.bf16.msra.mxu0 %v22099_v7 }
 0x413   :  { %v18978_v31 = vadd.f32 %v18977_v27, %v18976_v37  ;;  %v18979_v49 = vpop.f32.mrb[106].mxu1  ;;  %12606 = vmatprep.subr.bf16.mxu0 %v22109_v50  ;;  %v22151_v50 = vld [vmem:[#allocation6 + $0x175c] ss:$12 sps:$4 sm:$0xff]  }
 0x414   :  { %v18980_v40 = vpop.f32.mrb[107].mxu1  ;;  %v24797_v27 = vld [vmem:[#allocation3 + $0x21c] ss:$208 sps:$4 sm:$0xff]  }
 0x415   :  { %v24758_v21 = vadd.f32 %v18978_v31, %v24646_v48  ;;  %v18981_v1 = vadd.f32 %v18980_v40, %v18979_v49  ;;  %12532 = vmatmul.mubr.bf16.gmra.mrb[4].mxu0 %v24696_v8  ;;  %v22120_v48 = vld [vmem:[#allocation6 + $0x16e0] ss:$12 sps:$4 sm:$0xff]  }
 0x416   :  { %15276 = vmatmul.mubr.bf16.gmra.mrb[212].mxu1 %v24753_v13  ;;  %12607 = vmatpush1.bf16.msra.mxu0 %v22107_v46  ;;  %v22149_v46 = vld [vmem:[#allocation6 + $0x1758] ss:$12 sps:$4 sm:$0xff]   ;;  %v22157_v49 = vld [vmem:[#allocation6 + $0x1774] ss:$12 sps:$4 sm:$0xff]  }
 0x417   :  { %v24763_v60 = vadd.f32 %v18981_v1, %v24651_v34  ;;  %12608 = vmatprep.subr.bf16.mxu0 %v22114_v63  ;;  %12541 = vmatprep.mubr.bf16.mxu0 %v24699_v15  ;;  %v22125_v15 = vld [vmem:[#allocation6 + $0x16f8] ss:$12 sps:$4 sm:$0xff]   ;;  %v22190_v63 = vld [vmem:[#allocation6 + $0x18e0] ss:$12 sps:$4 sm:$0xff]  }
 0x418   :  { %15283 = vmatprep.mubr.bf16.mxu1 %v24755_v24  ;;  %v24808_v1 = vld [vmem:[#allocation3 + $0x218] ss:$208 sps:$4 sm:$0xff]  }
 0x419   :  { %v18982_v52 = vpop.f32.mrb[108].mxu1 }
 0x41a   :  { %v18983_v2 = vpop.f32.mrb[109].mxu1  ;;  %12609 = vmatpush1.bf16.msra.mxu0 %v22112_v33  ;;  %v22191_v33 = vld [vmem:[#allocation6 + $0x1820] ss:$12 sps:$4 sm:$0xff]  }
 0x41b   :  { %v18984_v8 = vadd.f32 %v18983_v2, %v18982_v52  ;;  %v18985_v45 = vpop.f32.mrb[110].mxu1  ;;  %12610 = vmatprep.subr.bf16.mxu0 %v22122_v55 }
 0x41c   :  { %v18986_v32 = vpop.f32.mrb[111].mxu1 }
 0x41d   :  { %v24772_v34 = vadd.f32 %v18984_v8, %v24660_v44  ;;  %v18987_v4 = vadd.f32 %v18986_v32, %v18985_v45  ;;  %12542 = vmatmul.mubr.bf16.gmra.mrb[8].mxu0 %v24710_v47  ;;  %v22133_v44 = vld [vmem:[#allocation6 + $0x1710] ss:$12 sps:$4 sm:$0xff]   ;;  %v22158_v45 = vld [vmem:[#allocation6 + $0x1788] ss:$12 sps:$4 sm:$0xff]  }
 0x41e   :  { %15284 = vmatmul.mubr.bf16.gmra.mrb[216].mxu1 %v24767_v58  ;;  %12611 = vmatpush1.bf16.msra.mxu0 %v22120_v48 }
 0x41f   :  { %v24777_v35 = vadd.f32 %v18987_v4, %v24665_v57  ;;  %12612 = vmatprep.subr.bf16.mxu0 %v22127_v14  ;;  %12551 = vmatprep.mubr.bf16.mxu0 %v24713_v61  ;;  %v22138_v61 = vld [vmem:[#allocation6 + $0x1728] ss:$12 sps:$4 sm:$0xff]   ;;  %v24811_v14 = vld [vmem:[#allocation3 + $0x3bc] ss:$208 sps:$4 sm:$0xff]  }
 0x420   :  { %15291 = vmatprep.mubr.bf16.mxu1 %v24769_v29 }
 0x421   :  { %v18988_v12 = vpop.f32.mrb[112].mxu1 }
 0x422   :  { %v18989_v28 = vpop.f32.mrb[113].mxu1  ;;  %12613 = vmatpush1.bf16.msra.mxu0 %v22125_v15  ;;  %v22166_v15 = vld [vmem:[#allocation6 + $0x17a4] ss:$12 sps:$4 sm:$0xff]  }
 0x423   :  { %v18990_v47 = vadd.f32 %v18989_v28, %v18988_v12  ;;  %v18991_v59 = vpop.f32.mrb[114].mxu1  ;;  %12614 = vmatprep.subr.bf16.mxu0 %v22135_v54  ;;  %v22203_v54 = vld [vmem:[#allocation6 + $0x1910] ss:$12 sps:$4 sm:$0xff]  }
 0x424   :  { %v18992_v18 = vpop.f32.mrb[115].mxu1  ;;  %v22204_v28 = vld [vmem:[#allocation6 + $0x1850] ss:$12 sps:$4 sm:$0xff]  }
 0x425   :  { %v24786_v57 = vadd.f32 %v18990_v47, %v24674_v10  ;;  %v18993_v3 = vadd.f32 %v18992_v18, %v18991_v59  ;;  %12552 = vmatmul.mubr.bf16.gmra.mrb[12].mxu0 %v24724_v16  ;;  %v22146_v10 = vld [vmem:[#allocation6 + $0x1740] ss:$12 sps:$4 sm:$0xff]   ;;  %v22211_v47 = vld [vmem:[#allocation6 + $0x1928] ss:$12 sps:$4 sm:$0xff]  }
 0x426   :  { %15292 = vmatmul.mubr.bf16.gmra.mrb[220].mxu1 %v24781_v9  ;;  %12615 = vmatpush1.bf16.msra.mxu0 %v22133_v44  ;;  %v24822_v44 = vld [vmem:[#allocation3 + $0x3b8] ss:$208 sps:$4 sm:$0xff]  }
 0x427   :  { %v24791_v11 = vadd.f32 %v18993_v3, %v24679_v23  ;;  %12616 = vmatprep.subr.bf16.mxu0 %v22140_v38  ;;  %12561 = vmatprep.mubr.bf16.mxu0 %v24727_v51  ;;  %v22186_v23 = vld [vmem:[#allocation6 + $0x1808] ss:$12 sps:$4 sm:$0xff]  }
 0x428   :  { %15332 = vmatprep.mubr.bf16.mxu1 %v24783_v42 }
 0x429   :  { %v18994_v5 = vpop.f32.mrb[116].mxu1 }
 0x42a   :  { %v18995_v43 = vpop.f32.mrb[117].mxu1  ;;  %12617 = vmatpush1.bf16.msra.mxu0 %v22138_v61  ;;  %v22167_v61 = vld [vmem:[#allocation6 + $0x17b8] ss:$12 sps:$4 sm:$0xff]  }
 0x42b   :  { %v18996_v16 = vadd.f32 %v18995_v43, %v18994_v5  ;;  %v18997_v7 = vpop.f32.mrb[118].mxu1  ;;  %12618 = vmatprep.subr.bf16.mxu0 %v22148_v39  ;;  %v24825_v39 = vld [vmem:[#allocation3 + $0x55c] ss:$208 sps:$4 sm:$0xff]   ;;  %v22175_v43 = vld [vmem:[#allocation6 + $0x17d4] ss:$12 sps:$4 sm:$0xff]  }
 0x42c   :  { %v18998_v37 = vpop.f32.mrb[119].mxu1 }
 0x42d   :  { %v24800_v31 = vadd.f32 %v18996_v16, %v24688_v62  ;;  %v18999_v51 = vadd.f32 %v18998_v37, %v18997_v7  ;;  %12562 = vmatmul.mubr.bf16.gmra.mrb[16].mxu0 %v24738_v22  ;;  %v22155_v62 = vld [vmem:[#allocation6 + $0x1770] ss:$12 sps:$4 sm:$0xff]   ;;  %v22198_v22 = vld [vmem:[#allocation6 + $0x18f8] ss:$12 sps:$4 sm:$0xff]   ;;  %v22216_v16 = vld [vmem:[#allocation6 + $0x1940] ss:$12 sps:$4 sm:$0xff]  }
 0x42e   :  { %15333 = vmatmul.mubr.bf16.vlgmr.msra.gmra.mrb[224].mxu1 %v24795_v25  ;;  %12619 = vmatpush1.bf16.msra.mxu0 %v22146_v10  ;;  %v22217_v37 = vld [vmem:[#allocation6 + $0x1880] ss:$12 sps:$4 sm:$0xff]  }
 0x42f   :  { %v24805_v40 = vadd.f32 %v18999_v51, %v24693_v0  ;;  %12620 = vmatprep.subr.bf16.mxu0 %v22151_v50  ;;  %12571 = vmatprep.mubr.bf16.mxu0 %v24741_v30  ;;  %v22160_v0 = vld [vmem:[#allocation6 + $0x178c] ss:$12 sps:$4 sm:$0xff]  }
 0x430   :  { %15340 = vmatprep.mubr.bf16.mxu1 %v24797_v27  ;;  %19269 = vmatpush3.bf16.msra.mxu1 %v22186_v23  ;;  %v22199_v30 = vld [vmem:[#allocation6 + $0x1838] ss:$12 sps:$4 sm:$0xff]  }
 0x431   :  { %v19000_v55 = vpop.f32.mrb[120].mxu1  ;;  %19270 = vmatprep.subr.bf16.mxu1 %v22190_v63  ;;  %v24836_v50 = vld [vmem:[#allocation3 + $0x558] ss:$208 sps:$4 sm:$0xff]  }
 0x432   :  { %v19001_v52 = vpop.f32.mrb[121].mxu1  ;;  %12621 = vmatpush1.bf16.msra.mxu0 %v22149_v46  ;;  %v22224_v46 = vld [vmem:[#allocation6 + $0x1958] ss:$12 sps:$4 sm:$0xff]  }
 0x433   :  { %v19002_v48 = vadd.f32 %v19001_v52, %v19000_v55  ;;  %v19003_v2 = vpop.f32.mrb[122].mxu1  ;;  %12622 = vmatprep.subr.bf16.mxu0 %v22157_v49  ;;  %v22184_v52 = vld [vmem:[#allocation6 + $0x1804] ss:$12 sps:$4 sm:$0xff]  }
 0x434   :  { %v19004_v8 = vpop.f32.mrb[123].mxu1  ;;  %19271 = vmatpush3.bf16.msra.mxu1 %v22191_v33  ;;  %v24839_v33 = vld [vmem:[#allocation3 + $0x6fc] ss:$208 sps:$4 sm:$0xff]  }
 0x435   :  { %v24814_v32 = vadd.f32 %v19002_v48, %v24702_v53  ;;  %v19005_v4 = vadd.f32 %v19004_v8, %v19003_v2  ;;  %12572 = vmatmul.mubr.bf16.gmra.mrb[20].mxu0 %v24753_v13  ;;  %19272 = vmatprep.subr.bf16.mxu1 %v22198_v22  ;;  %v22164_v53 = vld [vmem:[#allocation6 + $0x17a0] ss:$12 sps:$4 sm:$0xff]   ;;  %v22229_v48 = vld [vmem:[#allocation6 + $0x1970] ss:$12 sps:$4 sm:$0xff]  }
 0x436   :  { %15341 = vmatmul.mubr.bf16.gmra.mrb[228].mxu1 %v24808_v1  ;;  %12623 = vmatpush1.bf16.msra.mxu0 %v22155_v62  ;;  %v22176_v62 = vld [vmem:[#allocation6 + $0x17e8] ss:$12 sps:$4 sm:$0xff]   ;;  %v22230_v8 = vld [vmem:[#allocation6 + $0x18b0] ss:$12 sps:$4 sm:$0xff]  }
 0x437   :  { %v24819_v12 = vadd.f32 %v19005_v4, %v24707_v19  ;;  %12624 = vmatprep.subr.bf16.mxu0 %v22160_v0  ;;  %12581 = vmatprep.mubr.bf16.mxu0 %v24755_v24  ;;  %v22169_v19 = vld [vmem:[#allocation6 + $0x17bc] ss:$12 sps:$4 sm:$0xff]  }
 0x438   :  { %15348 = vmatprep.mubr.bf16.mxu1 %v24811_v14  ;;  %19273 = vmatpush3.bf16.msra.mxu1 %v22199_v30  ;;  %v22212_v24 = vld [vmem:[#allocation6 + $0x1868] ss:$12 sps:$4 sm:$0xff]  }
 0x439   :  { %v19006_v13 = vpop.f32.mrb[124].mxu1  ;;  %19274 = vmatprep.subr.bf16.mxu1 %v22203_v54  ;;  %v24850_v0 = vld [vmem:[#allocation3 + $0x6f8] ss:$208 sps:$4 sm:$0xff]  }
 0x43a   :  { %v19007_v59 = vpop.f32.mrb[125].mxu1  ;;  %12625 = vmatpush1.bf16.msra.mxu0 %v22158_v45  ;;  %v22273_v45 = vld [vmem:[#allocation6 + $0x1a48] ss:$12 sps:$4 sm:$0xff]  }
 0x43b   :  { %v19008_v38 = vadd.f32 %v19007_v59, %v19006_v13  ;;  %v19009_v18 = vpop.f32.mrb[126].mxu1  ;;  %12626 = vmatprep.subr.bf16.mxu0 %v22166_v15  ;;  %v22187_v13 = vld [vmem:[#allocation6 + $0x1818] ss:$12 sps:$4 sm:$0xff]  }
 0x43c   :  { %v19010_v3 = vpop.f32.mrb[127].mxu1  ;;  %19275 = vmatpush3.bf16.msra.mxu1 %v22204_v28 }
 0x43d   :  { %v24828_v5 = vadd.f32 %v19008_v38, %v24716_v41  ;;  %v19011_v10 = vadd.f32 %v19010_v3, %v19009_v18  ;;  %12582 = vmatmul.mubr.bf16.gmra.mrb[24].mxu0 %v24767_v58  ;;  %19276 = vmatprep.subr.bf16.mxu1 %v22211_v47  ;;  %v22173_v41 = vld [vmem:[#allocation6 + $0x17d0] ss:$12 sps:$4 sm:$0xff]   ;;  %v22197_v47 = vld [vmem:[#allocation6 + $0x1834] ss:$12 sps:$4 sm:$0xff]  }
 0x43e   :  { %15349 = vmatmul.mubr.bf16.gmra.mrb[232].mxu1 %v24822_v44  ;;  %12627 = vmatpush1.bf16.msra.mxu0 %v22164_v53  ;;  %v24853_v53 = vld [vmem:[#allocation3 + $0x89c] ss:$208 sps:$4 sm:$0xff]  }
 0x43f   :  { %v24833_v7 = vadd.f32 %v19011_v10, %v24721_v20  ;;  %12628 = vmatprep.subr.bf16.mxu0 %v22169_v19  ;;  %12591 = vmatprep.mubr.bf16.mxu0 %v24769_v29  ;;  %v22178_v20 = vld [vmem:[#allocation6 + $0x17ec] ss:$12 sps:$4 sm:$0xff]   ;;  %v22195_v18 = vld [vmem:[#allocation6 + $0x1830] ss:$12 sps:$4 sm:$0xff]  }
 0x440   :  { %15356 = vmatprep.mubr.bf16.mxu1 %v24825_v39  ;;  %19277 = vmatpush3.bf16.msra.mxu1 %v22212_v24  ;;  %v22225_v29 = vld [vmem:[#allocation6 + $0x1898] ss:$12 sps:$4 sm:$0xff]   ;;  %v24867_v10 = vld [vmem:[#allocation3 + $0xa3c] ss:$208 sps:$4 sm:$0xff]  }
 0x441   :  { %v19028_v58 = vpop.f32.mrb[128].mxu1  ;;  %19278 = vmatprep.subr.bf16.mxu1 %v22216_v16  ;;  %v22210_v16 = vld [vmem:[#allocation6 + $0x1864] ss:$12 sps:$4 sm:$0xff]  }
 0x442   :  { %v19029_v23 = vpop.f32.mrb[129].mxu1  ;;  %12629 = vmatpush1.bf16.msra.mxu0 %v22167_v61  ;;  %v22202_v61 = vld [vmem:[#allocation6 + $0x184c] ss:$12 sps:$4 sm:$0xff]  }
 0x443   :  { %v19030_v51 = vadd.f32 %v19029_v23, %v19028_v58  ;;  %v19031_v49 = vpop.f32.mrb[130].mxu1  ;;  %12630 = vmatprep.subr.bf16.mxu0 %v22175_v43  ;;  %v24879_v58 = vld [vmem:[#allocation3 + $0xa38] ss:$208 sps:$4 sm:$0xff]  }
 0x444   :  { %v19032_v63 = vpop.f32.mrb[131].mxu1  ;;  %19279 = vmatpush3.bf16.msra.mxu1 %v22217_v37 }
 0x445   :  { %v24842_v55 = vadd.f32 %v19030_v51, %v24730_v36  ;;  %v19033_v22 = vadd.f32 %v19032_v63, %v19031_v49  ;;  %12592 = vmatmul.mubr.bf16.gmra.mrb[28].mxu0 %v24781_v9  ;;  %19280 = vmatprep.subr.bf16.mxu1 %v22224_v46  ;;  %v22182_v36 = vld [vmem:[#allocation6 + $0x1800] ss:$12 sps:$4 sm:$0xff]   ;;  %v22215_v51 = vld [vmem:[#allocation6 + $0x187c] ss:$12 sps:$4 sm:$0xff]  }
 0x446   :  { %15357 = vmatmul.mubr.bf16.gmra.mrb[236].mxu1 %v24836_v50  ;;  %12631 = vmatpush1.bf16.msra.mxu0 %v22173_v41 }
 0x447   :  { %v24847_v2 = vadd.f32 %v19033_v22, %v24735_v6  ;;  %12632 = vmatprep.subr.bf16.mxu0 %v22178_v20  ;;  %12634 = vmatprep.mubr.bf16.mxu0 %v24783_v42  ;;  %v22189_v6 = vld [vmem:[#allocation6 + $0x181c] ss:$12 sps:$4 sm:$0xff]  }
 0x448   :  { %15364 = vmatprep.mubr.bf16.mxu1 %v24839_v33  ;;  %19281 = vmatpush3.bf16.msra.mxu1 %v22225_v29  ;;  %v24881_v20 = vld [vmem:[#allocation3 + $0xbdc] ss:$208 sps:$4 sm:$0xff]  }
 0x449   :  { %v19034_v9 = vpop.f32.mrb[132].mxu1  ;;  %19282 = vmatprep.subr.bf16.mxu1 %v22229_v48 }
 0x44a   :  { %v19035_v30 = vpop.f32.mrb[133].mxu1  ;;  %12633 = vmatpush1.bf16.msra.mxu0 %v22176_v62  ;;  %v22223_v62 = vld [vmem:[#allocation6 + $0x1894] ss:$12 sps:$4 sm:$0xff]  }
 0x44b   :  { %v19036_v4 = vadd.f32 %v19035_v30, %v19034_v9  ;;  %v19037_v15 = vpop.f32.mrb[134].mxu1  ;;  %12715 = vmatprep.subr.bf16.mxu0 %v22184_v52  ;;  %v24893_v52 = vld [vmem:[#allocation3 + $0xbd8] ss:$208 sps:$4 sm:$0xff]  }
 0x44c   :  { %v19038_v54 = vpop.f32.mrb[135].mxu1  ;;  %19283 = vmatpush3.bf16.msra.mxu1 %v22230_v8  ;;  %v22228_v8 = vld [vmem:[#allocation6 + $0x18ac] ss:$12 sps:$4 sm:$0xff]  }
 0x44d   :  { %v24856_v42 = vadd.f32 %v19036_v4, %v24744_v26  ;;  %v19039_v28 = vadd.f32 %v19038_v54, %v19037_v15  ;;  %12635 = vmatmul.mubr.bf16.vlgmr.msra.gmra.mrb[0].mxu0 %v24795_v25  ;;  %19332 = vmatprep.subr.bf16.mxu1 %v22273_v45  ;;  %v24865_v26 = vld [vmem:[#allocation3 + $0x898] ss:$208 sps:$4 sm:$0xff]   ;;  %v24895_v45 = vld [vmem:[#allocation3 + $0x84] ss:$208 sps:$4 sm:$0xff]   ;;  %v24907_v54 = vld [vmem:[#allocation3 + $0x80] ss:$208 sps:$4 sm:$0xff]  }
 0x44e   :  { %15365 = vmatmul.mubr.bf16.gmra.mrb[240].mxu1 %v24850_v0  ;;  %12716 = vmatpush1.bf16.msra.mxu0 %v22182_v36  ;;  %v22236_v4 = vld [vmem:[#allocation6 + $0x18c4] ss:$12 sps:$4 sm:$0xff]  }
 0x44f   :  { %v24861_v59 = vadd.f32 %v19039_v28, %v24749_v56  ;;  %12717 = vmatprep.subr.bf16.mxu0 %v22189_v6  ;;  %12644 = vmatprep.mubr.bf16.mxu0 %v24797_v27  ;;  %v22200_v27 = vld [vmem:[#allocation6 + $0x1848] ss:$12 sps:$4 sm:$0xff]  }
 0x450   :  { %15372 = vmatprep.mubr.bf16.mxu1 %v24853_v53 }
 0x451   :  { %v19040_v38 = vpop.f32.mrb[136].mxu1 }
 0x452   :  { %v19041_v19 = vpop.f32.mrb[137].mxu1  ;;  %12718 = vmatpush1.bf16.msra.mxu0 %v22187_v13 }
 0x453   :  { %v19042_v25 = vadd.f32 %v19041_v19, %v19040_v38  ;;  %v19043_v3 = vpop.f32.mrb[138].mxu1  ;;  %12719 = vmatprep.subr.bf16.mxu0 %v22197_v47  ;;  %v22239_v47 = vld [vmem:[#allocation6 + $0x18dc] ss:$12 sps:$4 sm:$0xff]   ;;  %v24909_v19 = vld [vmem:[#allocation3 + $0x224] ss:$208 sps:$4 sm:$0xff]  }
 0x454   :  { %v19044_v24 = vpop.f32.mrb[139].mxu1 }
 0x455   :  { %v24870_v56 = vadd.f32 %v19042_v25, %v24758_v21  ;;  %v19045_v43 = vadd.f32 %v19044_v24, %v19043_v3  ;;  %12645 = vmatmul.mubr.bf16.gmra.mrb[4].mxu0 %v24808_v1  ;;  %v22208_v21 = vld [vmem:[#allocation6 + $0x1860] ss:$12 sps:$4 sm:$0xff]  }
 0x456   :  { %15373 = vmatmul.mubr.bf16.gmra.mrb[244].mxu1 %v24865_v26  ;;  %12720 = vmatpush1.bf16.msra.mxu0 %v22195_v18  ;;  %v22237_v18 = vld [vmem:[#allocation6 + $0x18d8] ss:$12 sps:$4 sm:$0xff]   ;;  %v22245_v3 = vld [vmem:[#allocation6 + $0x18f4] ss:$12 sps:$4 sm:$0xff]  }
 0x457   :  { %v24875_v41 = vadd.f32 %v19045_v43, %v24763_v60  ;;  %12721 = vmatprep.subr.bf16.mxu0 %v22202_v61  ;;  %12654 = vmatprep.mubr.bf16.mxu0 %v24811_v14  ;;  %v22213_v14 = vld [vmem:[#allocation6 + $0x1878] ss:$12 sps:$4 sm:$0xff]   ;;  %v22278_v61 = vld [vmem:[#allocation6 + $0x1a60] ss:$12 sps:$4 sm:$0xff]  }
 0x458   :  { %15380 = vmatprep.mubr.bf16.mxu1 %v24867_v10  ;;  %v24920_v43 = vld [vmem:[#allocation3 + $0x220] ss:$208 sps:$4 sm:$0xff]  }
 0x459   :  { %v19046_v37 = vpop.f32.mrb[140].mxu1 }
 0x45a   :  { %v19047_v46 = vpop.f32.mrb[141].mxu1  ;;  %12722 = vmatpush1.bf16.msra.mxu0 %v22200_v27  ;;  %v22279_v27 = vld [vmem:[#allocation6 + $0x19a0] ss:$12 sps:$4 sm:$0xff]  }
 0x45b   :  { %v19048_v1 = vadd.f32 %v19047_v46, %v19046_v37  ;;  %v19049_v23 = vpop.f32.mrb[142].mxu1  ;;  %12723 = vmatprep.subr.bf16.mxu0 %v22210_v16 }
 0x45c   :  { %v19050_v49 = vpop.f32.mrb[143].mxu1 }
 0x45d   :  { %v24884_v60 = vadd.f32 %v19048_v1, %v24772_v34  ;;  %v19051_v63 = vadd.f32 %v19050_v49, %v19049_v23  ;;  %12655 = vmatmul.mubr.bf16.gmra.mrb[8].mxu0 %v24822_v44  ;;  %v22221_v34 = vld [vmem:[#allocation6 + $0x1890] ss:$12 sps:$4 sm:$0xff]   ;;  %v22246_v23 = vld [vmem:[#allocation6 + $0x1908] ss:$12 sps:$4 sm:$0xff]  }
 0x45e   :  { %15381 = vmatmul.mubr.bf16.gmra.mrb[248].mxu1 %v24879_v58  ;;  %12724 = vmatpush1.bf16.msra.mxu0 %v22208_v21 }
 0x45f   :  { %v24889_v29 = vadd.f32 %v19051_v63, %v24777_v35  ;;  %12725 = vmatprep.subr.bf16.mxu0 %v22215_v51  ;;  %12664 = vmatprep.mubr.bf16.mxu0 %v24825_v39  ;;  %v22226_v39 = vld [vmem:[#allocation6 + $0x18a8] ss:$12 sps:$4 sm:$0xff]  }
 0x460   :  { %15388 = vmatprep.mubr.bf16.mxu1 %v24881_v20  ;;  %v24923_v51 = vld [vmem:[#allocation3 + $0x3c4] ss:$208 sps:$4 sm:$0xff]  }
 0x461   :  { %v19052_v22 = vpop.f32.mrb[144].mxu1 }
 0x462   :  { %v19053_v48 = vpop.f32.mrb[145].mxu1  ;;  %12726 = vmatpush1.bf16.msra.mxu0 %v22213_v14  ;;  %v22254_v14 = vld [vmem:[#allocation6 + $0x1924] ss:$12 sps:$4 sm:$0xff]  }
 0x463   :  { %v19054_v44 = vadd.f32 %v19053_v48, %v19052_v22  ;;  %v19055_v36 = vpop.f32.mrb[146].mxu1  ;;  %12727 = vmatprep.subr.bf16.mxu0 %v22223_v62  ;;  %v22291_v62 = vld [vmem:[#allocation6 + $0x1a90] ss:$12 sps:$4 sm:$0xff]  }
 0x464   :  { %v19056_v9 = vpop.f32.mrb[147].mxu1  ;;  %v22292_v48 = vld [vmem:[#allocation6 + $0x19d0] ss:$12 sps:$4 sm:$0xff]  }
 0x465   :  { %v24898_v35 = vadd.f32 %v19054_v44, %v24786_v57  ;;  %v19057_v30 = vadd.f32 %v19056_v9, %v19055_v36  ;;  %12665 = vmatmul.mubr.bf16.gmra.mrb[12].mxu0 %v24836_v50  ;;  %v22234_v57 = vld [vmem:[#allocation6 + $0x18c0] ss:$12 sps:$4 sm:$0xff]   ;;  %v22299_v44 = vld [vmem:[#allocation6 + $0x1aa8] ss:$12 sps:$4 sm:$0xff]  }
 0x466   :  { %15389 = vmatmul.mubr.bf16.gmra.mrb[252].mxu1 %v24893_v52  ;;  %12728 = vmatpush1.bf16.msra.mxu0 %v22221_v34  ;;  %v24934_v34 = vld [vmem:[#allocation3 + $0x3c0] ss:$208 sps:$4 sm:$0xff]  }
 0x467   :  { %v24903_v15 = vadd.f32 %v19057_v30, %v24791_v11  ;;  %12729 = vmatprep.subr.bf16.mxu0 %v22228_v8  ;;  %12674 = vmatprep.mubr.bf16.mxu0 %v24839_v33  ;;  %v22274_v11 = vld [vmem:[#allocation6 + $0x1988] ss:$12 sps:$4 sm:$0xff]  }
 0x468   :  { %15429 = vmatprep.mubr.bf16.mxu1 %v24895_v45 }
 0x469   :  { %v19058_v6 = vpop.f32.mrb[148].mxu1 }
 0x46a   :  { %v19059_v28 = vpop.f32.mrb[149].mxu1  ;;  %12730 = vmatpush1.bf16.msra.mxu0 %v22226_v39  ;;  %v22255_v39 = vld [vmem:[#allocation6 + $0x1938] ss:$12 sps:$4 sm:$0xff]  }
 0x46b   :  { %v19060_v50 = vadd.f32 %v19059_v28, %v19058_v6  ;;  %v19061_v13 = vpop.f32.mrb[150].mxu1  ;;  %12731 = vmatprep.subr.bf16.mxu0 %v22236_v4  ;;  %v24937_v4 = vld [vmem:[#allocation3 + $0x564] ss:$208 sps:$4 sm:$0xff]  }
 0x46c   :  { %v19062_v38 = vpop.f32.mrb[151].mxu1  ;;  %v22263_v28 = vld [vmem:[#allocation6 + $0x1954] ss:$12 sps:$4 sm:$0xff]  }
 0x46d   :  { %v24912_v25 = vadd.f32 %v19060_v50, %v24800_v31  ;;  %v19063_v33 = vadd.f32 %v19062_v38, %v19061_v13  ;;  %12675 = vmatmul.mubr.bf16.gmra.mrb[16].mxu0 %v24850_v0  ;;  %v22243_v31 = vld [vmem:[#allocation6 + $0x18f0] ss:$12 sps:$4 sm:$0xff]   ;;  %v22286_v0 = vld [vmem:[#allocation6 + $0x1a78] ss:$12 sps:$4 sm:$0xff]   ;;  %v22304_v50 = vld [vmem:[#allocation6 + $0x1ac0] ss:$12 sps:$4 sm:$0xff]  }
 0x46e   :  { %15430 = vmatmul.mubr.bf16.vlgmr.msra.gmra.mrb[0].mxu1 %v24907_v54  ;;  %12732 = vmatpush1.bf16.msra.mxu0 %v22234_v57  ;;  %v22305_v38 = vld [vmem:[#allocation6 + $0x1a00] ss:$12 sps:$4 sm:$0xff]  }
 0x46f   :  { %v24917_v24 = vadd.f32 %v19063_v33, %v24805_v40  ;;  %12733 = vmatprep.subr.bf16.mxu0 %v22239_v47  ;;  %12684 = vmatprep.mubr.bf16.mxu0 %v24853_v53  ;;  %v22248_v40 = vld [vmem:[#allocation6 + $0x190c] ss:$12 sps:$4 sm:$0xff]   ;;  %v24948_v47 = vld [vmem:[#allocation3 + $0x560] ss:$208 sps:$4 sm:$0xff]  }
 0x470   :  { %15437 = vmatprep.mubr.bf16.mxu1 %v24909_v19  ;;  %19333 = vmatpush3.bf16.msra.mxu1 %v22274_v11  ;;  %v22287_v53 = vld [vmem:[#allocation6 + $0x19b8] ss:$12 sps:$4 sm:$0xff]  }
 0x471   :  { %v19064_v16 = vpop.f32.mrb[152].mxu1  ;;  %19334 = vmatprep.subr.bf16.mxu1 %v22278_v61 }
 0x472   :  { %v19065_v37 = vpop.f32.mrb[153].mxu1  ;;  %12734 = vmatpush1.bf16.msra.mxu0 %v22237_v18  ;;  %v22312_v18 = vld [vmem:[#allocation6 + $0x1ad8] ss:$12 sps:$4 sm:$0xff]  }
 0x473   :  { %v19066_v21 = vadd.f32 %v19065_v37, %v19064_v16  ;;  %v19067_v46 = vpop.f32.mrb[154].mxu1  ;;  %12735 = vmatprep.subr.bf16.mxu0 %v22245_v3  ;;  %v22272_v37 = vld [vmem:[#allocation6 + $0x1984] ss:$12 sps:$4 sm:$0xff]  }
 0x474   :  { %v19068_v1 = vpop.f32.mrb[155].mxu1  ;;  %19335 = vmatpush3.bf16.msra.mxu1 %v22279_v27  ;;  %v24951_v27 = vld [vmem:[#allocation3 + $0x704] ss:$208 sps:$4 sm:$0xff]  }
 0x475   :  { %v24926_v49 = vadd.f32 %v19066_v21, %v24814_v32  ;;  %v19069_v63 = vadd.f32 %v19068_v1, %v19067_v46  ;;  %12685 = vmatmul.mubr.bf16.gmra.mrb[20].mxu0 %v24865_v26  ;;  %19336 = vmatprep.subr.bf16.mxu1 %v22286_v0  ;;  %v22252_v32 = vld [vmem:[#allocation6 + $0x1920] ss:$12 sps:$4 sm:$0xff]   ;;  %v22317_v21 = vld [vmem:[#allocation6 + $0x1af0] ss:$12 sps:$4 sm:$0xff]  }
 0x476   :  { %15438 = vmatmul.mubr.bf16.gmra.mrb[4].mxu1 %v24920_v43  ;;  %12736 = vmatpush1.bf16.msra.mxu0 %v22243_v31  ;;  %v22264_v31 = vld [vmem:[#allocation6 + $0x1968] ss:$12 sps:$4 sm:$0xff]   ;;  %v22318_v1 = vld [vmem:[#allocation6 + $0x1a30] ss:$12 sps:$4 sm:$0xff]  }
 0x477   :  { %v24931_v22 = vadd.f32 %v19069_v63, %v24819_v12  ;;  %12737 = vmatprep.subr.bf16.mxu0 %v22248_v40  ;;  %12694 = vmatprep.mubr.bf16.mxu0 %v24867_v10  ;;  %v22257_v12 = vld [vmem:[#allocation6 + $0x193c] ss:$12 sps:$4 sm:$0xff]   ;;  %v24962_v40 = vld [vmem:[#allocation3 + $0x700] ss:$208 sps:$4 sm:$0xff]  }
 0x478   :  { %15445 = vmatprep.mubr.bf16.mxu1 %v24923_v51  ;;  %19337 = vmatpush3.bf16.msra.mxu1 %v22287_v53  ;;  %v22300_v10 = vld [vmem:[#allocation6 + $0x19e8] ss:$12 sps:$4 sm:$0xff]  }
 0x479   :  { %v19070_v26 = vpop.f32.mrb[156].mxu1  ;;  %19338 = vmatprep.subr.bf16.mxu1 %v22291_v62 }
 0x47a   :  { %v19071_v36 = vpop.f32.mrb[157].mxu1  ;;  %12738 = vmatpush1.bf16.msra.mxu0 %v22246_v23  ;;  %v22361_v23 = vld [vmem:[#allocation6 + $0x1bc8] ss:$12 sps:$4 sm:$0xff]  }
 0x47b   :  { %v19072_v8 = vadd.f32 %v19071_v36, %v19070_v26  ;;  %v19073_v9 = vpop.f32.mrb[158].mxu1  ;;  %12739 = vmatprep.subr.bf16.mxu0 %v22254_v14  ;;  %v22275_v26 = vld [vmem:[#allocation6 + $0x1998] ss:$12 sps:$4 sm:$0xff]  }
 0x47c   :  { %v19074_v30 = vpop.f32.mrb[159].mxu1  ;;  %19339 = vmatpush3.bf16.msra.mxu1 %v22292_v48 }
 0x47d   :  { %v24940_v6 = vadd.f32 %v19072_v8, %v24828_v5  ;;  %v19075_v57 = vadd.f32 %v19074_v30, %v19073_v9  ;;  %12695 = vmatmul.mubr.bf16.gmra.mrb[24].mxu0 %v24879_v58  ;;  %19340 = vmatprep.subr.bf16.mxu1 %v22299_v44  ;;  %v22261_v5 = vld [vmem:[#allocation6 + $0x1950] ss:$12 sps:$4 sm:$0xff]   ;;  %v22285_v44 = vld [vmem:[#allocation6 + $0x19b4] ss:$12 sps:$4 sm:$0xff]  }
 0x47e   :  { %15446 = vmatmul.mubr.bf16.gmra.mrb[8].mxu1 %v24934_v34  ;;  %12740 = vmatpush1.bf16.msra.mxu0 %v22252_v32  ;;  %v24965_v32 = vld [vmem:[#allocation3 + $0x8a4] ss:$208 sps:$4 sm:$0xff]   ;;  %v22283_v9 = vld [vmem:[#allocation6 + $0x19b0] ss:$12 sps:$4 sm:$0xff]  }
 0x47f   :  { %v24945_v13 = vadd.f32 %v19075_v57, %v24833_v7  ;;  %12741 = vmatprep.subr.bf16.mxu0 %v22257_v12  ;;  %12704 = vmatprep.mubr.bf16.mxu0 %v24881_v20  ;;  %v22266_v7 = vld [vmem:[#allocation6 + $0x196c] ss:$12 sps:$4 sm:$0xff]   ;;  %v24979_v57 = vld [vmem:[#allocation3 + $0xa44] ss:$208 sps:$4 sm:$0xff]  }
 0x480   :  { %15453 = vmatprep.mubr.bf16.mxu1 %v24937_v4  ;;  %19341 = vmatpush3.bf16.msra.mxu1 %v22300_v10  ;;  %v22313_v20 = vld [vmem:[#allocation6 + $0x1a18] ss:$12 sps:$4 sm:$0xff]  }
 0x481   :  { %v19092_v58 = vpop.f32.mrb[160].mxu1  ;;  %19342 = vmatprep.subr.bf16.mxu1 %v22304_v50 }
 0x482   :  { %v19093_v11 = vpop.f32.mrb[161].mxu1  ;;  %12742 = vmatpush1.bf16.msra.mxu0 %v22255_v39  ;;  %v22290_v39 = vld [vmem:[#allocation6 + $0x19cc] ss:$12 sps:$4 sm:$0xff]  }
 0x483   :  { %v19094_v33 = vadd.f32 %v19093_v11, %v19092_v58  ;;  %v19095_v3 = vpop.f32.mrb[162].mxu1  ;;  %12743 = vmatprep.subr.bf16.mxu0 %v22263_v28 }
 0x484   :  { %v19096_v61 = vpop.f32.mrb[163].mxu1  ;;  %19343 = vmatpush3.bf16.msra.mxu1 %v22305_v38 }
 0x485   :  { %v24954_v16 = vadd.f32 %v19094_v33, %v24842_v55  ;;  %v19097_v0 = vadd.f32 %v19096_v61, %v19095_v3  ;;  %12705 = vmatmul.mubr.bf16.gmra.mrb[28].mxu0 %v24893_v52  ;;  %19344 = vmatprep.subr.bf16.mxu1 %v22312_v18  ;;  %v22270_v55 = vld [vmem:[#allocation6 + $0x1980] ss:$12 sps:$4 sm:$0xff]   ;;  %v22303_v33 = vld [vmem:[#allocation6 + $0x19fc] ss:$12 sps:$4 sm:$0xff]   ;;  %v22301_v61 = vld [vmem:[#allocation6 + $0x19f8] ss:$12 sps:$4 sm:$0xff]  }
 0x486   :  { %15454 = vmatmul.mubr.bf16.gmra.mrb[12].mxu1 %v24948_v47  ;;  %12744 = vmatpush1.bf16.msra.mxu0 %v22261_v5  ;;  %v22298_v5 = vld [vmem:[#allocation6 + $0x19e4] ss:$12 sps:$4 sm:$0xff]   ;;  %v22296_v18 = vld [vmem:[#allocation6 + $0x19e0] ss:$12 sps:$4 sm:$0xff]  }
 0x487   :  { %v24959_v46 = vadd.f32 %v19097_v0, %v24847_v2  ;;  %12745 = vmatprep.subr.bf16.mxu0 %v22266_v7  ;;  %12747 = vmatprep.mubr.bf16.mxu0 %v24895_v45  ;;  %v22277_v2 = vld [vmem:[#allocation6 + $0x199c] ss:$12 sps:$4 sm:$0xff]   ;;  %v24993_v7 = vld [vmem:[#allocation3 + $0xbe4] ss:$208 sps:$4 sm:$0xff]  }
 0x488   :  { %15461 = vmatprep.mubr.bf16.mxu1 %v24951_v27  ;;  %19345 = vmatpush3.bf16.msra.mxu1 %v22313_v20  ;;  %v22311_v20 = vld [vmem:[#allocation6 + $0x1a14] ss:$12 sps:$4 sm:$0xff]  }
 0x489   :  { %v19098_v52 = vpop.f32.mrb[164].mxu1  ;;  %19346 = vmatprep.subr.bf16.mxu1 %v22317_v21  ;;  %v22309_v21 = vld [vmem:[#allocation6 + $0x1a10] ss:$12 sps:$4 sm:$0xff]  }
 0x48a   :  { %v19099_v53 = vpop.f32.mrb[165].mxu1  ;;  %12746 = vmatpush1.bf16.msra.mxu0 %v22264_v31 }
 0x48b   :  { %v19100_v63 = vadd.f32 %v19099_v53, %v19098_v52  ;;  %v19101_v14 = vpop.f32.mrb[166].mxu1  ;;  %12828 = vmatprep.subr.bf16.mxu0 %v22272_v37  ;;  %v22314_v53 = vld [vmem:[#allocation6 + $0x1a28] ss:$12 sps:$4 sm:$0xff]  }
 0x48c   :  { %v19102_v62 = vpop.f32.mrb[167].mxu1  ;;  %19347 = vmatpush3.bf16.msra.mxu1 %v22318_v1  ;;  %v22316_v1 = vld [vmem:[#allocation6 + $0x1a2c] ss:$12 sps:$4 sm:$0xff]  }
 0x48d   :  { %v24968_v45 = vadd.f32 %v19100_v63, %v24856_v42  ;;  %v19103_v48 = vadd.f32 %v19102_v62, %v19101_v14  ;;  %12748 = vmatmul.mubr.bf16.vlgmr.msra.gmra.mrb[0].mxu0 %v24907_v54  ;;  %19396 = vmatprep.subr.bf16.mxu1 %v22361_v23  ;;  %v24977_v42 = vld [vmem:[#allocation3 + $0x8a0] ss:$208 sps:$4 sm:$0xff]   ;;  %v25007_v23 = vld [vmem:[#allocation3 + $0x8c] ss:$208 sps:$4 sm:$0xff]  }
 0x48e   :  { %15462 = vmatmul.mubr.bf16.gmra.mrb[16].mxu1 %v24962_v40  ;;  %12829 = vmatpush1.bf16.msra.mxu0 %v22270_v55  ;;  %v22324_v14 = vld [vmem:[#allocation6 + $0x1a44] ss:$12 sps:$4 sm:$0xff]  }
 0x48f   :  { %v24973_v36 = vadd.f32 %v19103_v48, %v24861_v59  ;;  %12830 = vmatprep.subr.bf16.mxu0 %v22277_v2  ;;  %12757 = vmatprep.mubr.bf16.mxu0 %v24909_v19  ;;  %v22288_v19 = vld [vmem:[#allocation6 + $0x19c8] ss:$12 sps:$4 sm:$0xff]   ;;  %v22322_v48 = vld [vmem:[#allocation6 + $0x1a40] ss:$12 sps:$4 sm:$0xff]  }
 0x490   :  { %15469 = vmatprep.mubr.bf16.mxu1 %v24965_v32 }
 0x491   :  { %v19104_v8 = vpop.f32.mrb[168].mxu1 }
 0x492   :  { %v19105_v12 = vpop.f32.mrb[169].mxu1  ;;  %12831 = vmatpush1.bf16.msra.mxu0 %v22275_v26 }
 0x493   :  { %v19106_v54 = vadd.f32 %v19105_v12, %v19104_v8  ;;  %v19107_v30 = vpop.f32.mrb[170].mxu1  ;;  %12832 = vmatprep.subr.bf16.mxu0 %v22285_v44  ;;  %v22327_v44 = vld [vmem:[#allocation6 + $0x1a5c] ss:$12 sps:$4 sm:$0xff]  }
 0x494   :  { %v19108_v10 = vpop.f32.mrb[171].mxu1 }
 0x495   :  { %v24982_v59 = vadd.f32 %v19106_v54, %v24870_v56  ;;  %v19109_v28 = vadd.f32 %v19108_v10, %v19107_v30  ;;  %12758 = vmatmul.mubr.bf16.gmra.mrb[4].mxu0 %v24920_v43  ;;  %v24991_v56 = vld [vmem:[#allocation3 + $0xa40] ss:$208 sps:$4 sm:$0xff]   ;;  %v22325_v30 = vld [vmem:[#allocation6 + $0x1a58] ss:$12 sps:$4 sm:$0xff]  }
 0x496   :  { %15470 = vmatmul.mubr.bf16.gmra.mrb[20].mxu1 %v24977_v42  ;;  %12833 = vmatpush1.bf16.msra.mxu0 %v22283_v9  ;;  %v25021_v9 = vld [vmem:[#allocation3 + $0x22c] ss:$208 sps:$4 sm:$0xff]   ;;  %v22333_v10 = vld [vmem:[#allocation6 + $0x1a74] ss:$12 sps:$4 sm:$0xff]  }
 0x497   :  { %v24987_v50 = vadd.f32 %v19109_v28, %v24875_v41  ;;  %12834 = vmatprep.subr.bf16.mxu0 %v22290_v39  ;;  %12767 = vmatprep.mubr.bf16.mxu0 %v24923_v51  ;;  %v22366_v54 = vld [vmem:[#allocation6 + $0x1be0] ss:$12 sps:$4 sm:$0xff]  }
 0x498   :  { %15477 = vmatprep.mubr.bf16.mxu1 %v24979_v57 }
 0x499   :  { %v19110_v38 = vpop.f32.mrb[172].mxu1 }
 0x49a   :  { %v19111_v58 = vpop.f32.mrb[173].mxu1  ;;  %12835 = vmatpush1.bf16.msra.mxu0 %v22288_v19  ;;  %v22374_v19 = vld [vmem:[#allocation6 + $0x1bf8] ss:$12 sps:$4 sm:$0xff]  }
 0x49b   :  { %v19112_v43 = vadd.f32 %v19111_v58, %v19110_v38  ;;  %v19113_v11 = vpop.f32.mrb[174].mxu1  ;;  %12836 = vmatprep.subr.bf16.mxu0 %v22298_v5  ;;  %v25033_v5 = vld [vmem:[#allocation3 + $0x228] ss:$208 sps:$4 sm:$0xff]   ;;  %v22331_v38 = vld [vmem:[#allocation6 + $0x1a70] ss:$12 sps:$4 sm:$0xff]  }
 0x49c   :  { %v19114_v3 = vpop.f32.mrb[175].mxu1 }
 0x49d   :  { %v24996_v41 = vadd.f32 %v19112_v43, %v24884_v60  ;;  %v19115_v51 = vadd.f32 %v19114_v3, %v19113_v11  ;;  %12768 = vmatmul.mubr.bf16.gmra.mrb[8].mxu0 %v24934_v34  ;;  %v25005_v60 = vld [vmem:[#allocation3 + $0xbe0] ss:$208 sps:$4 sm:$0xff]   ;;  %v25035_v11 = vld [vmem:[#allocation3 + $0x3cc] ss:$208 sps:$4 sm:$0xff]  }
 0x49e   :  { %15478 = vmatmul.mubr.bf16.gmra.mrb[24].mxu1 %v24991_v56  ;;  %12837 = vmatpush1.bf16.msra.mxu0 %v22296_v18 }
 0x49f   :  { %v25001_v31 = vadd.f32 %v19115_v51, %v24889_v29  ;;  %12838 = vmatprep.subr.bf16.mxu0 %v22303_v33  ;;  %12777 = vmatprep.mubr.bf16.mxu0 %v24937_v4  ;;  %v22379_v51 = vld [vmem:[#allocation6 + $0x1c10] ss:$12 sps:$4 sm:$0xff]  }
 0x4a0   :  { %15485 = vmatprep.mubr.bf16.mxu1 %v24993_v7 }
 0x4a1   :  { %v19116_v0 = vpop.f32.mrb[176].mxu1 }
 0x4a2   :  { %v19117_v37 = vpop.f32.mrb[177].mxu1  ;;  %12839 = vmatpush1.bf16.msra.mxu0 %v22301_v61  ;;  %v22334_v61 = vld [vmem:[#allocation6 + $0x1a88] ss:$12 sps:$4 sm:$0xff]  }
 0x4a3   :  { %v19118_v34 = vadd.f32 %v19117_v37, %v19116_v0  ;;  %v19119_v55 = vpop.f32.mrb[178].mxu1  ;;  %12840 = vmatprep.subr.bf16.mxu0 %v22311_v20  ;;  %v22342_v0 = vld [vmem:[#allocation6 + $0x1aa4] ss:$12 sps:$4 sm:$0xff]  }
 0x4a4   :  { %v19120_v52 = vpop.f32.mrb[179].mxu1 }
 0x4a5   :  { %v25010_v29 = vadd.f32 %v19118_v34, %v24898_v35  ;;  %v19121_v4 = vadd.f32 %v19120_v52, %v19119_v55  ;;  %12778 = vmatmul.mubr.bf16.gmra.mrb[12].mxu0 %v24948_v47  ;;  %v25019_v35 = vld [vmem:[#allocation3 + $0x88] ss:$208 sps:$4 sm:$0xff]   ;;  %v22340_v55 = vld [vmem:[#allocation6 + $0x1aa0] ss:$12 sps:$4 sm:$0xff]  }
 0x4a6   :  { %15486 = vmatmul.mubr.bf16.gmra.mrb[28].mxu1 %v25005_v60  ;;  %12841 = vmatpush1.bf16.msra.mxu0 %v22309_v21  ;;  %v25047_v34 = vld [vmem:[#allocation3 + $0x3c8] ss:$208 sps:$4 sm:$0xff]  }
 0x4a7   :  { %v25015_v63 = vadd.f32 %v19121_v4, %v24903_v15  ;;  %12842 = vmatprep.subr.bf16.mxu0 %v22316_v1  ;;  %12787 = vmatprep.mubr.bf16.mxu0 %v24951_v27  ;;  %v22362_v15 = vld [vmem:[#allocation6 + $0x1b08] ss:$12 sps:$4 sm:$0xff]  }
 0x4a8   :  { %15526 = vmatprep.mubr.bf16.mxu1 %v25007_v23 }
 0x4a9   :  { %v19122_v2 = vpop.f32.mrb[180].mxu1 }
 0x4aa   :  { %v19123_v62 = vpop.f32.mrb[181].mxu1  ;;  %12843 = vmatpush1.bf16.msra.mxu0 %v22314_v53  ;;  %v25049_v53 = vld [vmem:[#allocation3 + $0x56c] ss:$208 sps:$4 sm:$0xff]  }
 0x4ab   :  { %v19124_v47 = vadd.f32 %v19123_v62, %v19122_v2  ;;  %v19125_v26 = vpop.f32.mrb[182].mxu1  ;;  %12844 = vmatprep.subr.bf16.mxu0 %v22324_v14  ;;  %v22392_v62 = vld [vmem:[#allocation6 + $0x1c40] ss:$12 sps:$4 sm:$0xff]  }
 0x4ac   :  { %v19126_v8 = vpop.f32.mrb[183].mxu1 }
 0x4ad   :  { %v25024_v12 = vadd.f32 %v19124_v47, %v24912_v25  ;;  %v19127_v27 = vadd.f32 %v19126_v8, %v19125_v26  ;;  %12788 = vmatmul.mubr.bf16.gmra.mrb[16].mxu0 %v24962_v40  ;;  %v22367_v25 = vld [vmem:[#allocation6 + $0x1b20] ss:$12 sps:$4 sm:$0xff]  }
 0x4ae   :  { %15527 = vmatmul.mubr.bf16.vlgmr.msra.gmra.mrb[32].mxu1 %v25019_v35  ;;  %12845 = vmatpush1.bf16.msra.mxu0 %v22322_v48  ;;  %v22343_v48 = vld [vmem:[#allocation6 + $0x1ab8] ss:$12 sps:$4 sm:$0xff]   ;;  %v22351_v26 = vld [vmem:[#allocation6 + $0x1ad4] ss:$12 sps:$4 sm:$0xff]  }
 0x4af   :  { %v25029_v39 = vadd.f32 %v19127_v27, %v24917_v24  ;;  %12846 = vmatprep.subr.bf16.mxu0 %v22327_v44  ;;  %12797 = vmatprep.mubr.bf16.mxu0 %v24965_v32  ;;  %v22336_v24 = vld [vmem:[#allocation6 + $0x1a8c] ss:$12 sps:$4 sm:$0xff]   ;;  %v22349_v27 = vld [vmem:[#allocation6 + $0x1ad0] ss:$12 sps:$4 sm:$0xff]  }
 0x4b0   :  { %15534 = vmatprep.mubr.bf16.mxu1 %v25021_v9  ;;  %19397 = vmatpush3.bf16.msra.mxu1 %v22362_v15  ;;  %v22375_v32 = vld [vmem:[#allocation6 + $0x1b38] ss:$12 sps:$4 sm:$0xff]  }
 0x4b1   :  { %v19128_v28 = vpop.f32.mrb[184].mxu1  ;;  %19398 = vmatprep.subr.bf16.mxu1 %v22366_v54  ;;  %v25061_v15 = vld [vmem:[#allocation3 + $0x568] ss:$208 sps:$4 sm:$0xff]  }
 0x4b2   :  { %v19129_v40 = vpop.f32.mrb[185].mxu1  ;;  %12847 = vmatpush1.bf16.msra.mxu0 %v22325_v30 }
 0x4b3   :  { %v19130_v58 = vadd.f32 %v19129_v40, %v19128_v28  ;;  %v19131_v18 = vpop.f32.mrb[186].mxu1  ;;  %12848 = vmatprep.subr.bf16.mxu0 %v22333_v10  ;;  %v22405_v40 = vld [vmem:[#allocation6 + $0x1c70] ss:$12 sps:$4 sm:$0xff]  }
 0x4b4   :  { %v19132_v43 = vpop.f32.mrb[187].mxu1  ;;  %19399 = vmatpush3.bf16.msra.mxu1 %v22367_v25  ;;  %v25063_v25 = vld [vmem:[#allocation3 + $0x70c] ss:$208 sps:$4 sm:$0xff]  }
 0x4b5   :  { %v25038_v33 = vadd.f32 %v19130_v58, %v24926_v49  ;;  %v19133_v3 = vadd.f32 %v19132_v43, %v19131_v18  ;;  %12798 = vmatmul.mubr.bf16.gmra.mrb[20].mxu0 %v24977_v42  ;;  %19400 = vmatprep.subr.bf16.mxu1 %v22374_v19  ;;  %v22380_v49 = vld [vmem:[#allocation6 + $0x1b50] ss:$12 sps:$4 sm:$0xff]   ;;  %v22387_v42 = vld [vmem:[#allocation6 + $0x1c28] ss:$12 sps:$4 sm:$0xff]  }
 0x4b6   :  { %15535 = vmatmul.mubr.bf16.gmra.mrb[36].mxu1 %v25033_v5  ;;  %12849 = vmatpush1.bf16.msra.mxu0 %v22331_v38  ;;  %v22352_v38 = vld [vmem:[#allocation6 + $0x1ae8] ss:$12 sps:$4 sm:$0xff]   ;;  %v22360_v18 = vld [vmem:[#allocation6 + $0x1b04] ss:$12 sps:$4 sm:$0xff]  }
 0x4b7   :  { %v25043_v20 = vadd.f32 %v19133_v3, %v24931_v22  ;;  %12850 = vmatprep.subr.bf16.mxu0 %v22336_v24  ;;  %12807 = vmatprep.mubr.bf16.mxu0 %v24979_v57  ;;  %v22345_v22 = vld [vmem:[#allocation6 + $0x1abc] ss:$12 sps:$4 sm:$0xff]   ;;  %v22358_v3 = vld [vmem:[#allocation6 + $0x1b00] ss:$12 sps:$4 sm:$0xff]  }
 0x4b8   :  { %15542 = vmatprep.mubr.bf16.mxu1 %v25035_v11  ;;  %19401 = vmatpush3.bf16.msra.mxu1 %v22375_v32  ;;  %v22388_v57 = vld [vmem:[#allocation6 + $0x1b68] ss:$12 sps:$4 sm:$0xff]  }
 0x4b9   :  { %v19134_v37 = vpop.f32.mrb[188].mxu1  ;;  %19402 = vmatprep.subr.bf16.mxu1 %v22379_v51  ;;  %v25075_v32 = vld [vmem:[#allocation3 + $0x708] ss:$208 sps:$4 sm:$0xff]  }
 0x4ba   :  { %v19135_v21 = vpop.f32.mrb[189].mxu1  ;;  %12851 = vmatpush1.bf16.msra.mxu0 %v22334_v61 }
 0x4bb   :  { %v19136_v1 = vadd.f32 %v19135_v21, %v19134_v37  ;;  %v19137_v52 = vpop.f32.mrb[190].mxu1  ;;  %12852 = vmatprep.subr.bf16.mxu0 %v22342_v0 }
 0x4bc   :  { %v19138_v4 = vpop.f32.mrb[191].mxu1  ;;  %19403 = vmatpush3.bf16.msra.mxu1 %v22380_v49  ;;  %v25077_v49 = vld [vmem:[#allocation3 + $0x8ac] ss:$208 sps:$4 sm:$0xff]  }
 0x4bd   :  { %v25052_v14 = vadd.f32 %v19136_v1, %v24940_v6  ;;  %v19139_v2 = vadd.f32 %v19138_v4, %v19137_v52  ;;  %12808 = vmatmul.mubr.bf16.gmra.mrb[24].mxu0 %v24991_v56  ;;  %19404 = vmatprep.subr.bf16.mxu1 %v22387_v42  ;;  %v22393_v6 = vld [vmem:[#allocation6 + $0x1b80] ss:$12 sps:$4 sm:$0xff]   ;;  %v22400_v56 = vld [vmem:[#allocation6 + $0x1c58] ss:$12 sps:$4 sm:$0xff]  }
 0x4be   :  { %15543 = vmatmul.mubr.bf16.gmra.mrb[40].mxu1 %v25047_v34  ;;  %12853 = vmatpush1.bf16.msra.mxu0 %v22340_v55  ;;  %v22363_v42 = vld [vmem:[#allocation6 + $0x1b18] ss:$12 sps:$4 sm:$0xff]   ;;  %v22373_v55 = vld [vmem:[#allocation6 + $0x1b34] ss:$12 sps:$4 sm:$0xff]  }
 0x4bf   :  { %v25057_v47 = vadd.f32 %v19139_v2, %v24945_v13  ;;  %12854 = vmatprep.subr.bf16.mxu0 %v22345_v22  ;;  %12817 = vmatprep.mubr.bf16.mxu0 %v24993_v7  ;;  %v22354_v13 = vld [vmem:[#allocation6 + $0x1aec] ss:$12 sps:$4 sm:$0xff]  }
 0x4c0   :  { %15550 = vmatprep.mubr.bf16.mxu1 %v25049_v53  ;;  %19405 = vmatpush3.bf16.msra.mxu1 %v22388_v57  ;;  %v22401_v7 = vld [vmem:[#allocation6 + $0x1b98] ss:$12 sps:$4 sm:$0xff]  }
 0x4c1   :  { %v19156_v44 = vpop.f32.mrb[192].mxu1  ;;  %19406 = vmatprep.subr.bf16.mxu1 %v22392_v62  ;;  %v25089_v52 = vld [vmem:[#allocation3 + $0x8a8] ss:$208 sps:$4 sm:$0xff]   ;;  %v25091_v62 = vld [vmem:[#allocation3 + $0xa4c] ss:$208 sps:$4 sm:$0xff]  }
 0x4c2   :  { %v19157_v8 = vpop.f32.mrb[193].mxu1  ;;  %12855 = vmatpush1.bf16.msra.mxu0 %v22343_v48  ;;  %v22378_v57 = vld [vmem:[#allocation6 + $0x1b4c] ss:$12 sps:$4 sm:$0xff]   ;;  %v22376_v48 = vld [vmem:[#allocation6 + $0x1b48] ss:$12 sps:$4 sm:$0xff]  }
 0x4c3   :  { %v19158_v54 = vadd.f32 %v19157_v8, %v19156_v44  ;;  %v19159_v30 = vpop.f32.mrb[194].mxu1  ;;  %12856 = vmatprep.subr.bf16.mxu0 %v22351_v26  ;;  %v22384_v8 = vld [vmem:[#allocation6 + $0x1b60] ss:$12 sps:$4 sm:$0xff]  }
 0x4c4   :  { %v19160_v10 = vpop.f32.mrb[195].mxu1  ;;  %19407 = vmatpush3.bf16.msra.mxu1 %v22393_v6  ;;  %v22386_v6 = vld [vmem:[#allocation6 + $0x1b64] ss:$12 sps:$4 sm:$0xff]  }
 0x4c5   :  { %v25066_v28 = vadd.f32 %v19158_v54, %v24954_v16  ;;  %v19161_v19 = vadd.f32 %v19160_v10, %v19159_v30  ;;  %12818 = vmatmul.mubr.bf16.gmra.mrb[28].mxu0 %v25005_v60  ;;  %19408 = vmatprep.subr.bf16.mxu1 %v22400_v56  ;;  %v22406_v16 = vld [vmem:[#allocation6 + $0x1bb0] ss:$12 sps:$4 sm:$0xff]   ;;  %v22449_v60 = vld [vmem:[#allocation6 + $0x1d48] ss:$12 sps:$4 sm:$0xff]   ;;  %v22389_v10 = vld [vmem:[#allocation6 + $0x1b78] ss:$12 sps:$4 sm:$0xff]  }
 0x4c6   :  { %15551 = vmatmul.mubr.bf16.gmra.mrb[44].mxu1 %v25061_v15  ;;  %12857 = vmatpush1.bf16.msra.mxu0 %v22349_v27  ;;  %v22391_v54 = vld [vmem:[#allocation6 + $0x1b7c] ss:$12 sps:$4 sm:$0xff]  }
 0x4c7   :  { %v25071_v58 = vadd.f32 %v19161_v19, %v24959_v46  ;;  %12858 = vmatprep.subr.bf16.mxu0 %v22354_v13  ;;  %12860 = vmatprep.mubr.bf16.mxu0 %v25007_v23  ;;  %v22365_v46 = vld [vmem:[#allocation6 + $0x1b1c] ss:$12 sps:$4 sm:$0xff]   ;;  %v22399_v19 = vld [vmem:[#allocation6 + $0x1b94] ss:$12 sps:$4 sm:$0xff]  }
 0x4c8   :  { %15558 = vmatprep.mubr.bf16.mxu1 %v25063_v25  ;;  %19409 = vmatpush3.bf16.msra.mxu1 %v22401_v7  ;;  %v25105_v13 = vld [vmem:[#allocation3 + $0xbec] ss:$208 sps:$4 sm:$0xff]  }
 0x4c9   :  { %v19162_v24 = vpop.f32.mrb[196].mxu1  ;;  %19410 = vmatprep.subr.bf16.mxu1 %v22405_v40 }
 0x4ca   :  { %v19163_v43 = vpop.f32.mrb[197].mxu1  ;;  %12859 = vmatpush1.bf16.msra.mxu0 %v22352_v38 }
 0x4cb   :  { %v19164_v51 = vadd.f32 %v19163_v43, %v19162_v24  ;;  %v19165_v61 = vpop.f32.mrb[198].mxu1  ;;  %12941 = vmatprep.subr.bf16.mxu0 %v22360_v18  ;;  %v22397_v18 = vld [vmem:[#allocation6 + $0x1b90] ss:$12 sps:$4 sm:$0xff]   ;;  %v22404_v24 = vld [vmem:[#allocation6 + $0x1bac] ss:$12 sps:$4 sm:$0xff]  }
 0x4cc   :  { %v19166_v0 = vpop.f32.mrb[199].mxu1  ;;  %19411 = vmatpush3.bf16.msra.mxu1 %v22406_v16  ;;  %v25119_v43 = vld [vmem:[#allocation3 + $0x94] ss:$208 sps:$4 sm:$0xff]  }
 0x4cd   :  { %v25080_v23 = vadd.f32 %v19164_v51, %v24968_v45  ;;  %v19167_v37 = vadd.f32 %v19166_v0, %v19165_v61  ;;  %12861 = vmatmul.mubr.bf16.vlgmr.msra.gmra.mrb[0].mxu0 %v25019_v35  ;;  %19460 = vmatprep.subr.bf16.mxu1 %v22449_v60  ;;  %v22371_v35 = vld [vmem:[#allocation6 + $0x1b30] ss:$12 sps:$4 sm:$0xff]  }
 0x4ce   :  { %15559 = vmatmul.mubr.bf16.gmra.mrb[48].mxu1 %v25075_v32  ;;  %12942 = vmatpush1.bf16.msra.mxu0 %v22358_v3  ;;  %v22402_v3 = vld [vmem:[#allocation6 + $0x1ba8] ss:$12 sps:$4 sm:$0xff]   ;;  %v22412_v61 = vld [vmem:[#allocation6 + $0x1bc4] ss:$12 sps:$4 sm:$0xff]  }
 0x4cf   :  { %v25085_v21 = vadd.f32 %v19167_v37, %v24973_v36  ;;  %12943 = vmatprep.subr.bf16.mxu0 %v22365_v46  ;;  %12870 = vmatprep.mubr.bf16.mxu0 %v25021_v9  ;;  %v22410_v37 = vld [vmem:[#allocation6 + $0x1bc0] ss:$12 sps:$4 sm:$0xff]  }
 0x4d0   :  { %15566 = vmatprep.mubr.bf16.mxu1 %v25077_v49 }
 0x4d1   :  { %v19168_v1 = vpop.f32.mrb[200].mxu1 }
 0x4d2   :  { %v19169_v45 = vpop.f32.mrb[201].mxu1  ;;  %12944 = vmatpush1.bf16.msra.mxu0 %v22363_v42 }
 0x4d3   :  { %v19170_v22 = vadd.f32 %v19169_v45, %v19168_v1  ;;  %v19171_v4 = vpop.f32.mrb[202].mxu1  ;;  %12945 = vmatprep.subr.bf16.mxu0 %v22373_v55  ;;  %v22415_v55 = vld [vmem:[#allocation6 + $0x1bdc] ss:$12 sps:$4 sm:$0xff]   ;;  %v25133_v45 = vld [vmem:[#allocation3 + $0x234] ss:$208 sps:$4 sm:$0xff]  }
 0x4d4   :  { %v19172_v2 = vpop.f32.mrb[203].mxu1 }
 0x4d5   :  { %v25094_v36 = vadd.f32 %v19170_v22, %v24982_v59  ;;  %v19173_v9 = vadd.f32 %v19172_v2, %v19171_v4  ;;  %12871 = vmatmul.mubr.bf16.gmra.mrb[4].mxu0 %v25033_v5  ;;  %v25103_v59 = vld [vmem:[#allocation3 + $0xa48] ss:$208 sps:$4 sm:$0xff]   ;;  %v22454_v22 = vld [vmem:[#allocation6 + $0x1d60] ss:$12 sps:$4 sm:$0xff]  }
 0x4d6   :  { %15567 = vmatmul.mubr.bf16.gmra.mrb[52].mxu1 %v25089_v52  ;;  %12946 = vmatpush1.bf16.msra.mxu0 %v22371_v35  ;;  %v22413_v4 = vld [vmem:[#allocation6 + $0x1bd8] ss:$12 sps:$4 sm:$0xff]   ;;  %v22421_v2 = vld [vmem:[#allocation6 + $0x1bf4] ss:$12 sps:$4 sm:$0xff]  }
 0x4d7   :  { %v25099_v26 = vadd.f32 %v19173_v9, %v24987_v50  ;;  %12947 = vmatprep.subr.bf16.mxu0 %v22378_v57  ;;  %12880 = vmatprep.mubr.bf16.mxu0 %v25035_v11 }
 0x4d8   :  { %15574 = vmatprep.mubr.bf16.mxu1 %v25091_v62 }
 0x4d9   :  { %v19174_v44 = vpop.f32.mrb[204].mxu1 }
 0x4da   :  { %v19175_v56 = vpop.f32.mrb[205].mxu1  ;;  %12948 = vmatpush1.bf16.msra.mxu0 %v22376_v48  ;;  %v22462_v48 = vld [vmem:[#allocation6 + $0x1d78] ss:$12 sps:$4 sm:$0xff]  }
 0x4db   :  { %v19176_v5 = vadd.f32 %v19175_v56, %v19174_v44  ;;  %v19177_v27 = vpop.f32.mrb[206].mxu1  ;;  %12949 = vmatprep.subr.bf16.mxu0 %v22386_v6  ;;  %v25145_v6 = vld [vmem:[#allocation3 + $0x230] ss:$208 sps:$4 sm:$0xff]  }
 0x4dc   :  { %v19178_v30 = vpop.f32.mrb[207].mxu1  ;;  %v22419_v44 = vld [vmem:[#allocation6 + $0x1bf0] ss:$12 sps:$4 sm:$0xff]  }
 0x4dd   :  { %v25108_v50 = vadd.f32 %v19176_v5, %v24996_v41  ;;  %v19179_v11 = vadd.f32 %v19178_v30, %v19177_v27  ;;  %12881 = vmatmul.mubr.bf16.gmra.mrb[8].mxu0 %v25047_v34  ;;  %v25117_v41 = vld [vmem:[#allocation3 + $0xbe8] ss:$208 sps:$4 sm:$0xff]   ;;  %v25147_v27 = vld [vmem:[#allocation3 + $0x3d4] ss:$208 sps:$4 sm:$0xff]  }
 0x4de   :  { %15575 = vmatmul.mubr.bf16.gmra.mrb[56].mxu1 %v25103_v59  ;;  %12950 = vmatpush1.bf16.msra.mxu0 %v22384_v8 }
 0x4df   :  { %v25113_v7 = vadd.f32 %v19179_v11, %v25001_v31  ;;  %12951 = vmatprep.subr.bf16.mxu0 %v22391_v54  ;;  %12890 = vmatprep.mubr.bf16.mxu0 %v25049_v53  ;;  %v22467_v11 = vld [vmem:[#allocation6 + $0x1d90] ss:$12 sps:$4 sm:$0xff]  }
 0x4e0   :  { %15582 = vmatprep.mubr.bf16.mxu1 %v25105_v13 }
 0x4e1   :  { %v19180_v40 = vpop.f32.mrb[208].mxu1 }
 0x4e2   :  { %v19181_v38 = vpop.f32.mrb[209].mxu1  ;;  %12952 = vmatpush1.bf16.msra.mxu0 %v22389_v10  ;;  %v22422_v10 = vld [vmem:[#allocation6 + $0x1c08] ss:$12 sps:$4 sm:$0xff]  }
 0x4e3   :  { %v19182_v34 = vadd.f32 %v19181_v38, %v19180_v40  ;;  %v19183_v16 = vpop.f32.mrb[210].mxu1  ;;  %12953 = vmatprep.subr.bf16.mxu0 %v22399_v19  ;;  %v22430_v40 = vld [vmem:[#allocation6 + $0x1c24] ss:$12 sps:$4 sm:$0xff]  }
 0x4e4   :  { %v19184_v60 = vpop.f32.mrb[211].mxu1 }
 0x4e5   :  { %v25122_v31 = vadd.f32 %v19182_v34, %v25010_v29  ;;  %v19185_v53 = vadd.f32 %v19184_v60, %v19183_v16  ;;  %12891 = vmatmul.mubr.bf16.gmra.mrb[12].mxu0 %v25061_v15  ;;  %v25131_v29 = vld [vmem:[#allocation3 + $0x90] ss:$208 sps:$4 sm:$0xff]  }
 0x4e6   :  { %15583 = vmatmul.mubr.bf16.gmra.mrb[60].mxu1 %v25117_v41  ;;  %12954 = vmatpush1.bf16.msra.mxu0 %v22397_v18  ;;  %v25159_v34 = vld [vmem:[#allocation3 + $0x3d0] ss:$208 sps:$4 sm:$0xff]  }
 0x4e7   :  { %v25127_v51 = vadd.f32 %v19185_v53, %v25015_v63  ;;  %12955 = vmatprep.subr.bf16.mxu0 %v22404_v24  ;;  %12900 = vmatprep.mubr.bf16.mxu0 %v25063_v25  ;;  %v22450_v63 = vld [vmem:[#allocation6 + $0x1c88] ss:$12 sps:$4 sm:$0xff]   ;;  %v22428_v16 = vld [vmem:[#allocation6 + $0x1c20] ss:$12 sps:$4 sm:$0xff]  }
 0x4e8   :  { %15623 = vmatprep.mubr.bf16.mxu1 %v25119_v43 }
 0x4e9   :  { %v19186_v46 = vpop.f32.mrb[212].mxu1 }
 0x4ea   :  { %v19187_v0 = vpop.f32.mrb[213].mxu1  ;;  %12956 = vmatpush1.bf16.msra.mxu0 %v22402_v3  ;;  %v25161_v3 = vld [vmem:[#allocation3 + $0x574] ss:$208 sps:$4 sm:$0xff]  }
 0x4eb   :  { %v19188_v15 = vadd.f32 %v19187_v0, %v19186_v46  ;;  %v19189_v42 = vpop.f32.mrb[214].mxu1  ;;  %12957 = vmatprep.subr.bf16.mxu0 %v22412_v61  ;;  %v22480_v0 = vld [vmem:[#allocation6 + $0x1dc0] ss:$12 sps:$4 sm:$0xff]  }
 0x4ec   :  { %v19190_v1 = vpop.f32.mrb[215].mxu1 }
 0x4ed   :  { %v25136_v35 = vadd.f32 %v19188_v15, %v25024_v12  ;;  %v19191_v25 = vadd.f32 %v19190_v1, %v19189_v42  ;;  %12901 = vmatmul.mubr.bf16.gmra.mrb[16].mxu0 %v25075_v32  ;;  %v22455_v12 = vld [vmem:[#allocation6 + $0x1ca0] ss:$12 sps:$4 sm:$0xff]  }
 0x4ee   :  { %15624 = vmatmul.mubr.bf16.vlgmr.msra.gmra.mrb[64].mxu1 %v25131_v29  ;;  %12958 = vmatpush1.bf16.msra.mxu0 %v22410_v37  ;;  %v22431_v37 = vld [vmem:[#allocation6 + $0x1c38] ss:$12 sps:$4 sm:$0xff]   ;;  %v22439_v42 = vld [vmem:[#allocation6 + $0x1c54] ss:$12 sps:$4 sm:$0xff]  }
 0x4ef   :  { %v25141_v57 = vadd.f32 %v19191_v25, %v25029_v39  ;;  %12959 = vmatprep.subr.bf16.mxu0 %v22415_v55  ;;  %12910 = vmatprep.mubr.bf16.mxu0 %v25077_v49  ;;  %v22424_v39 = vld [vmem:[#allocation6 + $0x1c0c] ss:$12 sps:$4 sm:$0xff]   ;;  %v22437_v25 = vld [vmem:[#allocation6 + $0x1c50] ss:$12 sps:$4 sm:$0xff]  }
 0x4f0   :  { %15631 = vmatprep.mubr.bf16.mxu1 %v25133_v45  ;;  %19461 = vmatpush3.bf16.msra.mxu1 %v22450_v63  ;;  %v22463_v49 = vld [vmem:[#allocation6 + $0x1cb8] ss:$12 sps:$4 sm:$0xff]   ;;  %v25173_v63 = vld [vmem:[#allocation3 + $0x570] ss:$208 sps:$4 sm:$0xff]  }
 0x4f1   :  { %v19192_v9 = vpop.f32.mrb[216].mxu1  ;;  %19462 = vmatprep.subr.bf16.mxu1 %v22454_v22 }
 0x4f2   :  { %v19193_v32 = vpop.f32.mrb[217].mxu1  ;;  %12960 = vmatpush1.bf16.msra.mxu0 %v22413_v4 }
 0x4f3   :  { %v19194_v56 = vadd.f32 %v19193_v32, %v19192_v9  ;;  %v19195_v8 = vpop.f32.mrb[218].mxu1  ;;  %12961 = vmatprep.subr.bf16.mxu0 %v22421_v2  ;;  %v22493_v32 = vld [vmem:[#allocation6 + $0x1df0] ss:$12 sps:$4 sm:$0xff]  }
 0x4f4   :  { %v19196_v5 = vpop.f32.mrb[219].mxu1  ;;  %19463 = vmatpush3.bf16.msra.mxu1 %v22455_v12  ;;  %v25175_v12 = vld [vmem:[#allocation3 + $0x714] ss:$208 sps:$4 sm:$0xff]  }
 0x4f5   :  { %v25150_v54 = vadd.f32 %v19194_v56, %v25038_v33  ;;  %v19197_v30 = vadd.f32 %v19196_v5, %v19195_v8  ;;  %12911 = vmatmul.mubr.bf16.gmra.mrb[20].mxu0 %v25089_v52  ;;  %19464 = vmatprep.subr.bf16.mxu1 %v22462_v48  ;;  %v22468_v33 = vld [vmem:[#allocation6 + $0x1cd0] ss:$12 sps:$4 sm:$0xff]   ;;  %v22475_v52 = vld [vmem:[#allocation6 + $0x1da8] ss:$12 sps:$4 sm:$0xff]  }
 0x4f6   :  { %15632 = vmatmul.mubr.bf16.gmra.mrb[68].mxu1 %v25145_v6  ;;  %12962 = vmatpush1.bf16.msra.mxu0 %v22419_v44  ;;  %v22440_v44 = vld [vmem:[#allocation6 + $0x1c68] ss:$12 sps:$4 sm:$0xff]   ;;  %v22448_v8 = vld [vmem:[#allocation6 + $0x1c84] ss:$12 sps:$4 sm:$0xff]  }
 0x4f7   :  { %v25155_v19 = vadd.f32 %v19197_v30, %v25043_v20  ;;  %12963 = vmatprep.subr.bf16.mxu0 %v22424_v39  ;;  %12920 = vmatprep.mubr.bf16.mxu0 %v25091_v62  ;;  %v22433_v20 = vld [vmem:[#allocation6 + $0x1c3c] ss:$12 sps:$4 sm:$0xff]   ;;  %v22446_v30 = vld [vmem:[#allocation6 + $0x1c80] ss:$12 sps:$4 sm:$0xff]  }
 0x4f8   :  { %15639 = vmatprep.mubr.bf16.mxu1 %v25147_v27  ;;  %19465 = vmatpush3.bf16.msra.mxu1 %v22463_v49  ;;  %v22476_v62 = vld [vmem:[#allocation6 + $0x1ce8] ss:$12 sps:$4 sm:$0xff]   ;;  %v25187_v49 = vld [vmem:[#allocation3 + $0x710] ss:$208 sps:$4 sm:$0xff]  }
 0x4f9   :  { %v19198_v38 = vpop.f32.mrb[220].mxu1  ;;  %19466 = vmatprep.subr.bf16.mxu1 %v22467_v11 }
 0x4fa   :  { %v19199_v18 = vpop.f32.mrb[221].mxu1  ;;  %12964 = vmatpush1.bf16.msra.mxu0 %v22422_v10 }
 0x4fb   :  { %v19200_v24 = vadd.f32 %v19199_v18, %v19198_v38  ;;  %v19201_v60 = vpop.f32.mrb[222].mxu1  ;;  %12965 = vmatprep.subr.bf16.mxu0 %v22430_v40 }
 0x4fc   :  { %v19202_v53 = vpop.f32.mrb[223].mxu1  ;;  %19467 = vmatpush3.bf16.msra.mxu1 %v22468_v33  ;;  %v25189_v33 = vld [vmem:[#allocation3 + $0x8b4] ss:$208 sps:$4 sm:$0xff]  }
 0x4fd   :  { %v25164_v61 = vadd.f32 %v19200_v24, %v25052_v14  ;;  %v19203_v46 = vadd.f32 %v19202_v53, %v19201_v60  ;;  %12921 = vmatmul.mubr.bf16.gmra.mrb[24].mxu0 %v25103_v59  ;;  %19468 = vmatprep.subr.bf16.mxu1 %v22475_v52  ;;  %v22481_v14 = vld [vmem:[#allocation6 + $0x1d00] ss:$12 sps:$4 sm:$0xff]   ;;  %v22488_v59 = vld [vmem:[#allocation6 + $0x1dd8] ss:$12 sps:$4 sm:$0xff]  }
 0x4fe   :  { %15640 = vmatmul.mubr.bf16.gmra.mrb[72].mxu1 %v25159_v34  ;;  %12966 = vmatpush1.bf16.msra.mxu0 %v22428_v16  ;;  %v22451_v52 = vld [vmem:[#allocation6 + $0x1c98] ss:$12 sps:$4 sm:$0xff]   ;;  %v22461_v16 = vld [vmem:[#allocation6 + $0x1cb4] ss:$12 sps:$4 sm:$0xff]  }
 0x4ff   :  { %v25169_v15 = vadd.f32 %v19203_v46, %v25057_v47  ;;  %12967 = vmatprep.subr.bf16.mxu0 %v22433_v20  ;;  %12930 = vmatprep.mubr.bf16.mxu0 %v25105_v13  ;;  %v22442_v47 = vld [vmem:[#allocation6 + $0x1c6c] ss:$12 sps:$4 sm:$0xff]   ;;  %v25201_v60 = vld [vmem:[#allocation3 + $0x8b0] ss:$208 sps:$4 sm:$0xff]  }
 0x500   :  { %15647 = vmatprep.mubr.bf16.mxu1 %v25161_v3  ;;  %19469 = vmatpush3.bf16.msra.mxu1 %v22476_v62  ;;  %v22489_v13 = vld [vmem:[#allocation6 + $0x1d18] ss:$12 sps:$4 sm:$0xff]  }
 0x501   :  { %v19220_v55 = vpop.f32.mrb[224].mxu1  ;;  %19470 = vmatprep.subr.bf16.mxu1 %v22480_v0  ;;  %v22466_v62 = vld [vmem:[#allocation6 + $0x1ccc] ss:$12 sps:$4 sm:$0xff]   ;;  %v25203_v0 = vld [vmem:[#allocation3 + $0xa54] ss:$208 sps:$4 sm:$0xff]  }
 0x502   :  { %v19221_v1 = vpop.f32.mrb[225].mxu1  ;;  %12968 = vmatpush1.bf16.msra.mxu0 %v22431_v37  ;;  %v22464_v37 = vld [vmem:[#allocation6 + $0x1cc8] ss:$12 sps:$4 sm:$0xff]  }
 0x503   :  { %v19222_v22 = vadd.f32 %v19221_v1, %v19220_v55  ;;  %v19223_v4 = vpop.f32.mrb[226].mxu1  ;;  %12969 = vmatprep.subr.bf16.mxu0 %v22439_v42  ;;  %v22472_v1 = vld [vmem:[#allocation6 + $0x1ce0] ss:$12 sps:$4 sm:$0xff]  }
 0x504   :  { %v19224_v2 = vpop.f32.mrb[227].mxu1  ;;  %19471 = vmatpush3.bf16.msra.mxu1 %v22481_v14  ;;  %v22474_v14 = vld [vmem:[#allocation6 + $0x1ce4] ss:$12 sps:$4 sm:$0xff]  }
 0x505   :  { %v25178_v9 = vadd.f32 %v19222_v22, %v25066_v28  ;;  %v19225_v48 = vadd.f32 %v19224_v2, %v19223_v4  ;;  %12931 = vmatmul.mubr.bf16.gmra.mrb[28].mxu0 %v25117_v41  ;;  %19472 = vmatprep.subr.bf16.mxu1 %v22488_v59  ;;  %v22494_v28 = vld [vmem:[#allocation6 + $0x1d30] ss:$12 sps:$4 sm:$0xff]   ;;  %v22537_v41 = vld [vmem:[#allocation6 + $0x1ec8] ss:$12 sps:$4 sm:$0xff]   ;;  %v22477_v2 = vld [vmem:[#allocation6 + $0x1cf8] ss:$12 sps:$4 sm:$0xff]  }
 0x506   :  { %15648 = vmatmul.mubr.bf16.gmra.mrb[76].mxu1 %v25173_v63  ;;  %12970 = vmatpush1.bf16.msra.mxu0 %v22437_v25  ;;  %v22479_v22 = vld [vmem:[#allocation6 + $0x1cfc] ss:$12 sps:$4 sm:$0xff]  }
 0x507   :  { %v25183_v56 = vadd.f32 %v19225_v48, %v25071_v58  ;;  %12971 = vmatprep.subr.bf16.mxu0 %v22442_v47  ;;  %12973 = vmatprep.mubr.bf16.mxu0 %v25119_v43  ;;  %v22453_v58 = vld [vmem:[#allocation6 + $0x1c9c] ss:$12 sps:$4 sm:$0xff]   ;;  %v25217_v47 = vld [vmem:[#allocation3 + $0xbf4] ss:$208 sps:$4 sm:$0xff]  }
 0x508   :  { %15655 = vmatprep.mubr.bf16.mxu1 %v25175_v12  ;;  %19473 = vmatpush3.bf16.msra.mxu1 %v22489_v13  ;;  %v22487_v48 = vld [vmem:[#allocation6 + $0x1d14] ss:$12 sps:$4 sm:$0xff]  }
 0x509   :  { %v19226_v39 = vpop.f32.mrb[228].mxu1  ;;  %19474 = vmatprep.subr.bf16.mxu1 %v22493_v32 }
 0x50a   :  { %v19227_v5 = vpop.f32.mrb[229].mxu1  ;;  %12972 = vmatpush1.bf16.msra.mxu0 %v22440_v44 }
 0x50b   :  { %v19228_v11 = vadd.f32 %v19227_v5, %v19226_v39  ;;  %v19229_v10 = vpop.f32.mrb[230].mxu1  ;;  %13054 = vmatprep.subr.bf16.mxu0 %v22448_v8  ;;  %v22485_v8 = vld [vmem:[#allocation6 + $0x1d10] ss:$12 sps:$4 sm:$0xff]   ;;  %v22492_v39 = vld [vmem:[#allocation6 + $0x1d2c] ss:$12 sps:$4 sm:$0xff]  }
 0x50c   :  { %v19230_v40 = vpop.f32.mrb[231].mxu1  ;;  %19475 = vmatpush3.bf16.msra.mxu1 %v22494_v28  ;;  %v25231_v5 = vld [vmem:[#allocation3 + $0x9c] ss:$208 sps:$4 sm:$0xff]  }
 0x50d   :  { %v25192_v43 = vadd.f32 %v19228_v11, %v25080_v23  ;;  %v19231_v38 = vadd.f32 %v19230_v40, %v19229_v10  ;;  %12974 = vmatmul.mubr.bf16.vlgmr.msra.gmra.mrb[0].mxu0 %v25131_v29  ;;  %19524 = vmatprep.subr.bf16.mxu1 %v22537_v41  ;;  %v22459_v29 = vld [vmem:[#allocation6 + $0x1cb0] ss:$12 sps:$4 sm:$0xff]  }
 0x50e   :  { %15656 = vmatmul.mubr.bf16.gmra.mrb[80].mxu1 %v25187_v49  ;;  %13055 = vmatpush1.bf16.msra.mxu0 %v22446_v30  ;;  %v22490_v30 = vld [vmem:[#allocation6 + $0x1d28] ss:$12 sps:$4 sm:$0xff]   ;;  %v22500_v10 = vld [vmem:[#allocation6 + $0x1d44] ss:$12 sps:$4 sm:$0xff]  }
 0x50f   :  { %v25197_v18 = vadd.f32 %v19231_v38, %v25085_v21  ;;  %13056 = vmatprep.subr.bf16.mxu0 %v22453_v58  ;;  %12983 = vmatprep.mubr.bf16.mxu0 %v25133_v45  ;;  %v22498_v38 = vld [vmem:[#allocation6 + $0x1d40] ss:$12 sps:$4 sm:$0xff]  }
 0x510   :  { %15663 = vmatprep.mubr.bf16.mxu1 %v25189_v33 }
 0x511   :  { %v19232_v24 = vpop.f32.mrb[232].mxu1 }
 0x512   :  { %v19233_v23 = vpop.f32.mrb[233].mxu1  ;;  %13057 = vmatpush1.bf16.msra.mxu0 %v22451_v52 }
 0x513   :  { %v19234_v20 = vadd.f32 %v19233_v23, %v19232_v24  ;;  %v19235_v53 = vpop.f32.mrb[234].mxu1  ;;  %13058 = vmatprep.subr.bf16.mxu0 %v22461_v16  ;;  %v22503_v16 = vld [vmem:[#allocation6 + $0x1d5c] ss:$12 sps:$4 sm:$0xff]  }
 0x514   :  { %v19236_v46 = vpop.f32.mrb[235].mxu1  ;;  %v25245_v23 = vld [vmem:[#allocation3 + $0x23c] ss:$208 sps:$4 sm:$0xff]  }
 0x515   :  { %v25206_v21 = vadd.f32 %v19234_v20, %v25094_v36  ;;  %v19237_v45 = vadd.f32 %v19236_v46, %v19235_v53  ;;  %12984 = vmatmul.mubr.bf16.gmra.mrb[4].mxu0 %v25145_v6  ;;  %v25215_v36 = vld [vmem:[#allocation3 + $0xa50] ss:$208 sps:$4 sm:$0xff]   ;;  %v22501_v53 = vld [vmem:[#allocation6 + $0x1d58] ss:$12 sps:$4 sm:$0xff]  }
 0x516   :  { %15664 = vmatmul.mubr.bf16.gmra.mrb[84].mxu1 %v25201_v60  ;;  %13059 = vmatpush1.bf16.msra.mxu0 %v22459_v29  ;;  %v22542_v20 = vld [vmem:[#allocation6 + $0x1ee0] ss:$12 sps:$4 sm:$0xff]  }
 0x517   :  { %v25211_v42 = vadd.f32 %v19237_v45, %v25099_v26  ;;  %13060 = vmatprep.subr.bf16.mxu0 %v22466_v62  ;;  %12993 = vmatprep.mubr.bf16.mxu0 %v25147_v27  ;;  %v22509_v46 = vld [vmem:[#allocation6 + $0x1d74] ss:$12 sps:$4 sm:$0xff]  }
 0x518   :  { %15671 = vmatprep.mubr.bf16.mxu1 %v25203_v0 }
 0x519   :  { %v19238_v55 = vpop.f32.mrb[236].mxu1 }
 0x51a   :  { %v19239_v59 = vpop.f32.mrb[237].mxu1  ;;  %13061 = vmatpush1.bf16.msra.mxu0 %v22464_v37  ;;  %v22550_v37 = vld [vmem:[#allocation6 + $0x1ef8] ss:$12 sps:$4 sm:$0xff]  }
 0x51b   :  { %v19240_v6 = vadd.f32 %v19239_v59, %v19238_v55  ;;  %v19241_v25 = vpop.f32.mrb[238].mxu1  ;;  %13062 = vmatprep.subr.bf16.mxu0 %v22474_v14  ;;  %v25257_v14 = vld [vmem:[#allocation3 + $0x238] ss:$208 sps:$4 sm:$0xff]   ;;  %v22507_v55 = vld [vmem:[#allocation6 + $0x1d70] ss:$12 sps:$4 sm:$0xff]  }
 0x51c   :  { %v19242_v4 = vpop.f32.mrb[239].mxu1 }
 0x51d   :  { %v25220_v26 = vadd.f32 %v19240_v6, %v25108_v50  ;;  %v19243_v27 = vadd.f32 %v19242_v4, %v19241_v25  ;;  %12994 = vmatmul.mubr.bf16.gmra.mrb[8].mxu0 %v25159_v34  ;;  %v25229_v50 = vld [vmem:[#allocation3 + $0xbf0] ss:$208 sps:$4 sm:$0xff]   ;;  %v25259_v25 = vld [vmem:[#allocation3 + $0x3dc] ss:$208 sps:$4 sm:$0xff]  }
 0x51e   :  { %15672 = vmatmul.mubr.bf16.gmra.mrb[88].mxu1 %v25215_v36  ;;  %13063 = vmatpush1.bf16.msra.mxu0 %v22472_v1 }
 0x51f   :  { %v25225_v13 = vadd.f32 %v19243_v27, %v25113_v7  ;;  %13064 = vmatprep.subr.bf16.mxu0 %v22479_v22  ;;  %13003 = vmatprep.mubr.bf16.mxu0 %v25161_v3  ;;  %v22555_v27 = vld [vmem:[#allocation6 + $0x1f10] ss:$12 sps:$4 sm:$0xff]  }
 0x520   :  { %15679 = vmatprep.mubr.bf16.mxu1 %v25217_v47 }
 0x521   :  { %v19244_v32 = vpop.f32.mrb[240].mxu1 }
 0x522   :  { %v19245_v44 = vpop.f32.mrb[241].mxu1  ;;  %13065 = vmatpush1.bf16.msra.mxu0 %v22477_v2  ;;  %v22510_v2 = vld [vmem:[#allocation6 + $0x1d88] ss:$12 sps:$4 sm:$0xff]  }
 0x523   :  { %v19246_v34 = vadd.f32 %v19245_v44, %v19244_v32  ;;  %v19247_v28 = vpop.f32.mrb[242].mxu1  ;;  %13066 = vmatprep.subr.bf16.mxu0 %v22487_v48  ;;  %v22518_v32 = vld [vmem:[#allocation6 + $0x1da4] ss:$12 sps:$4 sm:$0xff]  }
 0x524   :  { %v19248_v41 = vpop.f32.mrb[243].mxu1 }
 0x525   :  { %v25234_v7 = vadd.f32 %v19246_v34, %v25122_v31  ;;  %v19249_v3 = vadd.f32 %v19248_v41, %v19247_v28  ;;  %13004 = vmatmul.mubr.bf16.gmra.mrb[12].mxu0 %v25173_v63  ;;  %v25243_v31 = vld [vmem:[#allocation3 + $0x98] ss:$208 sps:$4 sm:$0xff]   ;;  %v22516_v28 = vld [vmem:[#allocation6 + $0x1da0] ss:$12 sps:$4 sm:$0xff]  }
 0x526   :  { %15680 = vmatmul.mubr.bf16.gmra.mrb[92].mxu1 %v25229_v50  ;;  %13067 = vmatpush1.bf16.msra.mxu0 %v22485_v8  ;;  %v25271_v34 = vld [vmem:[#allocation3 + $0x3d8] ss:$208 sps:$4 sm:$0xff]  }
 0x527   :  { %v25239_v11 = vadd.f32 %v19249_v3, %v25127_v51  ;;  %13068 = vmatprep.subr.bf16.mxu0 %v22492_v39  ;;  %13013 = vmatprep.mubr.bf16.mxu0 %v25175_v12  ;;  %v22538_v51 = vld [vmem:[#allocation6 + $0x1e08] ss:$12 sps:$4 sm:$0xff]  }
 0x528   :  { %15720 = vmatprep.mubr.bf16.mxu1 %v25231_v5 }
 0x529   :  { %v19250_v58 = vpop.f32.mrb[244].mxu1 }
 0x52a   :  { %v19251_v40 = vpop.f32.mrb[245].mxu1  ;;  %13069 = vmatpush1.bf16.msra.mxu0 %v22490_v30  ;;  %v25273_v30 = vld [vmem:[#allocation3 + $0x57c] ss:$208 sps:$4 sm:$0xff]  }
 0x52b   :  { %v19252_v63 = vadd.f32 %v19251_v40, %v19250_v58  ;;  %v19253_v52 = vpop.f32.mrb[246].mxu1  ;;  %13070 = vmatprep.subr.bf16.mxu0 %v22500_v10  ;;  %v22568_v40 = vld [vmem:[#allocation6 + $0x1f40] ss:$12 sps:$4 sm:$0xff]  }
 0x52c   :  { %v19254_v24 = vpop.f32.mrb[247].mxu1 }
 0x52d   :  { %v25248_v29 = vadd.f32 %v19252_v63, %v25136_v35  ;;  %v19255_v12 = vadd.f32 %v19254_v24, %v19253_v52  ;;  %13014 = vmatmul.mubr.bf16.gmra.mrb[16].mxu0 %v25187_v49  ;;  %v22543_v35 = vld [vmem:[#allocation6 + $0x1e20] ss:$12 sps:$4 sm:$0xff]  }
 0x52e   :  { %15721 = vmatmul.mubr.bf16.vlgmr.msra.gmra.mrb[96].mxu1 %v25243_v31  ;;  %13071 = vmatpush1.bf16.msra.mxu0 %v22498_v38  ;;  %v22519_v38 = vld [vmem:[#allocation6 + $0x1db8] ss:$12 sps:$4 sm:$0xff]   ;;  %v22527_v52 = vld [vmem:[#allocation6 + $0x1dd4] ss:$12 sps:$4 sm:$0xff]  }
 0x52f   :  { %v25253_v62 = vadd.f32 %v19255_v12, %v25141_v57  ;;  %13072 = vmatprep.subr.bf16.mxu0 %v22503_v16  ;;  %13023 = vmatprep.mubr.bf16.mxu0 %v25189_v33  ;;  %v22512_v57 = vld [vmem:[#allocation6 + $0x1d8c] ss:$12 sps:$4 sm:$0xff]   ;;  %v22525_v12 = vld [vmem:[#allocation6 + $0x1dd0] ss:$12 sps:$4 sm:$0xff]  }
 0x530   :  { %15728 = vmatprep.mubr.bf16.mxu1 %v25245_v23  ;;  %19525 = vmatpush3.bf16.msra.mxu1 %v22538_v51  ;;  %v22551_v33 = vld [vmem:[#allocation6 + $0x1e38] ss:$12 sps:$4 sm:$0xff]  }
 0x531   :  { %v19256_v45 = vpop.f32.mrb[248].mxu1  ;;  %19526 = vmatprep.subr.bf16.mxu1 %v22542_v20  ;;  %v25285_v51 = vld [vmem:[#allocation3 + $0x578] ss:$208 sps:$4 sm:$0xff]  }
 0x532   :  { %v19257_v49 = vpop.f32.mrb[249].mxu1  ;;  %13073 = vmatpush1.bf16.msra.mxu0 %v22501_v53 }
 0x533   :  { %v19258_v59 = vadd.f32 %v19257_v49, %v19256_v45  ;;  %v19259_v1 = vpop.f32.mrb[250].mxu1  ;;  %13074 = vmatprep.subr.bf16.mxu0 %v22509_v46  ;;  %v22581_v49 = vld [vmem:[#allocation6 + $0x1f70] ss:$12 sps:$4 sm:$0xff]  }
 0x534   :  { %v19260_v6 = vpop.f32.mrb[251].mxu1  ;;  %19527 = vmatpush3.bf16.msra.mxu1 %v22543_v35  ;;  %v25287_v35 = vld [vmem:[#allocation3 + $0x71c] ss:$208 sps:$4 sm:$0xff]  }
 0x535   :  { %v25262_v22 = vadd.f32 %v19258_v59, %v25150_v54  ;;  %v19261_v4 = vadd.f32 %v19260_v6, %v19259_v1  ;;  %13024 = vmatmul.mubr.bf16.gmra.mrb[20].mxu0 %v25201_v60  ;;  %19528 = vmatprep.subr.bf16.mxu1 %v22550_v37  ;;  %v22556_v54 = vld [vmem:[#allocation6 + $0x1e50] ss:$12 sps:$4 sm:$0xff]   ;;  %v22563_v60 = vld [vmem:[#allocation6 + $0x1f28] ss:$12 sps:$4 sm:$0xff]  }
 0x536   :  { %15729 = vmatmul.mubr.bf16.gmra.mrb[100].mxu1 %v25257_v14  ;;  %13075 = vmatpush1.bf16.msra.mxu0 %v22507_v55  ;;  %v22528_v55 = vld [vmem:[#allocation6 + $0x1de8] ss:$12 sps:$4 sm:$0xff]   ;;  %v22536_v1 = vld [vmem:[#allocation6 + $0x1e04] ss:$12 sps:$4 sm:$0xff]  }
 0x537   :  { %v25267_v48 = vadd.f32 %v19261_v4, %v25155_v19  ;;  %13076 = vmatprep.subr.bf16.mxu0 %v22512_v57  ;;  %13033 = vmatprep.mubr.bf16.mxu0 %v25203_v0  ;;  %v22521_v19 = vld [vmem:[#allocation6 + $0x1dbc] ss:$12 sps:$4 sm:$0xff]   ;;  %v22534_v4 = vld [vmem:[#allocation6 + $0x1e00] ss:$12 sps:$4 sm:$0xff]  }
 0x538   :  { %15736 = vmatprep.mubr.bf16.mxu1 %v25259_v25  ;;  %19529 = vmatpush3.bf16.msra.mxu1 %v22551_v33  ;;  %v22564_v0 = vld [vmem:[#allocation6 + $0x1e68] ss:$12 sps:$4 sm:$0xff]  }
 0x539   :  { %v19262_v44 = vpop.f32.mrb[252].mxu1  ;;  %19530 = vmatprep.subr.bf16.mxu1 %v22555_v27  ;;  %v25299_v33 = vld [vmem:[#allocation3 + $0x718] ss:$208 sps:$4 sm:$0xff]  }
 0x53a   :  { %v19263_v8 = vpop.f32.mrb[253].mxu1  ;;  %13077 = vmatpush1.bf16.msra.mxu0 %v22510_v2 }
 0x53b   :  { %v19264_v39 = vadd.f32 %v19263_v8, %v19262_v44  ;;  %v19265_v41 = vpop.f32.mrb[254].mxu1  ;;  %13078 = vmatprep.subr.bf16.mxu0 %v22518_v32 }
 0x53c   :  { %v19266_v3 = vpop.f32.mrb[255].mxu1  ;;  %19531 = vmatpush3.bf16.msra.mxu1 %v22556_v54  ;;  %v25301_v54 = vld [vmem:[#allocation3 + $0x8bc] ss:$208 sps:$4 sm:$0xff]  }
 0x53d   :  { %v25276_v10 = vadd.f32 %v19264_v39, %v25164_v61  ;;  %v19267_v58 = vadd.f32 %v19266_v3, %v19265_v41  ;;  %13034 = vmatmul.mubr.bf16.gmra.mrb[24].mxu0 %v25215_v36  ;;  %19532 = vmatprep.subr.bf16.mxu1 %v22563_v60  ;;  %v22569_v61 = vld [vmem:[#allocation6 + $0x1e80] ss:$12 sps:$4 sm:$0xff]   ;;  %v22576_v36 = vld [vmem:[#allocation6 + $0x1f58] ss:$12 sps:$4 sm:$0xff]  }
 0x53e   :  { %15737 = vmatmul.mubr.bf16.gmra.mrb[104].mxu1 %v25271_v34  ;;  %13079 = vmatpush1.bf16.msra.mxu0 %v22516_v28  ;;  %v22539_v60 = vld [vmem:[#allocation6 + $0x1e18] ss:$12 sps:$4 sm:$0xff]   ;;  %v22549_v28 = vld [vmem:[#allocation6 + $0x1e34] ss:$12 sps:$4 sm:$0xff]  }
 0x53f   :  { %v25281_v63 = vadd.f32 %v19267_v58, %v25169_v15  ;;  %13080 = vmatprep.subr.bf16.mxu0 %v22521_v19  ;;  %13043 = vmatprep.mubr.bf16.mxu0 %v25217_v47  ;;  %v22530_v15 = vld [vmem:[#allocation6 + $0x1dec] ss:$12 sps:$4 sm:$0xff]  }
 0x540   :  { %15744 = vmatprep.mubr.bf16.mxu1 %v25273_v30  ;;  %19533 = vmatpush3.bf16.msra.mxu1 %v22564_v0  ;;  %v22577_v47 = vld [vmem:[#allocation6 + $0x1e98] ss:$12 sps:$4 sm:$0xff]  }
 0x541   :  { %v19284_v16 = vpop.f32.mrb[0].mxu1  ;;  %19534 = vmatprep.subr.bf16.mxu1 %v22568_v40  ;;  %v25313_v41 = vld [vmem:[#allocation3 + $0x8b8] ss:$208 sps:$4 sm:$0xff]   ;;  %v25315_v40 = vld [vmem:[#allocation3 + $0xa5c] ss:$208 sps:$4 sm:$0xff]  }
 0x542   :  { %v19285_v24 = vpop.f32.mrb[1].mxu1  ;;  %13081 = vmatpush1.bf16.msra.mxu0 %v22519_v38  ;;  %v22554_v0 = vld [vmem:[#allocation6 + $0x1e4c] ss:$12 sps:$4 sm:$0xff]   ;;  %v22552_v38 = vld [vmem:[#allocation6 + $0x1e48] ss:$12 sps:$4 sm:$0xff]  }
 0x543   :  { %v19286_v20 = vadd.f32 %v19285_v24, %v19284_v16  ;;  %v19287_v53 = vpop.f32.mrb[2].mxu1  ;;  %13082 = vmatprep.subr.bf16.mxu0 %v22527_v52  ;;  %v22560_v24 = vld [vmem:[#allocation6 + $0x1e60] ss:$12 sps:$4 sm:$0xff]  }
 0x544   :  { %v19288_v46 = vpop.f32.mrb[3].mxu1  ;;  %19535 = vmatpush3.bf16.msra.mxu1 %v22569_v61  ;;  %v22562_v61 = vld [vmem:[#allocation6 + $0x1e64] ss:$12 sps:$4 sm:$0xff]  }
 0x545   :  { %v25290_v45 = vadd.f32 %v19286_v20, %v25178_v9  ;;  %v19289_v37 = vadd.f32 %v19288_v46, %v19287_v53  ;;  %13044 = vmatmul.mubr.bf16.gmra.mrb[28].mxu0 %v25229_v50  ;;  %19536 = vmatprep.subr.bf16.mxu1 %v22576_v36  ;;  %v22582_v9 = vld [vmem:[#allocation6 + $0x1eb0] ss:$12 sps:$4 sm:$0xff]   ;;  %v22625_v50 = vld [vmem:[#allocation6 + $0x2048] ss:$12 sps:$4 sm:$0xff]   ;;  %v22565_v46 = vld [vmem:[#allocation6 + $0x1e78] ss:$12 sps:$4 sm:$0xff]  }
 0x546   :  { %15745 = vmatmul.mubr.bf16.gmra.mrb[108].mxu1 %v25285_v51  ;;  %13083 = vmatpush1.bf16.msra.mxu0 %v22525_v12  ;;  %v22567_v20 = vld [vmem:[#allocation6 + $0x1e7c] ss:$12 sps:$4 sm:$0xff]  }
 0x547   :  { %v25295_v59 = vadd.f32 %v19289_v37, %v25183_v56  ;;  %13084 = vmatprep.subr.bf16.mxu0 %v22530_v15  ;;  %13086 = vmatprep.mubr.bf16.mxu0 %v25231_v5  ;;  %v22541_v56 = vld [vmem:[#allocation6 + $0x1e1c] ss:$12 sps:$4 sm:$0xff]   ;;  %v22575_v37 = vld [vmem:[#allocation6 + $0x1e94] ss:$12 sps:$4 sm:$0xff]  }
 0x548   :  { %15752 = vmatprep.mubr.bf16.mxu1 %v25287_v35  ;;  %19537 = vmatpush3.bf16.msra.mxu1 %v22577_v47  ;;  %v25329_v15 = vld [vmem:[#allocation3 + $0xbfc] ss:$208 sps:$4 sm:$0xff]  }
 0x549   :  { %v19290_v57 = vpop.f32.mrb[4].mxu1  ;;  %19538 = vmatprep.subr.bf16.mxu1 %v22581_v49 }
 0x54a   :  { %v19291_v6 = vpop.f32.mrb[5].mxu1  ;;  %13085 = vmatpush1.bf16.msra.mxu0 %v22528_v55 }
 0x54b   :  { %v19292_v27 = vadd.f32 %v19291_v6, %v19290_v57  ;;  %v19293_v2 = vpop.f32.mrb[6].mxu1  ;;  %13167 = vmatprep.subr.bf16.mxu0 %v22536_v1  ;;  %v22573_v1 = vld [vmem:[#allocation6 + $0x1e90] ss:$12 sps:$4 sm:$0xff]   ;;  %v22580_v57 = vld [vmem:[#allocation6 + $0x1eac] ss:$12 sps:$4 sm:$0xff]  }
 0x54c   :  { %v19294_v32 = vpop.f32.mrb[7].mxu1  ;;  %19539 = vmatpush3.bf16.msra.mxu1 %v22582_v9  ;;  %v25343_v6 = vld [vmem:[#allocation3 + $0xa4] ss:$208 sps:$4 sm:$0xff]  }
 0x54d   :  { %v25304_v5 = vadd.f32 %v19292_v27, %v25192_v43  ;;  %v19295_v44 = vadd.f32 %v19294_v32, %v19293_v2  ;;  %13087 = vmatmul.mubr.bf16.vlgmr.msra.gmra.mrb[0].mxu0 %v25243_v31  ;;  %19588 = vmatprep.subr.bf16.mxu1 %v22625_v50  ;;  %v22547_v31 = vld [vmem:[#allocation6 + $0x1e30] ss:$12 sps:$4 sm:$0xff]  }
 0x54e   :  { %15753 = vmatmul.mubr.bf16.gmra.mrb[112].mxu1 %v25299_v33  ;;  %13168 = vmatpush1.bf16.msra.mxu0 %v22534_v4  ;;  %v22578_v4 = vld [vmem:[#allocation6 + $0x1ea8] ss:$12 sps:$4 sm:$0xff]   ;;  %v22588_v2 = vld [vmem:[#allocation6 + $0x1ec4] ss:$12 sps:$4 sm:$0xff]  }
 0x54f   :  { %v25309_v8 = vadd.f32 %v19295_v44, %v25197_v18  ;;  %13169 = vmatprep.subr.bf16.mxu0 %v22541_v56  ;;  %13096 = vmatprep.mubr.bf16.mxu0 %v25245_v23  ;;  %v22586_v44 = vld [vmem:[#allocation6 + $0x1ec0] ss:$12 sps:$4 sm:$0xff]  }
 0x550   :  { %15760 = vmatprep.mubr.bf16.mxu1 %v25301_v54 }
 0x551   :  { %v19296_v39 = vpop.f32.mrb[8].mxu1 }
 0x552   :  { %v19297_v43 = vpop.f32.mrb[9].mxu1  ;;  %13170 = vmatpush1.bf16.msra.mxu0 %v22539_v60 }
 0x553   :  { %v19298_v19 = vadd.f32 %v19297_v43, %v19296_v39  ;;  %v19299_v3 = vpop.f32.mrb[10].mxu1  ;;  %13171 = vmatprep.subr.bf16.mxu0 %v22549_v28  ;;  %v22591_v28 = vld [vmem:[#allocation6 + $0x1edc] ss:$12 sps:$4 sm:$0xff]   ;;  %v25357_v43 = vld [vmem:[#allocation3 + $0x244] ss:$208 sps:$4 sm:$0xff]  }
 0x554   :  { %v19300_v58 = vpop.f32.mrb[11].mxu1 }
 0x555   :  { %v25318_v18 = vadd.f32 %v19298_v19, %v25206_v21  ;;  %v19301_v23 = vadd.f32 %v19300_v58, %v19299_v3  ;;  %13097 = vmatmul.mubr.bf16.gmra.mrb[4].mxu0 %v25257_v14  ;;  %v25327_v21 = vld [vmem:[#allocation3 + $0xa58] ss:$208 sps:$4 sm:$0xff]   ;;  %v22630_v19 = vld [vmem:[#allocation6 + $0x2060] ss:$12 sps:$4 sm:$0xff]  }
 0x556   :  { %15761 = vmatmul.mubr.bf16.gmra.mrb[116].mxu1 %v25313_v41  ;;  %13172 = vmatpush1.bf16.msra.mxu0 %v22547_v31  ;;  %v22589_v3 = vld [vmem:[#allocation6 + $0x1ed8] ss:$12 sps:$4 sm:$0xff]   ;;  %v22597_v58 = vld [vmem:[#allocation6 + $0x1ef4] ss:$12 sps:$4 sm:$0xff]  }
 0x557   :  { %v25323_v52 = vadd.f32 %v19301_v23, %v25211_v42  ;;  %13173 = vmatprep.subr.bf16.mxu0 %v22554_v0  ;;  %13106 = vmatprep.mubr.bf16.mxu0 %v25259_v25 }
 0x558   :  { %15768 = vmatprep.mubr.bf16.mxu1 %v25315_v40 }
 0x559   :  { %v19302_v16 = vpop.f32.mrb[12].mxu1 }
 0x55a   :  { %v19303_v36 = vpop.f32.mrb[13].mxu1  ;;  %13174 = vmatpush1.bf16.msra.mxu0 %v22552_v38  ;;  %v22638_v38 = vld [vmem:[#allocation6 + $0x2078] ss:$12 sps:$4 sm:$0xff]  }
 0x55b   :  { %v19304_v14 = vadd.f32 %v19303_v36, %v19302_v16  ;;  %v19305_v12 = vpop.f32.mrb[14].mxu1  ;;  %13175 = vmatprep.subr.bf16.mxu0 %v22562_v61  ;;  %v25369_v61 = vld [vmem:[#allocation3 + $0x240] ss:$208 sps:$4 sm:$0xff]  }
 0x55c   :  { %v19306_v53 = vpop.f32.mrb[15].mxu1  ;;  %v22595_v16 = vld [vmem:[#allocation6 + $0x1ef0] ss:$12 sps:$4 sm:$0xff]  }
 0x55d   :  { %v25332_v42 = vadd.f32 %v19304_v14, %v25220_v26  ;;  %v19307_v25 = vadd.f32 %v19306_v53, %v19305_v12  ;;  %13107 = vmatmul.mubr.bf16.gmra.mrb[8].mxu0 %v25271_v34  ;;  %v25341_v26 = vld [vmem:[#allocation3 + $0xbf8] ss:$208 sps:$4 sm:$0xff]   ;;  %v25371_v12 = vld [vmem:[#allocation3 + $0x3e4] ss:$208 sps:$4 sm:$0xff]  }
 0x55e   :  { %15769 = vmatmul.mubr.bf16.gmra.mrb[120].mxu1 %v25327_v21  ;;  %13176 = vmatpush1.bf16.msra.mxu0 %v22560_v24 }
 0x55f   :  { %v25337_v47 = vadd.f32 %v19307_v25, %v25225_v13  ;;  %13177 = vmatprep.subr.bf16.mxu0 %v22567_v20  ;;  %13116 = vmatprep.mubr.bf16.mxu0 %v25273_v30  ;;  %v22643_v25 = vld [vmem:[#allocation6 + $0x2090] ss:$12 sps:$4 sm:$0xff]  }
 0x560   :  { %15776 = vmatprep.mubr.bf16.mxu1 %v25329_v15 }
 0x561   :  { %v19308_v49 = vpop.f32.mrb[16].mxu1 }
 0x562   :  { %v19309_v55 = vpop.f32.mrb[17].mxu1  ;;  %13178 = vmatpush1.bf16.msra.mxu0 %v22565_v46  ;;  %v22598_v46 = vld [vmem:[#allocation6 + $0x1f08] ss:$12 sps:$4 sm:$0xff]  }
 0x563   :  { %v19310_v34 = vadd.f32 %v19309_v55, %v19308_v49  ;;  %v19311_v9 = vpop.f32.mrb[18].mxu1  ;;  %13179 = vmatprep.subr.bf16.mxu0 %v22575_v37  ;;  %v22606_v49 = vld [vmem:[#allocation6 + $0x1f24] ss:$12 sps:$4 sm:$0xff]  }
 0x564   :  { %v19312_v50 = vpop.f32.mrb[19].mxu1 }
 0x565   :  { %v25346_v13 = vadd.f32 %v19310_v34, %v25234_v7  ;;  %v19313_v30 = vadd.f32 %v19312_v50, %v19311_v9  ;;  %13117 = vmatmul.mubr.bf16.gmra.mrb[12].mxu0 %v25285_v51  ;;  %v25355_v7 = vld [vmem:[#allocation3 + $0xa0] ss:$208 sps:$4 sm:$0xff]  }
 0x566   :  { %15777 = vmatmul.mubr.bf16.gmra.mrb[124].mxu1 %v25341_v26  ;;  %13180 = vmatpush1.bf16.msra.mxu0 %v22573_v1  ;;  %v25383_v34 = vld [vmem:[#allocation3 + $0x3e0] ss:$208 sps:$4 sm:$0xff]  }
 0x567   :  { %v25351_v27 = vadd.f32 %v19313_v30, %v25239_v11  ;;  %13181 = vmatprep.subr.bf16.mxu0 %v22580_v57  ;;  %13126 = vmatprep.mubr.bf16.mxu0 %v25287_v35  ;;  %v22626_v11 = vld [vmem:[#allocation6 + $0x1f88] ss:$12 sps:$4 sm:$0xff]   ;;  %v22604_v9 = vld [vmem:[#allocation6 + $0x1f20] ss:$12 sps:$4 sm:$0xff]  }
 0x568   :  { %15817 = vmatprep.mubr.bf16.mxu1 %v25343_v6 }
 0x569   :  { %v19314_v56 = vpop.f32.mrb[20].mxu1 }
 0x56a   :  { %v19315_v32 = vpop.f32.mrb[21].mxu1  ;;  %13182 = vmatpush1.bf16.msra.mxu0 %v22578_v4  ;;  %v25385_v4 = vld [vmem:[#allocation3 + $0x584] ss:$208 sps:$4 sm:$0xff]  }
 0x56b   :  { %v19316_v51 = vadd.f32 %v19315_v32, %v19314_v56  ;;  %v19317_v60 = vpop.f32.mrb[22].mxu1  ;;  %13183 = vmatprep.subr.bf16.mxu0 %v22588_v2  ;;  %v22656_v32 = vld [vmem:[#allocation6 + $0x20c0] ss:$12 sps:$4 sm:$0xff]  }
 0x56c   :  { %v19318_v39 = vpop.f32.mrb[23].mxu1 }
 0x56d   :  { %v25360_v31 = vadd.f32 %v19316_v51, %v25248_v29  ;;  %v19319_v35 = vadd.f32 %v19318_v39, %v19317_v60  ;;  %13127 = vmatmul.mubr.bf16.gmra.mrb[16].mxu0 %v25299_v33  ;;  %v22631_v29 = vld [vmem:[#allocation6 + $0x1fa0] ss:$12 sps:$4 sm:$0xff]  }
 0x56e   :  { %15818 = vmatmul.mubr.bf16.vlgmr.msra.gmra.mrb[128].mxu1 %v25355_v7  ;;  %13184 = vmatpush1.bf16.msra.mxu0 %v22586_v44  ;;  %v22607_v44 = vld [vmem:[#allocation6 + $0x1f38] ss:$12 sps:$4 sm:$0xff]   ;;  %v22615_v60 = vld [vmem:[#allocation6 + $0x1f54] ss:$12 sps:$4 sm:$0xff]  }
 0x56f   :  { %v25365_v0 = vadd.f32 %v19319_v35, %v25253_v62  ;;  %13185 = vmatprep.subr.bf16.mxu0 %v22591_v28  ;;  %13136 = vmatprep.mubr.bf16.mxu0 %v25301_v54  ;;  %v22600_v62 = vld [vmem:[#allocation6 + $0x1f0c] ss:$12 sps:$4 sm:$0xff]   ;;  %v22613_v35 = vld [vmem:[#allocation6 + $0x1f50] ss:$12 sps:$4 sm:$0xff]  }
 0x570   :  { %15825 = vmatprep.mubr.bf16.mxu1 %v25357_v43  ;;  %19589 = vmatpush3.bf16.msra.mxu1 %v22626_v11  ;;  %v22639_v54 = vld [vmem:[#allocation6 + $0x1fb8] ss:$12 sps:$4 sm:$0xff]   ;;  %v25397_v11 = vld [vmem:[#allocation3 + $0x580] ss:$208 sps:$4 sm:$0xff]  }
 0x571   :  { %v19320_v23 = vpop.f32.mrb[24].mxu1  ;;  %19590 = vmatprep.subr.bf16.mxu1 %v22630_v19 }
 0x572   :  { %v19321_v33 = vpop.f32.mrb[25].mxu1  ;;  %13186 = vmatpush1.bf16.msra.mxu0 %v22589_v3 }
 0x573   :  { %v19322_v36 = vadd.f32 %v19321_v33, %v19320_v23  ;;  %v19323_v24 = vpop.f32.mrb[26].mxu1  ;;  %13187 = vmatprep.subr.bf16.mxu0 %v22597_v58  ;;  %v22669_v33 = vld [vmem:[#allocation6 + $0x20f0] ss:$12 sps:$4 sm:$0xff]  }
 0x574   :  { %v19324_v14 = vpop.f32.mrb[27].mxu1  ;;  %19591 = vmatpush3.bf16.msra.mxu1 %v22631_v29  ;;  %v25399_v29 = vld [vmem:[#allocation3 + $0x724] ss:$208 sps:$4 sm:$0xff]  }
 0x575   :  { %v25374_v20 = vadd.f32 %v19322_v36, %v25262_v22  ;;  %v19325_v53 = vadd.f32 %v19324_v14, %v19323_v24  ;;  %13137 = vmatmul.mubr.bf16.gmra.mrb[20].mxu0 %v25313_v41  ;;  %19592 = vmatprep.subr.bf16.mxu1 %v22638_v38  ;;  %v22644_v22 = vld [vmem:[#allocation6 + $0x1fd0] ss:$12 sps:$4 sm:$0xff]   ;;  %v22651_v41 = vld [vmem:[#allocation6 + $0x20a8] ss:$12 sps:$4 sm:$0xff]  }
 0x576   :  { %15826 = vmatmul.mubr.bf16.gmra.mrb[132].mxu1 %v25369_v61  ;;  %13188 = vmatpush1.bf16.msra.mxu0 %v22595_v16  ;;  %v22616_v16 = vld [vmem:[#allocation6 + $0x1f68] ss:$12 sps:$4 sm:$0xff]   ;;  %v22624_v24 = vld [vmem:[#allocation6 + $0x1f84] ss:$12 sps:$4 sm:$0xff]  }
 0x577   :  { %v25379_v37 = vadd.f32 %v19325_v53, %v25267_v48  ;;  %13189 = vmatprep.subr.bf16.mxu0 %v22600_v62  ;;  %13146 = vmatprep.mubr.bf16.mxu0 %v25315_v40  ;;  %v22609_v48 = vld [vmem:[#allocation6 + $0x1f3c] ss:$12 sps:$4 sm:$0xff]   ;;  %v22622_v53 = vld [vmem:[#allocation6 + $0x1f80] ss:$12 sps:$4 sm:$0xff]  }
 0x578   :  { %15833 = vmatprep.mubr.bf16.mxu1 %v25371_v12  ;;  %19593 = vmatpush3.bf16.msra.mxu1 %v22639_v54  ;;  %v22652_v40 = vld [vmem:[#allocation6 + $0x1fe8] ss:$12 sps:$4 sm:$0xff]   ;;  %v25411_v54 = vld [vmem:[#allocation3 + $0x720] ss:$208 sps:$4 sm:$0xff]  }
 0x579   :  { %v19326_v55 = vpop.f32.mrb[28].mxu1  ;;  %19594 = vmatprep.subr.bf16.mxu1 %v22643_v25 }
 0x57a   :  { %v19327_v1 = vpop.f32.mrb[29].mxu1  ;;  %13190 = vmatpush1.bf16.msra.mxu0 %v22598_v46 }
 0x57b   :  { %v19328_v57 = vadd.f32 %v19327_v1, %v19326_v55  ;;  %v19329_v50 = vpop.f32.mrb[30].mxu1  ;;  %13191 = vmatprep.subr.bf16.mxu0 %v22606_v49  ;;  %v22637_v1 = vld [vmem:[#allocation6 + $0x1fb4] ss:$12 sps:$4 sm:$0xff]  }
 0x57c   :  { %v19330_v30 = vpop.f32.mrb[31].mxu1  ;;  %19595 = vmatpush3.bf16.msra.mxu1 %v22644_v22  ;;  %v25413_v22 = vld [vmem:[#allocation3 + $0x8c4] ss:$208 sps:$4 sm:$0xff]  }
 0x57d   :  { %v25388_v2 = vadd.f32 %v19328_v57, %v25276_v10  ;;  %v19331_v56 = vadd.f32 %v19330_v30, %v19329_v50  ;;  %13147 = vmatmul.mubr.bf16.gmra.mrb[24].mxu0 %v25327_v21  ;;  %19596 = vmatprep.subr.bf16.mxu1 %v22651_v41  ;;  %v22657_v10 = vld [vmem:[#allocation6 + $0x2000] ss:$12 sps:$4 sm:$0xff]   ;;  %v22664_v21 = vld [vmem:[#allocation6 + $0x20d8] ss:$12 sps:$4 sm:$0xff]  }
 0x57e   :  { %15834 = vmatmul.mubr.bf16.gmra.mrb[136].mxu1 %v25383_v34  ;;  %13192 = vmatpush1.bf16.msra.mxu0 %v22604_v9  ;;  %v22627_v41 = vld [vmem:[#allocation6 + $0x1f98] ss:$12 sps:$4 sm:$0xff]  }
 0x57f   :  { %v25393_v51 = vadd.f32 %v19331_v56, %v25281_v63  ;;  %13193 = vmatprep.subr.bf16.mxu0 %v22609_v48  ;;  %13156 = vmatprep.mubr.bf16.mxu0 %v25329_v15  ;;  %v22618_v63 = vld [vmem:[#allocation6 + $0x1f6c] ss:$12 sps:$4 sm:$0xff]  }
 0x580   :  { %15841 = vmatprep.mubr.bf16.mxu1 %v25385_v4  ;;  %19597 = vmatpush3.bf16.msra.mxu1 %v22652_v40  ;;  %v22665_v15 = vld [vmem:[#allocation6 + $0x2018] ss:$12 sps:$4 sm:$0xff]  }
 0x581   :  { %v19348_v28 = vpop.f32.mrb[32].mxu1  ;;  %19598 = vmatprep.subr.bf16.mxu1 %v22656_v32  ;;  %v22642_v40 = vld [vmem:[#allocation6 + $0x1fcc] ss:$12 sps:$4 sm:$0xff]   ;;  %v25427_v32 = vld [vmem:[#allocation3 + $0xa64] ss:$208 sps:$4 sm:$0xff]  }
 0x582   :  { %v19349_v39 = vpop.f32.mrb[33].mxu1  ;;  %13194 = vmatpush1.bf16.msra.mxu0 %v22607_v44  ;;  %v22640_v44 = vld [vmem:[#allocation6 + $0x1fc8] ss:$12 sps:$4 sm:$0xff]  }
 0x583   :  { %v19350_v19 = vadd.f32 %v19349_v39, %v19348_v28  ;;  %v19351_v3 = vpop.f32.mrb[34].mxu1  ;;  %13195 = vmatprep.subr.bf16.mxu0 %v22615_v60  ;;  %v22650_v60 = vld [vmem:[#allocation6 + $0x1fe4] ss:$12 sps:$4 sm:$0xff]  }
 0x584   :  { %v19352_v58 = vpop.f32.mrb[35].mxu1  ;;  %19599 = vmatpush3.bf16.msra.mxu1 %v22657_v10 }
 0x585   :  { %v25402_v23 = vadd.f32 %v19350_v19, %v25290_v45  ;;  %v19353_v38 = vadd.f32 %v19352_v58, %v19351_v3  ;;  %13157 = vmatmul.mubr.bf16.gmra.mrb[28].mxu0 %v25341_v26  ;;  %19600 = vmatprep.subr.bf16.mxu1 %v22664_v21  ;;  %v22670_v45 = vld [vmem:[#allocation6 + $0x2030] ss:$12 sps:$4 sm:$0xff]   ;;  %v22713_v26 = vld [vmem:[#allocation6 + $0x21c8] ss:$12 sps:$4 sm:$0xff]   ;;  %v22653_v58 = vld [vmem:[#allocation6 + $0x1ff8] ss:$12 sps:$4 sm:$0xff]  }
 0x586   :  { %15842 = vmatmul.mubr.bf16.gmra.mrb[140].mxu1 %v25397_v11  ;;  %13196 = vmatpush1.bf16.msra.mxu0 %v22613_v35  ;;  %v22655_v19 = vld [vmem:[#allocation6 + $0x1ffc] ss:$12 sps:$4 sm:$0xff]  }
 0x587   :  { %v25407_v36 = vadd.f32 %v19353_v38, %v25295_v59  ;;  %13197 = vmatprep.subr.bf16.mxu0 %v22618_v63  ;;  %13199 = vmatprep.mubr.bf16.mxu0 %v25343_v6  ;;  %v22629_v59 = vld [vmem:[#allocation6 + $0x1f9c] ss:$12 sps:$4 sm:$0xff]   ;;  %v25441_v63 = vld [vmem:[#allocation3 + $0xc04] ss:$208 sps:$4 sm:$0xff]  }
 0x588   :  { %15849 = vmatprep.mubr.bf16.mxu1 %v25399_v29  ;;  %19601 = vmatpush3.bf16.msra.mxu1 %v22665_v15  ;;  %v22663_v15 = vld [vmem:[#allocation6 + $0x2014] ss:$12 sps:$4 sm:$0xff]  }
 0x589   :  { %v19354_v62 = vpop.f32.mrb[36].mxu1  ;;  %19602 = vmatprep.subr.bf16.mxu1 %v22669_v33 }
 0x58a   :  { %v19355_v14 = vpop.f32.mrb[37].mxu1  ;;  %13198 = vmatpush1.bf16.msra.mxu0 %v22616_v16 }
 0x58b   :  { %v19356_v25 = vadd.f32 %v19355_v14, %v19354_v62  ;;  %v19357_v46 = vpop.f32.mrb[38].mxu1  ;;  %13280 = vmatprep.subr.bf16.mxu0 %v22624_v24  ;;  %v22668_v62 = vld [vmem:[#allocation6 + $0x202c] ss:$12 sps:$4 sm:$0xff]  }
 0x58c   :  { %v19358_v49 = vpop.f32.mrb[39].mxu1  ;;  %19603 = vmatpush3.bf16.msra.mxu1 %v22670_v45  ;;  %v25455_v14 = vld [vmem:[#allocation3 + $0xac] ss:$208 sps:$4 sm:$0xff]  }
 0x58d   :  { %v19359_v6 = vadd.f32 %v19358_v49, %v19357_v46  ;;  %13200 = vmatmul.mubr.bf16.vlgmr.msra.gmra.mrb[0].mxu0 %v25355_v7  ;;  %v25417_v55 = vadd.f32 %v19356_v25, %v25304_v5  ;;  %19652 = vmatprep.subr.bf16.mxu1 %v22713_v26  ;;  %v25425_v7 = vld [vmem:[#allocation3 + $0x8c0] ss:$208 sps:$4 sm:$0xff]  }
 0x58e   :  { %15850 = vmatmul.mubr.bf16.gmra.mrb[144].mxu1 %v25411_v54  ;;  %13281 = vmatpush1.bf16.msra.mxu0 %v22622_v53  ;;  %v22635_v5 = vld [vmem:[#allocation6 + $0x1fb0] ss:$12 sps:$4 sm:$0xff]   ;;  %v22666_v53 = vld [vmem:[#allocation6 + $0x2028] ss:$12 sps:$4 sm:$0xff]  }
 0x58f   :  { %13282 = vmatprep.subr.bf16.mxu0 %v22629_v59  ;;  %13209 = vmatprep.mubr.bf16.mxu0 %v25357_v43  ;;  %v25422_v9 = vadd.f32 %v19359_v6, %v25309_v8  ;;  %v22676_v25 = vld [vmem:[#allocation6 + $0x2044] ss:$12 sps:$4 sm:$0xff]  }
 0x590   :  { %15857 = vmatprep.mubr.bf16.mxu1 %v25413_v22 }
 0x591   :  { %v19360_v57 = vpop.f32.mrb[40].mxu1 }
 0x592   :  { %v19361_v50 = vpop.f32.mrb[41].mxu1  ;;  %13283 = vmatpush1.bf16.msra.mxu0 %v22627_v41 }
 0x593   :  { %v19362_v48 = vadd.f32 %v19361_v50, %v19360_v57  ;;  %v19363_v30 = vpop.f32.mrb[42].mxu1  ;;  %13284 = vmatprep.subr.bf16.mxu0 %v22637_v1  ;;  %v22679_v1 = vld [vmem:[#allocation6 + $0x205c] ss:$12 sps:$4 sm:$0xff]  }
 0x594   :  { %v19364_v56 = vpop.f32.mrb[43].mxu1  ;;  %v25469_v50 = vld [vmem:[#allocation3 + $0x24c] ss:$208 sps:$4 sm:$0xff]  }
 0x595   :  { %v19365_v43 = vadd.f32 %v19364_v56, %v19363_v30  ;;  %13210 = vmatmul.mubr.bf16.gmra.mrb[4].mxu0 %v25369_v61  ;;  %v25431_v8 = vadd.f32 %v19362_v48, %v25318_v18  ;;  %v25439_v61 = vld [vmem:[#allocation3 + $0xa60] ss:$208 sps:$4 sm:$0xff]   ;;  %v22677_v30 = vld [vmem:[#allocation6 + $0x2058] ss:$12 sps:$4 sm:$0xff]  }
 0x596   :  { %15858 = vmatmul.mubr.bf16.gmra.mrb[148].mxu1 %v25425_v7  ;;  %13285 = vmatpush1.bf16.msra.mxu0 %v22635_v5  ;;  %v22648_v18 = vld [vmem:[#allocation6 + $0x1fe0] ss:$12 sps:$4 sm:$0xff]  }
 0x597   :  { %13286 = vmatprep.subr.bf16.mxu0 %v22642_v40  ;;  %13219 = vmatprep.mubr.bf16.mxu0 %v25371_v12  ;;  %v25436_v10 = vadd.f32 %v19365_v43, %v25323_v52  ;;  %v22685_v40 = vld [vmem:[#allocation6 + $0x2074] ss:$12 sps:$4 sm:$0xff]  }
 0x598   :  { %15865 = vmatprep.mubr.bf16.mxu1 %v25427_v32  ;;  %v22719_v43 = vld [vmem:[#allocation6 + $0x2120] ss:$12 sps:$4 sm:$0xff]  }
 0x599   :  { %v19366_v28 = vpop.f32.mrb[44].mxu1 }
 0x59a   :  { %v19367_v21 = vpop.f32.mrb[45].mxu1  ;;  %13287 = vmatpush1.bf16.msra.mxu0 %v22640_v44  ;;  %v22726_v44 = vld [vmem:[#allocation6 + $0x21f8] ss:$12 sps:$4 sm:$0xff]  }
 0x59b   :  { %v19368_v39 = vadd.f32 %v19367_v21, %v19366_v28  ;;  %v19369_v35 = vpop.f32.mrb[46].mxu1  ;;  %13288 = vmatprep.subr.bf16.mxu0 %v22650_v60  ;;  %v25481_v60 = vld [vmem:[#allocation3 + $0x248] ss:$208 sps:$4 sm:$0xff]   ;;  %v22683_v28 = vld [vmem:[#allocation6 + $0x2070] ss:$12 sps:$4 sm:$0xff]  }
 0x59c   :  { %v19370_v3 = vpop.f32.mrb[47].mxu1 }
 0x59d   :  { %v19371_v12 = vadd.f32 %v19370_v3, %v19369_v35  ;;  %13220 = vmatmul.mubr.bf16.gmra.mrb[8].mxu0 %v25383_v34  ;;  %v25445_v52 = vadd.f32 %v19368_v39, %v25332_v42  ;;  %v25453_v34 = vld [vmem:[#allocation3 + $0xc00] ss:$208 sps:$4 sm:$0xff]   ;;  %v25483_v35 = vld [vmem:[#allocation3 + $0x3ec] ss:$208 sps:$4 sm:$0xff]  }
 0x59e   :  { %15866 = vmatmul.mubr.bf16.gmra.mrb[152].mxu1 %v25439_v61  ;;  %13289 = vmatpush1.bf16.msra.mxu0 %v22648_v18  ;;  %v22661_v42 = vld [vmem:[#allocation6 + $0x2010] ss:$12 sps:$4 sm:$0xff]  }
 0x59f   :  { %13290 = vmatprep.subr.bf16.mxu0 %v22655_v19  ;;  %13229 = vmatprep.mubr.bf16.mxu0 %v25385_v4  ;;  %v25450_v38 = vadd.f32 %v19371_v12, %v25337_v47  ;;  %v22731_v3 = vld [vmem:[#allocation6 + $0x2210] ss:$12 sps:$4 sm:$0xff]  }
 0x5a0   :  { %15873 = vmatprep.mubr.bf16.mxu1 %v25441_v63 }
 0x5a1   :  { %v19372_v33 = vpop.f32.mrb[48].mxu1 }
 0x5a2   :  { %v19373_v16 = vpop.f32.mrb[49].mxu1  ;;  %13291 = vmatpush1.bf16.msra.mxu0 %v22653_v58  ;;  %v22686_v58 = vld [vmem:[#allocation6 + $0x2088] ss:$12 sps:$4 sm:$0xff]  }
 0x5a3   :  { %v19374_v24 = vadd.f32 %v19373_v16, %v19372_v33  ;;  %v19375_v45 = vpop.f32.mrb[50].mxu1  ;;  %13292 = vmatprep.subr.bf16.mxu0 %v22663_v15  ;;  %v22694_v15 = vld [vmem:[#allocation6 + $0x20a4] ss:$12 sps:$4 sm:$0xff]  }
 0x5a4   :  { %v19376_v26 = vpop.f32.mrb[51].mxu1 }
 0x5a5   :  { %v19377_v4 = vadd.f32 %v19376_v26, %v19375_v45  ;;  %13230 = vmatmul.mubr.bf16.gmra.mrb[12].mxu0 %v25397_v11  ;;  %v25459_v47 = vadd.f32 %v19374_v24, %v25346_v13  ;;  %v25467_v11 = vld [vmem:[#allocation3 + $0xa8] ss:$208 sps:$4 sm:$0xff]   ;;  %v22674_v13 = vld [vmem:[#allocation6 + $0x2040] ss:$12 sps:$4 sm:$0xff]  }
 0x5a6   :  { %15874 = vmatmul.mubr.bf16.gmra.mrb[156].mxu1 %v25453_v34  ;;  %13293 = vmatpush1.bf16.msra.mxu0 %v22661_v42  ;;  %v22739_v42 = vld [vmem:[#allocation6 + $0x2228] ss:$12 sps:$4 sm:$0xff]   ;;  %v22692_v45 = vld [vmem:[#allocation6 + $0x20a0] ss:$12 sps:$4 sm:$0xff]  }
 0x5a7   :  { %13294 = vmatprep.subr.bf16.mxu0 %v22668_v62  ;;  %13239 = vmatprep.mubr.bf16.mxu0 %v25399_v29  ;;  %v25464_v46 = vadd.f32 %v19377_v4, %v25351_v27  ;;  %v22714_v29 = vld [vmem:[#allocation6 + $0x2108] ss:$12 sps:$4 sm:$0xff]   ;;  %v22718_v27 = vld [vmem:[#allocation6 + $0x21e0] ss:$12 sps:$4 sm:$0xff]  }
 0x5a8   :  { %15914 = vmatprep.mubr.bf16.mxu1 %v25455_v14  ;;  %v25495_v24 = vld [vmem:[#allocation3 + $0x3e8] ss:$208 sps:$4 sm:$0xff]  }
 0x5a9   :  { %v19378_v59 = vpop.f32.mrb[52].mxu1 }
 0x5aa   :  { %v19379_v49 = vpop.f32.mrb[53].mxu1  ;;  %13295 = vmatpush1.bf16.msra.mxu0 %v22666_v53  ;;  %v25497_v53 = vld [vmem:[#allocation3 + $0x58c] ss:$208 sps:$4 sm:$0xff]  }
 0x5ab   :  { %v19380_v6 = vadd.f32 %v19379_v49, %v19378_v59  ;;  %v19381_v41 = vpop.f32.mrb[54].mxu1  ;;  %13296 = vmatprep.subr.bf16.mxu0 %v22676_v25  ;;  %v22744_v59 = vld [vmem:[#allocation6 + $0x2240] ss:$12 sps:$4 sm:$0xff]  }
 0x5ac   :  { %v19382_v57 = vpop.f32.mrb[55].mxu1 }
 0x5ad   :  { %v19383_v5 = vadd.f32 %v19382_v57, %v19381_v41  ;;  %13240 = vmatmul.mubr.bf16.gmra.mrb[16].mxu0 %v25411_v54  ;;  %v25473_v48 = vadd.f32 %v19380_v6, %v25360_v31  ;;  %v22703_v6 = vld [vmem:[#allocation6 + $0x20d4] ss:$12 sps:$4 sm:$0xff]   ;;  %v22752_v57 = vld [vmem:[#allocation6 + $0x2258] ss:$12 sps:$4 sm:$0xff]  }
 0x5ae   :  { %15915 = vmatmul.mubr.bf16.vlgmr.msra.gmra.mrb[160].mxu1 %v25467_v11  ;;  %13297 = vmatpush1.bf16.msra.mxu0 %v22674_v13  ;;  %v22695_v13 = vld [vmem:[#allocation6 + $0x20b8] ss:$12 sps:$4 sm:$0xff]  }
 0x5af   :  { %13298 = vmatprep.subr.bf16.mxu0 %v22679_v1  ;;  %13249 = vmatprep.mubr.bf16.mxu0 %v25413_v22  ;;  %v25478_v56 = vadd.f32 %v19383_v5, %v25365_v0  ;;  %v22688_v22 = vld [vmem:[#allocation6 + $0x208c] ss:$12 sps:$4 sm:$0xff]   ;;  %v22701_v5 = vld [vmem:[#allocation6 + $0x20d0] ss:$12 sps:$4 sm:$0xff]  }
 0x5b0   :  { %15922 = vmatprep.mubr.bf16.mxu1 %v25469_v50  ;;  %19653 = vmatpush3.bf16.msra.mxu1 %v22714_v29  ;;  %v22727_v0 = vld [vmem:[#allocation6 + $0x2138] ss:$12 sps:$4 sm:$0xff]  }
 0x5b1   :  { %v19384_v54 = vpop.f32.mrb[56].mxu1  ;;  %19654 = vmatprep.subr.bf16.mxu1 %v22718_v27  ;;  %v25509_v29 = vld [vmem:[#allocation3 + $0x588] ss:$208 sps:$4 sm:$0xff]  }
 0x5b2   :  { %v19385_v31 = vpop.f32.mrb[57].mxu1  ;;  %13299 = vmatpush1.bf16.msra.mxu0 %v22677_v30 }
 0x5b3   :  { %v19386_v21 = vadd.f32 %v19385_v31, %v19384_v54  ;;  %v19387_v18 = vpop.f32.mrb[58].mxu1  ;;  %13300 = vmatprep.subr.bf16.mxu0 %v22685_v40 }
 0x5b4   :  { %v19388_v39 = vpop.f32.mrb[59].mxu1  ;;  %19655 = vmatpush3.bf16.msra.mxu1 %v22719_v43  ;;  %v25511_v43 = vld [vmem:[#allocation3 + $0x72c] ss:$208 sps:$4 sm:$0xff]  }
 0x5b5   :  { %v19389_v19 = vadd.f32 %v19388_v39, %v19387_v18  ;;  %13250 = vmatmul.mubr.bf16.gmra.mrb[20].mxu0 %v25425_v7  ;;  %19656 = vmatprep.subr.bf16.mxu1 %v22726_v44  ;;  %v25487_v12 = vadd.f32 %v19386_v21, %v25374_v20  ;;  %v22732_v7 = vld [vmem:[#allocation6 + $0x2150] ss:$12 sps:$4 sm:$0xff]   ;;  %v22801_v39 = vld [vmem:[#allocation6 + $0x2348] ss:$12 sps:$4 sm:$0xff]  }
 0x5b6   :  { %15923 = vmatmul.mubr.bf16.gmra.mrb[164].mxu1 %v25481_v60  ;;  %13301 = vmatpush1.bf16.msra.mxu0 %v22683_v28  ;;  %v22757_v44 = vld [vmem:[#allocation6 + $0x2270] ss:$12 sps:$4 sm:$0xff]   ;;  %v22704_v28 = vld [vmem:[#allocation6 + $0x20e8] ss:$12 sps:$4 sm:$0xff]  }
 0x5b7   :  { %13302 = vmatprep.subr.bf16.mxu0 %v22688_v22  ;;  %13259 = vmatprep.mubr.bf16.mxu0 %v25427_v32  ;;  %v25492_v33 = vadd.f32 %v19389_v19, %v25379_v37  ;;  %v22697_v32 = vld [vmem:[#allocation6 + $0x20bc] ss:$12 sps:$4 sm:$0xff]   ;;  %v22712_v21 = vld [vmem:[#allocation6 + $0x2104] ss:$12 sps:$4 sm:$0xff]   ;;  %v22710_v19 = vld [vmem:[#allocation6 + $0x2100] ss:$12 sps:$4 sm:$0xff]  }
 0x5b8   :  { %15930 = vmatprep.mubr.bf16.mxu1 %v25483_v35  ;;  %19657 = vmatpush3.bf16.msra.mxu1 %v22727_v0  ;;  %v22740_v37 = vld [vmem:[#allocation6 + $0x2168] ss:$12 sps:$4 sm:$0xff]  }
 0x5b9   :  { %v19390_v16 = vpop.f32.mrb[60].mxu1  ;;  %19658 = vmatprep.subr.bf16.mxu1 %v22731_v3  ;;  %v25523_v0 = vld [vmem:[#allocation3 + $0x728] ss:$208 sps:$4 sm:$0xff]  }
 0x5ba   :  { %v19391_v20 = vpop.f32.mrb[61].mxu1  ;;  %13303 = vmatpush1.bf16.msra.mxu0 %v22686_v58 }
 0x5bb   :  { %v19392_v62 = vadd.f32 %v19391_v20, %v19390_v16  ;;  %v19393_v26 = vpop.f32.mrb[62].mxu1  ;;  %13304 = vmatprep.subr.bf16.mxu0 %v22694_v15 }
 0x5bc   :  { %v19394_v4 = vpop.f32.mrb[63].mxu1  ;;  %19659 = vmatpush3.bf16.msra.mxu1 %v22732_v7  ;;  %v25525_v7 = vld [vmem:[#allocation3 + $0x8cc] ss:$208 sps:$4 sm:$0xff]  }
 0x5bd   :  { %v19395_v25 = vadd.f32 %v19394_v4, %v19393_v26  ;;  %13260 = vmatmul.mubr.bf16.gmra.mrb[24].mxu0 %v25439_v61  ;;  %19660 = vmatprep.subr.bf16.mxu1 %v22739_v42  ;;  %v25501_v49 = vadd.f32 %v19392_v62, %v25388_v2  ;;  %v22745_v61 = vld [vmem:[#allocation6 + $0x2180] ss:$12 sps:$4 sm:$0xff]   ;;  %v22715_v42 = vld [vmem:[#allocation6 + $0x2118] ss:$12 sps:$4 sm:$0xff]  }
 0x5be   :  { %15931 = vmatmul.mubr.bf16.gmra.mrb[168].mxu1 %v25495_v24  ;;  %13305 = vmatpush1.bf16.msra.mxu0 %v22692_v45  ;;  %v22725_v45 = vld [vmem:[#allocation6 + $0x2134] ss:$12 sps:$4 sm:$0xff]   ;;  %v25537_v26 = vld [vmem:[#allocation3 + $0x8c8] ss:$208 sps:$4 sm:$0xff]  }
 0x5bf   :  { %13306 = vmatprep.subr.bf16.mxu0 %v22697_v32  ;;  %13269 = vmatprep.mubr.bf16.mxu0 %v25441_v63  ;;  %v25506_v41 = vadd.f32 %v19395_v25, %v25393_v51  ;;  %v22706_v63 = vld [vmem:[#allocation6 + $0x20ec] ss:$12 sps:$4 sm:$0xff]  }
 0x5c0   :  { %15938 = vmatprep.mubr.bf16.mxu1 %v25497_v53  ;;  %19661 = vmatpush3.bf16.msra.mxu1 %v22740_v37  ;;  %v22753_v51 = vld [vmem:[#allocation6 + $0x2198] ss:$12 sps:$4 sm:$0xff]  }
 0x5c1   :  { %v19412_v1 = vpop.f32.mrb[64].mxu1  ;;  %19662 = vmatprep.subr.bf16.mxu1 %v22744_v59  ;;  %v22730_v37 = vld [vmem:[#allocation6 + $0x214c] ss:$12 sps:$4 sm:$0xff]  }
 0x5c2   :  { %v19413_v2 = vpop.f32.mrb[65].mxu1  ;;  %13307 = vmatpush1.bf16.msra.mxu0 %v22695_v13  ;;  %v25539_v59 = vld [vmem:[#allocation3 + $0xa6c] ss:$208 sps:$4 sm:$0xff]   ;;  %v22728_v13 = vld [vmem:[#allocation6 + $0x2148] ss:$12 sps:$4 sm:$0xff]  }
 0x5c3   :  { %v19414_v27 = vadd.f32 %v19413_v2, %v19412_v1  ;;  %v19415_v30 = vpop.f32.mrb[66].mxu1  ;;  %13308 = vmatprep.subr.bf16.mxu0 %v22703_v6  ;;  %v22736_v2 = vld [vmem:[#allocation6 + $0x2160] ss:$12 sps:$4 sm:$0xff]  }
 0x5c4   :  { %v19416_v40 = vpop.f32.mrb[67].mxu1  ;;  %19663 = vmatpush3.bf16.msra.mxu1 %v22745_v61  ;;  %v22738_v61 = vld [vmem:[#allocation6 + $0x2164] ss:$12 sps:$4 sm:$0xff]  }
 0x5c5   :  { %v19417_v54 = vadd.f32 %v19416_v40, %v19415_v30  ;;  %13270 = vmatmul.mubr.bf16.gmra.mrb[28].mxu0 %v25453_v34  ;;  %19664 = vmatprep.subr.bf16.mxu1 %v22752_v57  ;;  %v25515_v31 = vadd.f32 %v19414_v27, %v25402_v23  ;;  %v22758_v34 = vld [vmem:[#allocation6 + $0x21b0] ss:$12 sps:$4 sm:$0xff]   ;;  %v22741_v40 = vld [vmem:[#allocation6 + $0x2178] ss:$12 sps:$4 sm:$0xff]  }
 0x5c6   :  { %15939 = vmatmul.mubr.bf16.gmra.mrb[172].mxu1 %v25509_v29  ;;  %13309 = vmatpush1.bf16.msra.mxu0 %v22701_v5  ;;  %v22743_v27 = vld [vmem:[#allocation6 + $0x217c] ss:$12 sps:$4 sm:$0xff]  }
 0x5c7   :  { %13310 = vmatprep.subr.bf16.mxu0 %v22706_v63  ;;  %13312 = vmatprep.mubr.bf16.mxu0 %v25455_v14  ;;  %v25520_v18 = vadd.f32 %v19417_v54, %v25407_v36  ;;  %v22717_v14 = vld [vmem:[#allocation6 + $0x211c] ss:$12 sps:$4 sm:$0xff]   ;;  %v22751_v54 = vld [vmem:[#allocation6 + $0x2194] ss:$12 sps:$4 sm:$0xff]  }
 0x5c8   :  { %15946 = vmatprep.mubr.bf16.mxu1 %v25511_v43  ;;  %19665 = vmatpush3.bf16.msra.mxu1 %v22753_v51  ;;  %v25553_v63 = vld [vmem:[#allocation3 + $0xc0c] ss:$208 sps:$4 sm:$0xff]  }
 0x5c9   :  { %v19418_v22 = vpop.f32.mrb[68].mxu1  ;;  %19666 = vmatprep.subr.bf16.mxu1 %v22757_v44 }
 0x5ca   :  { %v19419_v23 = vpop.f32.mrb[69].mxu1  ;;  %13311 = vmatpush1.bf16.msra.mxu0 %v22704_v28 }
 0x5cb   :  { %v19420_v3 = vadd.f32 %v19419_v23, %v19418_v22  ;;  %v19421_v58 = vpop.f32.mrb[70].mxu1  ;;  %13393 = vmatprep.subr.bf16.mxu0 %v22712_v21  ;;  %v22749_v21 = vld [vmem:[#allocation6 + $0x2190] ss:$12 sps:$4 sm:$0xff]   ;;  %v22756_v22 = vld [vmem:[#allocation6 + $0x21ac] ss:$12 sps:$4 sm:$0xff]  }
 0x5cc   :  { %v19422_v15 = vpop.f32.mrb[71].mxu1  ;;  %19667 = vmatpush3.bf16.msra.mxu1 %v22758_v34  ;;  %v25567_v23 = vld [vmem:[#allocation3 + $0xb4] ss:$208 sps:$4 sm:$0xff]  }
 0x5cd   :  { %v25528_v36 = vadd.f32 %v19420_v3, %v25417_v55  ;;  %v19423_v16 = vadd.f32 %v19422_v15, %v19421_v58  ;;  %13313 = vmatmul.mubr.bf16.vlgmr.msra.gmra.mrb[0].mxu0 %v25467_v11  ;;  %19716 = vmatprep.subr.bf16.mxu1 %v22801_v39  ;;  %v22723_v11 = vld [vmem:[#allocation6 + $0x2130] ss:$12 sps:$4 sm:$0xff]  }
 0x5ce   :  { %15947 = vmatmul.mubr.bf16.gmra.mrb[176].mxu1 %v25523_v0  ;;  %13394 = vmatpush1.bf16.msra.mxu0 %v22710_v19  ;;  %v22754_v19 = vld [vmem:[#allocation6 + $0x21a8] ss:$12 sps:$4 sm:$0xff]   ;;  %v22764_v58 = vld [vmem:[#allocation6 + $0x21c4] ss:$12 sps:$4 sm:$0xff]  }
 0x5cf   :  { %v25533_v20 = vadd.f32 %v19423_v16, %v25422_v9  ;;  %13395 = vmatprep.subr.bf16.mxu0 %v22717_v14  ;;  %13322 = vmatprep.mubr.bf16.mxu0 %v25469_v50  ;;  %v22762_v16 = vld [vmem:[#allocation6 + $0x21c0] ss:$12 sps:$4 sm:$0xff]  }
 0x5d0   :  { %15954 = vmatprep.mubr.bf16.mxu1 %v25525_v7 }
 0x5d1   :  { %v19424_v62 = vpop.f32.mrb[72].mxu1 }
 0x5d2   :  { %v19425_v55 = vpop.f32.mrb[73].mxu1  ;;  %13396 = vmatpush1.bf16.msra.mxu0 %v22715_v42 }
 0x5d3   :  { %v19426_v32 = vadd.f32 %v19425_v55, %v19424_v62  ;;  %v19427_v4 = vpop.f32.mrb[74].mxu1  ;;  %13397 = vmatprep.subr.bf16.mxu0 %v22725_v45  ;;  %v22767_v45 = vld [vmem:[#allocation6 + $0x21dc] ss:$12 sps:$4 sm:$0xff]   ;;  %v25581_v55 = vld [vmem:[#allocation3 + $0x254] ss:$208 sps:$4 sm:$0xff]  }
 0x5d4   :  { %v19428_v25 = vpop.f32.mrb[75].mxu1 }
 0x5d5   :  { %v25542_v9 = vadd.f32 %v19426_v32, %v25431_v8  ;;  %v19429_v50 = vadd.f32 %v19428_v25, %v19427_v4  ;;  %13323 = vmatmul.mubr.bf16.gmra.mrb[4].mxu0 %v25481_v60  ;;  %v25551_v8 = vld [vmem:[#allocation3 + $0xa68] ss:$208 sps:$4 sm:$0xff]   ;;  %v22806_v32 = vld [vmem:[#allocation6 + $0x2360] ss:$12 sps:$4 sm:$0xff]  }
 0x5d6   :  { %15955 = vmatmul.mubr.bf16.gmra.mrb[180].mxu1 %v25537_v26  ;;  %13398 = vmatpush1.bf16.msra.mxu0 %v22723_v11  ;;  %v22765_v4 = vld [vmem:[#allocation6 + $0x21d8] ss:$12 sps:$4 sm:$0xff]   ;;  %v22773_v25 = vld [vmem:[#allocation6 + $0x21f4] ss:$12 sps:$4 sm:$0xff]  }
 0x5d7   :  { %v25547_v6 = vadd.f32 %v19429_v50, %v25436_v10  ;;  %13399 = vmatprep.subr.bf16.mxu0 %v22730_v37  ;;  %13332 = vmatprep.mubr.bf16.mxu0 %v25483_v35 }
 0x5d8   :  { %15962 = vmatprep.mubr.bf16.mxu1 %v25539_v59 }
 0x5d9   :  { %v19430_v1 = vpop.f32.mrb[76].mxu1 }
 0x5da   :  { %v19431_v57 = vpop.f32.mrb[77].mxu1  ;;  %13400 = vmatpush1.bf16.msra.mxu0 %v22728_v13  ;;  %v22814_v13 = vld [vmem:[#allocation6 + $0x2378] ss:$12 sps:$4 sm:$0xff]  }
 0x5db   :  { %v19432_v60 = vadd.f32 %v19431_v57, %v19430_v1  ;;  %v19433_v5 = vpop.f32.mrb[78].mxu1  ;;  %13401 = vmatprep.subr.bf16.mxu0 %v22738_v61  ;;  %v25593_v61 = vld [vmem:[#allocation3 + $0x250] ss:$208 sps:$4 sm:$0xff]  }
 0x5dc   :  { %v19434_v30 = vpop.f32.mrb[79].mxu1  ;;  %v22771_v1 = vld [vmem:[#allocation6 + $0x21f0] ss:$12 sps:$4 sm:$0xff]  }
 0x5dd   :  { %v25556_v10 = vadd.f32 %v19432_v60, %v25445_v52  ;;  %v19435_v35 = vadd.f32 %v19434_v30, %v19433_v5  ;;  %13333 = vmatmul.mubr.bf16.gmra.mrb[8].mxu0 %v25495_v24  ;;  %v25565_v52 = vld [vmem:[#allocation3 + $0xc08] ss:$208 sps:$4 sm:$0xff]   ;;  %v25595_v5 = vld [vmem:[#allocation3 + $0x3f4] ss:$208 sps:$4 sm:$0xff]  }
 0x5de   :  { %15963 = vmatmul.mubr.bf16.gmra.mrb[184].mxu1 %v25551_v8  ;;  %13402 = vmatpush1.bf16.msra.mxu0 %v22736_v2 }
 0x5df   :  { %v25561_v51 = vadd.f32 %v19435_v35, %v25450_v38  ;;  %13403 = vmatprep.subr.bf16.mxu0 %v22743_v27  ;;  %13342 = vmatprep.mubr.bf16.mxu0 %v25497_v53  ;;  %v22819_v35 = vld [vmem:[#allocation6 + $0x2390] ss:$12 sps:$4 sm:$0xff]  }
 0x5e0   :  { %15970 = vmatprep.mubr.bf16.mxu1 %v25553_v63 }
 0x5e1   :  { %v19436_v44 = vpop.f32.mrb[80].mxu1 }
 0x5e2   :  { %v19437_v28 = vpop.f32.mrb[81].mxu1  ;;  %13404 = vmatpush1.bf16.msra.mxu0 %v22741_v40  ;;  %v22774_v40 = vld [vmem:[#allocation6 + $0x2208] ss:$12 sps:$4 sm:$0xff]  }
 0x5e3   :  { %v19438_v24 = vadd.f32 %v19437_v28, %v19436_v44  ;;  %v19439_v34 = vpop.f32.mrb[82].mxu1  ;;  %13405 = vmatprep.subr.bf16.mxu0 %v22751_v54  ;;  %v22782_v44 = vld [vmem:[#allocation6 + $0x2224] ss:$12 sps:$4 sm:$0xff]  }
 0x5e4   :  { %v19440_v39 = vpop.f32.mrb[83].mxu1 }
 0x5e5   :  { %v25570_v38 = vadd.f32 %v19438_v24, %v25459_v47  ;;  %v19441_v53 = vadd.f32 %v19440_v39, %v19439_v34  ;;  %13343 = vmatmul.mubr.bf16.gmra.mrb[12].mxu0 %v25509_v29  ;;  %v25579_v47 = vld [vmem:[#allocation3 + $0xb0] ss:$208 sps:$4 sm:$0xff]  }
 0x5e6   :  { %15971 = vmatmul.mubr.bf16.gmra.mrb[188].mxu1 %v25565_v52  ;;  %13406 = vmatpush1.bf16.msra.mxu0 %v22749_v21  ;;  %v25607_v24 = vld [vmem:[#allocation3 + $0x3f0] ss:$208 sps:$4 sm:$0xff]  }
 0x5e7   :  { %v25575_v3 = vadd.f32 %v19441_v53, %v25464_v46  ;;  %13407 = vmatprep.subr.bf16.mxu0 %v22756_v22  ;;  %13352 = vmatprep.mubr.bf16.mxu0 %v25511_v43  ;;  %v22802_v46 = vld [vmem:[#allocation6 + $0x2288] ss:$12 sps:$4 sm:$0xff]   ;;  %v22780_v34 = vld [vmem:[#allocation6 + $0x2220] ss:$12 sps:$4 sm:$0xff]  }
 0x5e8   :  { %16011 = vmatprep.mubr.bf16.mxu1 %v25567_v23 }
 0x5e9   :  { %v19442_v14 = vpop.f32.mrb[84].mxu1 }
 0x5ea   :  { %v19443_v15 = vpop.f32.mrb[85].mxu1  ;;  %13408 = vmatpush1.bf16.msra.mxu0 %v22754_v19  ;;  %v25609_v19 = vld [vmem:[#allocation3 + $0x594] ss:$208 sps:$4 sm:$0xff]  }
 0x5eb   :  { %v19444_v29 = vadd.f32 %v19443_v15, %v19442_v14  ;;  %v19445_v42 = vpop.f32.mrb[86].mxu1  ;;  %13409 = vmatprep.subr.bf16.mxu0 %v22764_v58  ;;  %v22832_v15 = vld [vmem:[#allocation6 + $0x23c0] ss:$12 sps:$4 sm:$0xff]  }
 0x5ec   :  { %v19446_v62 = vpop.f32.mrb[87].mxu1 }
 0x5ed   :  { %v25584_v11 = vadd.f32 %v19444_v29, %v25473_v48  ;;  %v19447_v43 = vadd.f32 %v19446_v62, %v19445_v42  ;;  %13353 = vmatmul.mubr.bf16.gmra.mrb[16].mxu0 %v25523_v0  ;;  %v22807_v48 = vld [vmem:[#allocation6 + $0x22a0] ss:$12 sps:$4 sm:$0xff]  }
 0x5ee   :  { %16012 = vmatmul.mubr.bf16.vlgmr.msra.gmra.mrb[192].mxu1 %v25579_v47  ;;  %13410 = vmatpush1.bf16.msra.mxu0 %v22762_v16  ;;  %v22783_v16 = vld [vmem:[#allocation6 + $0x2238] ss:$12 sps:$4 sm:$0xff]   ;;  %v22791_v42 = vld [vmem:[#allocation6 + $0x2254] ss:$12 sps:$4 sm:$0xff]  }
 0x5ef   :  { %v25589_v37 = vadd.f32 %v19447_v43, %v25478_v56  ;;  %13411 = vmatprep.subr.bf16.mxu0 %v22767_v45  ;;  %13362 = vmatprep.mubr.bf16.mxu0 %v25525_v7  ;;  %v22776_v56 = vld [vmem:[#allocation6 + $0x220c] ss:$12 sps:$4 sm:$0xff]   ;;  %v22789_v43 = vld [vmem:[#allocation6 + $0x2250] ss:$12 sps:$4 sm:$0xff]  }
 0x5f0   :  { %16019 = vmatprep.mubr.bf16.mxu1 %v25581_v55  ;;  %19717 = vmatpush3.bf16.msra.mxu1 %v22802_v46  ;;  %v22815_v7 = vld [vmem:[#allocation6 + $0x22b8] ss:$12 sps:$4 sm:$0xff]   ;;  %v25621_v46 = vld [vmem:[#allocation3 + $0x590] ss:$208 sps:$4 sm:$0xff]  }
 0x5f1   :  { %v19448_v50 = vpop.f32.mrb[88].mxu1  ;;  %19718 = vmatprep.subr.bf16.mxu1 %v22806_v32 }
 0x5f2   :  { %v19449_v0 = vpop.f32.mrb[89].mxu1  ;;  %13412 = vmatpush1.bf16.msra.mxu0 %v22765_v4 }
 0x5f3   :  { %v19450_v57 = vadd.f32 %v19449_v0, %v19448_v50  ;;  %v19451_v2 = vpop.f32.mrb[90].mxu1  ;;  %13413 = vmatprep.subr.bf16.mxu0 %v22773_v25  ;;  %v22845_v0 = vld [vmem:[#allocation6 + $0x23f0] ss:$12 sps:$4 sm:$0xff]  }
 0x5f4   :  { %v19452_v60 = vpop.f32.mrb[91].mxu1  ;;  %19719 = vmatpush3.bf16.msra.mxu1 %v22807_v48  ;;  %v25623_v48 = vld [vmem:[#allocation3 + $0x734] ss:$208 sps:$4 sm:$0xff]  }
 0x5f5   :  { %v25598_v27 = vadd.f32 %v19450_v57, %v25487_v12  ;;  %v19453_v30 = vadd.f32 %v19452_v60, %v19451_v2  ;;  %13363 = vmatmul.mubr.bf16.gmra.mrb[20].mxu0 %v25537_v26  ;;  %19720 = vmatprep.subr.bf16.mxu1 %v22814_v13  ;;  %v22820_v12 = vld [vmem:[#allocation6 + $0x22d0] ss:$12 sps:$4 sm:$0xff]   ;;  %v22827_v26 = vld [vmem:[#allocation6 + $0x23a8] ss:$12 sps:$4 sm:$0xff]  }
 0x5f6   :  { %16020 = vmatmul.mubr.bf16.gmra.mrb[196].mxu1 %v25593_v61  ;;  %13414 = vmatpush1.bf16.msra.mxu0 %v22771_v1  ;;  %v22792_v1 = vld [vmem:[#allocation6 + $0x2268] ss:$12 sps:$4 sm:$0xff]   ;;  %v22800_v2 = vld [vmem:[#allocation6 + $0x2284] ss:$12 sps:$4 sm:$0xff]  }
 0x5f7   :  { %v25603_v54 = vadd.f32 %v19453_v30, %v25492_v33  ;;  %13415 = vmatprep.subr.bf16.mxu0 %v22776_v56  ;;  %13372 = vmatprep.mubr.bf16.mxu0 %v25539_v59  ;;  %v22785_v33 = vld [vmem:[#allocation6 + $0x223c] ss:$12 sps:$4 sm:$0xff]   ;;  %v22798_v30 = vld [vmem:[#allocation6 + $0x2280] ss:$12 sps:$4 sm:$0xff]  }
 0x5f8   :  { %16027 = vmatprep.mubr.bf16.mxu1 %v25595_v5  ;;  %19721 = vmatpush3.bf16.msra.mxu1 %v22815_v7  ;;  %v22828_v59 = vld [vmem:[#allocation6 + $0x22e8] ss:$12 sps:$4 sm:$0xff]   ;;  %v25635_v7 = vld [vmem:[#allocation3 + $0x730] ss:$208 sps:$4 sm:$0xff]  }
 0x5f9   :  { %v19454_v28 = vpop.f32.mrb[92].mxu1  ;;  %19722 = vmatprep.subr.bf16.mxu1 %v22819_v35 }
 0x5fa   :  { %v19455_v21 = vpop.f32.mrb[93].mxu1  ;;  %13416 = vmatpush1.bf16.msra.mxu0 %v22774_v40 }
 0x5fb   :  { %v19456_v22 = vadd.f32 %v19455_v21, %v19454_v28  ;;  %v19457_v39 = vpop.f32.mrb[94].mxu1  ;;  %13417 = vmatprep.subr.bf16.mxu0 %v22782_v44 }
 0x5fc   :  { %v19458_v53 = vpop.f32.mrb[95].mxu1  ;;  %19723 = vmatpush3.bf16.msra.mxu1 %v22820_v12  ;;  %v25637_v12 = vld [vmem:[#allocation3 + $0x8d4] ss:$208 sps:$4 sm:$0xff]  }
 0x5fd   :  { %v25612_v58 = vadd.f32 %v19456_v22, %v25501_v49  ;;  %v19459_v14 = vadd.f32 %v19458_v53, %v19457_v39  ;;  %13373 = vmatmul.mubr.bf16.gmra.mrb[24].mxu0 %v25551_v8  ;;  %19724 = vmatprep.subr.bf16.mxu1 %v22827_v26  ;;  %v22833_v49 = vld [vmem:[#allocation6 + $0x2300] ss:$12 sps:$4 sm:$0xff]   ;;  %v22840_v8 = vld [vmem:[#allocation6 + $0x23d8] ss:$12 sps:$4 sm:$0xff]  }
 0x5fe   :  { %16028 = vmatmul.mubr.bf16.gmra.mrb[200].mxu1 %v25607_v24  ;;  %13418 = vmatpush1.bf16.msra.mxu0 %v22780_v34  ;;  %v22803_v26 = vld [vmem:[#allocation6 + $0x2298] ss:$12 sps:$4 sm:$0xff]   ;;  %v22813_v34 = vld [vmem:[#allocation6 + $0x22b4] ss:$12 sps:$4 sm:$0xff]  }
 0x5ff   :  { %v25617_v29 = vadd.f32 %v19459_v14, %v25506_v41  ;;  %13419 = vmatprep.subr.bf16.mxu0 %v22785_v33  ;;  %13382 = vmatprep.mubr.bf16.mxu0 %v25553_v63  ;;  %v22794_v41 = vld [vmem:[#allocation6 + $0x226c] ss:$12 sps:$4 sm:$0xff]   ;;  %v25649_v39 = vld [vmem:[#allocation3 + $0x8d0] ss:$208 sps:$4 sm:$0xff]  }
 0x600   :  { %16035 = vmatprep.mubr.bf16.mxu1 %v25609_v19  ;;  %19725 = vmatpush3.bf16.msra.mxu1 %v22828_v59  ;;  %v22841_v63 = vld [vmem:[#allocation6 + $0x2318] ss:$12 sps:$4 sm:$0xff]  }
 0x601   :  { %v19476_v45 = vpop.f32.mrb[96].mxu1  ;;  %19726 = vmatprep.subr.bf16.mxu1 %v22832_v15  ;;  %v22818_v59 = vld [vmem:[#allocation6 + $0x22cc] ss:$12 sps:$4 sm:$0xff]   ;;  %v25651_v15 = vld [vmem:[#allocation3 + $0xa74] ss:$208 sps:$4 sm:$0xff]  }
 0x602   :  { %v19477_v62 = vpop.f32.mrb[97].mxu1  ;;  %13420 = vmatpush1.bf16.msra.mxu0 %v22783_v16  ;;  %v22816_v16 = vld [vmem:[#allocation6 + $0x22c8] ss:$12 sps:$4 sm:$0xff]  }
 0x603   :  { %v19478_v32 = vadd.f32 %v19477_v62, %v19476_v45  ;;  %v19479_v4 = vpop.f32.mrb[98].mxu1  ;;  %13421 = vmatprep.subr.bf16.mxu0 %v22791_v42  ;;  %v22824_v62 = vld [vmem:[#allocation6 + $0x22e0] ss:$12 sps:$4 sm:$0xff]  }
 0x604   :  { %v19480_v25 = vpop.f32.mrb[99].mxu1  ;;  %19727 = vmatpush3.bf16.msra.mxu1 %v22833_v49  ;;  %v22826_v49 = vld [vmem:[#allocation6 + $0x22e4] ss:$12 sps:$4 sm:$0xff]  }
 0x605   :  { %v25626_v50 = vadd.f32 %v19478_v32, %v25515_v31  ;;  %v19481_v13 = vadd.f32 %v19480_v25, %v19479_v4  ;;  %13383 = vmatmul.mubr.bf16.gmra.mrb[28].mxu0 %v25565_v52  ;;  %19728 = vmatprep.subr.bf16.mxu1 %v22840_v8  ;;  %v22846_v31 = vld [vmem:[#allocation6 + $0x2330] ss:$12 sps:$4 sm:$0xff]   ;;  %v22889_v52 = vld [vmem:[#allocation6 + $0x24c8] ss:$12 sps:$4 sm:$0xff]   ;;  %v22829_v25 = vld [vmem:[#allocation6 + $0x22f8] ss:$12 sps:$4 sm:$0xff]  }
 0x606   :  { %16036 = vmatmul.mubr.bf16.gmra.mrb[204].mxu1 %v25621_v46  ;;  %13422 = vmatpush1.bf16.msra.mxu0 %v22789_v43  ;;  %v22831_v32 = vld [vmem:[#allocation6 + $0x22fc] ss:$12 sps:$4 sm:$0xff]  }
 0x607   :  { %v25631_v57 = vadd.f32 %v19481_v13, %v25520_v18  ;;  %13423 = vmatprep.subr.bf16.mxu0 %v22794_v41  ;;  %13425 = vmatprep.mubr.bf16.mxu0 %v25567_v23  ;;  %v22805_v18 = vld [vmem:[#allocation6 + $0x229c] ss:$12 sps:$4 sm:$0xff]   ;;  %v25665_v41 = vld [vmem:[#allocation3 + $0xc14] ss:$208 sps:$4 sm:$0xff]  }
 0x608   :  { %16043 = vmatprep.mubr.bf16.mxu1 %v25623_v48  ;;  %19729 = vmatpush3.bf16.msra.mxu1 %v22841_v63  ;;  %v22839_v13 = vld [vmem:[#allocation6 + $0x2314] ss:$12 sps:$4 sm:$0xff]  }
 0x609   :  { %v19482_v56 = vpop.f32.mrb[100].mxu1  ;;  %19730 = vmatprep.subr.bf16.mxu1 %v22845_v0 }
 0x60a   :  { %v19483_v60 = vpop.f32.mrb[101].mxu1  ;;  %13424 = vmatpush1.bf16.msra.mxu0 %v22792_v1 }
 0x60b   :  { %v19484_v35 = vadd.f32 %v19483_v60, %v19482_v56  ;;  %v19485_v40 = vpop.f32.mrb[102].mxu1  ;;  %13506 = vmatprep.subr.bf16.mxu0 %v22800_v2  ;;  %v22837_v2 = vld [vmem:[#allocation6 + $0x2310] ss:$12 sps:$4 sm:$0xff]   ;;  %v22844_v56 = vld [vmem:[#allocation6 + $0x232c] ss:$12 sps:$4 sm:$0xff]  }
 0x60c   :  { %v19486_v44 = vpop.f32.mrb[103].mxu1  ;;  %19731 = vmatpush3.bf16.msra.mxu1 %v22846_v31  ;;  %v25679_v60 = vld [vmem:[#allocation3 + $0xbc] ss:$208 sps:$4 sm:$0xff]  }
 0x60d   :  { %v25640_v23 = vadd.f32 %v19484_v35, %v25528_v36  ;;  %v19487_v28 = vadd.f32 %v19486_v44, %v19485_v40  ;;  %13426 = vmatmul.mubr.bf16.vlgmr.msra.gmra.mrb[0].mxu0 %v25579_v47  ;;  %19780 = vmatprep.subr.bf16.mxu1 %v22889_v52  ;;  %v22811_v47 = vld [vmem:[#allocation6 + $0x22b0] ss:$12 sps:$4 sm:$0xff]  }
 0x60e   :  { %16044 = vmatmul.mubr.bf16.gmra.mrb[208].mxu1 %v25635_v7  ;;  %13507 = vmatpush1.bf16.msra.mxu0 %v22798_v30  ;;  %v22842_v30 = vld [vmem:[#allocation6 + $0x2328] ss:$12 sps:$4 sm:$0xff]   ;;  %v22852_v40 = vld [vmem:[#allocation6 + $0x2344] ss:$12 sps:$4 sm:$0xff]  }
 0x60f   :  { %v25645_v21 = vadd.f32 %v19487_v28, %v25533_v20  ;;  %13508 = vmatprep.subr.bf16.mxu0 %v22805_v18  ;;  %13435 = vmatprep.mubr.bf16.mxu0 %v25581_v55  ;;  %v22850_v28 = vld [vmem:[#allocation6 + $0x2340] ss:$12 sps:$4 sm:$0xff]  }
 0x610   :  { %16051 = vmatprep.mubr.bf16.mxu1 %v25637_v12 }
 0x611   :  { %v19488_v22 = vpop.f32.mrb[104].mxu1 }
 0x612   :  { %v19489_v36 = vpop.f32.mrb[105].mxu1  ;;  %13509 = vmatpush1.bf16.msra.mxu0 %v22803_v26 }
 0x613   :  { %v19490_v33 = vadd.f32 %v19489_v36, %v19488_v22  ;;  %v19491_v53 = vpop.f32.mrb[106].mxu1  ;;  %13510 = vmatprep.subr.bf16.mxu0 %v22813_v34  ;;  %v22855_v34 = vld [vmem:[#allocation6 + $0x235c] ss:$12 sps:$4 sm:$0xff]  }
 0x614   :  { %v19492_v14 = vpop.f32.mrb[107].mxu1  ;;  %v25693_v36 = vld [vmem:[#allocation3 + $0x25c] ss:$208 sps:$4 sm:$0xff]  }
 0x615   :  { %v25654_v20 = vadd.f32 %v19490_v33, %v25542_v9  ;;  %v19493_v55 = vadd.f32 %v19492_v14, %v19491_v53  ;;  %13436 = vmatmul.mubr.bf16.gmra.mrb[4].mxu0 %v25593_v61  ;;  %v25663_v9 = vld [vmem:[#allocation3 + $0xa70] ss:$208 sps:$4 sm:$0xff]   ;;  %v22853_v53 = vld [vmem:[#allocation6 + $0x2358] ss:$12 sps:$4 sm:$0xff]  }
 0x616   :  { %16052 = vmatmul.mubr.bf16.gmra.mrb[212].mxu1 %v25649_v39  ;;  %13511 = vmatpush1.bf16.msra.mxu0 %v22811_v47  ;;  %v22894_v33 = vld [vmem:[#allocation6 + $0x24e0] ss:$12 sps:$4 sm:$0xff]  }
 0x617   :  { %v25659_v42 = vadd.f32 %v19493_v55, %v25547_v6  ;;  %13512 = vmatprep.subr.bf16.mxu0 %v22818_v59  ;;  %13445 = vmatprep.mubr.bf16.mxu0 %v25595_v5  ;;  %v22861_v14 = vld [vmem:[#allocation6 + $0x2374] ss:$12 sps:$4 sm:$0xff]  }
 0x618   :  { %16059 = vmatprep.mubr.bf16.mxu1 %v25651_v15 }
 0x619   :  { %v19494_v45 = vpop.f32.mrb[108].mxu1 }
 0x61a   :  { %v19495_v8 = vpop.f32.mrb[109].mxu1  ;;  %13513 = vmatpush1.bf16.msra.mxu0 %v22816_v16  ;;  %v22902_v16 = vld [vmem:[#allocation6 + $0x24f8] ss:$12 sps:$4 sm:$0xff]  }
 0x61b   :  { %v19496_v61 = vadd.f32 %v19495_v8, %v19494_v45  ;;  %v19497_v43 = vpop.f32.mrb[110].mxu1  ;;  %13514 = vmatprep.subr.bf16.mxu0 %v22826_v49  ;;  %v25705_v49 = vld [vmem:[#allocation3 + $0x258] ss:$208 sps:$4 sm:$0xff]   ;;  %v22859_v45 = vld [vmem:[#allocation6 + $0x2370] ss:$12 sps:$4 sm:$0xff]  }
 0x61c   :  { %v19498_v4 = vpop.f32.mrb[111].mxu1 }
 0x61d   :  { %v25668_v6 = vadd.f32 %v19496_v61, %v25556_v10  ;;  %v19499_v5 = vadd.f32 %v19498_v4, %v19497_v43  ;;  %13446 = vmatmul.mubr.bf16.gmra.mrb[8].mxu0 %v25607_v24  ;;  %v25677_v10 = vld [vmem:[#allocation3 + $0xc10] ss:$208 sps:$4 sm:$0xff]   ;;  %v25707_v43 = vld [vmem:[#allocation3 + $0x3fc] ss:$208 sps:$4 sm:$0xff]  }
 0x61e   :  { %16060 = vmatmul.mubr.bf16.gmra.mrb[216].mxu1 %v25663_v9  ;;  %13515 = vmatpush1.bf16.msra.mxu0 %v22824_v62 }
 0x61f   :  { %v25673_v63 = vadd.f32 %v19499_v5, %v25561_v51  ;;  %13516 = vmatprep.subr.bf16.mxu0 %v22831_v32  ;;  %13455 = vmatprep.mubr.bf16.mxu0 %v25609_v19  ;;  %v22907_v5 = vld [vmem:[#allocation6 + $0x2510] ss:$12 sps:$4 sm:$0xff]  }
 0x620   :  { %16067 = vmatprep.mubr.bf16.mxu1 %v25665_v41 }
 0x621   :  { %v19500_v0 = vpop.f32.mrb[112].mxu1 }
 0x622   :  { %v19501_v1 = vpop.f32.mrb[113].mxu1  ;;  %13517 = vmatpush1.bf16.msra.mxu0 %v22829_v25  ;;  %v22862_v25 = vld [vmem:[#allocation6 + $0x2388] ss:$12 sps:$4 sm:$0xff]  }
 0x623   :  { %v19502_v24 = vadd.f32 %v19501_v1, %v19500_v0  ;;  %v19503_v31 = vpop.f32.mrb[114].mxu1  ;;  %13518 = vmatprep.subr.bf16.mxu0 %v22839_v13  ;;  %v22870_v0 = vld [vmem:[#allocation6 + $0x23a4] ss:$12 sps:$4 sm:$0xff]  }
 0x624   :  { %v19504_v52 = vpop.f32.mrb[115].mxu1 }
 0x625   :  { %v25682_v51 = vadd.f32 %v19502_v24, %v25570_v38  ;;  %v19505_v19 = vadd.f32 %v19504_v52, %v19503_v31  ;;  %13456 = vmatmul.mubr.bf16.gmra.mrb[12].mxu0 %v25621_v46  ;;  %v25691_v38 = vld [vmem:[#allocation3 + $0xb8] ss:$208 sps:$4 sm:$0xff]   ;;  %v22868_v31 = vld [vmem:[#allocation6 + $0x23a0] ss:$12 sps:$4 sm:$0xff]  }
 0x626   :  { %16068 = vmatmul.mubr.bf16.gmra.mrb[220].mxu1 %v25677_v10  ;;  %13519 = vmatpush1.bf16.msra.mxu0 %v22837_v2  ;;  %v25719_v24 = vld [vmem:[#allocation3 + $0x3f8] ss:$208 sps:$4 sm:$0xff]  }
 0x627   :  { %v25687_v35 = vadd.f32 %v19505_v19, %v25575_v3  ;;  %13520 = vmatprep.subr.bf16.mxu0 %v22844_v56  ;;  %13465 = vmatprep.mubr.bf16.mxu0 %v25623_v48  ;;  %v22890_v3 = vld [vmem:[#allocation6 + $0x2408] ss:$12 sps:$4 sm:$0xff]  }
 0x628   :  { %16108 = vmatprep.mubr.bf16.mxu1 %v25679_v60 }
 0x629   :  { %v19506_v18 = vpop.f32.mrb[116].mxu1 }
 0x62a   :  { %v19507_v44 = vpop.f32.mrb[117].mxu1  ;;  %13521 = vmatpush1.bf16.msra.mxu0 %v22842_v30  ;;  %v25721_v30 = vld [vmem:[#allocation3 + $0x59c] ss:$208 sps:$4 sm:$0xff]  }
 0x62b   :  { %v19508_v46 = vadd.f32 %v19507_v44, %v19506_v18  ;;  %v19509_v26 = vpop.f32.mrb[118].mxu1  ;;  %13522 = vmatprep.subr.bf16.mxu0 %v22852_v40  ;;  %v22920_v44 = vld [vmem:[#allocation6 + $0x2540] ss:$12 sps:$4 sm:$0xff]  }
 0x62c   :  { %v19510_v22 = vpop.f32.mrb[119].mxu1 }
 0x62d   :  { %v25696_v47 = vadd.f32 %v19508_v46, %v25584_v11  ;;  %v19511_v48 = vadd.f32 %v19510_v22, %v19509_v26  ;;  %13466 = vmatmul.mubr.bf16.gmra.mrb[16].mxu0 %v25635_v7  ;;  %v22895_v11 = vld [vmem:[#allocation6 + $0x2420] ss:$12 sps:$4 sm:$0xff]  }
 0x62e   :  { %16109 = vmatmul.mubr.bf16.vlgmr.msra.gmra.mrb[224].mxu1 %v25691_v38  ;;  %13523 = vmatpush1.bf16.msra.mxu0 %v22850_v28  ;;  %v22871_v28 = vld [vmem:[#allocation6 + $0x23b8] ss:$12 sps:$4 sm:$0xff]   ;;  %v22879_v26 = vld [vmem:[#allocation6 + $0x23d4] ss:$12 sps:$4 sm:$0xff]  }
 0x62f   :  { %v25701_v59 = vadd.f32 %v19511_v48, %v25589_v37  ;;  %13524 = vmatprep.subr.bf16.mxu0 %v22855_v34  ;;  %13475 = vmatprep.mubr.bf16.mxu0 %v25637_v12  ;;  %v22864_v37 = vld [vmem:[#allocation6 + $0x238c] ss:$12 sps:$4 sm:$0xff]   ;;  %v22877_v48 = vld [vmem:[#allocation6 + $0x23d0] ss:$12 sps:$4 sm:$0xff]  }
 0x630   :  { %16116 = vmatprep.mubr.bf16.mxu1 %v25693_v36  ;;  %19781 = vmatpush3.bf16.msra.mxu1 %v22890_v3  ;;  %v22903_v12 = vld [vmem:[#allocation6 + $0x2438] ss:$12 sps:$4 sm:$0xff]  }
 0x631   :  { %v19512_v55 = vpop.f32.mrb[120].mxu1  ;;  %19782 = vmatprep.subr.bf16.mxu1 %v22894_v33  ;;  %v25733_v3 = vld [vmem:[#allocation3 + $0x598] ss:$208 sps:$4 sm:$0xff]  }
 0x632   :  { %v19513_v7 = vpop.f32.mrb[121].mxu1  ;;  %13525 = vmatpush1.bf16.msra.mxu0 %v22853_v53 }
 0x633   :  { %v19514_v8 = vadd.f32 %v19513_v7, %v19512_v55  ;;  %v19515_v62 = vpop.f32.mrb[122].mxu1  ;;  %13526 = vmatprep.subr.bf16.mxu0 %v22861_v14  ;;  %v22933_v7 = vld [vmem:[#allocation6 + $0x2570] ss:$12 sps:$4 sm:$0xff]  }
 0x634   :  { %v19516_v61 = vpop.f32.mrb[123].mxu1  ;;  %19783 = vmatpush3.bf16.msra.mxu1 %v22895_v11  ;;  %v25735_v11 = vld [vmem:[#allocation3 + $0x73c] ss:$208 sps:$4 sm:$0xff]  }
 0x635   :  { %v25710_v32 = vadd.f32 %v19514_v8, %v25598_v27  ;;  %v19517_v4 = vadd.f32 %v19516_v61, %v19515_v62  ;;  %13476 = vmatmul.mubr.bf16.gmra.mrb[20].mxu0 %v25649_v39  ;;  %19784 = vmatprep.subr.bf16.mxu1 %v22902_v16  ;;  %v22908_v27 = vld [vmem:[#allocation6 + $0x2450] ss:$12 sps:$4 sm:$0xff]   ;;  %v22915_v39 = vld [vmem:[#allocation6 + $0x2528] ss:$12 sps:$4 sm:$0xff]  }
 0x636   :  { %16117 = vmatmul.mubr.bf16.gmra.mrb[228].mxu1 %v25705_v49  ;;  %13527 = vmatpush1.bf16.msra.mxu0 %v22859_v45  ;;  %v22880_v45 = vld [vmem:[#allocation6 + $0x23e8] ss:$12 sps:$4 sm:$0xff]   ;;  %v22888_v62 = vld [vmem:[#allocation6 + $0x2404] ss:$12 sps:$4 sm:$0xff]  }
 0x637   :  { %v25715_v13 = vadd.f32 %v19517_v4, %v25603_v54  ;;  %13528 = vmatprep.subr.bf16.mxu0 %v22864_v37  ;;  %13485 = vmatprep.mubr.bf16.mxu0 %v25651_v15  ;;  %v22873_v54 = vld [vmem:[#allocation6 + $0x23bc] ss:$12 sps:$4 sm:$0xff]   ;;  %v22886_v4 = vld [vmem:[#allocation6 + $0x2400] ss:$12 sps:$4 sm:$0xff]  }
 0x638   :  { %16124 = vmatprep.mubr.bf16.mxu1 %v25707_v43  ;;  %19785 = vmatpush3.bf16.msra.mxu1 %v22903_v12  ;;  %v22916_v15 = vld [vmem:[#allocation6 + $0x2468] ss:$12 sps:$4 sm:$0xff]  }
 0x639   :  { %v19518_v1 = vpop.f32.mrb[124].mxu1  ;;  %19786 = vmatprep.subr.bf16.mxu1 %v22907_v5  ;;  %v25747_v12 = vld [vmem:[#allocation3 + $0x738] ss:$208 sps:$4 sm:$0xff]  }
 0x63a   :  { %v19519_v2 = vpop.f32.mrb[125].mxu1  ;;  %13529 = vmatpush1.bf16.msra.mxu0 %v22862_v25 }
 0x63b   :  { %v19520_v56 = vadd.f32 %v19519_v2, %v19518_v1  ;;  %v19521_v52 = vpop.f32.mrb[126].mxu1  ;;  %13530 = vmatprep.subr.bf16.mxu0 %v22870_v0 }
 0x63c   :  { %v19522_v19 = vpop.f32.mrb[127].mxu1  ;;  %19787 = vmatpush3.bf16.msra.mxu1 %v22908_v27  ;;  %v25749_v27 = vld [vmem:[#allocation3 + $0x8dc] ss:$208 sps:$4 sm:$0xff]  }
 0x63d   :  { %v25724_v40 = vadd.f32 %v19520_v56, %v25612_v58  ;;  %v19523_v18 = vadd.f32 %v19522_v19, %v19521_v52  ;;  %13486 = vmatmul.mubr.bf16.gmra.mrb[24].mxu0 %v25663_v9  ;;  %19788 = vmatprep.subr.bf16.mxu1 %v22915_v39  ;;  %v22921_v58 = vld [vmem:[#allocation6 + $0x2480] ss:$12 sps:$4 sm:$0xff]   ;;  %v22928_v9 = vld [vmem:[#allocation6 + $0x2558] ss:$12 sps:$4 sm:$0xff]  }
 0x63e   :  { %16125 = vmatmul.mubr.bf16.gmra.mrb[232].mxu1 %v25719_v24  ;;  %13531 = vmatpush1.bf16.msra.mxu0 %v22868_v31  ;;  %v22891_v39 = vld [vmem:[#allocation6 + $0x2418] ss:$12 sps:$4 sm:$0xff]   ;;  %v22901_v31 = vld [vmem:[#allocation6 + $0x2434] ss:$12 sps:$4 sm:$0xff]  }
 0x63f   :  { %v25729_v46 = vadd.f32 %v19523_v18, %v25617_v29  ;;  %13532 = vmatprep.subr.bf16.mxu0 %v22873_v54  ;;  %13495 = vmatprep.mubr.bf16.mxu0 %v25665_v41  ;;  %v22882_v29 = vld [vmem:[#allocation6 + $0x23ec] ss:$12 sps:$4 sm:$0xff]  }
 0x640   :  { %16132 = vmatprep.mubr.bf16.mxu1 %v25721_v30  ;;  %19789 = vmatpush3.bf16.msra.mxu1 %v22916_v15  ;;  %v22929_v41 = vld [vmem:[#allocation6 + $0x2498] ss:$12 sps:$4 sm:$0xff]  }
 0x641   :  { %v19540_v34 = vpop.f32.mrb[128].mxu1  ;;  %19790 = vmatprep.subr.bf16.mxu1 %v22920_v44  ;;  %v25761_v52 = vld [vmem:[#allocation3 + $0x8d8] ss:$208 sps:$4 sm:$0xff]   ;;  %v25763_v44 = vld [vmem:[#allocation3 + $0xa7c] ss:$208 sps:$4 sm:$0xff]  }
 0x642   :  { %v19541_v22 = vpop.f32.mrb[129].mxu1  ;;  %13533 = vmatpush1.bf16.msra.mxu0 %v22871_v28  ;;  %v22906_v15 = vld [vmem:[#allocation6 + $0x244c] ss:$12 sps:$4 sm:$0xff]   ;;  %v22904_v28 = vld [vmem:[#allocation6 + $0x2448] ss:$12 sps:$4 sm:$0xff]  }
 0x643   :  { %v19542_v33 = vadd.f32 %v19541_v22, %v19540_v34  ;;  %v19543_v53 = vpop.f32.mrb[130].mxu1  ;;  %13534 = vmatprep.subr.bf16.mxu0 %v22879_v26  ;;  %v22912_v22 = vld [vmem:[#allocation6 + $0x2460] ss:$12 sps:$4 sm:$0xff]  }
 0x644   :  { %v19544_v14 = vpop.f32.mrb[131].mxu1  ;;  %19791 = vmatpush3.bf16.msra.mxu1 %v22921_v58  ;;  %v22914_v58 = vld [vmem:[#allocation6 + $0x2464] ss:$12 sps:$4 sm:$0xff]  }
 0x645   :  { %v25738_v55 = vadd.f32 %v19542_v33, %v25626_v50  ;;  %v19545_v16 = vadd.f32 %v19544_v14, %v19543_v53  ;;  %13496 = vmatmul.mubr.bf16.gmra.mrb[28].mxu0 %v25677_v10  ;;  %19792 = vmatprep.subr.bf16.mxu1 %v22928_v9  ;;  %v22934_v50 = vld [vmem:[#allocation6 + $0x24b0] ss:$12 sps:$4 sm:$0xff]   ;;  %v22977_v10 = vld [vmem:[#allocation6 + $0x2648] ss:$12 sps:$4 sm:$0xff]   ;;  %v22917_v14 = vld [vmem:[#allocation6 + $0x2478] ss:$12 sps:$4 sm:$0xff]  }
 0x646   :  { %16133 = vmatmul.mubr.bf16.gmra.mrb[236].mxu1 %v25733_v3  ;;  %13535 = vmatpush1.bf16.msra.mxu0 %v22877_v48  ;;  %v22919_v33 = vld [vmem:[#allocation6 + $0x247c] ss:$12 sps:$4 sm:$0xff]  }
 0x647   :  { %v25743_v8 = vadd.f32 %v19545_v16, %v25631_v57  ;;  %13536 = vmatprep.subr.bf16.mxu0 %v22882_v29  ;;  %13538 = vmatprep.mubr.bf16.mxu0 %v25679_v60  ;;  %v22893_v57 = vld [vmem:[#allocation6 + $0x241c] ss:$12 sps:$4 sm:$0xff]   ;;  %v22927_v16 = vld [vmem:[#allocation6 + $0x2494] ss:$12 sps:$4 sm:$0xff]  }
 0x648   :  { %16140 = vmatprep.mubr.bf16.mxu1 %v25735_v11  ;;  %19793 = vmatpush3.bf16.msra.mxu1 %v22929_v41  ;;  %v25777_v29 = vld [vmem:[#allocation3 + $0xc1c] ss:$208 sps:$4 sm:$0xff]  }
 0x649   :  { %v19546_v37 = vpop.f32.mrb[132].mxu1  ;;  %19794 = vmatprep.subr.bf16.mxu1 %v22933_v7 }
 0x64a   :  { %v19547_v61 = vpop.f32.mrb[133].mxu1  ;;  %13537 = vmatpush1.bf16.msra.mxu0 %v22880_v45 }
 0x64b   :  { %v19548_v5 = vadd.f32 %v19547_v61, %v19546_v37  ;;  %v19549_v25 = vpop.f32.mrb[134].mxu1  ;;  %13619 = vmatprep.subr.bf16.mxu0 %v22888_v62  ;;  %v22925_v62 = vld [vmem:[#allocation6 + $0x2490] ss:$12 sps:$4 sm:$0xff]   ;;  %v22932_v37 = vld [vmem:[#allocation6 + $0x24ac] ss:$12 sps:$4 sm:$0xff]  }
 0x64c   :  { %v19550_v0 = vpop.f32.mrb[135].mxu1  ;;  %19795 = vmatpush3.bf16.msra.mxu1 %v22934_v50  ;;  %v25791_v61 = vld [vmem:[#allocation3 + $0xc4] ss:$208 sps:$4 sm:$0xff]  }
 0x64d   :  { %v25752_v60 = vadd.f32 %v19548_v5, %v25640_v23  ;;  %v19551_v1 = vadd.f32 %v19550_v0, %v19549_v25  ;;  %13539 = vmatmul.mubr.bf16.vlgmr.msra.gmra.mrb[0].mxu0 %v25691_v38  ;;  %19844 = vmatprep.subr.bf16.mxu1 %v22977_v10  ;;  %v22899_v38 = vld [vmem:[#allocation6 + $0x2430] ss:$12 sps:$4 sm:$0xff]  }
 0x64e   :  { %16141 = vmatmul.mubr.bf16.gmra.mrb[240].mxu1 %v25747_v12  ;;  %13620 = vmatpush1.bf16.msra.mxu0 %v22886_v4  ;;  %v22930_v4 = vld [vmem:[#allocation6 + $0x24a8] ss:$12 sps:$4 sm:$0xff]   ;;  %v22940_v25 = vld [vmem:[#allocation6 + $0x24c4] ss:$12 sps:$4 sm:$0xff]  }
 0x64f   :  { %v25757_v2 = vadd.f32 %v19551_v1, %v25645_v21  ;;  %13621 = vmatprep.subr.bf16.mxu0 %v22893_v57  ;;  %13548 = vmatprep.mubr.bf16.mxu0 %v25693_v36  ;;  %v22938_v1 = vld [vmem:[#allocation6 + $0x24c0] ss:$12 sps:$4 sm:$0xff]  }
 0x650   :  { %16148 = vmatprep.mubr.bf16.mxu1 %v25749_v27 }
 0x651   :  { %v19552_v56 = vpop.f32.mrb[136].mxu1 }
 0x652   :  { %v19553_v23 = vpop.f32.mrb[137].mxu1  ;;  %13622 = vmatpush1.bf16.msra.mxu0 %v22891_v39 }
 0x653   :  { %v19554_v54 = vadd.f32 %v19553_v23, %v19552_v56  ;;  %v19555_v19 = vpop.f32.mrb[138].mxu1  ;;  %13623 = vmatprep.subr.bf16.mxu0 %v22901_v31  ;;  %v22943_v31 = vld [vmem:[#allocation6 + $0x24dc] ss:$12 sps:$4 sm:$0xff]   ;;  %v25805_v23 = vld [vmem:[#allocation3 + $0x264] ss:$208 sps:$4 sm:$0xff]  }
 0x654   :  { %v19556_v18 = vpop.f32.mrb[139].mxu1 }
 0x655   :  { %v25766_v21 = vadd.f32 %v19554_v54, %v25654_v20  ;;  %v19557_v36 = vadd.f32 %v19556_v18, %v19555_v19  ;;  %13549 = vmatmul.mubr.bf16.gmra.mrb[4].mxu0 %v25705_v49  ;;  %v25775_v20 = vld [vmem:[#allocation3 + $0xa78] ss:$208 sps:$4 sm:$0xff]   ;;  %v22982_v54 = vld [vmem:[#allocation6 + $0x2660] ss:$12 sps:$4 sm:$0xff]  }
 0x656   :  { %16149 = vmatmul.mubr.bf16.gmra.mrb[244].mxu1 %v25761_v52  ;;  %13624 = vmatpush1.bf16.msra.mxu0 %v22899_v38  ;;  %v22941_v19 = vld [vmem:[#allocation6 + $0x24d8] ss:$12 sps:$4 sm:$0xff]   ;;  %v22949_v18 = vld [vmem:[#allocation6 + $0x24f4] ss:$12 sps:$4 sm:$0xff]  }
 0x657   :  { %v25771_v26 = vadd.f32 %v19557_v36, %v25659_v42  ;;  %13625 = vmatprep.subr.bf16.mxu0 %v22906_v15  ;;  %13558 = vmatprep.mubr.bf16.mxu0 %v25707_v43 }
 0x658   :  { %16156 = vmatprep.mubr.bf16.mxu1 %v25763_v44 }
 0x659   :  { %v19558_v34 = vpop.f32.mrb[140].mxu1 }
 0x65a   :  { %v19559_v9 = vpop.f32.mrb[141].mxu1  ;;  %13626 = vmatpush1.bf16.msra.mxu0 %v22904_v28  ;;  %v22990_v28 = vld [vmem:[#allocation6 + $0x2678] ss:$12 sps:$4 sm:$0xff]  }
 0x65b   :  { %v19560_v49 = vadd.f32 %v19559_v9, %v19558_v34  ;;  %v19561_v48 = vpop.f32.mrb[142].mxu1  ;;  %13627 = vmatprep.subr.bf16.mxu0 %v22914_v58  ;;  %v25817_v58 = vld [vmem:[#allocation3 + $0x260] ss:$208 sps:$4 sm:$0xff]  }
 0x65c   :  { %v19562_v53 = vpop.f32.mrb[143].mxu1  ;;  %v22947_v34 = vld [vmem:[#allocation6 + $0x24f0] ss:$12 sps:$4 sm:$0xff]  }
 0x65d   :  { %v25780_v42 = vadd.f32 %v19560_v49, %v25668_v6  ;;  %v19563_v43 = vadd.f32 %v19562_v53, %v19561_v48  ;;  %13559 = vmatmul.mubr.bf16.gmra.mrb[8].mxu0 %v25719_v24  ;;  %v25789_v6 = vld [vmem:[#allocation3 + $0xc18] ss:$208 sps:$4 sm:$0xff]   ;;  %v25819_v48 = vld [vmem:[#allocation3 + $0x404] ss:$208 sps:$4 sm:$0xff]  }
 0x65e   :  { %16157 = vmatmul.mubr.bf16.gmra.mrb[248].mxu1 %v25775_v20  ;;  %13628 = vmatpush1.bf16.msra.mxu0 %v22912_v22 }
 0x65f   :  { %v25785_v41 = vadd.f32 %v19563_v43, %v25673_v63  ;;  %13629 = vmatprep.subr.bf16.mxu0 %v22919_v33  ;;  %13568 = vmatprep.mubr.bf16.mxu0 %v25721_v30  ;;  %v22995_v43 = vld [vmem:[#allocation6 + $0x2690] ss:$12 sps:$4 sm:$0xff]  }
 0x660   :  { %16164 = vmatprep.mubr.bf16.mxu1 %v25777_v29 }
 0x661   :  { %v19564_v7 = vpop.f32.mrb[144].mxu1 }
 0x662   :  { %v19565_v45 = vpop.f32.mrb[145].mxu1  ;;  %13630 = vmatpush1.bf16.msra.mxu0 %v22917_v14  ;;  %v22950_v14 = vld [vmem:[#allocation6 + $0x2508] ss:$12 sps:$4 sm:$0xff]  }
 0x663   :  { %v19566_v24 = vadd.f32 %v19565_v45, %v19564_v7  ;;  %v19567_v50 = vpop.f32.mrb[146].mxu1  ;;  %13631 = vmatprep.subr.bf16.mxu0 %v22927_v16  ;;  %v22958_v7 = vld [vmem:[#allocation6 + $0x2524] ss:$12 sps:$4 sm:$0xff]  }
 0x664   :  { %v19568_v10 = vpop.f32.mrb[147].mxu1 }
 0x665   :  { %v25794_v63 = vadd.f32 %v19566_v24, %v25682_v51  ;;  %v19569_v30 = vadd.f32 %v19568_v10, %v19567_v50  ;;  %13569 = vmatmul.mubr.bf16.gmra.mrb[12].mxu0 %v25733_v3  ;;  %v25803_v51 = vld [vmem:[#allocation3 + $0xc0] ss:$208 sps:$4 sm:$0xff]  }
 0x666   :  { %16165 = vmatmul.mubr.bf16.gmra.mrb[252].mxu1 %v25789_v6  ;;  %13632 = vmatpush1.bf16.msra.mxu0 %v22925_v62  ;;  %v25831_v24 = vld [vmem:[#allocation3 + $0x400] ss:$208 sps:$4 sm:$0xff]  }
 0x667   :  { %v25799_v5 = vadd.f32 %v19569_v30, %v25687_v35  ;;  %13633 = vmatprep.subr.bf16.mxu0 %v22932_v37  ;;  %13578 = vmatprep.mubr.bf16.mxu0 %v25735_v11  ;;  %v22978_v35 = vld [vmem:[#allocation6 + $0x2588] ss:$12 sps:$4 sm:$0xff]   ;;  %v22956_v50 = vld [vmem:[#allocation6 + $0x2520] ss:$12 sps:$4 sm:$0xff]  }
 0x668   :  { %16205 = vmatprep.mubr.bf16.mxu1 %v25791_v61 }
 0x669   :  { %v19570_v57 = vpop.f32.mrb[148].mxu1 }
 0x66a   :  { %v19571_v0 = vpop.f32.mrb[149].mxu1  ;;  %13634 = vmatpush1.bf16.msra.mxu0 %v22930_v4  ;;  %v25833_v4 = vld [vmem:[#allocation3 + $0x5a4] ss:$208 sps:$4 sm:$0xff]  }
 0x66b   :  { %v19572_v3 = vadd.f32 %v19571_v0, %v19570_v57  ;;  %v19573_v39 = vpop.f32.mrb[150].mxu1  ;;  %13635 = vmatprep.subr.bf16.mxu0 %v22940_v25  ;;  %v23008_v0 = vld [vmem:[#allocation6 + $0x26c0] ss:$12 sps:$4 sm:$0xff]  }
 0x66c   :  { %v19574_v56 = vpop.f32.mrb[151].mxu1 }
 0x66d   :  { %v25808_v38 = vadd.f32 %v19572_v3, %v25696_v47  ;;  %v19575_v11 = vadd.f32 %v19574_v56, %v19573_v39  ;;  %13579 = vmatmul.mubr.bf16.gmra.mrb[16].mxu0 %v25747_v12  ;;  %v22983_v47 = vld [vmem:[#allocation6 + $0x25a0] ss:$12 sps:$4 sm:$0xff]  }
 0x66e   :  { %16206 = vmatmul.mubr.bf16.vlgmr.msra.gmra.mrb[0].mxu1 %v25803_v51  ;;  %13636 = vmatpush1.bf16.msra.mxu0 %v22938_v1  ;;  %v22959_v1 = vld [vmem:[#allocation6 + $0x2538] ss:$12 sps:$4 sm:$0xff]   ;;  %v22967_v39 = vld [vmem:[#allocation6 + $0x2554] ss:$12 sps:$4 sm:$0xff]  }
 0x66f   :  { %v25813_v15 = vadd.f32 %v19575_v11, %v25701_v59  ;;  %13637 = vmatprep.subr.bf16.mxu0 %v22943_v31  ;;  %13588 = vmatprep.mubr.bf16.mxu0 %v25749_v27  ;;  %v22952_v59 = vld [vmem:[#allocation6 + $0x250c] ss:$12 sps:$4 sm:$0xff]   ;;  %v22965_v11 = vld [vmem:[#allocation6 + $0x2550] ss:$12 sps:$4 sm:$0xff]  }
 0x670   :  { %16213 = vmatprep.mubr.bf16.mxu1 %v25805_v23  ;;  %19845 = vmatpush3.bf16.msra.mxu1 %v22978_v35  ;;  %v22991_v27 = vld [vmem:[#allocation6 + $0x25b8] ss:$12 sps:$4 sm:$0xff]   ;;  %v25845_v35 = vld [vmem:[#allocation3 + $0x5a0] ss:$208 sps:$4 sm:$0xff]  }
 0x671   :  { %v19576_v36 = vpop.f32.mrb[152].mxu1  ;;  %19846 = vmatprep.subr.bf16.mxu1 %v22982_v54 }
 0x672   :  { %v19577_v12 = vpop.f32.mrb[153].mxu1  ;;  %13638 = vmatpush1.bf16.msra.mxu0 %v22941_v19 }
 0x673   :  { %v19578_v9 = vadd.f32 %v19577_v12, %v19576_v36  ;;  %v19579_v22 = vpop.f32.mrb[154].mxu1  ;;  %13639 = vmatprep.subr.bf16.mxu0 %v22949_v18  ;;  %v23021_v12 = vld [vmem:[#allocation6 + $0x26f0] ss:$12 sps:$4 sm:$0xff]  }
 0x674   :  { %v19580_v49 = vpop.f32.mrb[155].mxu1  ;;  %19847 = vmatpush3.bf16.msra.mxu1 %v22983_v47  ;;  %v25847_v47 = vld [vmem:[#allocation3 + $0x744] ss:$208 sps:$4 sm:$0xff]  }
 0x675   :  { %v25822_v33 = vadd.f32 %v19578_v9, %v25710_v32  ;;  %v19581_v53 = vadd.f32 %v19580_v49, %v19579_v22  ;;  %13589 = vmatmul.mubr.bf16.gmra.mrb[20].mxu0 %v25761_v52  ;;  %19848 = vmatprep.subr.bf16.mxu1 %v22990_v28  ;;  %v22996_v32 = vld [vmem:[#allocation6 + $0x25d0] ss:$12 sps:$4 sm:$0xff]   ;;  %v23003_v52 = vld [vmem:[#allocation6 + $0x26a8] ss:$12 sps:$4 sm:$0xff]  }
 0x676   :  { %16214 = vmatmul.mubr.bf16.gmra.mrb[4].mxu1 %v25817_v58  ;;  %13640 = vmatpush1.bf16.msra.mxu0 %v22947_v34  ;;  %v22968_v34 = vld [vmem:[#allocation6 + $0x2568] ss:$12 sps:$4 sm:$0xff]   ;;  %v22976_v22 = vld [vmem:[#allocation6 + $0x2584] ss:$12 sps:$4 sm:$0xff]  }
 0x677   :  { %v25827_v16 = vadd.f32 %v19581_v53, %v25715_v13  ;;  %13641 = vmatprep.subr.bf16.mxu0 %v22952_v59  ;;  %13598 = vmatprep.mubr.bf16.mxu0 %v25763_v44  ;;  %v22961_v13 = vld [vmem:[#allocation6 + $0x253c] ss:$12 sps:$4 sm:$0xff]   ;;  %v25859_v49 = vld [vmem:[#allocation3 + $0x740] ss:$208 sps:$4 sm:$0xff]  }
 0x678   :  { %16221 = vmatprep.mubr.bf16.mxu1 %v25819_v48  ;;  %19849 = vmatpush3.bf16.msra.mxu1 %v22991_v27  ;;  %v23004_v44 = vld [vmem:[#allocation6 + $0x25e8] ss:$12 sps:$4 sm:$0xff]   ;;  %v22974_v27 = vld [vmem:[#allocation6 + $0x2580] ss:$12 sps:$4 sm:$0xff]  }
 0x679   :  { %v19582_v45 = vpop.f32.mrb[156].mxu1  ;;  %19850 = vmatprep.subr.bf16.mxu1 %v22995_v43 }
 0x67a   :  { %v19583_v62 = vpop.f32.mrb[157].mxu1  ;;  %13642 = vmatpush1.bf16.msra.mxu0 %v22950_v14 }
 0x67b   :  { %v19584_v37 = vadd.f32 %v19583_v62, %v19582_v45  ;;  %v19585_v10 = vpop.f32.mrb[158].mxu1  ;;  %13643 = vmatprep.subr.bf16.mxu0 %v22958_v7  ;;  %v25861_v7 = vld [vmem:[#allocation3 + $0x8e4] ss:$208 sps:$4 sm:$0xff]  }
 0x67c   :  { %v19586_v30 = vpop.f32.mrb[159].mxu1  ;;  %19851 = vmatpush3.bf16.msra.mxu1 %v22996_v32  ;;  %v22979_v45 = vld [vmem:[#allocation6 + $0x2598] ss:$12 sps:$4 sm:$0xff]   ;;  %v22989_v62 = vld [vmem:[#allocation6 + $0x25b4] ss:$12 sps:$4 sm:$0xff]  }
 0x67d   :  { %v25836_v25 = vadd.f32 %v19584_v37, %v25724_v40  ;;  %v19587_v57 = vadd.f32 %v19586_v30, %v19585_v10  ;;  %13599 = vmatmul.mubr.bf16.gmra.mrb[24].mxu0 %v25775_v20  ;;  %19852 = vmatprep.subr.bf16.mxu1 %v23003_v52  ;;  %v23009_v40 = vld [vmem:[#allocation6 + $0x2600] ss:$12 sps:$4 sm:$0xff]   ;;  %v23016_v20 = vld [vmem:[#allocation6 + $0x26d8] ss:$12 sps:$4 sm:$0xff]   ;;  %v22987_v10 = vld [vmem:[#allocation6 + $0x25b0] ss:$12 sps:$4 sm:$0xff]  }
 0x67e   :  { %16222 = vmatmul.mubr.bf16.gmra.mrb[8].mxu1 %v25831_v24  ;;  %13644 = vmatpush1.bf16.msra.mxu0 %v22956_v50  ;;  %v22994_v30 = vld [vmem:[#allocation6 + $0x25cc] ss:$12 sps:$4 sm:$0xff]  }
 0x67f   :  { %v25841_v3 = vadd.f32 %v19587_v57, %v25729_v46  ;;  %13645 = vmatprep.subr.bf16.mxu0 %v22961_v13  ;;  %13608 = vmatprep.mubr.bf16.mxu0 %v25777_v29  ;;  %v22970_v46 = vld [vmem:[#allocation6 + $0x256c] ss:$12 sps:$4 sm:$0xff]   ;;  %v25875_v57 = vld [vmem:[#allocation3 + $0xa84] ss:$208 sps:$4 sm:$0xff]  }
 0x680   :  { %16229 = vmatprep.mubr.bf16.mxu1 %v25833_v4  ;;  %19853 = vmatpush3.bf16.msra.mxu1 %v23004_v44  ;;  %v23017_v29 = vld [vmem:[#allocation6 + $0x2618] ss:$12 sps:$4 sm:$0xff]  }
 0x681   :  { %v19604_v31 = vpop.f32.mrb[160].mxu1  ;;  %19854 = vmatprep.subr.bf16.mxu1 %v23008_v0  ;;  %v22992_v0 = vld [vmem:[#allocation6 + $0x25c8] ss:$12 sps:$4 sm:$0xff]  }
 0x682   :  { %v19605_v56 = vpop.f32.mrb[161].mxu1  ;;  %13646 = vmatpush1.bf16.msra.mxu0 %v22959_v1 }
 0x683   :  { %v19606_v54 = vadd.f32 %v19605_v56, %v19604_v31  ;;  %v19607_v19 = vpop.f32.mrb[162].mxu1  ;;  %13647 = vmatprep.subr.bf16.mxu0 %v22967_v39  ;;  %v23002_v39 = vld [vmem:[#allocation6 + $0x25e4] ss:$12 sps:$4 sm:$0xff]  }
 0x684   :  { %v19608_v18 = vpop.f32.mrb[163].mxu1  ;;  %19855 = vmatpush3.bf16.msra.mxu1 %v23009_v40 }
 0x685   :  { %v25850_v36 = vadd.f32 %v19606_v54, %v25738_v55  ;;  %v19609_v28 = vadd.f32 %v19608_v18, %v19607_v19  ;;  %13609 = vmatmul.mubr.bf16.gmra.mrb[28].mxu0 %v25789_v6  ;;  %19856 = vmatprep.subr.bf16.mxu1 %v23016_v20  ;;  %v23022_v55 = vld [vmem:[#allocation6 + $0x2630] ss:$12 sps:$4 sm:$0xff]   ;;  %v23000_v20 = vld [vmem:[#allocation6 + $0x25e0] ss:$12 sps:$4 sm:$0xff]   ;;  %v25889_v19 = vld [vmem:[#allocation3 + $0xc24] ss:$208 sps:$4 sm:$0xff]  }
 0x686   :  { %16230 = vmatmul.mubr.bf16.gmra.mrb[12].mxu1 %v25845_v35  ;;  %13648 = vmatpush1.bf16.msra.mxu0 %v22965_v11  ;;  %v23007_v11 = vld [vmem:[#allocation6 + $0x25fc] ss:$12 sps:$4 sm:$0xff]  }
 0x687   :  { %v25855_v9 = vadd.f32 %v19609_v28, %v25743_v8  ;;  %13649 = vmatprep.subr.bf16.mxu0 %v22970_v46  ;;  %13651 = vmatprep.mubr.bf16.mxu0 %v25791_v61  ;;  %v22981_v8 = vld [vmem:[#allocation6 + $0x259c] ss:$12 sps:$4 sm:$0xff]   ;;  %v23005_v46 = vld [vmem:[#allocation6 + $0x25f8] ss:$12 sps:$4 sm:$0xff]  }
 0x688   :  { %16237 = vmatprep.mubr.bf16.mxu1 %v25847_v47  ;;  %19857 = vmatpush3.bf16.msra.mxu1 %v23017_v29  ;;  %v23015_v29 = vld [vmem:[#allocation6 + $0x2614] ss:$12 sps:$4 sm:$0xff]  }
 0x689   :  { %v19610_v59 = vpop.f32.mrb[164].mxu1  ;;  %19858 = vmatprep.subr.bf16.mxu1 %v23021_v12 }
 0x68a   :  { %v19611_v6 = vpop.f32.mrb[165].mxu1  ;;  %13650 = vmatpush1.bf16.msra.mxu0 %v22968_v34  ;;  %v23013_v34 = vld [vmem:[#allocation6 + $0x2610] ss:$12 sps:$4 sm:$0xff]  }
 0x68b   :  { %v19612_v53 = vadd.f32 %v19611_v6, %v19610_v59  ;;  %v19613_v43 = vpop.f32.mrb[166].mxu1  ;;  %13732 = vmatprep.subr.bf16.mxu0 %v22976_v22  ;;  %v25903_v6 = vld [vmem:[#allocation3 + $0xcc] ss:$208 sps:$4 sm:$0xff]  }
 0x68c   :  { %v19614_v14 = vpop.f32.mrb[167].mxu1  ;;  %19859 = vmatpush3.bf16.msra.mxu1 %v23022_v55  ;;  %v23020_v55 = vld [vmem:[#allocation6 + $0x262c] ss:$12 sps:$4 sm:$0xff]  }
 0x68d   :  { %v25864_v61 = vadd.f32 %v19612_v53, %v25752_v60  ;;  %v19615_v32 = vadd.f32 %v19614_v14, %v19613_v43  ;;  %13652 = vmatmul.mubr.bf16.vlgmr.msra.gmra.mrb[0].mxu0 %v25803_v51  ;;  %v25873_v60 = vld [vmem:[#allocation3 + $0x8e0] ss:$208 sps:$4 sm:$0xff]  }
 0x68e   :  { %16238 = vmatmul.mubr.bf16.gmra.mrb[16].mxu1 %v25859_v49  ;;  %13733 = vmatpush1.bf16.msra.mxu0 %v22974_v27  ;;  %v23018_v27 = vld [vmem:[#allocation6 + $0x2628] ss:$12 sps:$4 sm:$0xff]   ;;  %v23028_v43 = vld [vmem:[#allocation6 + $0x2644] ss:$12 sps:$4 sm:$0xff]  }
 0x68f   :  { %v25869_v52 = vadd.f32 %v19615_v32, %v25757_v2  ;;  %13734 = vmatprep.subr.bf16.mxu0 %v22981_v8  ;;  %13661 = vmatprep.mubr.bf16.mxu0 %v25805_v23  ;;  %v23026_v32 = vld [vmem:[#allocation6 + $0x2640] ss:$12 sps:$4 sm:$0xff]  }
 0x690   :  { %16245 = vmatprep.mubr.bf16.mxu1 %v25861_v7 }
 0x691   :  { %v19616_v50 = vpop.f32.mrb[168].mxu1 }
 0x692   :  { %v19617_v37 = vpop.f32.mrb[169].mxu1  ;;  %13735 = vmatpush1.bf16.msra.mxu0 %v22979_v45 }
 0x693   :  { %v19618_v51 = vadd.f32 %v19617_v37, %v19616_v50  ;;  %v19619_v13 = vpop.f32.mrb[170].mxu1  ;;  %13736 = vmatprep.subr.bf16.mxu0 %v22989_v62  ;;  %v23031_v62 = vld [vmem:[#allocation6 + $0x265c] ss:$12 sps:$4 sm:$0xff]  }
 0x694   :  { %v19620_v44 = vpop.f32.mrb[171].mxu1  ;;  %v25917_v37 = vld [vmem:[#allocation3 + $0x26c] ss:$208 sps:$4 sm:$0xff]  }
 0x695   :  { %v25878_v2 = vadd.f32 %v19618_v51, %v25766_v21  ;;  %v19621_v23 = vadd.f32 %v19620_v44, %v19619_v13  ;;  %13662 = vmatmul.mubr.bf16.gmra.mrb[4].mxu0 %v25817_v58  ;;  %v25887_v21 = vld [vmem:[#allocation3 + $0xa80] ss:$208 sps:$4 sm:$0xff]  }
 0x696   :  { %16246 = vmatmul.mubr.bf16.gmra.mrb[20].mxu1 %v25873_v60  ;;  %13737 = vmatpush1.bf16.msra.mxu0 %v22987_v10  ;;  %v23029_v10 = vld [vmem:[#allocation6 + $0x2658] ss:$12 sps:$4 sm:$0xff]   ;;  %v23037_v13 = vld [vmem:[#allocation6 + $0x2674] ss:$12 sps:$4 sm:$0xff]  }
 0x697   :  { %v25883_v1 = vadd.f32 %v19621_v23, %v25771_v26  ;;  %13738 = vmatprep.subr.bf16.mxu0 %v22994_v30  ;;  %13671 = vmatprep.mubr.bf16.mxu0 %v25819_v48  ;;  %v23035_v23 = vld [vmem:[#allocation6 + $0x2670] ss:$12 sps:$4 sm:$0xff]  }
 0x698   :  { %16253 = vmatprep.mubr.bf16.mxu1 %v25875_v57 }
 0x699   :  { %v19622_v40 = vpop.f32.mrb[172].mxu1 }
 0x69a   :  { %v19623_v31 = vpop.f32.mrb[173].mxu1  ;;  %13739 = vmatpush1.bf16.msra.mxu0 %v22992_v0 }
 0x69b   :  { %v19624_v58 = vadd.f32 %v19623_v31, %v19622_v40  ;;  %v19625_v56 = vpop.f32.mrb[174].mxu1  ;;  %13740 = vmatprep.subr.bf16.mxu0 %v23002_v39  ;;  %v23040_v39 = vld [vmem:[#allocation6 + $0x268c] ss:$12 sps:$4 sm:$0xff]  }
 0x69c   :  { %v19626_v54 = vpop.f32.mrb[175].mxu1  ;;  %v25931_v31 = vld [vmem:[#allocation3 + $0x40c] ss:$208 sps:$4 sm:$0xff]  }
 0x69d   :  { %v25892_v26 = vadd.f32 %v19624_v58, %v25780_v42  ;;  %v19627_v48 = vadd.f32 %v19626_v54, %v19625_v56  ;;  %13672 = vmatmul.mubr.bf16.gmra.mrb[8].mxu0 %v25831_v24  ;;  %v25901_v42 = vld [vmem:[#allocation3 + $0xc20] ss:$208 sps:$4 sm:$0xff]  }
 0x69e   :  { %16254 = vmatmul.mubr.bf16.gmra.mrb[24].mxu1 %v25887_v21  ;;  %13741 = vmatpush1.bf16.msra.mxu0 %v23000_v20  ;;  %v23038_v20 = vld [vmem:[#allocation6 + $0x2688] ss:$12 sps:$4 sm:$0xff]   ;;  %v23046_v56 = vld [vmem:[#allocation6 + $0x26a4] ss:$12 sps:$4 sm:$0xff]  }
 0x69f   :  { %v25897_v18 = vadd.f32 %v19627_v48, %v25785_v41  ;;  %13742 = vmatprep.subr.bf16.mxu0 %v23007_v11  ;;  %13681 = vmatprep.mubr.bf16.mxu0 %v25833_v4  ;;  %v23044_v48 = vld [vmem:[#allocation6 + $0x26a0] ss:$12 sps:$4 sm:$0xff]  }
 0x6a0   :  { %16261 = vmatprep.mubr.bf16.mxu1 %v25889_v19 }
 0x6a1   :  { %v19628_v28 = vpop.f32.mrb[176].mxu1 }
 0x6a2   :  { %v19629_v12 = vpop.f32.mrb[177].mxu1  ;;  %13743 = vmatpush1.bf16.msra.mxu0 %v23005_v46 }
 0x6a3   :  { %v19630_v24 = vadd.f32 %v19629_v12, %v19628_v28  ;;  %v19631_v22 = vpop.f32.mrb[178].mxu1  ;;  %13744 = vmatprep.subr.bf16.mxu0 %v23015_v29  ;;  %v23049_v29 = vld [vmem:[#allocation6 + $0x26bc] ss:$12 sps:$4 sm:$0xff]  }
 0x6a4   :  { %v19632_v59 = vpop.f32.mrb[179].mxu1  ;;  %v25945_v12 = vld [vmem:[#allocation3 + $0x5ac] ss:$208 sps:$4 sm:$0xff]  }
 0x6a5   :  { %v25906_v41 = vadd.f32 %v19630_v24, %v25794_v63  ;;  %v19633_v4 = vadd.f32 %v19632_v59, %v19631_v22  ;;  %13682 = vmatmul.mubr.bf16.gmra.mrb[12].mxu0 %v25845_v35  ;;  %v25915_v63 = vld [vmem:[#allocation3 + $0xc8] ss:$208 sps:$4 sm:$0xff]   ;;  %v23055_v22 = vld [vmem:[#allocation6 + $0x26d4] ss:$12 sps:$4 sm:$0xff]  }
 0x6a6   :  { %16262 = vmatmul.mubr.bf16.gmra.mrb[28].mxu1 %v25901_v42  ;;  %13745 = vmatpush1.bf16.msra.mxu0 %v23013_v34  ;;  %v23047_v34 = vld [vmem:[#allocation6 + $0x26b8] ss:$12 sps:$4 sm:$0xff]  }
 0x6a7   :  { %v25911_v53 = vadd.f32 %v19633_v4, %v25799_v5  ;;  %13746 = vmatprep.subr.bf16.mxu0 %v23020_v55  ;;  %13691 = vmatprep.mubr.bf16.mxu0 %v25847_v47  ;;  %v23053_v4 = vld [vmem:[#allocation6 + $0x26d0] ss:$12 sps:$4 sm:$0xff]  }
 0x6a8   :  { %16302 = vmatprep.mubr.bf16.mxu1 %v25903_v6 }
 0x6a9   :  { %v19634_v8 = vpop.f32.mrb[180].mxu1 }
 0x6aa   :  { %v19635_v14 = vpop.f32.mrb[181].mxu1  ;;  %13747 = vmatpush1.bf16.msra.mxu0 %v23018_v27 }
 0x6ab   :  { %v19636_v35 = vadd.f32 %v19635_v14, %v19634_v8  ;;  %v19637_v45 = vpop.f32.mrb[182].mxu1  ;;  %13748 = vmatprep.subr.bf16.mxu0 %v23028_v43  ;;  %v23058_v43 = vld [vmem:[#allocation6 + $0x26ec] ss:$12 sps:$4 sm:$0xff]  }
 0x6ac   :  { %v19638_v50 = vpop.f32.mrb[183].mxu1  ;;  %v25959_v14 = vld [vmem:[#allocation3 + $0x74c] ss:$208 sps:$4 sm:$0xff]  }
 0x6ad   :  { %v25920_v5 = vadd.f32 %v19636_v35, %v25808_v38  ;;  %v19639_v47 = vadd.f32 %v19638_v50, %v19637_v45  ;;  %13692 = vmatmul.mubr.bf16.gmra.mrb[16].mxu0 %v25859_v49  ;;  %v25929_v38 = vld [vmem:[#allocation3 + $0x268] ss:$208 sps:$4 sm:$0xff]  }
 0x6ae   :  { %16303 = vmatmul.mubr.bf16.vlgmr.msra.gmra.mrb[32].mxu1 %v25915_v63  ;;  %13749 = vmatpush1.bf16.msra.mxu0 %v23026_v32  ;;  %v23056_v32 = vld [vmem:[#allocation6 + $0x26e8] ss:$12 sps:$4 sm:$0xff]  }
 0x6af   :  { %v25925_v51 = vadd.f32 %v19639_v47, %v25813_v15  ;;  %13750 = vmatprep.subr.bf16.mxu0 %v23031_v62  ;;  %13701 = vmatprep.mubr.bf16.mxu0 %v25861_v7 }
 0x6b0   :  { %16310 = vmatprep.mubr.bf16.mxu1 %v25917_v37 }
 0x6b1   :  { %v19640_v30 = vpop.f32.mrb[184].mxu1 }
 0x6b2   :  { %v19641_v44 = vpop.f32.mrb[185].mxu1  ;;  %13751 = vmatpush1.bf16.msra.mxu0 %v23029_v10  ;;  %v23064_v10 = vld [vmem:[#allocation3 + $0x8ec] ss:$208 sps:$4 sm:$0xff]  }
 0x6b3   :  { %v19642_v49 = vadd.f32 %v19641_v44, %v19640_v30  ;;  %v19643_v0 = vpop.f32.mrb[186].mxu1  ;;  %13752 = vmatprep.subr.bf16.mxu0 %v23037_v13 }
 0x6b4   :  { %v19644_v40 = vpop.f32.mrb[187].mxu1 }
 0x6b5   :  { %v25934_v15 = vadd.f32 %v19642_v49, %v25822_v33  ;;  %v19645_v7 = vadd.f32 %v19644_v40, %v19643_v0  ;;  %13702 = vmatmul.mubr.bf16.gmra.mrb[20].mxu0 %v25873_v60  ;;  %v25943_v33 = vld [vmem:[#allocation3 + $0x408] ss:$208 sps:$4 sm:$0xff]  }
 0x6b6   :  { %16311 = vmatmul.mubr.bf16.gmra.mrb[36].mxu1 %v25929_v38  ;;  %13753 = vmatpush1.bf16.msra.mxu0 %v23035_v23  ;;  %v23062_v23 = vld [vmem:[#allocation3 + $0x8e8] ss:$208 sps:$4 sm:$0xff]  }
 0x6b7   :  { %v25939_v58 = vadd.f32 %v19645_v7, %v25827_v16  ;;  %13754 = vmatprep.subr.bf16.mxu0 %v23040_v39  ;;  %13711 = vmatprep.mubr.bf16.mxu0 %v25875_v57  ;;  %v23067_v39 = vld [vmem:[#allocation3 + $0xa8c] ss:$208 sps:$4 sm:$0xff]  }
 0x6b8   :  { %16318 = vmatprep.mubr.bf16.mxu1 %v25931_v31 }
 0x6b9   :  { %v19646_v11 = vpop.f32.mrb[188].mxu1 }
 0x6ba   :  { %v19647_v54 = vpop.f32.mrb[189].mxu1  ;;  %13755 = vmatpush1.bf16.msra.mxu0 %v23038_v20  ;;  %v23065_v20 = vld [vmem:[#allocation3 + $0xa88] ss:$208 sps:$4 sm:$0xff]  }
 0x6bb   :  { %v19648_v60 = vadd.f32 %v19647_v54, %v19646_v11  ;;  %v19649_v46 = vpop.f32.mrb[190].mxu1  ;;  %13756 = vmatprep.subr.bf16.mxu0 %v23046_v56  ;;  %v23070_v54 = vld [vmem:[#allocation3 + $0xc2c] ss:$208 sps:$4 sm:$0xff]  }
 0x6bc   :  { %v19650_v28 = vpop.f32.mrb[191].mxu1 }
 0x6bd   :  { %v25948_v16 = vadd.f32 %v19648_v60, %v25836_v25  ;;  %v19651_v57 = vadd.f32 %v19650_v28, %v19649_v46  ;;  %13712 = vmatmul.mubr.bf16.gmra.mrb[24].mxu0 %v25887_v21  ;;  %v25957_v25 = vld [vmem:[#allocation3 + $0x5a8] ss:$208 sps:$4 sm:$0xff]  }
 0x6be   :  { %16319 = vmatmul.mubr.bf16.gmra.mrb[40].mxu1 %v25943_v33  ;;  %13757 = vmatpush1.bf16.msra.mxu0 %v23044_v48  ;;  %v23068_v46 = vld [vmem:[#allocation3 + $0xc28] ss:$208 sps:$4 sm:$0xff]  }
 0x6bf   :  { %v25953_v24 = vadd.f32 %v19651_v57, %v25841_v3  ;;  %13758 = vmatprep.subr.bf16.mxu0 %v23049_v29  ;;  %13721 = vmatprep.mubr.bf16.mxu0 %v25889_v19 }
 0x6c0   :  { %16326 = vmatprep.mubr.bf16.mxu1 %v25945_v12 }
 0x6c1   :  { %v19668_v55 = vpop.f32.mrb[192].mxu1 }
 0x6c2   :  { %v19669_v59 = vpop.f32.mrb[193].mxu1  ;;  %13759 = vmatpush1.bf16.msra.mxu0 %v23047_v34 }
 0x6c3   :  { %v19670_v21 = vadd.f32 %v19669_v59, %v19668_v55  ;;  %v19671_v27 = vpop.f32.mrb[194].mxu1  ;;  %13760 = vmatprep.subr.bf16.mxu0 %v23055_v22 }
 0x6c4   :  { %v19672_v8 = vpop.f32.mrb[195].mxu1 }
 0x6c5   :  { %v25962_v3 = vadd.f32 %v19670_v21, %v25850_v36  ;;  %v19673_v19 = vadd.f32 %v19672_v8, %v19671_v27  ;;  %13722 = vmatmul.mubr.bf16.gmra.mrb[28].mxu0 %v25901_v42  ;;  %v23059_v36 = vld [vmem:[#allocation3 + $0x748] ss:$208 sps:$4 sm:$0xff]  }
 0x6c6   :  { %16327 = vmatmul.mubr.bf16.gmra.mrb[44].mxu1 %v25957_v25  ;;  %13761 = vmatpush1.bf16.msra.mxu0 %v23053_v4 }
 0x6c7   :  { %v25967_v35 = vadd.f32 %v19673_v19, %v25855_v9  ;;  %13762 = vmatprep.subr.bf16.mxu0 %v23058_v43  ;;  %13764 = vmatprep.mubr.bf16.mxu0 %v25903_v6 }
 0x6c8   :  { %16334 = vmatprep.mubr.bf16.mxu1 %v25959_v14 }
 0x6c9   :  { %v19674_v45 = vpop.f32.mrb[196].mxu1 }
 0x6ca   :  { %v19675_v62 = vpop.f32.mrb[197].mxu1  ;;  %13763 = vmatpush1.bf16.msra.mxu0 %v23056_v32 }
 0x6cb   :  { %v19676_v50 = vadd.f32 %v19675_v62, %v19674_v45  ;;  %v19677_v47 = vpop.f32.mrb[198].mxu1 }
 0x6cc   :  { %v19678_v42 = vpop.f32.mrb[199].mxu1 }
 0x6cd   :  { %v25972_v13 = vadd.f32 %v19676_v50, %v25864_v61  ;;  %v19679_v30 = vadd.f32 %v19678_v42, %v19677_v47  ;;  %13765 = vmatmul.mubr.bf16.vlgmr.msra.gmra.mrb[0].mxu0 %v25915_v63 }
 0x6ce   :  { %16335 = vmatmul.mubr.bf16.gmra.mrb[48].mxu1 %v23059_v36  ;;  %13774 = vmatprep.mubr.bf16.mxu0 %v25917_v37 }
 0x6cf   :  { %v25977_v9 = vadd.f32 %v19679_v30, %v25869_v52  ;;  %16342 = vmatprep.mubr.bf16.mxu1 %v23064_v10 }
 0x6d1   :  { %v19680_v6 = vpop.f32.mrb[200].mxu1 }
 0x6d2   :  { %v19681_v44 = vpop.f32.mrb[201].mxu1 }
 0x6d3   :  { %v19682_v49 = vadd.f32 %v19681_v44, %v19680_v6  ;;  %v19683_v0 = vpop.f32.mrb[202].mxu1 }
 0x6d4   :  { %v19684_v40 = vpop.f32.mrb[203].mxu1 }
 0x6d5   :  { %v25980_v61 = vadd.f32 %v19682_v49, %v25878_v2  ;;  %v19685_v7 = vadd.f32 %v19684_v40, %v19683_v0  ;;  %13775 = vmatmul.mubr.bf16.gmra.mrb[4].mxu0 %v25929_v38 }
 0x6d6   :  { %16343 = vmatmul.mubr.bf16.gmra.mrb[52].mxu1 %v23062_v23  ;;  %13784 = vmatprep.mubr.bf16.mxu0 %v25931_v31 }
 0x6d7   :  { %v25985_v52 = vadd.f32 %v19685_v7, %v25883_v1  ;;  %16350 = vmatprep.mubr.bf16.mxu1 %v23067_v39 }
 0x6d9   :  { %v19686_v63 = vpop.f32.mrb[204].mxu1 }
 0x6da   :  { %v19687_v37 = vpop.f32.mrb[205].mxu1 }
 0x6db   :  { %v19688_v56 = vadd.f32 %v19687_v37, %v19686_v63  ;;  %v19689_v11 = vpop.f32.mrb[206].mxu1 }
 0x6dc   :  { %v19690_v48 = vpop.f32.mrb[207].mxu1 }
 0x6dd   :  { %v25988_v2 = vadd.f32 %v19688_v56, %v25892_v26  ;;  %v19691_v60 = vadd.f32 %v19690_v48, %v19689_v11  ;;  %13785 = vmatmul.mubr.bf16.gmra.mrb[8].mxu0 %v25943_v33 }
 0x6de   :  { %16351 = vmatmul.mubr.bf16.gmra.mrb[56].mxu1 %v23065_v20  ;;  %13794 = vmatprep.mubr.bf16.mxu0 %v25945_v12 }
 0x6df   :  { %v25993_v1 = vadd.f32 %v19691_v60, %v25897_v18  ;;  %16358 = vmatprep.mubr.bf16.mxu1 %v23070_v54 }
 0x6e1   :  { %v19692_v38 = vpop.f32.mrb[208].mxu1 }
 0x6e2   :  { %v19693_v31 = vpop.f32.mrb[209].mxu1 }
 0x6e3   :  { %v19694_v29 = vadd.f32 %v19693_v31, %v19692_v38  ;;  %v19695_v28 = vpop.f32.mrb[210].mxu1 }
 0x6e4   :  { %v19696_v57 = vpop.f32.mrb[211].mxu1 }
 0x6e5   :  { %v25996_v34 = vadd.f32 %v19694_v29, %v25906_v41  ;;  %v19697_v26 = vadd.f32 %v19696_v57, %v19695_v28  ;;  %13795 = vmatmul.mubr.bf16.gmra.mrb[12].mxu0 %v25957_v25 }
 0x6e6   :  { %16359 = vmatmul.mubr.bf16.gmra.mrb[60].mxu1 %v23068_v46  ;;  %13804 = vmatprep.mubr.bf16.mxu0 %v25959_v14 }
 0x6e7   :  { %v26001_v33 = vadd.f32 %v19697_v26, %v25911_v53 }
 0x6e9   :  { %v19698_v18 = vpop.f32.mrb[212].mxu1 }
 0x6ea   :  { %v19699_v12 = vpop.f32.mrb[213].mxu1 }
 0x6eb   :  { %v19700_v22 = vadd.f32 %v19699_v12, %v19698_v18  ;;  %v19701_v55 = vpop.f32.mrb[214].mxu1 }
 0x6ec   :  { %v19702_v59 = vpop.f32.mrb[215].mxu1 }
 0x6ed   :  { %v26004_v4 = vadd.f32 %v19700_v22, %v25920_v5  ;;  %v19703_v21 = vadd.f32 %v19702_v59, %v19701_v55  ;;  %13805 = vmatmul.mubr.bf16.gmra.mrb[16].mxu0 %v23059_v36 }
 0x6ee   :  { %13814 = vmatprep.mubr.bf16.mxu0 %v23064_v10 }
 0x6ef   :  { %v26007_v41 = vadd.f32 %v19703_v21, %v25925_v51 }
 0x6f1   :  { %v19704_v25 = vpop.f32.mrb[216].mxu1 }
 0x6f2   :  { %v19705_v27 = vpop.f32.mrb[217].mxu1 }
 0x6f3   :  { %v19706_v43 = vadd.f32 %v19705_v27, %v19704_v25  ;;  %v19707_v8 = vpop.f32.mrb[218].mxu1 }
 0x6f4   :  { %v19708_v53 = vpop.f32.mrb[219].mxu1 }
 0x6f5   :  { %v26010_v14 = vadd.f32 %v19706_v43, %v25934_v15  ;;  %v19709_v19 = vadd.f32 %v19708_v53, %v19707_v8  ;;  %13815 = vmatmul.mubr.bf16.gmra.mrb[20].mxu0 %v23062_v23 }
 0x6f6   :  { %13824 = vmatprep.mubr.bf16.mxu0 %v23067_v39 }
 0x6f7   :  { %v26013_v5 = vadd.f32 %v19709_v19, %v25939_v58 }
 0x6f9   :  { %v19710_v32 = vpop.f32.mrb[220].mxu1 }
 0x6fa   :  { %v19711_v45 = vpop.f32.mrb[221].mxu1 }
 0x6fb   :  { %v19712_v62 = vadd.f32 %v19711_v45, %v19710_v32  ;;  %v19713_v36 = vpop.f32.mrb[222].mxu1 }
 0x6fc   :  { %v19714_v51 = vpop.f32.mrb[223].mxu1 }
 0x6fd   :  { %v26016_v50 = vadd.f32 %v19712_v62, %v25948_v16  ;;  %v19715_v47 = vadd.f32 %v19714_v51, %v19713_v36  ;;  %13825 = vmatmul.mubr.bf16.gmra.mrb[24].mxu0 %v23065_v20 }
 0x6fe   :  { %13834 = vmatprep.mubr.bf16.mxu0 %v23070_v54 }
 0x6ff   :  { %v26019_v15 = vadd.f32 %v19715_v47, %v25953_v24  ;;  %v23202_v24 = vmov 0.0  }
 0x700   :  { %19917 = vmatprep.subr.bf16.mxu1 %v23202_v24  ;;  %19933 = vmatprep.mubr.msk.bf16.mxu1 %vm23204_vm0, %v23202_v24 }
 0x701   :  { %v19732_v10 = vpop.f32.mrb[224].mxu1 }
 0x702   :  { %v19733_v42 = vpop.f32.mrb[225].mxu1 }
 0x703   :  { %v19734_v30 = vadd.f32 %v19733_v42, %v19732_v10  ;;  %v19735_v6 = vpop.f32.mrb[226].mxu1 }
 0x704   :  { %v19736_v58 = vpop.f32.mrb[227].mxu1 }
 0x705   :  { %v26022_v44 = vadd.f32 %v19734_v30, %v25962_v3  ;;  %v19737_v23 = vadd.f32 %v19736_v58, %v19735_v6  ;;  %13835 = vmatmul.mubr.bf16.gmra.mrb[28].mxu0 %v23068_v46 }
 0x707   :  { %v26025_v49 = vadd.f32 %v19737_v23, %v25967_v35 }
 0x709   :  { %v19738_v16 = vpop.f32.mrb[228].mxu1 }
 0x70a   :  { %v19739_v0 = vpop.f32.mrb[229].mxu1 }
 0x70b   :  { %v19740_v39 = vadd.f32 %v19739_v0, %v19738_v16  ;;  %v19741_v40 = vpop.f32.mrb[230].mxu1 }
 0x70c   :  { %v19742_v7 = vpop.f32.mrb[231].mxu1 }
 0x70d   :  { %v26029_v63 = vadd.f32 %v19740_v39, %v25972_v13  ;;  %v19743_v37 = vadd.f32 %v19742_v7, %v19741_v40 }
 0x70f   :  { %v26032_v3 = vadd.f32 %v19743_v37, %v25977_v9 }
 0x711   :  { %v19744_v20 = vpop.f32.mrb[232].mxu1 }
 0x712   :  { %v19745_v56 = vpop.f32.mrb[233].mxu1 }
 0x713   :  { %v19746_v11 = vadd.f32 %v19745_v56, %v19744_v20  ;;  %v19747_v35 = vpop.f32.mrb[234].mxu1 }
 0x714   :  { %v19748_v54 = vpop.f32.mrb[235].mxu1 }
 0x715   :  { %v26035_v48 = vadd.f32 %v19746_v11, %v25980_v61  ;;  %v19749_v60 = vadd.f32 %v19748_v54, %v19747_v35 }
 0x717   :  { %v26038_v38 = vadd.f32 %v19749_v60, %v25985_v52 }
 0x719   :  { %v19750_v31 = vpop.f32.mrb[236].mxu1 }
 0x71a   :  { %v19751_v46 = vpop.f32.mrb[237].mxu1 }
 0x71b   :  { %v19752_v13 = vadd.f32 %v19751_v46, %v19750_v31  ;;  %v19753_v29 = vpop.f32.mrb[238].mxu1 }
 0x71c   :  { %v19754_v28 = vpop.f32.mrb[239].mxu1 }
 0x71d   :  { %v26041_v9 = vadd.f32 %v19752_v13, %v25988_v2  ;;  %v19755_v57 = vadd.f32 %v19754_v28, %v19753_v29 }
 0x71f   :  { %v26044_v26 = vadd.f32 %v19755_v57, %v25993_v1 }
 0x721   :  { %v19756_v18 = vpop.f32.mrb[240].mxu1 }
 0x722   :  { %v19757_v12 = vpop.f32.mrb[241].mxu1 }
 0x723   :  { %v19758_v61 = vadd.f32 %v19757_v12, %v19756_v18  ;;  %v19759_v22 = vpop.f32.mrb[242].mxu1 }
 0x724   :  { %v19760_v55 = vpop.f32.mrb[243].mxu1 }
 0x725   :  { %v26047_v52 = vadd.f32 %v19758_v61, %v25996_v34  ;;  %v19761_v59 = vadd.f32 %v19760_v55, %v19759_v22 }
 0x727   :  { %v26050_v21 = vadd.f32 %v19761_v59, %v26001_v33 }
 0x729   :  { %v19762_v25 = vpop.f32.mrb[244].mxu1 }
 0x72a   :  { %v19763_v27 = vpop.f32.mrb[245].mxu1 }
 0x72b   :  { %v19764_v2 = vadd.f32 %v19763_v27, %v19762_v25  ;;  %v19765_v43 = vpop.f32.mrb[246].mxu1  ;;  %v23203_v25 = vmov 1966171168  }
 0x72c   :  { %v19766_v8 = vpop.f32.mrb[247].mxu1  ;;  %v16452_v27 = vunpack.c.l.s4 %v23203_v25 }
 0x72d   :  { %v26053_v1 = vadd.f32 %v19764_v2, %v26004_v4  ;;  %v19767_v53 = vadd.f32 %v19766_v8, %v19765_v43 }
 0x72e   :  { %v16453_v43 = vunpack.c.0.s8 %v16452_v27 }
 0x72f   :  { %v26056_v19 = vadd.f32 %v19767_v53, %v26007_v41  ;;  %v18242_v53 = vld.sshfl [vmem:[#allocation9] sm:$0x13 pattern:$0x75316420] }
 0x731   :  { %v19768_v32 = vpop.f32.mrb[248].mxu1 }
 0x732   :  { %v19769_v45 = vpop.f32.mrb[249].mxu1 }
 0x733   :  { %v19770_v34 = vadd.f32 %v19769_v45, %v19768_v32  ;;  %v19771_v62 = vpop.f32.mrb[250].mxu1  ;;  %v16450_v45 = vcombine.high %v18242_v53, %v18242_v53 }
 0x734   :  { %v19772_v36 = vpop.f32.mrb[251].mxu1 }
 0x735   :  { %v26059_v33 = vadd.f32 %v19770_v34, %v26010_v14  ;;  %v19773_v51 = vadd.f32 %v19772_v36, %v19771_v62  ;;  %v16456_v34 = vsub.s32 %v16453_v43, %v23558_v17 }
 0x737   :  { %v26062_v47 = vadd.f32 %v19773_v51, %v26013_v5  ;;  %v26099_v62 = vrot.slane %v18242_v53, %v16456_v34  ;;  %v16464_v36 = vrot.slane %v16450_v45, %v16456_v34 }
 0x739   :  { %v19774_v10 = vpop.f32.mrb[252].mxu1  ;;  %16501 = vmatprep.mubr.bf16.mxu0 %v16464_v36 }
 0x73a   :  { %v19775_v42 = vpop.f32.mrb[253].mxu1 }
 0x73b   :  { %v19776_v4 = vadd.f32 %v19775_v42, %v19774_v10  ;;  %v19777_v30 = vpop.f32.mrb[254].mxu1 }
 0x73c   :  { %v19778_v6 = vpop.f32.mrb[255].mxu1 }
 0x73d   :  { %v26065_v41 = vadd.f32 %v19776_v4, %v26016_v50  ;;  %v19779_v58 = vadd.f32 %v19778_v6, %v19777_v30 }
 0x73f   :  { %v26068_v23 = vadd.f32 %v19779_v58, %v26019_v15 }
 0x741   :  { %v19796_v16 = vpop.f32.mrb[0].mxu1 }
 0x742   :  { %v19797_v0 = vpop.f32.mrb[1].mxu1 }
 0x743   :  { %v19798_v14 = vadd.f32 %v19797_v0, %v19796_v16  ;;  %v19799_v39 = vpop.f32.mrb[2].mxu1 }
 0x744   :  { %v19800_v40 = vpop.f32.mrb[3].mxu1 }
 0x745   :  { %v26071_v5 = vadd.f32 %v19798_v14, %v26022_v44  ;;  %v19801_v7 = vadd.f32 %v19800_v40, %v19799_v39 }
 0x747   :  { %v26074_v37 = vadd.f32 %v19801_v7, %v26025_v49 }
 0x749   :  { %v19802_v20 = vpop.f32.mrb[4].mxu1 }
 0x74a   :  { %v19803_v56 = vpop.f32.mrb[5].mxu1 }
 0x74b   :  { %v19804_v50 = vadd.f32 %v19803_v56, %v19802_v20  ;;  %v19805_v11 = vpop.f32.mrb[6].mxu1 }
 0x74c   :  { %v19806_v35 = vpop.f32.mrb[7].mxu1 }
 0x74d   :  { %v26077_v15 = vadd.f32 %v19804_v50, %v26029_v63  ;;  %v19807_v54 = vadd.f32 %v19806_v35, %v19805_v11 }
 0x74f   :  { %v26080_v60 = vadd.f32 %v19807_v54, %v26032_v3 }
 0x751   :  { %v19808_v31 = vpop.f32.mrb[8].mxu1 }
 0x752   :  { %v19809_v46 = vpop.f32.mrb[9].mxu1 }
 0x753   :  { %v19810_v44 = vadd.f32 %v19809_v46, %v19808_v31  ;;  %v19811_v13 = vpop.f32.mrb[10].mxu1 }
 0x754   :  { %v19812_v29 = vpop.f32.mrb[11].mxu1 }
 0x755   :  { %v26083_v49 = vadd.f32 %v19810_v44, %v26035_v48  ;;  %v19813_v28 = vadd.f32 %v19812_v29, %v19811_v13 }
 0x757   :  { %v26086_v57 = vadd.f32 %v19813_v28, %v26038_v38 }
 0x759   :  { %v19814_v18 = vpop.f32.mrb[12].mxu1 }
 0x75a   :  { %v19815_v12 = vpop.f32.mrb[13].mxu1 }
 0x75b   :  { %v19816_v63 = vadd.f32 %v19815_v12, %v19814_v18  ;;  %v19817_v61 = vpop.f32.mrb[14].mxu1 }
 0x75c   :  { %v19818_v22 = vpop.f32.mrb[15].mxu1 }
 0x75d   :  { %v26089_v3 = vadd.f32 %v19816_v63, %v26041_v9  ;;  %v19819_v55 = vadd.f32 %v19818_v22, %v19817_v61 }
 0x75f   :  { %v26092_v59 = vadd.f32 %v19819_v55, %v26044_v26 }
 0x761   :  { %v19820_v48 = vpop.f32.mrb[16].mxu1 }
 0x762   :  { %v19821_v2 = vpop.f32.mrb[17].mxu1 }
 0x763   :  { %v19822_v8 = vadd.f32 %v19821_v2, %v19820_v48  ;;  %v19823_v38 = vpop.f32.mrb[18].mxu1 }
 0x764   :  { %v19824_v32 = vpop.f32.mrb[19].mxu1 }
 0x765   :  { %v26097_v9 = vadd.f32 %v19822_v8, %v26047_v52  ;;  %v19825_v26 = vadd.f32 %v19824_v32, %v19823_v38 }
 0x767   :  { %v26102_v51 = vadd.f32 %v19825_v26, %v26050_v21 }
 0x769   :  { %v19826_v10 = vpop.f32.mrb[20].mxu1 }
 0x76a   :  { %v19827_v42 = vpop.f32.mrb[21].mxu1 }
 0x76b   :  { %v19828_v4 = vadd.f32 %v19827_v42, %v19826_v10  ;;  %v19829_v30 = vpop.f32.mrb[22].mxu1 }
 0x76c   :  { %v19830_v6 = vpop.f32.mrb[23].mxu1 }
 0x76d   :  { %v26105_v58 = vadd.f32 %v19828_v4, %v26053_v1  ;;  %v19831_v16 = vadd.f32 %v19830_v6, %v19829_v30  ;;  %v2162_v6 = vsub.s32 1, %v23558_v17 }
 0x76f   :  { %v26108_v52 = vadd.f32 %v19831_v16, %v26056_v19 }
 0x771   :  { %v19832_v0 = vpop.f32.mrb[24].mxu1 }
 0x772   :  { %v19833_v14 = vpop.f32.mrb[25].mxu1 }
 0x773   :  { %v19834_v39 = vadd.f32 %v19833_v14, %v19832_v0  ;;  %v19835_v40 = vpop.f32.mrb[26].mxu1 }
 0x774   :  { %v19836_v7 = vpop.f32.mrb[27].mxu1 }
 0x775   :  { %v26111_v21 = vadd.f32 %v19834_v39, %v26059_v33  ;;  %v19837_v20 = vadd.f32 %v19836_v7, %v19835_v40  ;;  %v23075_v7 = vld [vmem:[#allocation8] sm:$0x7] }
 0x777   :  { %v26114_v56 = vadd.f32 %v19837_v20, %v26062_v47 }
 0x779   :  { %v19838_v50 = vpop.f32.mrb[28].mxu1 }
 0x77a   :  { %v19839_v11 = vpop.f32.mrb[29].mxu1 }
 0x77b   :  { %v19840_v1 = vadd.f32 %v19839_v11, %v19838_v50  ;;  %v19841_v35 = vpop.f32.mrb[30].mxu1 }
 0x77c   :  { %v19842_v54 = vpop.f32.mrb[31].mxu1 }
 0x77d   :  { %v26117_v19 = vadd.f32 %v19840_v1, %v26065_v41  ;;  %v19843_v31 = vadd.f32 %v19842_v54, %v19841_v35 }
 0x77f   :  { %v26120_v46 = vadd.f32 %v19843_v31, %v26068_v23 }
 0x781   :  { %v19860_v44 = vpop.f32.mrb[32].mxu1 }
 0x782   :  { %v19861_v13 = vpop.f32.mrb[33].mxu1 }
 0x783   :  { %v19862_v33 = vadd.f32 %v19861_v13, %v19860_v44  ;;  %v19863_v29 = vpop.f32.mrb[34].mxu1 }
 0x784   :  { %v19864_v28 = vpop.f32.mrb[35].mxu1 }
 0x785   :  { %v16305_v47 = vadd.f32 %v19862_v33, %v26071_v5  ;;  %v19865_v18 = vadd.f32 %v19864_v28, %v19863_v29 }
 0x787   :  { %v16308_v12 = vadd.f32 %v19865_v18, %v26074_v37  ;;  %v16369_v63 = vmax.f32 %v16305_v47, 0.0 }
 0x789   :  { %v16372_v61 = vmax.f32 %v16308_v12, 0.0  ;;  %v19866_v22 = vpop.f32.mrb[36].mxu1 }
 0x78a   :  { %v19867_v55 = vpop.f32.mrb[37].mxu1 }
 0x78b   :  { %v16418_v41 = vpack.c.bf16 %v16372_v61, %v16369_v63  ;;  %v19868_v25 = vadd.f32 %v19867_v55, %v19866_v22  ;;  %v19869_v27 = vpop.f32.mrb[38].mxu1 }
 0x78c   :  { %v19870_v48 = vpop.f32.mrb[39].mxu1 }
 0x78d   :  { %v16313_v23 = vadd.f32 %v19868_v25, %v26077_v15  ;;  %v19871_v2 = vadd.f32 %v19870_v48, %v19869_v27  ;;  %19918 = vmatpush3.bf16.xpose.msra.mxu1 %v16418_v41 }
 0x78e   :  { %19919 = vmatprep.subr.bf16.mxu1 %v23202_v24 }
 0x78f   :  { %v16316_v43 = vadd.f32 %v19871_v2, %v26080_v60  ;;  %v16375_v5 = vmax.f32 %v16313_v23, 0.0  ;;  %v2158_v60 = vsub.s32 0, %v23558_v17 }
 0x791   :  { %v16378_v8 = vmax.f32 %v16316_v43, 0.0  ;;  %v19872_v38 = vpop.f32.mrb[40].mxu1  ;;  %v26133_v20 = vrot.slane %v23075_v7, %v2158_v60 }
 0x792   :  { %v19873_v37 = vpop.f32.mrb[41].mxu1 }
 0x793   :  { %v16421_v53 = vpack.c.bf16 %v16378_v8, %v16375_v5  ;;  %v19874_v32 = vadd.f32 %v19873_v37, %v19872_v38  ;;  %v19875_v45 = vpop.f32.mrb[42].mxu1 }
 0x794   :  { %v19876_v34 = vpop.f32.mrb[43].mxu1 }
 0x795   :  { %v16321_v26 = vadd.f32 %v19874_v32, %v26083_v49  ;;  %v19877_v36 = vadd.f32 %v19876_v34, %v19875_v45  ;;  %19920 = vmatpush3.bf16.xpose.msra.mxu1 %v16421_v53 }
 0x796   :  { %19921 = vmatprep.subr.bf16.mxu1 %v23202_v24 }
 0x797   :  { %v16324_v15 = vadd.f32 %v19877_v36, %v26086_v57  ;;  %v16381_v10 = vmax.f32 %v16321_v26, 0.0  ;;  %v26135_v57 = vrot.slane %v23075_v7, %v2162_v6 }
 0x799   :  { %v16384_v42 = vmax.f32 %v16324_v15, 0.0  ;;  %v19878_v4 = vpop.f32.mrb[44].mxu1 }
 0x79a   :  { %v19879_v30 = vpop.f32.mrb[45].mxu1 }
 0x79b   :  { %v16424_v16 = vpack.c.bf16 %v16384_v42, %v16381_v10  ;;  %v19880_v0 = vadd.f32 %v19879_v30, %v19878_v4  ;;  %v19881_v14 = vpop.f32.mrb[46].mxu1 }
 0x79c   :  { %v19882_v39 = vpop.f32.mrb[47].mxu1 }
 0x79d   :  { %v16329_v49 = vadd.f32 %v19880_v0, %v26089_v3  ;;  %v19883_v40 = vadd.f32 %v19882_v39, %v19881_v14  ;;  %19922 = vmatpush3.bf16.xpose.msra.mxu1 %v16424_v16 }
 0x79e   :  { %19923 = vmatprep.subr.bf16.mxu1 %v23202_v24 }
 0x79f   :  { %v16332_v50 = vadd.f32 %v19883_v40, %v26092_v59  ;;  %v16387_v1 = vmax.f32 %v16329_v49, 0.0 }
 0x7a0   :  { %v13766_v11 = vpop.f32.mrb[0].mxu0 }
 0x7a1   :  { %v16390_v17 = vmax.f32 %v16332_v50, 0.0  ;;  %v19937_v35 = vadd.f32 %v13766_v11, %v26133_v20  ;;  %v19884_v54 = vpop.f32.mrb[48].mxu1  ;;  %v13768_v31 = vpop.f32.mrb[1].mxu0 }
 0x7a2   :  { %v19938_v3 = vadd.f32 %v13768_v31, %v26135_v57  ;;  %v19885_v44 = vpop.f32.mrb[49].mxu1  ;;  %v13770_v13 = vpop.f32.mrb[2].mxu0 }
 0x7a3   :  { %v16427_v33 = vpack.c.bf16 %v16390_v17, %v16387_v1  ;;  %v19886_v29 = vadd.f32 %v19885_v44, %v19884_v54  ;;  %v19939_v28 = vadd.f32 %v13770_v13, %v26133_v20  ;;  %v19887_v47 = vpop.f32.mrb[50].mxu1  ;;  %v13772_v18 = vpop.f32.mrb[3].mxu0  ;;  %v16367_v63 = vmax.f32 %v19937_v35, 0.0 }
 0x7a4   :  { %v19940_v12 = vadd.f32 %v13772_v18, %v26135_v57  ;;  %v19888_v59 = vpop.f32.mrb[51].mxu1  ;;  %v16368_v41 = vmax.f32 %v19938_v3, 0.0 }
 0x7a5   :  { %v16337_v61 = vadd.f32 %v19886_v29, %v26097_v9  ;;  %v16370_v22 = vmax.f32 %v19939_v28, 0.0  ;;  %v19889_v55 = vadd.f32 %v19888_v59, %v19887_v47  ;;  %19924 = vmatpush3.bf16.xpose.msra.mxu1 %v16427_v33 }
 0x7a6   :  { %v16371_v25 = vmax.f32 %v19940_v12, 0.0  ;;  %19925 = vmatprep.subr.bf16.mxu1 %v23202_v24 }
 0x7a7   :  { %v16416_v27 = vpack.c.bf16 %v16370_v22, %v16367_v63  ;;  %v16340_v48 = vadd.f32 %v19889_v55, %v26102_v51  ;;  %v16393_v43 = vmax.f32 %v16337_v61, 0.0 }
 0x7a8   :  { %v16417_v23 = vpack.c.bf16 %v16371_v25, %v16368_v41  ;;  %v13776_v2 = vpop.f32.mrb[4].mxu0 }
 0x7a9   :  { %v16396_v5 = vmax.f32 %v16340_v48, 0.0  ;;  %v19941_v8 = vadd.f32 %v13776_v2, %v26133_v20  ;;  %v19890_v38 = vpop.f32.mrb[52].mxu1  ;;  %v13778_v37 = vpop.f32.mrb[5].mxu0 }
 0x7aa   :  { %v19942_v9 = vadd.f32 %v13778_v37, %v26135_v57  ;;  %v19891_v53 = vpop.f32.mrb[53].mxu1  ;;  %v13780_v32 = vpop.f32.mrb[6].mxu0  ;;  %16469 = vmatprep.subr.bf16.mxu0 %v16417_v23 }
 0x7ab   :  { %v16430_v45 = vpack.c.bf16 %v16396_v5, %v16393_v43  ;;  %v19892_v34 = vadd.f32 %v19891_v53, %v19890_v38  ;;  %v19943_v26 = vadd.f32 %v13780_v32, %v26133_v20  ;;  %v19893_v36 = vpop.f32.mrb[54].mxu1  ;;  %v13782_v15 = vpop.f32.mrb[7].mxu0  ;;  %16470 = vmatpush1.bf16.xpose.msra.mxu0 %v16416_v27  ;;  %v16373_v42 = vmax.f32 %v19941_v8, 0.0 }
 0x7ac   :  { %v19944_v51 = vadd.f32 %v13782_v15, %v26135_v57  ;;  %v19894_v10 = vpop.f32.mrb[55].mxu1  ;;  %v16374_v6 = vmax.f32 %v19942_v9, 0.0 }
 0x7ad   :  { %v16345_v4 = vadd.f32 %v19892_v34, %v26105_v58  ;;  %v16376_v60 = vmax.f32 %v19943_v26, 0.0  ;;  %v19895_v30 = vadd.f32 %v19894_v10, %v19893_v36  ;;  %19926 = vmatpush3.bf16.xpose.msra.mxu1 %v16430_v45 }
 0x7ae   :  { %v16377_v16 = vmax.f32 %v19944_v51, 0.0  ;;  %19927 = vmatprep.subr.bf16.mxu1 %v23202_v24 }
 0x7af   :  { %v16419_v0 = vpack.c.bf16 %v16376_v60, %v16373_v42  ;;  %v16348_v14 = vadd.f32 %v19895_v30, %v26108_v52  ;;  %v16399_v40 = vmax.f32 %v16345_v4, 0.0 }
 0x7b0   :  { %v16420_v39 = vpack.c.bf16 %v16377_v16, %v16374_v6  ;;  %v13786_v49 = vpop.f32.mrb[8].mxu0 }
 0x7b1   :  { %v16402_v7 = vmax.f32 %v16348_v14, 0.0  ;;  %v19945_v50 = vadd.f32 %v13786_v49, %v26133_v20  ;;  %v19896_v11 = vpop.f32.mrb[56].mxu1  ;;  %v13788_v1 = vpop.f32.mrb[9].mxu0 }
 0x7b2   :  { %v19946_v58 = vadd.f32 %v13788_v1, %v26135_v57  ;;  %v19897_v17 = vpop.f32.mrb[57].mxu1  ;;  %v13790_v35 = vpop.f32.mrb[10].mxu0  ;;  %16471 = vmatprep.subr.bf16.mxu0 %v16420_v39 }
 0x7b3   :  { %v16433_v54 = vpack.c.bf16 %v16402_v7, %v16399_v40  ;;  %v19898_v31 = vadd.f32 %v19897_v17, %v19896_v11  ;;  %v19947_v3 = vadd.f32 %v13790_v35, %v26133_v20  ;;  %v19899_v44 = vpop.f32.mrb[58].mxu1  ;;  %v13792_v13 = vpop.f32.mrb[11].mxu0  ;;  %16472 = vmatpush1.bf16.xpose.msra.mxu0 %v16419_v0  ;;  %v16379_v29 = vmax.f32 %v19945_v50, 0.0 }
 0x7b4   :  { %v19948_v52 = vadd.f32 %v13792_v13, %v26135_v57  ;;  %v19900_v33 = vpop.f32.mrb[59].mxu1  ;;  %v16380_v12 = vmax.f32 %v19946_v58, 0.0  ;;  %v16465_v17 = vcombine.high %v26099_v62, %v26099_v62 }
 0x7b5   :  { %v16353_v28 = vadd.f32 %v19898_v31, %v26111_v21  ;;  %v16382_v47 = vmax.f32 %v19947_v3, 0.0  ;;  %v19901_v18 = vadd.f32 %v19900_v33, %v19899_v44  ;;  %19928 = vmatpush3.bf16.xpose.msra.mxu1 %v16433_v54 }
 0x7b6   :  { %v16383_v59 = vmax.f32 %v19948_v52, 0.0  ;;  %19929 = vmatprep.subr.bf16.mxu1 %v23202_v24 }
 0x7b7   :  { %v16422_v63 = vpack.c.bf16 %v16382_v47, %v16379_v29  ;;  %v16356_v61 = vadd.f32 %v19901_v18, %v26114_v56  ;;  %v16405_v41 = vmax.f32 %v16353_v28, 0.0 }
 0x7b8   :  { %v16423_v22 = vpack.c.bf16 %v16383_v59, %v16380_v12  ;;  %v13796_v55 = vpop.f32.mrb[12].mxu0 }
 0x7b9   :  { %v16408_v25 = vmax.f32 %v16356_v61, 0.0  ;;  %v19949_v27 = vadd.f32 %v13796_v55, %v26133_v20  ;;  %v19902_v48 = vpop.f32.mrb[60].mxu1  ;;  %v13798_v23 = vpop.f32.mrb[13].mxu0 }
 0x7ba   :  { %v19950_v21 = vadd.f32 %v13798_v23, %v26135_v57  ;;  %v19903_v2 = vpop.f32.mrb[61].mxu1  ;;  %v13800_v43 = vpop.f32.mrb[14].mxu0  ;;  %16473 = vmatprep.subr.bf16.mxu0 %v16423_v22 }
 0x7bb   :  { %v16436_v5 = vpack.c.bf16 %v16408_v25, %v16405_v41  ;;  %v19904_v8 = vadd.f32 %v19903_v2, %v19902_v48  ;;  %v19951_v38 = vadd.f32 %v13800_v43, %v26133_v20  ;;  %v19905_v37 = vpop.f32.mrb[62].mxu1  ;;  %v13802_v9 = vpop.f32.mrb[15].mxu0  ;;  %16474 = vmatpush1.bf16.xpose.msra.mxu0 %v16422_v63  ;;  %v16385_v32 = vmax.f32 %v19949_v27, 0.0 }
 0x7bc   :  { %v19952_v56 = vadd.f32 %v13802_v9, %v26135_v57  ;;  %v19906_v53 = vpop.f32.mrb[63].mxu1  ;;  %v16386_v36 = vmax.f32 %v19950_v21, 0.0 }
 0x7bd   :  { %v16361_v45 = vadd.f32 %v19904_v8, %v26117_v19  ;;  %v16388_v34 = vmax.f32 %v19951_v38, 0.0  ;;  %v19907_v26 = vadd.f32 %v19906_v53, %v19905_v37  ;;  %19930 = vmatpush3.bf16.xpose.msra.mxu1 %v16436_v5 }
 0x7be   :  { %v16389_v15 = vmax.f32 %v19952_v56, 0.0  ;;  %19931 = vmatprep.subr.bf16.mxu1 %v23202_v24 }
 0x7bf   :  { %v16425_v51 = vpack.c.bf16 %v16388_v34, %v16385_v32  ;;  %v16364_v10 = vadd.f32 %v19907_v26, %v26120_v46  ;;  %v16411_v60 = vmax.f32 %v16361_v45, 0.0 }
 0x7c0   :  { %v16426_v42 = vpack.c.bf16 %v16389_v15, %v16386_v36  ;;  %v13806_v4 = vpop.f32.mrb[16].mxu0 }
 0x7c1   :  { %v16414_v30 = vmax.f32 %v16364_v10, 0.0  ;;  %v19953_v6 = vadd.f32 %v13806_v4, %v26133_v20  ;;  %v13808_v16 = vpop.f32.mrb[17].mxu0 }
 0x7c2   :  { %v19954_v0 = vadd.f32 %v13808_v16, %v26135_v57  ;;  %v13810_v19 = vpop.f32.mrb[18].mxu0  ;;  %16475 = vmatprep.subr.bf16.mxu0 %v16426_v42 }
 0x7c3   :  { %v16439_v14 = vpack.c.bf16 %v16414_v30, %v16411_v60  ;;  %v19955_v39 = vadd.f32 %v13810_v19, %v26133_v20  ;;  %v13812_v49 = vpop.f32.mrb[19].mxu0  ;;  %16476 = vmatpush1.bf16.xpose.msra.mxu0 %v16425_v51  ;;  %v16391_v40 = vmax.f32 %v19953_v6, 0.0 }
 0x7c4   :  { %v19956_v24 = vadd.f32 %v13812_v49, %v26135_v57  ;;  %v16392_v7 = vmax.f32 %v19954_v0, 0.0 }
 0x7c5   :  { %v16394_v46 = vmax.f32 %v19955_v39, 0.0  ;;  %19932 = vmatpush3.bf16.xpose.msra.mxu1 %v16439_v14 }
 0x7c6   :  { %v16395_v50 = vmax.f32 %v19956_v24, 0.0 }
 0x7c7   :  { %v16428_v11 = vpack.c.bf16 %v16394_v46, %v16391_v40 }
 0x7c8   :  { %v16429_v1 = vpack.c.bf16 %v16395_v50, %v16392_v7  ;;  %v13816_v58 = vpop.f32.mrb[20].mxu0 }
 0x7c9   :  { %v19957_v35 = vadd.f32 %v13816_v58, %v26133_v20  ;;  %v13818_v54 = vpop.f32.mrb[21].mxu0 }
 0x7ca   :  { %v19958_v31 = vadd.f32 %v13818_v54, %v26135_v57  ;;  %v13820_v3 = vpop.f32.mrb[22].mxu0  ;;  %16477 = vmatprep.subr.bf16.mxu0 %v16429_v1 }
 0x7cb   :  { %v19959_v44 = vadd.f32 %v13820_v3, %v26133_v20  ;;  %v13822_v13 = vpop.f32.mrb[23].mxu0  ;;  %16478 = vmatpush1.bf16.xpose.msra.mxu0 %v16428_v11  ;;  %v16397_v33 = vmax.f32 %v19957_v35, 0.0 }
 0x7cc   :  { %v19960_v52 = vadd.f32 %v13822_v13, %v26135_v57  ;;  %19934 = vmatmul.mubr.bf16.vlgmr.msra.gmra.mrb[64].mxu1 %v16465_v17  ;;  %v16398_v28 = vmax.f32 %v19958_v31, 0.0 }
 0x7cd   :  { %v16400_v29 = vmax.f32 %v19959_v44, 0.0 }
 0x7ce   :  { %v16401_v47 = vmax.f32 %v19960_v52, 0.0 }
 0x7cf   :  { %v16431_v18 = vpack.c.bf16 %v16400_v29, %v16397_v33 }
 0x7d0   :  { %v16432_v12 = vpack.c.bf16 %v16401_v47, %v16398_v28  ;;  %v13826_v59 = vpop.f32.mrb[24].mxu0 }
 0x7d1   :  { %v19961_v63 = vadd.f32 %v13826_v59, %v26133_v20  ;;  %v13828_v61 = vpop.f32.mrb[25].mxu0 }
 0x7d2   :  { %v19962_v22 = vadd.f32 %v13828_v61, %v26135_v57  ;;  %v13830_v55 = vpop.f32.mrb[26].mxu0  ;;  %16479 = vmatprep.subr.bf16.mxu0 %v16432_v12 }
 0x7d3   :  { %v19963_v41 = vadd.f32 %v13830_v55, %v26133_v20  ;;  %v13832_v25 = vpop.f32.mrb[27].mxu0  ;;  %16480 = vmatpush1.bf16.xpose.msra.mxu0 %v16431_v18  ;;  %v16403_v48 = vmax.f32 %v19961_v63, 0.0 }
 0x7d4   :  { %v19964_v27 = vadd.f32 %v13832_v25, %v26135_v57  ;;  %v16404_v21 = vmax.f32 %v19962_v22, 0.0 }
 0x7d5   :  { %v16406_v23 = vmax.f32 %v19963_v41, 0.0 }
 0x7d6   :  { %v16407_v2 = vmax.f32 %v19964_v27, 0.0 }
 0x7d7   :  { %v16434_v43 = vpack.c.bf16 %v16406_v23, %v16403_v48 }
 0x7d8   :  { %v16435_v5 = vpack.c.bf16 %v16407_v2, %v16404_v21  ;;  %v13836_v8 = vpop.f32.mrb[28].mxu0 }
 0x7d9   :  { %v19965_v38 = vadd.f32 %v13836_v8, %v26133_v20  ;;  %v13838_v37 = vpop.f32.mrb[29].mxu0 }
 0x7da   :  { %v19966_v9 = vadd.f32 %v13838_v37, %v26135_v57  ;;  %v13840_v56 = vpop.f32.mrb[30].mxu0  ;;  %16481 = vmatprep.subr.bf16.mxu0 %v16435_v5 }
 0x7db   :  { %v19967_v53 = vadd.f32 %v13840_v56, %v26133_v20  ;;  %v13842_v32 = vpop.f32.mrb[31].mxu0  ;;  %16482 = vmatpush1.bf16.xpose.msra.mxu0 %v16434_v43  ;;  %v16409_v34 = vmax.f32 %v19965_v38, 0.0  ;;  %v16441_v20 = vstv %s26205_s4  ;;  %s23164_s4 = scalar_lea.vmem %s16568_s20, 32 }
 0x7dc   :  { %v19968_v45 = vadd.f32 %v13842_v32, %v26135_v57  ;;  %v16410_v36 = vmax.f32 %v19966_v9, 0.0  ;;  %p23165_p4 = scmp.ne.s32.totalorder %s16568_s20, %s23164_s4  ;;  %p23170_p6 = scmp.lt.s32.totalorder %s23164_s4, %s23164_s4 }
 0x7dd   :  { %v16412_v26 = vmax.f32 %v19967_v53, 0.0 }
 0x7de   :  { %v16413_v15 = vmax.f32 %v19968_v45, 0.0  ;;  %p23171_p7 = por %p23170_p6, %p23169_p5 }
 0x7df   :  { %v16437_v51 = vpack.c.bf16 %v16412_v26, %v16409_v34 }
 0x7e0   :  { %v16438_v10 = vpack.c.bf16 %v16413_v15, %v16410_v36  ;;  %p23172_p8 = pnand %p23171_p7, %p23165_p4 }
 0x7e2   :  { %16483 = vmatprep.subr.bf16.mxu0 %v16438_v10 }
 0x7e3   :  { %16484 = vmatpush1.bf16.xpose.msra.mxu0 %v16437_v51 }
 0x7ea   :  { %16502 = vmatmul.mubr.bf16.vlgmr.msra.gmra.mrb[32].mxu0 %v26099_v62 }
 0x89f   :  { %v16543_v42 = vpop.f32.mrb[64].mxu1 }
 0x8a0   :  { %v19935_v4 = vpop.f32.mrb[65].mxu1 }
 0x8a1   :  { %v16546_v60 = vpop.f32.mrb[66].mxu1 }
 0x8a2   :  { %v19936_v30 = vpop.f32.mrb[67].mxu1 }
 0x8bd   :  { %v16503_v6 = vpop.f32.mrb[32].mxu0 }
 0x8be   :  { %v16504_v57 = vadd.f32 %v16503_v6, %v16441_v20  ;;  %v16505_v16 = vpop.f32.mrb[33].mxu0 }
 0x8bf   :  { %v16506_v0 = vpop.f32.mrb[34].mxu0 }
 0x8c0   :  { %v16544_v19 = vadd.f32 %v16543_v42, %v16504_v57  ;;  %v16507_v14 = vpop.f32.mrb[35].mxu0 }
 0x8c2   :  { %v18243_v39 = vmul.f32 -1.442695, %v16544_v19  ;;  %v16556_v62 = vrot.slane %v16544_v19, 7 }
 0x8c4   :  { %23071 = vpow2.f32 %v18243_v39 }
 0x8ce   :  { %v23072_v49 = vpop.eup %23071 }
 0x8cf   :  { %v16552_v24 = vadd.f32 1.0, %v23072_v49 }
 0x8d1   :  { %23073 = vrcp.f32 %v16552_v24 }
 0x8db   :  { %v23074_v40 = vpop.eup %23073 }
 0x8dc   :  { %v16559_v46 = vsel %vm16558_vm1, %v23074_v40, %v16556_v62 }
 0x8dd   :  { %16560 = vst [vmem:[#allocation11] sm:$0x3] %v16559_v46 }
 0x8de   :  { %23175 = shalt.err (!%p23172_p8)
}
 0x8df   :  { %s23176_s23 = scalar_lea.hbm %s26206_s5, 32 }
 0x8e0   :  { %p23177_p9 = scmp.ne.s32.totalorder %s26206_s5, %s23176_s23  ;;  %p23180_p10 = scmp.lt.u32.totalorder %s23176_s23, %s26206_s5 }
 0x8e2   :  { %p23182_p11 = pnand %p23180_p10, %p23177_p9 }
 0x8e4   :  { %23185 = shalt.err (!%p23182_p11)
}
 0x8e5   :  { %16570 = dma.vmem_to_hbm [thread:$0]  %s16568_s20, 32, %s26206_s5, [#allocation5]  }
 0x8e6   :  { %23192 = dma.done.wait [#allocation5], 32  }
 0x8e7   :  { %23193 = vsyncadd [#allocation5], 4294967264 }
 0x8e8   :  { %16574 = vsyncpa [#allocation4], 1 }
 0x8e9   :  { %16575 = vsyncpa [#allocation7], 1 }
 0x8ea   :  { %16576 = vsyncpa [#allocation10], 1 }
 0x8eb   :  { %16577 = vsyncpa [#allocation5], 1 }

</bundles_post_ra>
